<compile_context>
chip_gen: v7x
topology: tpu7x:2x2x1
jax: 0.10.0
libtpu: 0.0.40
codegen_flags: <defaults>
</compile_context>

<pallas_src>
import functools

import jax
import jax.numpy as jnp
from jax.experimental import pallas as pl
from jax.experimental.pallas import tpu as pltpu


# ------------------------------ in-kernel helpers ----------------------------

def _dot_t(a, b):
    """a @ b.T with f32 accumulation (operands already in MXU dtype)."""
    return jax.lax.dot_general(a, b, (((1,), (1,)), ((), ())),
                               preferred_element_type=jnp.float32)


def _mm_t(a, w):
    """a @ w.T on the MXU: bf16 operands, f32 accumulation (PyTorch Linear)."""
    return _dot_t(a.astype(jnp.bfloat16), w.astype(jnp.bfloat16))


def _mm(a, b):
    """a @ b on the MXU: bf16 operands, f32 accumulation."""
    return jnp.dot(a.astype(jnp.bfloat16), b.astype(jnp.bfloat16),
                   preferred_element_type=jnp.float32)


def _ln(x, g, b, eps=1e-5):
    """Row-wise LayerNorm kept in f32 (v5e has no bf16 VPU/EUP path)."""
    mean = jnp.mean(x, axis=-1, keepdims=True)
    var = jnp.mean((x - mean) * (x - mean), axis=-1, keepdims=True)
    return (x - mean) * jax.lax.rsqrt(var + eps) * g + b


def _row_tile(n, target=256):        # sublane-dim tile (multiple of 8)
    return n if n <= target else target


def _lane_tile(n, target=256):       # lane-dim tile (multiple of 128)
    return n if n <= target else target


_PARALLEL = pltpu.CompilerParams(dimension_semantics=("parallel",))


# ---------------------------------- kernels ----------------------------------

def _hop_kernel(a_ref, x_ref, acc_ref, y_ref, acc_out_ref):
    # One LightGCN hop for a row-tile of A:  y = A[i] @ x ;  acc_out = acc + y.
    # TODO(synk): LightGCNAgg source not provided; standard LightGCN (A @ x) assumed.
    y = _mm(a_ref[...], x_ref[...])
    y_ref[...] = y
    acc_out_ref[...] = acc_ref[...] + y


def _hop_ln_kernel(a_ref, x_ref, acc_ref, g_ref, b_ref, o_ref):
    # Final hop fused with the hop-sum and the LN1 epilogue.
    y = _mm(a_ref[...], x_ref[...])
    o_ref[...] = _ln(acc_ref[...] + y, g_ref[...], b_ref[...])


def _trans_pop_kernel(z_ref, w1_ref, b1_ref, w2_ref, b2_ref,
                      ax_ref, w0w_ref, w0b_ref, g_ref, beta_ref, o_ref,
                      *, apply_ln):
    # Fused: anchors_emb = w0(anchor_x); p = softmax(W2 @ leaky(W1 @ z));
    #        o = p @ anchors_emb (+ optional LN3 epilogue).
    # The narrow (tm, K) softmax never leaves VMEM (no masked lane stores).
    anchors_emb = _mm_t(ax_ref[...], w0w_ref[...]) + w0b_ref[...]          # (K, H)
    h1 = _mm_t(z_ref[...], w1_ref[...]) + b1_ref[...]
    h1 = jnp.where(h1 >= 0.0, h1, 0.01 * h1)                               # LeakyReLU(0.01)
    logits = _mm_t(h1, w2_ref[...]) + b2_ref[...]                          # (tm, K)
    m = jnp.max(logits, axis=-1, keepdims=True)
    e = jnp.exp(logits - m)
    p = e / jnp.sum(e, axis=-1, keepdims=True)
    y = _mm(p, anchors_emb)                                                # (tm, H)
    if apply_ln:
        y = _ln(y, g_ref[...], beta_ref[...])
    o_ref[...] = y


def _gru2_ln_kernel(x_ref, wih_ref, bih_ref, whh_ref, bhh_ref, lens_ref,
                    g_ref, beta_ref, ht_ref, *, seq_len):
    # Both GRU passes (inp_emb & inp_pop stacked along batch -> 2B rows) in one
    # kernel.  The input projection for every timestep/gate is hoisted out of
    # the recurrence as a single (2B*S, 3H) matmul; the serial loop only runs
    # one fused (2B,H)@(H,3H) recurrent matmul per step.  Emits only the hidden
    # state at t = lengths-1, LayerNormed with per-row (LN2 / LN4) params.
    M2, S, Hd = x_ref.shape
    x_flat = x_ref[...].reshape(M2 * S, Hd)
    xp = _mm_t(x_flat, wih_ref[...]) + bih_ref[...]            # (2B*S, 3H)
    xp = xp.reshape(M2, S, 3 * Hd)

    whh_bf = whh_ref[...].astype(jnp.bfloat16)                 # loaded/cast once
    bhh = bhh_ref[...]                                         # (1, 3H)
    lens = lens_ref[...]                                       # (2B, 1) int32

    h = jnp.zeros((M2, Hd), jnp.float32)
    ht = jnp.zeros((M2, Hd), jnp.float32)
    # TODO(synk): for long sequences (S >~ 16) switch to lax.fori_loop + a VMEM
    # scratch for xp; static unroll is fine at this S and keeps indices static.
    for t in range(seq_len):
        xpt = xp[:, t, :]                                      # (2B, 3H)
        hp = _dot_t(h.astype(jnp.bfloat16), whh_bf) + bhh      # fused r/z/n matmul
        r = jax.nn.sigmoid(xpt[:, 0:Hd] + hp[:, 0:Hd])
        z = jax.nn.sigmoid(xpt[:, Hd:2 * Hd] + hp[:, Hd:2 * Hd])
        n = jnp.tanh(xpt[:, 2 * Hd:] + r * hp[:, 2 * Hd:])
        h = (1.0 - z) * n + z * h
        ht = jnp.where(lens == (t + 1), h, ht)                 # last valid step

    ht_ref[...] = _ln(ht, g_ref[...], beta_ref[...])


def _scores_kernel(ht_ref, htp_ref, iv_ref, ipv_ref, a_ref, s_ref, s1_ref, s2_ref):
    # Item-tiled: scores1 = ht @ iv.T, scores2 = ht_pop @ ipv.T,
    #             scores  = sigmoid(a1)*scores1 + sigmoid(a2)*scores2.
    s1 = _mm_t(ht_ref[...], iv_ref[...])
    s2 = _mm_t(htp_ref[...], ipv_ref[...])
    sig = jax.nn.sigmoid(a_ref[...])                           # (1, 2)
    s_ref[...] = sig[:, 0:1] * s1 + sig[:, 1:2] * s2
    s1_ref[...] = s1
    s2_ref[...] = s2


# ------------------------------ kernel wrappers -------------------------------

def lightgcn_propagate_ln(A_bf16, x0, gamma, beta, hop, row_tile=256):
    """LightGCN hop propagation + hop-sum + LN1, row-tiled over A (parallel grid)."""
    assert hop >= 1
    N1, Hd = x0.shape
    tm = _row_tile(N1, row_tile)
    grid = (pl.cdiv(N1, tm),)
    a_spec = pl.BlockSpec((tm, N1), lambda i: (i, 0))          # streamed A row-tiles
    x_spec = pl.BlockSpec((N1, Hd), lambda i: (0, 0))          # full x resident
    row_spec = pl.BlockSpec((tm, Hd), lambda i: (i, 0))
    vec_spec = pl.BlockSpec((1, Hd), lambda i: (0, 0))

    x = x0.astype(jnp.float32)
    acc = x
    for _ in range(hop - 1):
        x, acc = pl.pallas_call(
            _hop_kernel,
            out_shape=(jax.ShapeDtypeStruct((N1, Hd), jnp.float32),
                       jax.ShapeDtypeStruct((N1, Hd), jnp.float32)),
            grid=grid,
            in_specs=[a_spec, x_spec, row_spec],
            out_specs=(row_spec, row_spec),
            compiler_params=_PARALLEL,
        )(A_bf16, x, acc)
    return pl.pallas_call(
        _hop_ln_kernel,
        out_shape=jax.ShapeDtypeStruct((N1, Hd), jnp.float32),
        grid=grid,
        in_specs=[a_spec, x_spec, row_spec, vec_spec, vec_spec],
        out_specs=row_spec,
        compiler_params=_PARALLEL,
    )(A_bf16, x, acc, gamma.reshape(1, Hd), beta.reshape(1, Hd))


def trans_softmax_pop(z, params, anchor_x, gamma=None, beta=None, row_tile=256):
    """Fused trans + softmax + w0(anchors) + matmul (+ optional LN3), row-tiled."""
    M, Hd = z.shape
    K = params["trans_w2"].shape[0]
    apply_ln = gamma is not None
    if not apply_ln:
        gamma = jnp.ones((Hd,), jnp.float32)
        beta = jnp.zeros((Hd,), jnp.float32)
    tm = _row_tile(M, row_tile)
    grid = (pl.cdiv(M, tm),)
    const2 = lambda i: (0, 0)
    kern = functools.partial(_trans_pop_kernel, apply_ln=apply_ln)
    return pl.pallas_call(
        kern,
        out_shape=jax.ShapeDtypeStruct((M, Hd), jnp.float32),
        grid=grid,
        in_specs=[pl.BlockSpec((tm, Hd), lambda i: (i, 0)),
                  pl.BlockSpec((Hd, Hd), const2),              # trans W1
                  pl.BlockSpec((1, Hd), const2),               # trans b1
                  pl.BlockSpec((K, Hd), const2),               # trans W2
                  pl.BlockSpec((1, K), const2),                # trans b2
                  pl.BlockSpec((K, Hd), const2),               # item_vectors[anchors]
                  pl.BlockSpec((Hd, Hd), const2),              # w0 weight
                  pl.BlockSpec((1, Hd), const2),               # w0 bias
                  pl.BlockSpec((1, Hd), const2),               # LN3 gamma (maybe unused)
                  pl.BlockSpec((1, Hd), const2)],              # LN3 beta  (maybe unused)
        out_specs=pl.BlockSpec((tm, Hd), lambda i: (i, 0)),
        compiler_params=_PARALLEL,
    )(z.astype(jnp.float32),
      params["trans_w1"], params["trans_b1"].reshape(1, Hd),
      params["trans_w2"], params["trans_b2"].reshape(1, K),
      anchor_x.astype(jnp.float32),
      params["w0_w"], params["w0_b"].reshape(1, Hd),
      gamma.reshape(1, Hd), beta.reshape(1, Hd))


def gru2_ln_last(x2, w_ih, b_ih, w_hh, b_hh, lens2, g_rows, b_rows):
    """One GRU kernel over the (2B, S, H) stacked batch; returns LN(h[len-1])."""
    M2, S, Hd = x2.shape
    kern = functools.partial(_gru2_ln_kernel, seq_len=S)
    const2 = lambda i: (0, 0)
    return pl.pallas_call(
        kern,
        out_shape=jax.ShapeDtypeStruct((M2, Hd), jnp.float32),
        grid=(1,),
        in_specs=[pl.BlockSpec((M2, S, Hd), lambda i: (0, 0, 0)),
                  pl.BlockSpec((3 * Hd, Hd), const2),
                  pl.BlockSpec((1, 3 * Hd), const2),
                  pl.BlockSpec((3 * Hd, Hd), const2),
                  pl.BlockSpec((1, 3 * Hd), const2),
                  pl.BlockSpec((M2, 1), const2),
                  pl.BlockSpec((M2, Hd), const2),
                  pl.BlockSpec((M2, Hd), const2)],
        out_specs=pl.BlockSpec((M2, Hd), const2),
        compiler_params=pltpu.CompilerParams(dimension_semantics=("arbitrary",)),
    )(x2.astype(jnp.float32), w_ih, b_ih.reshape(1, 3 * Hd),
      w_hh, b_hh.reshape(1, 3 * Hd),
      lens2.reshape(M2, 1).astype(jnp.int32), g_rows, b_rows)


def fused_scores(ht, ht_pop, item_vecs, item_pop_vecs, a12, item_tile=256):
    """Item-tiled fused scores1 / scores2 / sigmoid(a1,a2) blend."""
    B, Hd = ht.shape
    N1 = item_vecs.shape[0]
    tn = _lane_tile(N1, item_tile)
    grid = (pl.cdiv(N1, tn),)
    const2 = lambda i: (0, 0)
    item_spec = pl.BlockSpec((tn, Hd), lambda i: (i, 0))
    out_spec = pl.BlockSpec((B, tn), lambda i: (0, i))
    sds = jax.ShapeDtypeStruct((B, N1), jnp.float32)
    return pl.pallas_call(
        _scores_kernel,
        out_shape=(sds, sds, sds),
        grid=grid,
        in_specs=[pl.BlockSpec((B, Hd), const2),
                  pl.BlockSpec((B, Hd), const2),
                  item_spec, item_spec,
                  pl.BlockSpec((1, 2), const2)],
        out_specs=(out_spec, out_spec, out_spec),
        compiler_params=_PARALLEL,
    )(ht, ht_pop, item_vecs.astype(jnp.bfloat16),
      item_pop_vecs.astype(jnp.bfloat16), a12.reshape(1, 2).astype(jnp.float32))


# -------------------------------- model forward -------------------------------

def lightgcn_lc_forward(params, A, anchors, inp_sess, lengths, hop):
    Hd = params["item_emb"].shape[1]
    B, S = inp_sess.shape

    A_bf16 = A.astype(jnp.bfloat16)                 # halve HBM/DMA bytes for A
    item_vecs = lightgcn_propagate_ln(A_bf16, params["item_emb"][1:],
                                      params["ln1_g"], params["ln1_b"], hop)   # (N-1, H)
    item_vectors = jnp.concatenate(
        [jnp.zeros((1, Hd), jnp.float32), item_vecs], axis=0)                  # (n_items, H)

    # TODO(synk): nn.Dropout(0.2) treated as identity (inference mode).
    inp_emb = item_vectors[inp_sess]                       # (B, S, H) gather (XLA glue)
    anchor_x = item_vectors[anchors]                       # (K, H)

    # Session path: fused trans+softmax+w0(anchors)+matmul (softmax stays in VMEM).
    inp_pop = trans_softmax_pop(inp_emb.reshape(B * S, Hd), params, anchor_x)
    inp_pop = inp_pop.reshape(B, S, Hd)

    # Item-popularity path: same fused kernel with LN3 epilogue.
    item_pop_vecs = trans_softmax_pop(item_vecs, params, anchor_x,
                                      gamma=params["ln3_g"], beta=params["ln3_b"])

    # Both GRU passes fused into one kernel (shared weights, stacked 2B batch).
    x2 = jnp.concatenate([inp_emb, inp_pop], axis=0)                           # (2B, S, H)
    lens2 = jnp.concatenate([lengths, lengths], axis=0)
    g_rows = jnp.concatenate([jnp.broadcast_to(params["ln2_g"], (B, Hd)),
                              jnp.broadcast_to(params["ln4_g"], (B, Hd))], axis=0)
    b_rows = jnp.concatenate([jnp.broadcast_to(params["ln2_b"], (B, Hd)),
                              jnp.broadcast_to(params["ln4_b"], (B, Hd))], axis=0)
    ht2 = gru2_ln_last(x2, params["gru_w_ih"], params["gru_b_ih"],
                       params["gru_w_hh"], params["gru_b_hh"], lens2, g_rows, b_rows)
    ht, ht_pop = ht2[:B], ht2[B:]

    # Item-tiled fused scores1 + scores2 + sigmoid(a1/a2) blend.
    scores, scores1, scores2 = fused_scores(ht, ht_pop, item_vecs,
                                            item_pop_vecs, params["a12"])
    return scores, scores1, scores2


# -------------------------------- parameter init ------------------------------

def xavier_normal(key, shape):
    fan_out, fan_in = shape
    std = (2.0 / (fan_in + fan_out)) ** 0.5
    return std * jax.random.normal(key, shape, jnp.float32)


def init_params(key, n_items, hidden, K):
    ks = jax.random.split(key, 12)
    emb = xavier_normal(ks[0], (n_items, hidden))
    emb = emb.at[0].set(0.0)                      # padding_idx=0
    u = 1.0 / (hidden ** 0.5)
    return {
        "item_emb": emb,
        "gru_w_ih": jax.random.uniform(ks[1], (3 * hidden, hidden), jnp.float32, -u, u),
        "gru_w_hh": jax.random.uniform(ks[2], (3 * hidden, hidden), jnp.float32, -u, u),
        "gru_b_ih": jax.random.uniform(ks[3], (3 * hidden,), jnp.float32, -u, u),
        "gru_b_hh": jax.random.uniform(ks[4], (3 * hidden,), jnp.float32, -u, u),
        "trans_w1": xavier_normal(ks[5], (hidden, hidden)),
        "trans_b1": jnp.zeros((hidden,), jnp.float32),
        "trans_w2": xavier_normal(ks[6], (K, hidden)),
        "trans_b2": jnp.zeros((K,), jnp.float32),
        "w0_w": xavier_normal(ks[7], (hidden, hidden)),
        "w0_b": jnp.zeros((hidden,), jnp.float32),
        "a12": jax.random.normal(ks[8], (2,), jnp.float32),         # a1, a2
        "ln1_g": jnp.ones((hidden,), jnp.float32), "ln1_b": jnp.zeros((hidden,), jnp.float32),
        "ln2_g": jnp.ones((hidden,), jnp.float32), "ln2_b": jnp.zeros((hidden,), jnp.float32),
        "ln3_g": jnp.ones((hidden,), jnp.float32), "ln3_b": jnp.zeros((hidden,), jnp.float32),
        "ln4_g": jnp.ones((hidden,), jnp.float32), "ln4_b": jnp.zeros((hidden,), jnp.float32),
    }


# ------------------------------------ main -------------------------------------

if __name__ == "__main__":
    # N-1 = 512 items so the row/item-tiled (tile=256) parallel grids are exercised.
    n_items, hidden, K, hop = 513, 32, 8, 2
    B, S = 2, 8

    key = jax.random.PRNGKey(0)
    kp, ka, kan, ks, kl = jax.random.split(key, 5)

    params = init_params(kp, n_items, hidden, K)

    # Normalized adjacency over the (n_items - 1) real items.
    A_raw = jax.random.uniform(ka, (n_items - 1, n_items - 1), jnp.float32)
    A = A_raw / jnp.sum(A_raw, axis=1, keepdims=True)

    anchors = jax.random.randint(kan, (K,), 1, n_items)             # anchor item ids
    inp_sess = jax.random.randint(ks, (B, S), 1, n_items)           # session item ids
    lengths = jnp.array([S, S - 3], dtype=jnp.int32)

    fwd = jax.jit(functools.partial(lightgcn_lc_forward, hop=hop))
    scores, scores1, scores2 = fwd(params, A, anchors, inp_sess, lengths)
    jax.block_until_ready((scores, scores1, scores2))

    assert scores.shape == (B, n_items - 1)
    assert scores1.shape == (B, n_items - 1)
    assert scores2.shape == (B, n_items - 1)
    assert bool(jnp.all(jnp.isfinite(scores)))
    print("KERNEL_OK")
</pallas_src>

<mosaic_0001>
module attributes {stable_mosaic.version = 11 : i64} {
  func.func @_hop_kernel(%arg0: i32, %arg1: memref<256x512xbf16, #tpu.memory_space<vmem>>, %arg2: memref<512x32xf32, #tpu.memory_space<vmem>>, %arg3: memref<256x32xf32, #tpu.memory_space<vmem>>, %arg4: memref<256x32xf32, #tpu.memory_space<vmem>>, %arg5: memref<256x32xf32, #tpu.memory_space<vmem>>) attributes {dimension_semantics = [#tpu.dimension_semantics<parallel>], iteration_bounds = array<i64: 2>, scalar_prefetch = 0 : i64, scratch_operands = 0 : i64, tpu.core_type = #tpu.core_type<tc>, window_params = [{transform_indices = @transform_0, window_bounds = array<i64: 256, 512>}, {pipeline_mode = #tpu.pipeline_mode<synchronous>, transform_indices = @transform_1, window_bounds = array<i64: 512, 32>}, {transform_indices = @transform_2, window_bounds = array<i64: 256, 32>}, {transform_indices = @transform_3, window_bounds = array<i64: 256, 32>}, {transform_indices = @transform_4, window_bounds = array<i64: 256, 32>}]} {
    %c0 = arith.constant 0 : index
    %c0_0 = arith.constant 0 : index
    %0 = vector.load %arg1[%c0, %c0_0] : memref<256x512xbf16, #tpu.memory_space<vmem>>, vector<256x512xbf16>
    %c0_1 = arith.constant 0 : index
    %c0_2 = arith.constant 0 : index
    %1 = vector.load %arg2[%c0_1, %c0_2] : memref<512x32xf32, #tpu.memory_space<vmem>>, vector<512x32xf32>
    %2 = arith.truncf %1 : vector<512x32xf32> to vector<512x32xbf16>
    %cst = arith.constant dense<0.000000e+00> : vector<256x32xf32>
    %3 = tpu.matmul %0, %2, %cst {dimension_numbers = #tpu.dot_dimension_numbers<[1], [0], [0], [1], [0, 0, 1, 1], [], []>} : vector<256x512xbf16>, vector<512x32xbf16>, vector<256x32xf32> -> vector<256x32xf32>
    %c0_3 = arith.constant 0 : index
    %c0_4 = arith.constant 0 : index
    %4 = vector.load %arg4[%c0_3, %c0_4] : memref<256x32xf32, #tpu.memory_space<vmem>>, vector<256x32xf32>
    tpu.vector_store %arg4[%c0_3, %c0_4], %3 {strides = array<i32>} : memref<256x32xf32, #tpu.memory_space<vmem>>, vector<256x32xf32>,
    %c0_5 = arith.constant 0 : index
    %c0_6 = arith.constant 0 : index
    %5 = vector.load %arg3[%c0_5, %c0_6] : memref<256x32xf32, #tpu.memory_space<vmem>>, vector<256x32xf32>
    %6 = arith.addf %5, %3 : vector<256x32xf32>
    %c0_7 = arith.constant 0 : index
    %c0_8 = arith.constant 0 : index
    %7 = vector.load %arg5[%c0_7, %c0_8] : memref<256x32xf32, #tpu.memory_space<vmem>>, vector<256x32xf32>
    tpu.vector_store %arg5[%c0_7, %c0_8], %6 {strides = array<i32>} : memref<256x32xf32, #tpu.memory_space<vmem>>, vector<256x32xf32>,
    return
  }
  func.func @transform_0(%arg0: i32) -> (i32, i32) {
    %c0_i32 = arith.constant 0 : i32
    %c0_i32_0 = arith.constant 0 : i32
    return %arg0, %c0_i32 : i32, i32
  }
  func.func @transform_1(%arg0: i32) -> (i32, i32) {
    %c0_i32 = arith.constant 0 : i32
    %c0_i32_0 = arith.constant 0 : i32
    %c0_i32_1 = arith.constant 0 : i32
    return %c0_i32, %c0_i32_0 : i32, i32
  }
  func.func @transform_2(%arg0: i32) -> (i32, i32) {
    %c0_i32 = arith.constant 0 : i32
    %c0_i32_0 = arith.constant 0 : i32
    return %arg0, %c0_i32 : i32, i32
  }
  func.func @transform_3(%arg0: i32) -> (i32, i32) {
    %c0_i32 = arith.constant 0 : i32
    %c0_i32_0 = arith.constant 0 : i32
    return %arg0, %c0_i32 : i32, i32
  }
  func.func @transform_4(%arg0: i32) -> (i32, i32) {
    %c0_i32 = arith.constant 0 : i32
    %c0_i32_0 = arith.constant 0 : i32
    return %arg0, %c0_i32 : i32, i32
  }
}

module attributes {stable_mosaic.version = 11 : i64} {
  func.func @_hop_ln_kernel(%arg0: i32, %arg1: memref<256x512xbf16, #tpu.memory_space<vmem>>, %arg2: memref<512x32xf32, #tpu.memory_space<vmem>>, %arg3: memref<256x32xf32, #tpu.memory_space<vmem>>, %arg4: memref<1x32xf32, #tpu.memory_space<vmem>>, %arg5: memref<1x32xf32, #tpu.memory_space<vmem>>, %arg6: memref<256x32xf32, #tpu.memory_space<vmem>>) attributes {dimension_semantics = [#tpu.dimension_semantics<parallel>], iteration_bounds = array<i64: 2>, scalar_prefetch = 0 : i64, scratch_operands = 0 : i64, tpu.core_type = #tpu.core_type<tc>, window_params = [{transform_indices = @transform_0, window_bounds = array<i64: 256, 512>}, {pipeline_mode = #tpu.pipeline_mode<synchronous>, transform_indices = @transform_1, window_bounds = array<i64: 512, 32>}, {transform_indices = @transform_2, window_bounds = array<i64: 256, 32>}, {pipeline_mode = #tpu.pipeline_mode<synchronous>, transform_indices = @transform_3, window_bounds = array<i64: 1, 32>}, {pipeline_mode = #tpu.pipeline_mode<synchronous>, transform_indices = @transform_4, window_bounds = array<i64: 1, 32>}, {transform_indices = @transform_5, window_bounds = array<i64: 256, 32>}]} {
    %c0 = arith.constant 0 : index
    %c0_0 = arith.constant 0 : index
    %0 = vector.load %arg1[%c0, %c0_0] : memref<256x512xbf16, #tpu.memory_space<vmem>>, vector<256x512xbf16>
    %c0_1 = arith.constant 0 : index
    %c0_2 = arith.constant 0 : index
    %1 = vector.load %arg2[%c0_1, %c0_2] : memref<512x32xf32, #tpu.memory_space<vmem>>, vector<512x32xf32>
    %2 = arith.truncf %1 : vector<512x32xf32> to vector<512x32xbf16>
    %cst = arith.constant dense<0.000000e+00> : vector<256x32xf32>
    %3 = tpu.matmul %0, %2, %cst {dimension_numbers = #tpu.dot_dimension_numbers<[1], [0], [0], [1], [0, 0, 1, 1], [], []>} : vector<256x512xbf16>, vector<512x32xbf16>, vector<256x32xf32> -> vector<256x32xf32>
    %c0_3 = arith.constant 0 : index
    %c0_4 = arith.constant 0 : index
    %4 = vector.load %arg3[%c0_3, %c0_4] : memref<256x32xf32, #tpu.memory_space<vmem>>, vector<256x32xf32>
    %5 = arith.addf %4, %3 : vector<256x32xf32>
    %c0_5 = arith.constant 0 : index
    %c0_6 = arith.constant 0 : index
    %6 = vector.load %arg4[%c0_5, %c0_6] : memref<1x32xf32, #tpu.memory_space<vmem>>, vector<1x32xf32>
    %c0_7 = arith.constant 0 : index
    %c0_8 = arith.constant 0 : index
    %7 = vector.load %arg5[%c0_7, %c0_8] : memref<1x32xf32, #tpu.memory_space<vmem>>, vector<1x32xf32>
    %cst_9 = arith.constant dense<0.000000e+00> : vector<256xf32>
    %8 = vector.multi_reduction <add>, %5, %cst_9 [1] : vector<256x32xf32> to vector<256xf32>
    %9 = vector.shape_cast %8 : vector<256xf32> to vector<256x1xf32>
    %cst_10 = arith.constant 3.200000e+01 : f32
    %10 = vector.broadcast %cst_10 : f32 to vector<256x1xf32>
    %11 = arith.divf %9, %10 : vector<256x1xf32>
    %12 = vector.broadcast %11 : vector<256x1xf32> to vector<256x32xf32>
    %13 = arith.subf %5, %12 : vector<256x32xf32>
    %14 = vector.broadcast %11 : vector<256x1xf32> to vector<256x32xf32>
    %15 = arith.subf %5, %14 : vector<256x32xf32>
    %16 = arith.mulf %13, %15 : vector<256x32xf32>
    %cst_11 = arith.constant dense<0.000000e+00> : vector<256xf32>
    %17 = vector.multi_reduction <add>, %16, %cst_11 [1] : vector<256x32xf32> to vector<256xf32>
    %18 = vector.shape_cast %17 : vector<256xf32> to vector<256x1xf32>
    %cst_12 = arith.constant 3.200000e+01 : f32
    %19 = vector.broadcast %cst_12 : f32 to vector<256x1xf32>
    %20 = arith.divf %18, %19 : vector<256x1xf32>
    %21 = vector.broadcast %11 : vector<256x1xf32> to vector<256x32xf32>
    %22 = arith.subf %5, %21 : vector<256x32xf32>
    %cst_13 = arith.constant 9.99999974E-6 : f32
    %23 = vector.broadcast %cst_13 : f32 to vector<256x1xf32>
    %24 = arith.addf %20, %23 : vector<256x1xf32>
    %25 = math.rsqrt %24 : vector<256x1xf32>
    %26 = vector.broadcast %25 : vector<256x1xf32> to vector<256x32xf32>
    %27 = arith.mulf %22, %26 : vector<256x32xf32>
    %28 = vector.broadcast %6 : vector<1x32xf32> to vector<256x32xf32>
    %29 = arith.mulf %27, %28 : vector<256x32xf32>
    %30 = vector.broadcast %7 : vector<1x32xf32> to vector<256x32xf32>
    %31 = arith.addf %29, %30 : vector<256x32xf32>
    %c0_14 = arith.constant 0 : index
    %c0_15 = arith.constant 0 : index
    %32 = vector.load %arg6[%c0_14, %c0_15] : memref<256x32xf32, #tpu.memory_space<vmem>>, vector<256x32xf32>
    tpu.vector_store %arg6[%c0_14, %c0_15], %31 {strides = array<i32>} : memref<256x32xf32, #tpu.memory_space<vmem>>, vector<256x32xf32>,
    return
  }
  func.func @transform_0(%arg0: i32) -> (i32, i32) {
    %c0_i32 = arith.constant 0 : i32
    %c0_i32_0 = arith.constant 0 : i32
    return %arg0, %c0_i32 : i32, i32
  }
  func.func @transform_1(%arg0: i32) -> (i32, i32) {
    %c0_i32 = arith.constant 0 : i32
    %c0_i32_0 = arith.constant 0 : i32
    %c0_i32_1 = arith.constant 0 : i32
    return %c0_i32, %c0_i32_0 : i32, i32
  }
  func.func @transform_2(%arg0: i32) -> (i32, i32) {
    %c0_i32 = arith.constant 0 : i32
    %c0_i32_0 = arith.constant 0 : i32
    return %arg0, %c0_i32 : i32, i32
  }
  func.func @transform_3(%arg0: i32) -> (i32, i32) {
    %c0_i32 = arith.constant 0 : i32
    %c0_i32_0 = arith.constant 0 : i32
    %c0_i32_1 = arith.constant 0 : i32
    return %c0_i32, %c0_i32_0 : i32, i32
  }
  func.func @transform_4(%arg0: i32) -> (i32, i32) {
    %c0_i32 = arith.constant 0 : i32
    %c0_i32_0 = arith.constant 0 : i32
    %c0_i32_1 = arith.constant 0 : i32
    return %c0_i32, %c0_i32_0 : i32, i32
  }
  func.func @transform_5(%arg0: i32) -> (i32, i32) {
    %c0_i32 = arith.constant 0 : i32
    %c0_i32_0 = arith.constant 0 : i32
    return %arg0, %c0_i32 : i32, i32
  }
}

module attributes {stable_mosaic.version = 11 : i64} {
  func.func @_trans_pop_kernel(%arg0: i32, %arg1: memref<16x32xf32, #tpu.memory_space<vmem>>, %arg2: memref<32x32xf32, #tpu.memory_space<vmem>>, %arg3: memref<1x32xf32, #tpu.memory_space<vmem>>, %arg4: memref<8x32xf32, #tpu.memory_space<vmem>>, %arg5: memref<1x8xf32, #tpu.memory_space<vmem>>, %arg6: memref<8x32xf32, #tpu.memory_space<vmem>>, %arg7: memref<32x32xf32, #tpu.memory_space<vmem>>, %arg8: memref<1x32xf32, #tpu.memory_space<vmem>>, %arg9: memref<1x32xf32, #tpu.memory_space<vmem>>, %arg10: memref<1x32xf32, #tpu.memory_space<vmem>>, %arg11: memref<16x32xf32, #tpu.memory_space<vmem>>) attributes {dimension_semantics = [#tpu.dimension_semantics<parallel>], iteration_bounds = array<i64: 1>, scalar_prefetch = 0 : i64, scratch_operands = 0 : i64, tpu.core_type = #tpu.core_type<tc>, window_params = [{transform_indices = @transform_0, window_bounds = array<i64: 16, 32>}, {pipeline_mode = #tpu.pipeline_mode<synchronous>, transform_indices = @transform_1, window_bounds = array<i64: 32, 32>}, {pipeline_mode = #tpu.pipeline_mode<synchronous>, transform_indices = @transform_2, window_bounds = array<i64: 1, 32>}, {pipeline_mode = #tpu.pipeline_mode<synchronous>, transform_indices = @transform_3, window_bounds = array<i64: 8, 32>}, {pipeline_mode = #tpu.pipeline_mode<synchronous>, transform_indices = @transform_4, window_bounds = array<i64: 1, 8>}, {pipeline_mode = #tpu.pipeline_mode<synchronous>, transform_indices = @transform_5, window_bounds = array<i64: 8, 32>}, {pipeline_mode = #tpu.pipeline_mode<synchronous>, transform_indices = @transform_6, window_bounds = array<i64: 32, 32>}, {pipeline_mode = #tpu.pipeline_mode<synchronous>, transform_indices = @transform_7, window_bounds = array<i64: 1, 32>}, {pipeline_mode = #tpu.pipeline_mode<synchronous>, transform_indices = @transform_8, window_bounds = array<i64: 1, 32>}, {pipeline_mode = #tpu.pipeline_mode<synchronous>, transform_indices = @transform_9, window_bounds = array<i64: 1, 32>}, {transform_indices = @transform_10, window_bounds = array<i64: 16, 32>}]} {
    %c0 = arith.constant 0 : index
    %c0_0 = arith.constant 0 : index
    %0 = vector.load %arg6[%c0, %c0_0] : memref<8x32xf32, #tpu.memory_space<vmem>>, vector<8x32xf32>
    %c0_1 = arith.constant 0 : index
    %c0_2 = arith.constant 0 : index
    %1 = vector.load %arg7[%c0_1, %c0_2] : memref<32x32xf32, #tpu.memory_space<vmem>>, vector<32x32xf32>
    %2 = arith.truncf %0 : vector<8x32xf32> to vector<8x32xbf16>
    %3 = arith.truncf %1 : vector<32x32xf32> to vector<32x32xbf16>
    %cst = arith.constant dense<0.000000e+00> : vector<8x32xf32>
    %4 = tpu.matmul %2, %3, %cst {dimension_numbers = #tpu.dot_dimension_numbers<[1], [1], [0], [0], [0, 0, 1, 0], [], []>} : vector<8x32xbf16>, vector<32x32xbf16>, vector<8x32xf32> -> vector<8x32xf32>
    %c0_3 = arith.constant 0 : index
    %c0_4 = arith.constant 0 : index
    %5 = vector.load %arg8[%c0_3, %c0_4] : memref<1x32xf32, #tpu.memory_space<vmem>>, vector<1x32xf32>
    %6 = vector.broadcast %5 : vector<1x32xf32> to vector<8x32xf32>
    %7 = arith.addf %4, %6 : vector<8x32xf32>
    %c0_5 = arith.constant 0 : index
    %c0_6 = arith.constant 0 : index
    %8 = vector.load %arg1[%c0_5, %c0_6] : memref<16x32xf32, #tpu.memory_space<vmem>>, vector<16x32xf32>
    %c0_7 = arith.constant 0 : index
    %c0_8 = arith.constant 0 : index
    %9 = vector.load %arg2[%c0_7, %c0_8] : memref<32x32xf32, #tpu.memory_space<vmem>>, vector<32x32xf32>
    %10 = arith.truncf %8 : vector<16x32xf32> to vector<16x32xbf16>
    %11 = arith.truncf %9 : vector<32x32xf32> to vector<32x32xbf16>
    %cst_9 = arith.constant dense<0.000000e+00> : vector<16x32xf32>
    %12 = tpu.matmul %10, %11, %cst_9 {dimension_numbers = #tpu.dot_dimension_numbers<[1], [1], [0], [0], [0, 0, 1, 0], [], []>} : vector<16x32xbf16>, vector<32x32xbf16>, vector<16x32xf32> -> vector<16x32xf32>
    %c0_10 = arith.constant 0 : index
    %c0_11 = arith.constant 0 : index
    %13 = vector.load %arg3[%c0_10, %c0_11] : memref<1x32xf32, #tpu.memory_space<vmem>>, vector<1x32xf32>
    %14 = vector.broadcast %13 : vector<1x32xf32> to vector<16x32xf32>
    %15 = arith.addf %12, %14 : vector<16x32xf32>
    %cst_12 = arith.constant 0.000000e+00 : f32
    %16 = vector.broadcast %cst_12 : f32 to vector<16x32xf32>
    %17 = arith.cmpf oge, %15, %16 : vector<16x32xf32>
    %cst_13 = arith.constant 0.00999999977 : f32
    %18 = vector.broadcast %cst_13 : f32 to vector<16x32xf32>
    %19 = arith.mulf %18, %15 : vector<16x32xf32>
    %20 = arith.select %17, %15, %19 : vector<16x32xi1>, vector<16x32xf32>
    %c0_14 = arith.constant 0 : index
    %c0_15 = arith.constant 0 : index
    %21 = vector.load %arg4[%c0_14, %c0_15] : memref<8x32xf32, #tpu.memory_space<vmem>>, vector<8x32xf32>
    %22 = arith.truncf %20 : vector<16x32xf32> to vector<16x32xbf16>
    %23 = arith.truncf %21 : vector<8x32xf32> to vector<8x32xbf16>
    %cst_16 = arith.constant dense<0.000000e+00> : vector<16x8xf32>
    %24 = tpu.matmul %22, %23, %cst_16 {dimension_numbers = #tpu.dot_dimension_numbers<[1], [1], [0], [0], [0, 0, 1, 0], [], []>} : vector<16x32xbf16>, vector<8x32xbf16>, vector<16x8xf32> -> vector<16x8xf32>
    %c0_17 = arith.constant 0 : index
    %c0_18 = arith.constant 0 : index
    %25 = vector.load %arg5[%c0_17, %c0_18] : memref<1x8xf32, #tpu.memory_space<vmem>>, vector<1x8xf32>
    %26 = vector.broadcast %25 : vector<1x8xf32> to vector<16x8xf32>
    %27 = arith.addf %24, %26 : vector<16x8xf32>
    %cst_19 = arith.constant dense<0xFF800000> : vector<16xf32>
    %28 = vector.multi_reduction <maximumf>, %27, %cst_19 [1] : vector<16x8xf32> to vector<16xf32>
    %29 = vector.shape_cast %28 : vector<16xf32> to vector<16x1xf32>
    %30 = vector.broadcast %29 : vector<16x1xf32> to vector<16x8xf32>
    %31 = arith.subf %27, %30 : vector<16x8xf32>
    %32 = math.exp %31 : vector<16x8xf32>
    %cst_20 = arith.constant dense<0.000000e+00> : vector<16xf32>
    %33 = vector.multi_reduction <add>, %32, %cst_20 [1] : vector<16x8xf32> to vector<16xf32>
    %34 = vector.shape_cast %33 : vector<16xf32> to vector<16x1xf32>
    %35 = vector.broadcast %34 : vector<16x1xf32> to vector<16x8xf32>
    %36 = arith.divf %32, %35 : vector<16x8xf32>
    %37 = arith.truncf %36 : vector<16x8xf32> to vector<16x8xbf16>
    %38 = arith.truncf %7 : vector<8x32xf32> to vector<8x32xbf16>
    %cst_21 = arith.constant dense<0.000000e+00> : vector<16x32xf32>
    %39 = tpu.matmul %37, %38, %cst_21 {dimension_numbers = #tpu.dot_dimension_numbers<[1], [0], [0], [1], [0, 0, 1, 1], [], []>} : vector<16x8xbf16>, vector<8x32xbf16>, vector<16x32xf32> -> vector<16x32xf32>
    %c0_22 = arith.constant 0 : index
    %c0_23 = arith.constant 0 : index
    %40 = vector.load %arg11[%c0_22, %c0_23] : memref<16x32xf32, #tpu.memory_space<vmem>>, vector<16x32xf32>
    tpu.vector_store %arg11[%c0_22, %c0_23], %39 {strides = array<i32>} : memref<16x32xf32, #tpu.memory_space<vmem>>, vector<16x32xf32>,
    return
  }
  func.func @transform_0(%arg0: i32) -> (i32, i32) {
    %c0_i32 = arith.constant 0 : i32
    %c0_i32_0 = arith.constant 0 : i32
    return %arg0, %c0_i32 : i32, i32
  }
  func.func @transform_1(%arg0: i32) -> (i32, i32) {
    %c0_i32 = arith.constant 0 : i32
    %c0_i32_0 = arith.constant 0 : i32
    %c0_i32_1 = arith.constant 0 : i32
    return %c0_i32, %c0_i32_0 : i32, i32
  }
  func.func @transform_2(%arg0: i32) -> (i32, i32) {
    %c0_i32 = arith.constant 0 : i32
    %c0_i32_0 = arith.constant 0 : i32
    %c0_i32_1 = arith.constant 0 : i32
    return %c0_i32, %c0_i32_0 : i32, i32
  }
  func.func @transform_3(%arg0: i32) -> (i32, i32) {
    %c0_i32 = arith.constant 0 : i32
    %c0_i32_0 = arith.constant 0 : i32
    %c0_i32_1 = arith.constant 0 : i32
    return %c0_i32, %c0_i32_0 : i32, i32
  }
  func.func @transform_4(%arg0: i32) -> (i32, i32) {
    %c0_i32 = arith.constant 0 : i32
    %c0_i32_0 = arith.constant 0 : i32
    %c0_i32_1 = arith.constant 0 : i32
    return %c0_i32, %c0_i32_0 : i32, i32
  }
  func.func @transform_5(%arg0: i32) -> (i32, i32) {
    %c0_i32 = arith.constant 0 : i32
    %c0_i32_0 = arith.constant 0 : i32
    %c0_i32_1 = arith.constant 0 : i32
    return %c0_i32, %c0_i32_0 : i32, i32
  }
  func.func @transform_6(%arg0: i32) -> (i32, i32) {
    %c0_i32 = arith.constant 0 : i32
    %c0_i32_0 = arith.constant 0 : i32
    %c0_i32_1 = arith.constant 0 : i32
    return %c0_i32, %c0_i32_0 : i32, i32
  }
  func.func @transform_7(%arg0: i32) -> (i32, i32) {
    %c0_i32 = arith.constant 0 : i32
    %c0_i32_0 = arith.constant 0 : i32
    %c0_i32_1 = arith.constant 0 : i32
    return %c0_i32, %c0_i32_0 : i32, i32
  }
  func.func @transform_8(%arg0: i32) -> (i32, i32) {
    %c0_i32 = arith.constant 0 : i32
    %c0_i32_0 = arith.constant 0 : i32
    %c0_i32_1 = arith.constant 0 : i32
    return %c0_i32, %c0_i32_0 : i32, i32
  }
  func.func @transform_9(%arg0: i32) -> (i32, i32) {
    %c0_i32 = arith.constant 0 : i32
    %c0_i32_0 = arith.constant 0 : i32
    %c0_i32_1 = arith.constant 0 : i32
    return %c0_i32, %c0_i32_0 : i32, i32
  }
  func.func @transform_10(%arg0: i32) -> (i32, i32) {
    %c0_i32 = arith.constant 0 : i32
    %c0_i32_0 = arith.constant 0 : i32
    return %arg0, %c0_i32 : i32, i32
  }
}

module attributes {stable_mosaic.version = 11 : i64} {
  func.func @_gru2_ln_kernel(%arg0: i32, %arg1: memref<4x8x32xf32, #tpu.memory_space<vmem>>, %arg2: memref<96x32xf32, #tpu.memory_space<vmem>>, %arg3: memref<1x96xf32, #tpu.memory_space<vmem>>, %arg4: memref<96x32xf32, #tpu.memory_space<vmem>>, %arg5: memref<1x96xf32, #tpu.memory_space<vmem>>, %arg6: memref<4x1xi32, #tpu.memory_space<vmem>>, %arg7: memref<4x32xf32, #tpu.memory_space<vmem>>, %arg8: memref<4x32xf32, #tpu.memory_space<vmem>>, %arg9: memref<4x32xf32, #tpu.memory_space<vmem>>) attributes {dimension_semantics = [#tpu.dimension_semantics<arbitrary>], iteration_bounds = array<i64: 1>, scalar_prefetch = 0 : i64, scratch_operands = 0 : i64, tpu.core_type = #tpu.core_type<tc>, window_params = [{pipeline_mode = #tpu.pipeline_mode<synchronous>, transform_indices = @transform_0, window_bounds = array<i64: 4, 8, 32>}, {pipeline_mode = #tpu.pipeline_mode<synchronous>, transform_indices = @transform_1, window_bounds = array<i64: 96, 32>}, {pipeline_mode = #tpu.pipeline_mode<synchronous>, transform_indices = @transform_2, window_bounds = array<i64: 1, 96>}, {pipeline_mode = #tpu.pipeline_mode<synchronous>, transform_indices = @transform_3, window_bounds = array<i64: 96, 32>}, {pipeline_mode = #tpu.pipeline_mode<synchronous>, transform_indices = @transform_4, window_bounds = array<i64: 1, 96>}, {pipeline_mode = #tpu.pipeline_mode<synchronous>, transform_indices = @transform_5, window_bounds = array<i64: 4, 1>}, {pipeline_mode = #tpu.pipeline_mode<synchronous>, transform_indices = @transform_6, window_bounds = array<i64: 4, 32>}, {pipeline_mode = #tpu.pipeline_mode<synchronous>, transform_indices = @transform_7, window_bounds = array<i64: 4, 32>}, {pipeline_mode = #tpu.pipeline_mode<synchronous>, transform_indices = @transform_8, window_bounds = array<i64: 4, 32>}]} {
    %c0 = arith.constant 0 : index
    %c0_0 = arith.constant 0 : index
    %c0_1 = arith.constant 0 : index
    %0 = vector.load %arg1[%c0, %c0_0, %c0_1] : memref<4x8x32xf32, #tpu.memory_space<vmem>>, vector<4x8x32xf32>
    %1 = vector.shape_cast %0 : vector<4x8x32xf32> to vector<32x32xf32>
    %c0_2 = arith.constant 0 : index
    %c0_3 = arith.constant 0 : index
    %2 = vector.load %arg2[%c0_2, %c0_3] : memref<96x32xf32, #tpu.memory_space<vmem>>, vector<96x32xf32>
    %3 = arith.truncf %1 : vector<32x32xf32> to vector<32x32xbf16>
    %4 = arith.truncf %2 : vector<96x32xf32> to vector<96x32xbf16>
    %cst = arith.constant dense<0.000000e+00> : vector<32x96xf32>
    %5 = tpu.matmul %3, %4, %cst {dimension_numbers = #tpu.dot_dimension_numbers<[1], [1], [0], [0], [0, 0, 1, 0], [], []>} : vector<32x32xbf16>, vector<96x32xbf16>, vector<32x96xf32> -> vector<32x96xf32>
    %c0_4 = arith.constant 0 : index
    %c0_5 = arith.constant 0 : index
    %6 = vector.load %arg3[%c0_4, %c0_5] : memref<1x96xf32, #tpu.memory_space<vmem>>, vector<1x96xf32>
    %7 = vector.broadcast %6 : vector<1x96xf32> to vector<32x96xf32>
    %8 = arith.addf %5, %7 : vector<32x96xf32>
    %9 = vector.shape_cast %8 : vector<32x96xf32> to vector<4x8x96xf32>
    %c0_6 = arith.constant 0 : index
    %c0_7 = arith.constant 0 : index
    %10 = vector.load %arg4[%c0_6, %c0_7] : memref<96x32xf32, #tpu.memory_space<vmem>>, vector<96x32xf32>
    %11 = arith.truncf %10 : vector<96x32xf32> to vector<96x32xbf16>
    %c0_8 = arith.constant 0 : index
    %c0_9 = arith.constant 0 : index
    %12 = vector.load %arg5[%c0_8, %c0_9] : memref<1x96xf32, #tpu.memory_space<vmem>>, vector<1x96xf32>
    %c0_10 = arith.constant 0 : index
    %c0_11 = arith.constant 0 : index
    %13 = vector.load %arg6[%c0_10, %c0_11] : memref<4x1xi32, #tpu.memory_space<vmem>>, vector<4x1xi32>
    %cst_12 = arith.constant 0.000000e+00 : f32
    %14 = vector.broadcast %cst_12 : f32 to vector<4x32xf32>
    %cst_13 = arith.constant 0.000000e+00 : f32
    %15 = vector.broadcast %cst_13 : f32 to vector<4x32xf32>
    %16 = vector.extract_strided_slice %9 {offsets = [0, 0, 0], sizes = [4, 1, 96], strides = [1, 1, 1]} : vector<4x8x96xf32> to vector<4x1x96xf32>
    %17 = vector.shape_cast %16 : vector<4x1x96xf32> to vector<4x96xf32>
    %18 = arith.truncf %14 : vector<4x32xf32> to vector<4x32xbf16>
    %cst_14 = arith.constant dense<0.000000e+00> : vector<4x96xf32>
    %19 = tpu.matmul %18, %11, %cst_14 {dimension_numbers = #tpu.dot_dimension_numbers<[1], [1], [0], [0], [0, 0, 1, 0], [], []>} : vector<4x32xbf16>, vector<96x32xbf16>, vector<4x96xf32> -> vector<4x96xf32>
    %20 = vector.broadcast %12 : vector<1x96xf32> to vector<4x96xf32>
    %21 = arith.addf %19, %20 : vector<4x96xf32>
    %22 = vector.extract_strided_slice %17 {offsets = [0, 0], sizes = [4, 32], strides = [1, 1]} : vector<4x96xf32> to vector<4x32xf32>
    %23 = vector.extract_strided_slice %21 {offsets = [0, 0], sizes = [4, 32], strides = [1, 1]} : vector<4x96xf32> to vector<4x32xf32>
    %24 = arith.addf %22, %23 : vector<4x32xf32>
    %25 = arith.negf %24 : vector<4x32xf32>
    %26 = math.exp %25 : vector<4x32xf32>
    %cst_15 = arith.constant 1.000000e+00 : f32
    %27 = vector.broadcast %cst_15 : f32 to vector<4x32xf32>
    %28 = arith.addf %27, %26 : vector<4x32xf32>
    %29 = arith.divf %27, %28 : vector<4x32xf32>
    %30 = vector.extract_strided_slice %17 {offsets = [0, 32], sizes = [4, 32], strides = [1, 1]} : vector<4x96xf32> to vector<4x32xf32>
    %31 = vector.extract_strided_slice %21 {offsets = [0, 32], sizes = [4, 32], strides = [1, 1]} : vector<4x96xf32> to vector<4x32xf32>
    %32 = arith.addf %30, %31 : vector<4x32xf32>
    %33 = arith.negf %32 : vector<4x32xf32>
    %34 = math.exp %33 : vector<4x32xf32>
    %cst_16 = arith.constant 1.000000e+00 : f32
    %35 = vector.broadcast %cst_16 : f32 to vector<4x32xf32>
    %36 = arith.addf %35, %34 : vector<4x32xf32>
    %37 = arith.divf %35, %36 : vector<4x32xf32>
    %38 = vector.extract_strided_slice %17 {offsets = [0, 64], sizes = [4, 32], strides = [1, 1]} : vector<4x96xf32> to vector<4x32xf32>
    %39 = vector.extract_strided_slice %21 {offsets = [0, 64], sizes = [4, 32], strides = [1, 1]} : vector<4x96xf32> to vector<4x32xf32>
    %40 = arith.mulf %29, %39 : vector<4x32xf32>
    %41 = arith.addf %38, %40 : vector<4x32xf32>
    %42 = math.tanh %41 : vector<4x32xf32>
    %cst_17 = arith.constant 1.000000e+00 : f32
    %43 = vector.broadcast %cst_17 : f32 to vector<4x32xf32>
    %44 = arith.subf %43, %37 : vector<4x32xf32>
    %45 = arith.mulf %44, %42 : vector<4x32xf32>
    %46 = arith.mulf %37, %14 : vector<4x32xf32>
    %47 = arith.addf %45, %46 : vector<4x32xf32>
    %c1_i32 = arith.constant 1 : i32
    %48 = vector.broadcast %c1_i32 : i32 to vector<4x1xi32>
    %49 = arith.cmpi eq, %13, %48 : vector<4x1xi32>
    %50 = vector.shape_cast %49 : vector<4x1xi1> to vector<4x1xi1>
    %51 = vector.broadcast %50 : vector<4x1xi1> to vector<4x32xi1>
    %52 = arith.select %51, %47, %15 : vector<4x32xi1>, vector<4x32xf32>
    %53 = vector.extract_strided_slice %9 {offsets = [0, 1, 0], sizes = [4, 1, 96], strides = [1, 1, 1]} : vector<4x8x96xf32> to vector<4x1x96xf32>
    %54 = vector.shape_cast %53 : vector<4x1x96xf32> to vector<4x96xf32>
    %55 = arith.truncf %47 : vector<4x32xf32> to vector<4x32xbf16>
    %cst_18 = arith.constant dense<0.000000e+00> : vector<4x96xf32>
    %56 = tpu.matmul %55, %11, %cst_18 {dimension_numbers = #tpu.dot_dimension_numbers<[1], [1], [0], [0], [0, 0, 1, 0], [], []>} : vector<4x32xbf16>, vector<96x32xbf16>, vector<4x96xf32> -> vector<4x96xf32>
    %57 = vector.broadcast %12 : vector<1x96xf32> to vector<4x96xf32>
    %58 = arith.addf %56, %57 : vector<4x96xf32>
    %59 = vector.extract_strided_slice %54 {offsets = [0, 0], sizes = [4, 32], strides = [1, 1]} : vector<4x96xf32> to vector<4x32xf32>
    %60 = vector.extract_strided_slice %58 {offsets = [0, 0], sizes = [4, 32], strides = [1, 1]} : vector<4x96xf32> to vector<4x32xf32>
    %61 = arith.addf %59, %60 : vector<4x32xf32>
    %62 = arith.negf %61 : vector<4x32xf32>
    %63 = math.exp %62 : vector<4x32xf32>
    %cst_19 = arith.constant 1.000000e+00 : f32
    %64 = vector.broadcast %cst_19 : f32 to vector<4x32xf32>
    %65 = arith.addf %64, %63 : vector<4x32xf32>
    %66 = arith.divf %64, %65 : vector<4x32xf32>
    %67 = vector.extract_strided_slice %54 {offsets = [0, 32], sizes = [4, 32], strides = [1, 1]} : vector<4x96xf32> to vector<4x32xf32>
    %68 = vector.extract_strided_slice %58 {offsets = [0, 32], sizes = [4, 32], strides = [1, 1]} : vector<4x96xf32> to vector<4x32xf32>
    %69 = arith.addf %67, %68 : vector<4x32xf32>
    %70 = arith.negf %69 : vector<4x32xf32>
    %71 = math.exp %70 : vector<4x32xf32>
    %cst_20 = arith.constant 1.000000e+00 : f32
    %72 = vector.broadcast %cst_20 : f32 to vector<4x32xf32>
    %73 = arith.addf %72, %71 : vector<4x32xf32>
    %74 = arith.divf %72, %73 : vector<4x32xf32>
    %75 = vector.extract_strided_slice %54 {offsets = [0, 64], sizes = [4, 32], strides = [1, 1]} : vector<4x96xf32> to vector<4x32xf32>
    %76 = vector.extract_strided_slice %58 {offsets = [0, 64], sizes = [4, 32], strides = [1, 1]} : vector<4x96xf32> to vector<4x32xf32>
    %77 = arith.mulf %66, %76 : vector<4x32xf32>
    %78 = arith.addf %75, %77 : vector<4x32xf32>
    %79 = math.tanh %78 : vector<4x32xf32>
    %cst_21 = arith.constant 1.000000e+00 : f32
    %80 = vector.broadcast %cst_21 : f32 to vector<4x32xf32>
    %81 = arith.subf %80, %74 : vector<4x32xf32>
    %82 = arith.mulf %81, %79 : vector<4x32xf32>
    %83 = arith.mulf %74, %47 : vector<4x32xf32>
    %84 = arith.addf %82, %83 : vector<4x32xf32>
    %c2_i32 = arith.constant 2 : i32
    %85 = vector.broadcast %c2_i32 : i32 to vector<4x1xi32>
    %86 = arith.cmpi eq, %13, %85 : vector<4x1xi32>
    %87 = vector.shape_cast %86 : vector<4x1xi1> to vector<4x1xi1>
    %88 = vector.broadcast %87 : vector<4x1xi1> to vector<4x32xi1>
    %89 = arith.select %88, %84, %52 : vector<4x32xi1>, vector<4x32xf32>
    %90 = vector.extract_strided_slice %9 {offsets = [0, 2, 0], sizes = [4, 1, 96], strides = [1, 1, 1]} : vector<4x8x96xf32> to vector<4x1x96xf32>
    %91 = vector.shape_cast %90 : vector<4x1x96xf32> to vector<4x96xf32>
    %92 = arith.truncf %84 : vector<4x32xf32> to vector<4x32xbf16>
    %cst_22 = arith.constant dense<0.000000e+00> : vector<4x96xf32>
    %93 = tpu.matmul %92, %11, %cst_22 {dimension_numbers = #tpu.dot_dimension_numbers<[1], [1], [0], [0], [0, 0, 1, 0], [], []>} : vector<4x32xbf16>, vector<96x32xbf16>, vector<4x96xf32> -> vector<4x96xf32>
    %94 = vector.broadcast %12 : vector<1x96xf32> to vector<4x96xf32>
    %95 = arith.addf %93, %94 : vector<4x96xf32>
    %96 = vector.extract_strided_slice %91 {offsets = [0, 0], sizes = [4, 32], strides = [1, 1]} : vector<4x96xf32> to vector<4x32xf32>
    %97 = vector.extract_strided_slice %95 {offsets = [0, 0], sizes = [4, 32], strides = [1, 1]} : vector<4x96xf32> to vector<4x32xf32>
    %98 = arith.addf %96, %97 : vector<4x32xf32>
    %99 = arith.negf %98 : vector<4x32xf32>
    %100 = math.exp %99 : vector<4x32xf32>
    %cst_23 = arith.constant 1.000000e+00 : f32
    %101 = vector.broadcast %cst_23 : f32 to vector<4x32xf32>
    %102 = arith.addf %101, %100 : vector<4x32xf32>
    %103 = arith.divf %101, %102 : vector<4x32xf32>
    %104 = vector.extract_strided_slice %91 {offsets = [0, 32], sizes = [4, 32], strides = [1, 1]} : vector<4x96xf32> to vector<4x32xf32>
    %105 = vector.extract_strided_slice %95 {offsets = [0, 32], sizes = [4, 32], strides = [1, 1]} : vector<4x96xf32> to vector<4x32xf32>
    %106 = arith.addf %104, %105 : vector<4x32xf32>
    %107 = arith.negf %106 : vector<4x32xf32>
    %108 = math.exp %107 : vector<4x32xf32>
    %cst_24 = arith.constant 1.000000e+00 : f32
    %109 = vector.broadcast %cst_24 : f32 to vector<4x32xf32>
    %110 = arith.addf %109, %108 : vector<4x32xf32>
    %111 = arith.divf %109, %110 : vector<4x32xf32>
    %112 = vector.extract_strided_slice %91 {offsets = [0, 64], sizes = [4, 32], strides = [1, 1]} : vector<4x96xf32> to vector<4x32xf32>
    %113 = vector.extract_strided_slice %95 {offsets = [0, 64], sizes = [4, 32], strides = [1, 1]} : vector<4x96xf32> to vector<4x32xf32>
    %114 = arith.mulf %103, %113 : vector<4x32xf32>
    %115 = arith.addf %112, %114 : vector<4x32xf32>
    %116 = math.tanh %115 : vector<4x32xf32>
    %cst_25 = arith.constant 1.000000e+00 : f32
    %117 = vector.broadcast %cst_25 : f32 to vector<4x32xf32>
    %118 = arith.subf %117, %111 : vector<4x32xf32>
    %119 = arith.mulf %118, %116 : vector<4x32xf32>
    %120 = arith.mulf %111, %84 : vector<4x32xf32>
    %121 = arith.addf %119, %120 : vector<4x32xf32>
    %c3_i32 = arith.constant 3 : i32
    %122 = vector.broadcast %c3_i32 : i32 to vector<4x1xi32>
    %123 = arith.cmpi eq, %13, %122 : vector<4x1xi32>
    %124 = vector.shape_cast %123 : vector<4x1xi1> to vector<4x1xi1>
    %125 = vector.broadcast %124 : vector<4x1xi1> to vector<4x32xi1>
    %126 = arith.select %125, %121, %89 : vector<4x32xi1>, vector<4x32xf32>
    %127 = vector.extract_strided_slice %9 {offsets = [0, 3, 0], sizes = [4, 1, 96], strides = [1, 1, 1]} : vector<4x8x96xf32> to vector<4x1x96xf32>
    %128 = vector.shape_cast %127 : vector<4x1x96xf32> to vector<4x96xf32>
    %129 = arith.truncf %121 : vector<4x32xf32> to vector<4x32xbf16>
    %cst_26 = arith.constant dense<0.000000e+00> : vector<4x96xf32>
    %130 = tpu.matmul %129, %11, %cst_26 {dimension_numbers = #tpu.dot_dimension_numbers<[1], [1], [0], [0], [0, 0, 1, 0], [], []>} : vector<4x32xbf16>, vector<96x32xbf16>, vector<4x96xf32> -> vector<4x96xf32>
    %131 = vector.broadcast %12 : vector<1x96xf32> to vector<4x96xf32>
    %132 = arith.addf %130, %131 : vector<4x96xf32>
    %133 = vector.extract_strided_slice %128 {offsets = [0, 0], sizes = [4, 32], strides = [1, 1]} : vector<4x96xf32> to vector<4x32xf32>
    %134 = vector.extract_strided_slice %132 {offsets = [0, 0], sizes = [4, 32], strides = [1, 1]} : vector<4x96xf32> to vector<4x32xf32>
    %135 = arith.addf %133, %134 : vector<4x32xf32>
    %136 = arith.negf %135 : vector<4x32xf32>
    %137 = math.exp %136 : vector<4x32xf32>
    %cst_27 = arith.constant 1.000000e+00 : f32
    %138 = vector.broadcast %cst_27 : f32 to vector<4x32xf32>
    %139 = arith.addf %138, %137 : vector<4x32xf32>
    %140 = arith.divf %138, %139 : vector<4x32xf32>
    %141 = vector.extract_strided_slice %128 {offsets = [0, 32], sizes = [4, 32], strides = [1, 1]} : vector<4x96xf32> to vector<4x32xf32>
    %142 = vector.extract_strided_slice %132 {offsets = [0, 32], sizes = [4, 32], strides = [1, 1]} : vector<4x96xf32> to vector<4x32xf32>
    %143 = arith.addf %141, %142 : vector<4x32xf32>
    %144 = arith.negf %143 : vector<4x32xf32>
    %145 = math.exp %144 : vector<4x32xf32>
    %cst_28 = arith.constant 1.000000e+00 : f32
    %146 = vector.broadcast %cst_28 : f32 to vector<4x32xf32>
    %147 = arith.addf %146, %145 : vector<4x32xf32>
    %148 = arith.divf %146, %147 : vector<4x32xf32>
    %149 = vector.extract_strided_slice %128 {offsets = [0, 64], sizes = [4, 32], strides = [1, 1]} : vector<4x96xf32> to vector<4x32xf32>
    %150 = vector.extract_strided_slice %132 {offsets = [0, 64], sizes = [4, 32], strides = [1, 1]} : vector<4x96xf32> to vector<4x32xf32>
    %151 = arith.mulf %140, %150 : vector<4x32xf32>
    %152 = arith.addf %149, %151 : vector<4x32xf32>
    %153 = math.tanh %152 : vector<4x32xf32>
    %cst_29 = arith.constant 1.000000e+00 : f32
    %154 = vector.broadcast %cst_29 : f32 to vector<4x32xf32>
    %155 = arith.subf %154, %148 : vector<4x32xf32>
    %156 = arith.mulf %155, %153 : vector<4x32xf32>
    %157 = arith.mulf %148, %121 : vector<4x32xf32>
    %158 = arith.addf %156, %157 : vector<4x32xf32>
    %c4_i32 = arith.constant 4 : i32
    %159 = vector.broadcast %c4_i32 : i32 to vector<4x1xi32>
    %160 = arith.cmpi eq, %13, %159 : vector<4x1xi32>
    %161 = vector.shape_cast %160 : vector<4x1xi1> to vector<4x1xi1>
    %162 = vector.broadcast %161 : vector<4x1xi1> to vector<4x32xi1>
    %163 = arith.select %162, %158, %126 : vector<4x32xi1>, vector<4x32xf32>
    %164 = vector.extract_strided_slice %9 {offsets = [0, 4, 0], sizes = [4, 1, 96], strides = [1, 1, 1]} : vector<4x8x96xf32> to vector<4x1x96xf32>
    %165 = vector.shape_cast %164 : vector<4x1x96xf32> to vector<4x96xf32>
    %166 = arith.truncf %158 : vector<4x32xf32> to vector<4x32xbf16>
    %cst_30 = arith.constant dense<0.000000e+00> : vector<4x96xf32>
    %167 = tpu.matmul %166, %11, %cst_30 {dimension_numbers = #tpu.dot_dimension_numbers<[1], [1], [0], [0], [0, 0, 1, 0], [], []>} : vector<4x32xbf16>, vector<96x32xbf16>, vector<4x96xf32> -> vector<4x96xf32>
    %168 = vector.broadcast %12 : vector<1x96xf32> to vector<4x96xf32>
    %169 = arith.addf %167, %168 : vector<4x96xf32>
    %170 = vector.extract_strided_slice %165 {offsets = [0, 0], sizes = [4, 32], strides = [1, 1]} : vector<4x96xf32> to vector<4x32xf32>
    %171 = vector.extract_strided_slice %169 {offsets = [0, 0], sizes = [4, 32], strides = [1, 1]} : vector<4x96xf32> to vector<4x32xf32>
    %172 = arith.addf %170, %171 : vector<4x32xf32>
    %173 = arith.negf %172 : vector<4x32xf32>
    %174 = math.exp %173 : vector<4x32xf32>
    %cst_31 = arith.constant 1.000000e+00 : f32
    %175 = vector.broadcast %cst_31 : f32 to vector<4x32xf32>
    %176 = arith.addf %175, %174 : vector<4x32xf32>
    %177 = arith.divf %175, %176 : vector<4x32xf32>
    %178 = vector.extract_strided_slice %165 {offsets = [0, 32], sizes = [4, 32], strides = [1, 1]} : vector<4x96xf32> to vector<4x32xf32>
    %179 = vector.extract_strided_slice %169 {offsets = [0, 32], sizes = [4, 32], strides = [1, 1]} : vector<4x96xf32> to vector<4x32xf32>
    %180 = arith.addf %178, %179 : vector<4x32xf32>
    %181 = arith.negf %180 : vector<4x32xf32>
    %182 = math.exp %181 : vector<4x32xf32>
    %cst_32 = arith.constant 1.000000e+00 : f32
    %183 = vector.broadcast %cst_32 : f32 to vector<4x32xf32>
    %184 = arith.addf %183, %182 : vector<4x32xf32>
    %185 = arith.divf %183, %184 : vector<4x32xf32>
    %186 = vector.extract_strided_slice %165 {offsets = [0, 64], sizes = [4, 32], strides = [1, 1]} : vector<4x96xf32> to vector<4x32xf32>
    %187 = vector.extract_strided_slice %169 {offsets = [0, 64], sizes = [4, 32], strides = [1, 1]} : vector<4x96xf32> to vector<4x32xf32>
    %188 = arith.mulf %177, %187 : vector<4x32xf32>
    %189 = arith.addf %186, %188 : vector<4x32xf32>
    %190 = math.tanh %189 : vector<4x32xf32>
    %cst_33 = arith.constant 1.000000e+00 : f32
    %191 = vector.broadcast %cst_33 : f32 to vector<4x32xf32>
    %192 = arith.subf %191, %185 : vector<4x32xf32>
    %193 = arith.mulf %192, %190 : vector<4x32xf32>
    %194 = arith.mulf %185, %158 : vector<4x32xf32>
    %195 = arith.addf %193, %194 : vector<4x32xf32>
    %c5_i32 = arith.constant 5 : i32
    %196 = vector.broadcast %c5_i32 : i32 to vector<4x1xi32>
    %197 = arith.cmpi eq, %13, %196 : vector<4x1xi32>
    %198 = vector.shape_cast %197 : vector<4x1xi1> to vector<4x1xi1>
    %199 = vector.broadcast %198 : vector<4x1xi1> to vector<4x32xi1>
    %200 = arith.select %199, %195, %163 : vector<4x32xi1>, vector<4x32xf32>
    %201 = vector.extract_strided_slice %9 {offsets = [0, 5, 0], sizes = [4, 1, 96], strides = [1, 1, 1]} : vector<4x8x96xf32> to vector<4x1x96xf32>
    %202 = vector.shape_cast %201 : vector<4x1x96xf32> to vector<4x96xf32>
    %203 = arith.truncf %195 : vector<4x32xf32> to vector<4x32xbf16>
    %cst_34 = arith.constant dense<0.000000e+00> : vector<4x96xf32>
    %204 = tpu.matmul %203, %11, %cst_34 {dimension_numbers = #tpu.dot_dimension_numbers<[1], [1], [0], [0], [0, 0, 1, 0], [], []>} : vector<4x32xbf16>, vector<96x32xbf16>, vector<4x96xf32> -> vector<4x96xf32>
    %205 = vector.broadcast %12 : vector<1x96xf32> to vector<4x96xf32>
    %206 = arith.addf %204, %205 : vector<4x96xf32>
    %207 = vector.extract_strided_slice %202 {offsets = [0, 0], sizes = [4, 32], strides = [1, 1]} : vector<4x96xf32> to vector<4x32xf32>
    %208 = vector.extract_strided_slice %206 {offsets = [0, 0], sizes = [4, 32], strides = [1, 1]} : vector<4x96xf32> to vector<4x32xf32>
    %209 = arith.addf %207, %208 : vector<4x32xf32>
    %210 = arith.negf %209 : vector<4x32xf32>
    %211 = math.exp %210 : vector<4x32xf32>
    %cst_35 = arith.constant 1.000000e+00 : f32
    %212 = vector.broadcast %cst_35 : f32 to vector<4x32xf32>
    %213 = arith.addf %212, %211 : vector<4x32xf32>
    %214 = arith.divf %212, %213 : vector<4x32xf32>
    %215 = vector.extract_strided_slice %202 {offsets = [0, 32], sizes = [4, 32], strides = [1, 1]} : vector<4x96xf32> to vector<4x32xf32>
    %216 = vector.extract_strided_slice %206 {offsets = [0, 32], sizes = [4, 32], strides = [1, 1]} : vector<4x96xf32> to vector<4x32xf32>
    %217 = arith.addf %215, %216 : vector<4x32xf32>
    %218 = arith.negf %217 : vector<4x32xf32>
    %219 = math.exp %218 : vector<4x32xf32>
    %cst_36 = arith.constant 1.000000e+00 : f32
    %220 = vector.broadcast %cst_36 : f32 to vector<4x32xf32>
    %221 = arith.addf %220, %219 : vector<4x32xf32>
    %222 = arith.divf %220, %221 : vector<4x32xf32>
    %223 = vector.extract_strided_slice %202 {offsets = [0, 64], sizes = [4, 32], strides = [1, 1]} : vector<4x96xf32> to vector<4x32xf32>
    %224 = vector.extract_strided_slice %206 {offsets = [0, 64], sizes = [4, 32], strides = [1, 1]} : vector<4x96xf32> to vector<4x32xf32>
    %225 = arith.mulf %214, %224 : vector<4x32xf32>
    %226 = arith.addf %223, %225 : vector<4x32xf32>
    %227 = math.tanh %226 : vector<4x32xf32>
    %cst_37 = arith.constant 1.000000e+00 : f32
    %228 = vector.broadcast %cst_37 : f32 to vector<4x32xf32>
    %229 = arith.subf %228, %222 : vector<4x32xf32>
    %230 = arith.mulf %229, %227 : vector<4x32xf32>
    %231 = arith.mulf %222, %195 : vector<4x32xf32>
    %232 = arith.addf %230, %231 : vector<4x32xf32>
    %c6_i32 = arith.constant 6 : i32
    %233 = vector.broadcast %c6_i32 : i32 to vector<4x1xi32>
    %234 = arith.cmpi eq, %13, %233 : vector<4x1xi32>
    %235 = vector.shape_cast %234 : vector<4x1xi1> to vector<4x1xi1>
    %236 = vector.broadcast %235 : vector<4x1xi1> to vector<4x32xi1>
    %237 = arith.select %236, %232, %200 : vector<4x32xi1>, vector<4x32xf32>
    %238 = vector.extract_strided_slice %9 {offsets = [0, 6, 0], sizes = [4, 1, 96], strides = [1, 1, 1]} : vector<4x8x96xf32> to vector<4x1x96xf32>
    %239 = vector.shape_cast %238 : vector<4x1x96xf32> to vector<4x96xf32>
    %240 = arith.truncf %232 : vector<4x32xf32> to vector<4x32xbf16>
    %cst_38 = arith.constant dense<0.000000e+00> : vector<4x96xf32>
    %241 = tpu.matmul %240, %11, %cst_38 {dimension_numbers = #tpu.dot_dimension_numbers<[1], [1], [0], [0], [0, 0, 1, 0], [], []>} : vector<4x32xbf16>, vector<96x32xbf16>, vector<4x96xf32> -> vector<4x96xf32>
    %242 = vector.broadcast %12 : vector<1x96xf32> to vector<4x96xf32>
    %243 = arith.addf %241, %242 : vector<4x96xf32>
    %244 = vector.extract_strided_slice %239 {offsets = [0, 0], sizes = [4, 32], strides = [1, 1]} : vector<4x96xf32> to vector<4x32xf32>
    %245 = vector.extract_strided_slice %243 {offsets = [0, 0], sizes = [4, 32], strides = [1, 1]} : vector<4x96xf32> to vector<4x32xf32>
    %246 = arith.addf %244, %245 : vector<4x32xf32>
    %247 = arith.negf %246 : vector<4x32xf32>
    %248 = math.exp %247 : vector<4x32xf32>
    %cst_39 = arith.constant 1.000000e+00 : f32
    %249 = vector.broadcast %cst_39 : f32 to vector<4x32xf32>
    %250 = arith.addf %249, %248 : vector<4x32xf32>
    %251 = arith.divf %249, %250 : vector<4x32xf32>
    %252 = vector.extract_strided_slice %239 {offsets = [0, 32], sizes = [4, 32], strides = [1, 1]} : vector<4x96xf32> to vector<4x32xf32>
    %253 = vector.extract_strided_slice %243 {offsets = [0, 32], sizes = [4, 32], strides = [1, 1]} : vector<4x96xf32> to vector<4x32xf32>
    %254 = arith.addf %252, %253 : vector<4x32xf32>
    %255 = arith.negf %254 : vector<4x32xf32>
    %256 = math.exp %255 : vector<4x32xf32>
    %cst_40 = arith.constant 1.000000e+00 : f32
    %257 = vector.broadcast %cst_40 : f32 to vector<4x32xf32>
    %258 = arith.addf %257, %256 : vector<4x32xf32>
    %259 = arith.divf %257, %258 : vector<4x32xf32>
    %260 = vector.extract_strided_slice %239 {offsets = [0, 64], sizes = [4, 32], strides = [1, 1]} : vector<4x96xf32> to vector<4x32xf32>
    %261 = vector.extract_strided_slice %243 {offsets = [0, 64], sizes = [4, 32], strides = [1, 1]} : vector<4x96xf32> to vector<4x32xf32>
    %262 = arith.mulf %251, %261 : vector<4x32xf32>
    %263 = arith.addf %260, %262 : vector<4x32xf32>
    %264 = math.tanh %263 : vector<4x32xf32>
    %cst_41 = arith.constant 1.000000e+00 : f32
    %265 = vector.broadcast %cst_41 : f32 to vector<4x32xf32>
    %266 = arith.subf %265, %259 : vector<4x32xf32>
    %267 = arith.mulf %266, %264 : vector<4x32xf32>
    %268 = arith.mulf %259, %232 : vector<4x32xf32>
    %269 = arith.addf %267, %268 : vector<4x32xf32>
    %c7_i32 = arith.constant 7 : i32
    %270 = vector.broadcast %c7_i32 : i32 to vector<4x1xi32>
    %271 = arith.cmpi eq, %13, %270 : vector<4x1xi32>
    %272 = vector.shape_cast %271 : vector<4x1xi1> to vector<4x1xi1>
    %273 = vector.broadcast %272 : vector<4x1xi1> to vector<4x32xi1>
    %274 = arith.select %273, %269, %237 : vector<4x32xi1>, vector<4x32xf32>
    %275 = vector.extract_strided_slice %9 {offsets = [0, 7, 0], sizes = [4, 1, 96], strides = [1, 1, 1]} : vector<4x8x96xf32> to vector<4x1x96xf32>
    %276 = vector.shape_cast %275 : vector<4x1x96xf32> to vector<4x96xf32>
    %277 = arith.truncf %269 : vector<4x32xf32> to vector<4x32xbf16>
    %cst_42 = arith.constant dense<0.000000e+00> : vector<4x96xf32>
    %278 = tpu.matmul %277, %11, %cst_42 {dimension_numbers = #tpu.dot_dimension_numbers<[1], [1], [0], [0], [0, 0, 1, 0], [], []>} : vector<4x32xbf16>, vector<96x32xbf16>, vector<4x96xf32> -> vector<4x96xf32>
    %279 = vector.broadcast %12 : vector<1x96xf32> to vector<4x96xf32>
    %280 = arith.addf %278, %279 : vector<4x96xf32>
    %281 = vector.extract_strided_slice %276 {offsets = [0, 0], sizes = [4, 32], strides = [1, 1]} : vector<4x96xf32> to vector<4x32xf32>
    %282 = vector.extract_strided_slice %280 {offsets = [0, 0], sizes = [4, 32], strides = [1, 1]} : vector<4x96xf32> to vector<4x32xf32>
    %283 = arith.addf %281, %282 : vector<4x32xf32>
    %284 = arith.negf %283 : vector<4x32xf32>
    %285 = math.exp %284 : vector<4x32xf32>
    %cst_43 = arith.constant 1.000000e+00 : f32
    %286 = vector.broadcast %cst_43 : f32 to vector<4x32xf32>
    %287 = arith.addf %286, %285 : vector<4x32xf32>
    %288 = arith.divf %286, %287 : vector<4x32xf32>
    %289 = vector.extract_strided_slice %276 {offsets = [0, 32], sizes = [4, 32], strides = [1, 1]} : vector<4x96xf32> to vector<4x32xf32>
    %290 = vector.extract_strided_slice %280 {offsets = [0, 32], sizes = [4, 32], strides = [1, 1]} : vector<4x96xf32> to vector<4x32xf32>
    %291 = arith.addf %289, %290 : vector<4x32xf32>
    %292 = arith.negf %291 : vector<4x32xf32>
    %293 = math.exp %292 : vector<4x32xf32>
    %cst_44 = arith.constant 1.000000e+00 : f32
    %294 = vector.broadcast %cst_44 : f32 to vector<4x32xf32>
    %295 = arith.addf %294, %293 : vector<4x32xf32>
    %296 = arith.divf %294, %295 : vector<4x32xf32>
    %297 = vector.extract_strided_slice %276 {offsets = [0, 64], sizes = [4, 32], strides = [1, 1]} : vector<4x96xf32> to vector<4x32xf32>
    %298 = vector.extract_strided_slice %280 {offsets = [0, 64], sizes = [4, 32], strides = [1, 1]} : vector<4x96xf32> to vector<4x32xf32>
    %299 = arith.mulf %288, %298 : vector<4x32xf32>
    %300 = arith.addf %297, %299 : vector<4x32xf32>
    %301 = math.tanh %300 : vector<4x32xf32>
    %cst_45 = arith.constant 1.000000e+00 : f32
    %302 = vector.broadcast %cst_45 : f32 to vector<4x32xf32>
    %303 = arith.subf %302, %296 : vector<4x32xf32>
    %304 = arith.mulf %303, %301 : vector<4x32xf32>
    %305 = arith.mulf %296, %269 : vector<4x32xf32>
    %306 = arith.addf %304, %305 : vector<4x32xf32>
    %c8_i32 = arith.constant 8 : i32
    %307 = vector.broadcast %c8_i32 : i32 to vector<4x1xi32>
    %308 = arith.cmpi eq, %13, %307 : vector<4x1xi32>
    %309 = vector.shape_cast %308 : vector<4x1xi1> to vector<4x1xi1>
    %310 = vector.broadcast %309 : vector<4x1xi1> to vector<4x32xi1>
    %311 = arith.select %310, %306, %274 : vector<4x32xi1>, vector<4x32xf32>
    %c0_46 = arith.constant 0 : index
    %c0_47 = arith.constant 0 : index
    %312 = vector.load %arg7[%c0_46, %c0_47] : memref<4x32xf32, #tpu.memory_space<vmem>>, vector<4x32xf32>
    %c0_48 = arith.constant 0 : index
    %c0_49 = arith.constant 0 : index
    %313 = vector.load %arg8[%c0_48, %c0_49] : memref<4x32xf32, #tpu.memory_space<vmem>>, vector<4x32xf32>
    %cst_50 = arith.constant dense<0.000000e+00> : vector<4xf32>
    %314 = vector.multi_reduction <add>, %311, %cst_50 [1] : vector<4x32xf32> to vector<4xf32>
    %315 = vector.shape_cast %314 : vector<4xf32> to vector<4x1xf32>
    %cst_51 = arith.constant 3.200000e+01 : f32
    %316 = vector.broadcast %cst_51 : f32 to vector<4x1xf32>
    %317 = arith.divf %315, %316 : vector<4x1xf32>
    %318 = vector.broadcast %317 : vector<4x1xf32> to vector<4x32xf32>
    %319 = arith.subf %311, %318 : vector<4x32xf32>
    %320 = vector.broadcast %317 : vector<4x1xf32> to vector<4x32xf32>
    %321 = arith.subf %311, %320 : vector<4x32xf32>
    %322 = arith.mulf %319, %321 : vector<4x32xf32>
    %cst_52 = arith.constant dense<0.000000e+00> : vector<4xf32>
    %323 = vector.multi_reduction <add>, %322, %cst_52 [1] : vector<4x32xf32> to vector<4xf32>
    %324 = vector.shape_cast %323 : vector<4xf32> to vector<4x1xf32>
    %cst_53 = arith.constant 3.200000e+01 : f32
    %325 = vector.broadcast %cst_53 : f32 to vector<4x1xf32>
    %326 = arith.divf %324, %325 : vector<4x1xf32>
    %327 = vector.broadcast %317 : vector<4x1xf32> to vector<4x32xf32>
    %328 = arith.subf %311, %327 : vector<4x32xf32>
    %cst_54 = arith.constant 9.99999974E-6 : f32
    %329 = vector.broadcast %cst_54 : f32 to vector<4x1xf32>
    %330 = arith.addf %326, %329 : vector<4x1xf32>
    %331 = math.rsqrt %330 : vector<4x1xf32>
    %332 = vector.broadcast %331 : vector<4x1xf32> to vector<4x32xf32>
    %333 = arith.mulf %328, %332 : vector<4x32xf32>
    %334 = arith.mulf %333, %312 : vector<4x32xf32>
    %335 = arith.addf %334, %313 : vector<4x32xf32>
    %c0_55 = arith.constant 0 : index
    %c0_56 = arith.constant 0 : index
    %336 = vector.load %arg9[%c0_55, %c0_56] : memref<4x32xf32, #tpu.memory_space<vmem>>, vector<4x32xf32>
    tpu.vector_store %arg9[%c0_55, %c0_56], %335 {strides = array<i32>} : memref<4x32xf32, #tpu.memory_space<vmem>>, vector<4x32xf32>,
    return
  }
  func.func @transform_0(%arg0: i32) -> (i32, i32, i32) {
    %c0_i32 = arith.constant 0 : i32
    %c0_i32_0 = arith.constant 0 : i32
    %c0_i32_1 = arith.constant 0 : i32
    %c0_i32_2 = arith.constant 0 : i32
    return %c0_i32, %c0_i32_0, %c0_i32_1 : i32, i32, i32
  }
  func.func @transform_1(%arg0: i32) -> (i32, i32) {
    %c0_i32 = arith.constant 0 : i32
    %c0_i32_0 = arith.constant 0 : i32
    %c0_i32_1 = arith.constant 0 : i32
    return %c0_i32, %c0_i32_0 : i32, i32
  }
  func.func @transform_2(%arg0: i32) -> (i32, i32) {
    %c0_i32 = arith.constant 0 : i32
    %c0_i32_0 = arith.constant 0 : i32
    %c0_i32_1 = arith.constant 0 : i32
    return %c0_i32, %c0_i32_0 : i32, i32
  }
  func.func @transform_3(%arg0: i32) -> (i32, i32) {
    %c0_i32 = arith.constant 0 : i32
    %c0_i32_0 = arith.constant 0 : i32
    %c0_i32_1 = arith.constant 0 : i32
    return %c0_i32, %c0_i32_0 : i32, i32
  }
  func.func @transform_4(%arg0: i32) -> (i32, i32) {
    %c0_i32 = arith.constant 0 : i32
    %c0_i32_0 = arith.constant 0 : i32
    %c0_i32_1 = arith.constant 0 : i32
    return %c0_i32, %c0_i32_0 : i32, i32
  }
  func.func @transform_5(%arg0: i32) -> (i32, i32) {
    %c0_i32 = arith.constant 0 : i32
    %c0_i32_0 = arith.constant 0 : i32
    %c0_i32_1 = arith.constant 0 : i32
    return %c0_i32, %c0_i32_0 : i32, i32
  }
  func.func @transform_6(%arg0: i32) -> (i32, i32) {
    %c0_i32 = arith.constant 0 : i32
    %c0_i32_0 = arith.constant 0 : i32
    %c0_i32_1 = arith.constant 0 : i32
    return %c0_i32, %c0_i32_0 : i32, i32
  }
  func.func @transform_7(%arg0: i32) -> (i32, i32) {
    %c0_i32 = arith.constant 0 : i32
    %c0_i32_0 = arith.constant 0 : i32
    %c0_i32_1 = arith.constant 0 : i32
    return %c0_i32, %c0_i32_0 : i32, i32
  }
  func.func @transform_8(%arg0: i32) -> (i32, i32) {
    %c0_i32 = arith.constant 0 : i32
    %c0_i32_0 = arith.constant 0 : i32
    %c0_i32_1 = arith.constant 0 : i32
    return %c0_i32, %c0_i32_0 : i32, i32
  }
}

module attributes {stable_mosaic.version = 11 : i64} {
  func.func @_trans_pop_kernel(%arg0: i32, %arg1: memref<256x32xf32, #tpu.memory_space<vmem>>, %arg2: memref<32x32xf32, #tpu.memory_space<vmem>>, %arg3: memref<1x32xf32, #tpu.memory_space<vmem>>, %arg4: memref<8x32xf32, #tpu.memory_space<vmem>>, %arg5: memref<1x8xf32, #tpu.memory_space<vmem>>, %arg6: memref<8x32xf32, #tpu.memory_space<vmem>>, %arg7: memref<32x32xf32, #tpu.memory_space<vmem>>, %arg8: memref<1x32xf32, #tpu.memory_space<vmem>>, %arg9: memref<1x32xf32, #tpu.memory_space<vmem>>, %arg10: memref<1x32xf32, #tpu.memory_space<vmem>>, %arg11: memref<256x32xf32, #tpu.memory_space<vmem>>) attributes {dimension_semantics = [#tpu.dimension_semantics<parallel>], iteration_bounds = array<i64: 2>, scalar_prefetch = 0 : i64, scratch_operands = 0 : i64, tpu.core_type = #tpu.core_type<tc>, window_params = [{transform_indices = @transform_0, window_bounds = array<i64: 256, 32>}, {pipeline_mode = #tpu.pipeline_mode<synchronous>, transform_indices = @transform_1, window_bounds = array<i64: 32, 32>}, {pipeline_mode = #tpu.pipeline_mode<synchronous>, transform_indices = @transform_2, window_bounds = array<i64: 1, 32>}, {pipeline_mode = #tpu.pipeline_mode<synchronous>, transform_indices = @transform_3, window_bounds = array<i64: 8, 32>}, {pipeline_mode = #tpu.pipeline_mode<synchronous>, transform_indices = @transform_4, window_bounds = array<i64: 1, 8>}, {pipeline_mode = #tpu.pipeline_mode<synchronous>, transform_indices = @transform_5, window_bounds = array<i64: 8, 32>}, {pipeline_mode = #tpu.pipeline_mode<synchronous>, transform_indices = @transform_6, window_bounds = array<i64: 32, 32>}, {pipeline_mode = #tpu.pipeline_mode<synchronous>, transform_indices = @transform_7, window_bounds = array<i64: 1, 32>}, {pipeline_mode = #tpu.pipeline_mode<synchronous>, transform_indices = @transform_8, window_bounds = array<i64: 1, 32>}, {pipeline_mode = #tpu.pipeline_mode<synchronous>, transform_indices = @transform_9, window_bounds = array<i64: 1, 32>}, {transform_indices = @transform_10, window_bounds = array<i64: 256, 32>}]} {
    %c0 = arith.constant 0 : index
    %c0_0 = arith.constant 0 : index
    %0 = vector.load %arg6[%c0, %c0_0] : memref<8x32xf32, #tpu.memory_space<vmem>>, vector<8x32xf32>
    %c0_1 = arith.constant 0 : index
    %c0_2 = arith.constant 0 : index
    %1 = vector.load %arg7[%c0_1, %c0_2] : memref<32x32xf32, #tpu.memory_space<vmem>>, vector<32x32xf32>
    %2 = arith.truncf %0 : vector<8x32xf32> to vector<8x32xbf16>
    %3 = arith.truncf %1 : vector<32x32xf32> to vector<32x32xbf16>
    %cst = arith.constant dense<0.000000e+00> : vector<8x32xf32>
    %4 = tpu.matmul %2, %3, %cst {dimension_numbers = #tpu.dot_dimension_numbers<[1], [1], [0], [0], [0, 0, 1, 0], [], []>} : vector<8x32xbf16>, vector<32x32xbf16>, vector<8x32xf32> -> vector<8x32xf32>
    %c0_3 = arith.constant 0 : index
    %c0_4 = arith.constant 0 : index
    %5 = vector.load %arg8[%c0_3, %c0_4] : memref<1x32xf32, #tpu.memory_space<vmem>>, vector<1x32xf32>
    %6 = vector.broadcast %5 : vector<1x32xf32> to vector<8x32xf32>
    %7 = arith.addf %4, %6 : vector<8x32xf32>
    %c0_5 = arith.constant 0 : index
    %c0_6 = arith.constant 0 : index
    %8 = vector.load %arg1[%c0_5, %c0_6] : memref<256x32xf32, #tpu.memory_space<vmem>>, vector<256x32xf32>
    %c0_7 = arith.constant 0 : index
    %c0_8 = arith.constant 0 : index
    %9 = vector.load %arg2[%c0_7, %c0_8] : memref<32x32xf32, #tpu.memory_space<vmem>>, vector<32x32xf32>
    %10 = arith.truncf %8 : vector<256x32xf32> to vector<256x32xbf16>
    %11 = arith.truncf %9 : vector<32x32xf32> to vector<32x32xbf16>
    %cst_9 = arith.constant dense<0.000000e+00> : vector<256x32xf32>
    %12 = tpu.matmul %10, %11, %cst_9 {dimension_numbers = #tpu.dot_dimension_numbers<[1], [1], [0], [0], [0, 0, 1, 0], [], []>} : vector<256x32xbf16>, vector<32x32xbf16>, vector<256x32xf32> -> vector<256x32xf32>
    %c0_10 = arith.constant 0 : index
    %c0_11 = arith.constant 0 : index
    %13 = vector.load %arg3[%c0_10, %c0_11] : memref<1x32xf32, #tpu.memory_space<vmem>>, vector<1x32xf32>
    %14 = vector.broadcast %13 : vector<1x32xf32> to vector<256x32xf32>
    %15 = arith.addf %12, %14 : vector<256x32xf32>
    %cst_12 = arith.constant 0.000000e+00 : f32
    %16 = vector.broadcast %cst_12 : f32 to vector<256x32xf32>
    %17 = arith.cmpf oge, %15, %16 : vector<256x32xf32>
    %cst_13 = arith.constant 0.00999999977 : f32
    %18 = vector.broadcast %cst_13 : f32 to vector<256x32xf32>
    %19 = arith.mulf %18, %15 : vector<256x32xf32>
    %20 = arith.select %17, %15, %19 : vector<256x32xi1>, vector<256x32xf32>
    %c0_14 = arith.constant 0 : index
    %c0_15 = arith.constant 0 : index
    %21 = vector.load %arg4[%c0_14, %c0_15] : memref<8x32xf32, #tpu.memory_space<vmem>>, vector<8x32xf32>
    %22 = arith.truncf %20 : vector<256x32xf32> to vector<256x32xbf16>
    %23 = arith.truncf %21 : vector<8x32xf32> to vector<8x32xbf16>
    %cst_16 = arith.constant dense<0.000000e+00> : vector<256x8xf32>
    %24 = tpu.matmul %22, %23, %cst_16 {dimension_numbers = #tpu.dot_dimension_numbers<[1], [1], [0], [0], [0, 0, 1, 0], [], []>} : vector<256x32xbf16>, vector<8x32xbf16>, vector<256x8xf32> -> vector<256x8xf32>
    %c0_17 = arith.constant 0 : index
    %c0_18 = arith.constant 0 : index
    %25 = vector.load %arg5[%c0_17, %c0_18] : memref<1x8xf32, #tpu.memory_space<vmem>>, vector<1x8xf32>
    %26 = vector.broadcast %25 : vector<1x8xf32> to vector<256x8xf32>
    %27 = arith.addf %24, %26 : vector<256x8xf32>
    %cst_19 = arith.constant dense<0xFF800000> : vector<256xf32>
    %28 = vector.multi_reduction <maximumf>, %27, %cst_19 [1] : vector<256x8xf32> to vector<256xf32>
    %29 = vector.shape_cast %28 : vector<256xf32> to vector<256x1xf32>
    %30 = vector.broadcast %29 : vector<256x1xf32> to vector<256x8xf32>
    %31 = arith.subf %27, %30 : vector<256x8xf32>
    %32 = math.exp %31 : vector<256x8xf32>
    %cst_20 = arith.constant dense<0.000000e+00> : vector<256xf32>
    %33 = vector.multi_reduction <add>, %32, %cst_20 [1] : vector<256x8xf32> to vector<256xf32>
    %34 = vector.shape_cast %33 : vector<256xf32> to vector<256x1xf32>
    %35 = vector.broadcast %34 : vector<256x1xf32> to vector<256x8xf32>
    %36 = arith.divf %32, %35 : vector<256x8xf32>
    %37 = arith.truncf %36 : vector<256x8xf32> to vector<256x8xbf16>
    %38 = arith.truncf %7 : vector<8x32xf32> to vector<8x32xbf16>
    %cst_21 = arith.constant dense<0.000000e+00> : vector<256x32xf32>
    %39 = tpu.matmul %37, %38, %cst_21 {dimension_numbers = #tpu.dot_dimension_numbers<[1], [0], [0], [1], [0, 0, 1, 1], [], []>} : vector<256x8xbf16>, vector<8x32xbf16>, vector<256x32xf32> -> vector<256x32xf32>
    %c0_22 = arith.constant 0 : index
    %c0_23 = arith.constant 0 : index
    %40 = vector.load %arg9[%c0_22, %c0_23] : memref<1x32xf32, #tpu.memory_space<vmem>>, vector<1x32xf32>
    %c0_24 = arith.constant 0 : index
    %c0_25 = arith.constant 0 : index
    %41 = vector.load %arg10[%c0_24, %c0_25] : memref<1x32xf32, #tpu.memory_space<vmem>>, vector<1x32xf32>
    %cst_26 = arith.constant dense<0.000000e+00> : vector<256xf32>
    %42 = vector.multi_reduction <add>, %39, %cst_26 [1] : vector<256x32xf32> to vector<256xf32>
    %43 = vector.shape_cast %42 : vector<256xf32> to vector<256x1xf32>
    %cst_27 = arith.constant 3.200000e+01 : f32
    %44 = vector.broadcast %cst_27 : f32 to vector<256x1xf32>
    %45 = arith.divf %43, %44 : vector<256x1xf32>
    %46 = vector.broadcast %45 : vector<256x1xf32> to vector<256x32xf32>
    %47 = arith.subf %39, %46 : vector<256x32xf32>
    %48 = vector.broadcast %45 : vector<256x1xf32> to vector<256x32xf32>
    %49 = arith.subf %39, %48 : vector<256x32xf32>
    %50 = arith.mulf %47, %49 : vector<256x32xf32>
    %cst_28 = arith.constant dense<0.000000e+00> : vector<256xf32>
    %51 = vector.multi_reduction <add>, %50, %cst_28 [1] : vector<256x32xf32> to vector<256xf32>
    %52 = vector.shape_cast %51 : vector<256xf32> to vector<256x1xf32>
    %cst_29 = arith.constant 3.200000e+01 : f32
    %53 = vector.broadcast %cst_29 : f32 to vector<256x1xf32>
    %54 = arith.divf %52, %53 : vector<256x1xf32>
    %55 = vector.broadcast %45 : vector<256x1xf32> to vector<256x32xf32>
    %56 = arith.subf %39, %55 : vector<256x32xf32>
    %cst_30 = arith.constant 9.99999974E-6 : f32
    %57 = vector.broadcast %cst_30 : f32 to vector<256x1xf32>
    %58 = arith.addf %54, %57 : vector<256x1xf32>
    %59 = math.rsqrt %58 : vector<256x1xf32>
    %60 = vector.broadcast %59 : vector<256x1xf32> to vector<256x32xf32>
    %61 = arith.mulf %56, %60 : vector<256x32xf32>
    %62 = vector.broadcast %40 : vector<1x32xf32> to vector<256x32xf32>
    %63 = arith.mulf %61, %62 : vector<256x32xf32>
    %64 = vector.broadcast %41 : vector<1x32xf32> to vector<256x32xf32>
    %65 = arith.addf %63, %64 : vector<256x32xf32>
    %c0_31 = arith.constant 0 : index
    %c0_32 = arith.constant 0 : index
    %66 = vector.load %arg11[%c0_31, %c0_32] : memref<256x32xf32, #tpu.memory_space<vmem>>, vector<256x32xf32>
    tpu.vector_store %arg11[%c0_31, %c0_32], %65 {strides = array<i32>} : memref<256x32xf32, #tpu.memory_space<vmem>>, vector<256x32xf32>,
    return
  }
  func.func @transform_0(%arg0: i32) -> (i32, i32) {
    %c0_i32 = arith.constant 0 : i32
    %c0_i32_0 = arith.constant 0 : i32
    return %arg0, %c0_i32 : i32, i32
  }
  func.func @transform_1(%arg0: i32) -> (i32, i32) {
    %c0_i32 = arith.constant 0 : i32
    %c0_i32_0 = arith.constant 0 : i32
    %c0_i32_1 = arith.constant 0 : i32
    return %c0_i32, %c0_i32_0 : i32, i32
  }
  func.func @transform_2(%arg0: i32) -> (i32, i32) {
    %c0_i32 = arith.constant 0 : i32
    %c0_i32_0 = arith.constant 0 : i32
    %c0_i32_1 = arith.constant 0 : i32
    return %c0_i32, %c0_i32_0 : i32, i32
  }
  func.func @transform_3(%arg0: i32) -> (i32, i32) {
    %c0_i32 = arith.constant 0 : i32
    %c0_i32_0 = arith.constant 0 : i32
    %c0_i32_1 = arith.constant 0 : i32
    return %c0_i32, %c0_i32_0 : i32, i32
  }
  func.func @transform_4(%arg0: i32) -> (i32, i32) {
    %c0_i32 = arith.constant 0 : i32
    %c0_i32_0 = arith.constant 0 : i32
    %c0_i32_1 = arith.constant 0 : i32
    return %c0_i32, %c0_i32_0 : i32, i32
  }
  func.func @transform_5(%arg0: i32) -> (i32, i32) {
    %c0_i32 = arith.constant 0 : i32
    %c0_i32_0 = arith.constant 0 : i32
    %c0_i32_1 = arith.constant 0 : i32
    return %c0_i32, %c0_i32_0 : i32, i32
  }
  func.func @transform_6(%arg0: i32) -> (i32, i32) {
    %c0_i32 = arith.constant 0 : i32
    %c0_i32_0 = arith.constant 0 : i32
    %c0_i32_1 = arith.constant 0 : i32
    return %c0_i32, %c0_i32_0 : i32, i32
  }
  func.func @transform_7(%arg0: i32) -> (i32, i32) {
    %c0_i32 = arith.constant 0 : i32
    %c0_i32_0 = arith.constant 0 : i32
    %c0_i32_1 = arith.constant 0 : i32
    return %c0_i32, %c0_i32_0 : i32, i32
  }
  func.func @transform_8(%arg0: i32) -> (i32, i32) {
    %c0_i32 = arith.constant 0 : i32
    %c0_i32_0 = arith.constant 0 : i32
    %c0_i32_1 = arith.constant 0 : i32
    return %c0_i32, %c0_i32_0 : i32, i32
  }
  func.func @transform_9(%arg0: i32) -> (i32, i32) {
    %c0_i32 = arith.constant 0 : i32
    %c0_i32_0 = arith.constant 0 : i32
    %c0_i32_1 = arith.constant 0 : i32
    return %c0_i32, %c0_i32_0 : i32, i32
  }
  func.func @transform_10(%arg0: i32) -> (i32, i32) {
    %c0_i32 = arith.constant 0 : i32
    %c0_i32_0 = arith.constant 0 : i32
    return %arg0, %c0_i32 : i32, i32
  }
}

module attributes {stable_mosaic.version = 11 : i64} {
  func.func @_scores_kernel(%arg0: i32, %arg1: memref<2x32xf32, #tpu.memory_space<vmem>>, %arg2: memref<2x32xf32, #tpu.memory_space<vmem>>, %arg3: memref<256x32xbf16, #tpu.memory_space<vmem>>, %arg4: memref<256x32xbf16, #tpu.memory_space<vmem>>, %arg5: memref<1x2xf32, #tpu.memory_space<vmem>>, %arg6: memref<2x256xf32, #tpu.memory_space<vmem>>, %arg7: memref<2x256xf32, #tpu.memory_space<vmem>>, %arg8: memref<2x256xf32, #tpu.memory_space<vmem>>) attributes {dimension_semantics = [#tpu.dimension_semantics<parallel>], iteration_bounds = array<i64: 2>, scalar_prefetch = 0 : i64, scratch_operands = 0 : i64, tpu.core_type = #tpu.core_type<tc>, window_params = [{pipeline_mode = #tpu.pipeline_mode<synchronous>, transform_indices = @transform_0, window_bounds = array<i64: 2, 32>}, {pipeline_mode = #tpu.pipeline_mode<synchronous>, transform_indices = @transform_1, window_bounds = array<i64: 2, 32>}, {transform_indices = @transform_2, window_bounds = array<i64: 256, 32>}, {transform_indices = @transform_3, window_bounds = array<i64: 256, 32>}, {pipeline_mode = #tpu.pipeline_mode<synchronous>, transform_indices = @transform_4, window_bounds = array<i64: 1, 2>}, {transform_indices = @transform_5, window_bounds = array<i64: 2, 256>}, {transform_indices = @transform_6, window_bounds = array<i64: 2, 256>}, {transform_indices = @transform_7, window_bounds = array<i64: 2, 256>}]} {
    %c0 = arith.constant 0 : index
    %c0_0 = arith.constant 0 : index
    %0 = vector.load %arg1[%c0, %c0_0] : memref<2x32xf32, #tpu.memory_space<vmem>>, vector<2x32xf32>
    %c0_1 = arith.constant 0 : index
    %c0_2 = arith.constant 0 : index
    %1 = vector.load %arg3[%c0_1, %c0_2] : memref<256x32xbf16, #tpu.memory_space<vmem>>, vector<256x32xbf16>
    %2 = arith.truncf %0 : vector<2x32xf32> to vector<2x32xbf16>
    %cst = arith.constant dense<0.000000e+00> : vector<2x256xf32>
    %3 = tpu.matmul %2, %1, %cst {dimension_numbers = #tpu.dot_dimension_numbers<[1], [1], [0], [0], [0, 0, 1, 0], [], []>} : vector<2x32xbf16>, vector<256x32xbf16>, vector<2x256xf32> -> vector<2x256xf32>
    %c0_3 = arith.constant 0 : index
    %c0_4 = arith.constant 0 : index
    %4 = vector.load %arg2[%c0_3, %c0_4] : memref<2x32xf32, #tpu.memory_space<vmem>>, vector<2x32xf32>
    %c0_5 = arith.constant 0 : index
    %c0_6 = arith.constant 0 : index
    %5 = vector.load %arg4[%c0_5, %c0_6] : memref<256x32xbf16, #tpu.memory_space<vmem>>, vector<256x32xbf16>
    %6 = arith.truncf %4 : vector<2x32xf32> to vector<2x32xbf16>
    %cst_7 = arith.constant dense<0.000000e+00> : vector<2x256xf32>
    %7 = tpu.matmul %6, %5, %cst_7 {dimension_numbers = #tpu.dot_dimension_numbers<[1], [1], [0], [0], [0, 0, 1, 0], [], []>} : vector<2x32xbf16>, vector<256x32xbf16>, vector<2x256xf32> -> vector<2x256xf32>
    %c0_8 = arith.constant 0 : index
    %c0_9 = arith.constant 0 : index
    %8 = vector.load %arg5[%c0_8, %c0_9] : memref<1x2xf32, #tpu.memory_space<vmem>>, vector<1x2xf32>
    %9 = arith.negf %8 : vector<1x2xf32>
    %10 = math.exp %9 : vector<1x2xf32>
    %cst_10 = arith.constant 1.000000e+00 : f32
    %11 = vector.broadcast %cst_10 : f32 to vector<1x2xf32>
    %12 = arith.addf %11, %10 : vector<1x2xf32>
    %13 = arith.divf %11, %12 : vector<1x2xf32>
    %14 = vector.extract_strided_slice %13 {offsets = [0, 0], sizes = [1, 1], strides = [1, 1]} : vector<1x2xf32> to vector<1x1xf32>
    %15 = vector.broadcast %14 : vector<1x1xf32> to vector<2x256xf32>
    %16 = arith.mulf %15, %3 : vector<2x256xf32>
    %17 = vector.extract_strided_slice %13 {offsets = [0, 1], sizes = [1, 1], strides = [1, 1]} : vector<1x2xf32> to vector<1x1xf32>
    %18 = vector.broadcast %17 : vector<1x1xf32> to vector<2x256xf32>
    %19 = arith.mulf %18, %7 : vector<2x256xf32>
    %20 = arith.addf %16, %19 : vector<2x256xf32>
    %c0_11 = arith.constant 0 : index
    %c0_12 = arith.constant 0 : index
    %21 = vector.load %arg6[%c0_11, %c0_12] : memref<2x256xf32, #tpu.memory_space<vmem>>, vector<2x256xf32>
    tpu.vector_store %arg6[%c0_11, %c0_12], %20 {strides = array<i32>} : memref<2x256xf32, #tpu.memory_space<vmem>>, vector<2x256xf32>,
    %c0_13 = arith.constant 0 : index
    %c0_14 = arith.constant 0 : index
    %22 = vector.load %arg7[%c0_13, %c0_14] : memref<2x256xf32, #tpu.memory_space<vmem>>, vector<2x256xf32>
    tpu.vector_store %arg7[%c0_13, %c0_14], %3 {strides = array<i32>} : memref<2x256xf32, #tpu.memory_space<vmem>>, vector<2x256xf32>,
    %c0_15 = arith.constant 0 : index
    %c0_16 = arith.constant 0 : index
    %23 = vector.load %arg8[%c0_15, %c0_16] : memref<2x256xf32, #tpu.memory_space<vmem>>, vector<2x256xf32>
    tpu.vector_store %arg8[%c0_15, %c0_16], %7 {strides = array<i32>} : memref<2x256xf32, #tpu.memory_space<vmem>>, vector<2x256xf32>,
    return
  }
  func.func @transform_0(%arg0: i32) -> (i32, i32) {
    %c0_i32 = arith.constant 0 : i32
    %c0_i32_0 = arith.constant 0 : i32
    %c0_i32_1 = arith.constant 0 : i32
    return %c0_i32, %c0_i32_0 : i32, i32
  }
  func.func @transform_1(%arg0: i32) -> (i32, i32) {
    %c0_i32 = arith.constant 0 : i32
    %c0_i32_0 = arith.constant 0 : i32
    %c0_i32_1 = arith.constant 0 : i32
    return %c0_i32, %c0_i32_0 : i32, i32
  }
  func.func @transform_2(%arg0: i32) -> (i32, i32) {
    %c0_i32 = arith.constant 0 : i32
    %c0_i32_0 = arith.constant 0 : i32
    return %arg0, %c0_i32 : i32, i32
  }
  func.func @transform_3(%arg0: i32) -> (i32, i32) {
    %c0_i32 = arith.constant 0 : i32
    %c0_i32_0 = arith.constant 0 : i32
    return %arg0, %c0_i32 : i32, i32
  }
  func.func @transform_4(%arg0: i32) -> (i32, i32) {
    %c0_i32 = arith.constant 0 : i32
    %c0_i32_0 = arith.constant 0 : i32
    %c0_i32_1 = arith.constant 0 : i32
    return %c0_i32, %c0_i32_0 : i32, i32
  }
  func.func @transform_5(%arg0: i32) -> (i32, i32) {
    %c0_i32 = arith.constant 0 : i32
    %c0_i32_0 = arith.constant 0 : i32
    return %c0_i32, %arg0 : i32, i32
  }
  func.func @transform_6(%arg0: i32) -> (i32, i32) {
    %c0_i32 = arith.constant 0 : i32
    %c0_i32_0 = arith.constant 0 : i32
    return %c0_i32, %arg0 : i32, i32
  }
  func.func @transform_7(%arg0: i32) -> (i32, i32) {
    %c0_i32 = arith.constant 0 : i32
    %c0_i32_0 = arith.constant 0 : i32
    return %c0_i32, %arg0 : i32, i32
  }
}

</mosaic_0001>

<bundles_post_ra>
// kernel: lightgcn_lc_forward.6
= control target key start
LH: loop header
LB: loop body
LE: loop exit
PB: predicated region body
PF: predicated region fallthrough
CT: control target
= control target key end

     0   :  { %s1716_s15 = smov 0   ;;  %s2175_s0 = inlined_call_operand.vmem [shape: bf16[512,512], index: 0, kind: input, shape index: {}]   ;;  %s2176_s1 = inlined_call_operand.vmem [shape: f32[512,32], index: 1, kind: input, shape index: {}, may-alias: {1,2}]   ;;  %s2177_s2 = inlined_call_operand.vmem [shape: f32[512,32], index: 2, kind: input, shape index: {}, may-alias: {1,2}]   ;;  %s2178_s3 = inlined_call_operand.vmem [shape: f32[512,32], index: 3, kind: output, shape index: {0}]   ;;  %s2179_s4 = inlined_call_operand.vmem [shape: f32[512,32], index: 4, kind: output, shape index: {1}]  }
   0x1 LB: > { %s1274_s16 = sadd.s32 4294967295, %s1689_s15   ;;  %p1278_p0 = scmp.ge.s32.totalorder %s1689_s15, 1  ;;  %s1689_s15 = sphi %s1716_s15, %s15_s15  }
   0x2   : > { %p178_p1 = scmp.lt.s32.totalorder %s1689_s15, 3 }
   0x4   : > { %p179_p2 = pnand %p1278_p0, %p178_p1 }
   0x5   : > { %v321_v0 = vld [vmem:[%s2176_s1 + $0x80] sm:$0xff] (!%p179_p2)  ;;  %v322_v1 = vld [vmem:[%s2176_s1 + $0x88] sm:$0xff] (!%p179_p2)  ;;  %v323_v11 = vld [vmem:[%s2176_s1 + $0x90] sm:$0xff] (!%p179_p2)  ;;  %s1780_s29 = sshll.u32 (!%p179_p2), %s1274_s16, 5  ;;  %vm1043_vm0 = vcmask (!%p179_p2), 261120  }
   0x6   : > { %182 = sbr.rel (%p179_p2) target bundleno = 384 (0x180), region = 32  ;;  %v353_v2 = vld [vmem:[%s2176_s1 + $0x180] sm:$0xff] (!%p179_p2)  ;;  %v377_v3 = vpack.c.bf16 (!%p179_p2), %v322_v1, %v321_v0  ;;  %v354_v4 = vld [vmem:[%s2176_s1 + $0x188] sm:$0xff] (!%p179_p2)  ;;  %v324_v13 = vld [vmem:[%s2176_s1 + $0x98] sm:$0xff] (!%p179_p2)  ;;  %p216_p3 = scmp.lt.s32.totalorder (!%p179_p2), %s1780_s29, 63 }
   0x7   : > { %v305_v5 = vld [vmem:[%s2176_s1] sm:$0xff] (!%p179_p2)  ;;  %v306_v6 = vld [vmem:[%s2176_s1 + $0x8] sm:$0xff] (!%p179_p2)  ;;  %v393_v7 = vpack.c.bf16 (!%p179_p2), %v354_v4, %v353_v2  ;;  %v355_v14 = vld [vmem:[%s2176_s1 + $0x190] sm:$0xff] (!%p179_p2)  ;;  %v378_v16 = vpack.c.bf16 (!%p179_p2), %v324_v13, %v323_v11 }
   0x8   : > { %v369_v8 = vpack.c.bf16 (!%p179_p2), %v306_v6, %v305_v5  ;;  %v337_v9 = vld [vmem:[%s2176_s1 + $0x100] sm:$0xff] (!%p179_p2)  ;;  %v338_v10 = vld [vmem:[%s2176_s1 + $0x108] sm:$0xff] (!%p179_p2)  ;;  %1355 = vmatprep.subr.bf16.mxu0 (!%p179_p2), %v377_v3  ;;  %v356_v15 = vld [vmem:[%s2176_s1 + $0x198] sm:$0xff] (!%p179_p2) }
   0x9   : > { %v385_v12 = vpack.c.bf16 (!%p179_p2), %v338_v10, %v337_v9  ;;  %1467 = vmatprep.subr.bf16.mxu1 (!%p179_p2), %v393_v7  ;;  %v394_v17 = vpack.c.bf16 (!%p179_p2), %v356_v15, %v355_v14  ;;  %v307_v18 = vld [vmem:[%s2176_s1 + $0x10] sm:$0xff] (!%p179_p2)  ;;  %v308_v19 = vld [vmem:[%s2176_s1 + $0x18] sm:$0xff] (!%p179_p2)  ;;  %v325_v23 = vld [vmem:[%s2176_s1 + $0xa0] sm:$0xff] (!%p179_p2) }
   0xa   : > { %1356 = vmatpush3.bf16.msra.mxu0 (!%p179_p2), %v369_v8  ;;  %v339_v20 = vld [vmem:[%s2176_s1 + $0x110] sm:$0xff] (!%p179_p2)  ;;  %v370_v21 = vpack.c.bf16 (!%p179_p2), %v308_v19, %v307_v18  ;;  %v340_v22 = vld [vmem:[%s2176_s1 + $0x118] sm:$0xff] (!%p179_p2)  ;;  %v326_v24 = vld [vmem:[%s2176_s1 + $0xa8] sm:$0xff] (!%p179_p2) }
   0xb   : > { %1468 = vmatpush3.bf16.msra.mxu1 (!%p179_p2), %v385_v12  ;;  %1357 = vmatprep.subr.bf16.mxu0 (!%p179_p2), %v378_v16  ;;  %v386_v25 = vpack.c.bf16 (!%p179_p2), %v340_v22, %v339_v20  ;;  %v379_v26 = vpack.c.bf16 (!%p179_p2), %v326_v24, %v325_v23  ;;  %v357_v27 = vld [vmem:[%s2176_s1 + $0x1a0] sm:$0xff] (!%p179_p2)  ;;  %v358_v28 = vld [vmem:[%s2176_s1 + $0x1a8] sm:$0xff] (!%p179_p2)  ;;  %v327_v35 = vld [vmem:[%s2176_s1 + $0xb0] sm:$0xff] (!%p179_p2) }
   0xc   : > { %1469 = vmatprep.subr.bf16.mxu1 (!%p179_p2), %v394_v17  ;;  %v309_v29 = vld [vmem:[%s2176_s1 + $0x20] sm:$0xff] (!%p179_p2)  ;;  %v395_v30 = vpack.c.bf16 (!%p179_p2), %v358_v28, %v357_v27  ;;  %v310_v31 = vld [vmem:[%s2176_s1 + $0x28] sm:$0xff] (!%p179_p2)  ;;  %v328_v36 = vld [vmem:[%s2176_s1 + $0xb8] sm:$0xff] (!%p179_p2) }
   0xd   : > { %v341_v32 = vld [vmem:[%s2176_s1 + $0x120] sm:$0xff]  ;;  %v342_v33 = vld [vmem:[%s2176_s1 + $0x128] sm:$0xff]  ;;  %v371_v34 = vpack.c.bf16 %v310_v31, %v309_v29  ;;  %v359_v37 = vld [vmem:[%s2176_s1 + $0x1b0] sm:$0xff]  ;;  %v380_v39 = vpack.c.bf16 %v328_v36, %v327_v35  ;;  %s2181_s29 = smov (!%p216_p3, %s1780_s29), 63 }
   0xe   : > { %1358 = vmatpush3.bf16.msra.mxu0 %v370_v21  ;;  %v387_v38 = vpack.c.bf16 %v342_v33, %v341_v32  ;;  %v360_v40 = vld [vmem:[%s2176_s1 + $0x1b8] sm:$0xff]  ;;  %v311_v41 = vld [vmem:[%s2176_s1 + $0x30] sm:$0xff]  ;;  %v329_v46 = vld [vmem:[%s2176_s1 + $0xc0] sm:$0xff]  ;;  %s1354_s16 = sshll.u32 %s2181_s29, 4  ;;  %s1283_s30 = sshll.u32 %s2181_s29, 3 }
   0xf   : > { %1470 = vmatpush3.bf16.msra.mxu1 %v386_v25  ;;  %1359 = vmatprep.subr.bf16.mxu0 %v379_v26  ;;  %v312_v42 = vld [vmem:[%s2176_s1 + $0x38] sm:$0xff]  ;;  %v396_v43 = vpack.c.bf16 %v360_v40, %v359_v37  ;;  %v343_v44 = vld [vmem:[%s2176_s1 + $0x130] sm:$0xff]  ;;  %v330_v47 = vld [vmem:[%s2176_s1 + $0xc8] sm:$0xff]  ;;  %s1900_s7 = scalar_lea.vmem %s2175_s0, %s1354_s16  ;;  %s2000_s8 = scalar_lea.vmem %s2177_s2, %s1283_s30 }
  0x10   : > { %1471 = vmatprep.subr.bf16.mxu1 %v395_v30  ;;  %v344_v45 = vld [vmem:[%s2176_s1 + $0x138] sm:$0xff]  ;;  %v361_v48 = vld [vmem:[%s2176_s1 + $0x1c0] sm:$0xff]  ;;  %v362_v49 = vld [vmem:[%s2176_s1 + $0x1c8] sm:$0xff]  ;;  %v372_v50 = vpack.c.bf16 %v312_v42, %v311_v41  ;;  %v381_v52 = vpack.c.bf16 %v330_v47, %v329_v46  ;;  %s2005_s29 = scalar_lea.vmem %s2178_s3, %s1283_s30  ;;  %s2011_s12 = scalar_lea.vmem %s2179_s4, %s1283_s30 }
  0x11   : > { %v388_v51 = vpack.c.bf16 %v344_v45, %v343_v44  ;;  %v313_v53 = vld [vmem:[%s2176_s1 + $0x40] sm:$0xff]  ;;  %v314_v54 = vld [vmem:[%s2176_s1 + $0x48] sm:$0xff]  ;;  %v397_v56 = vpack.c.bf16 %v362_v49, %v361_v48  ;;  %v331_v58 = vld [vmem:[%s2176_s1 + $0xd0] sm:$0xff] }
  0x12   : > { %1360 = vmatpush3.bf16.msra.mxu0 %v371_v34  ;;  %v345_v55 = vld [vmem:[%s2176_s1 + $0x140] sm:$0xff]  ;;  %v346_v57 = vld [vmem:[%s2176_s1 + $0x148] sm:$0xff]  ;;  %v332_v59 = vld [vmem:[%s2176_s1 + $0xd8] sm:$0xff]  ;;  %v373_v62 = vpack.c.bf16 %v314_v54, %v313_v53 }
  0x13   : > { %1472 = vmatpush3.bf16.msra.mxu1 %v387_v38  ;;  %1361 = vmatprep.subr.bf16.mxu0 %v380_v39  ;;  %v363_v60 = vld [vmem:[%s2176_s1 + $0x1d0] sm:$0xff]  ;;  %v364_v61 = vld [vmem:[%s2176_s1 + $0x1d8] sm:$0xff]  ;;  %v389_v0 = vpack.c.bf16 %v346_v57, %v345_v55  ;;  %v382_v1 = vpack.c.bf16 %v332_v59, %v331_v58  ;;  %v333_v6 = vld [vmem:[%s2176_s1 + $0xe0] sm:$0xff] }
  0x14   : > { %1473 = vmatprep.subr.bf16.mxu1 %v396_v43  ;;  %v315_v63 = vld [vmem:[%s2176_s1 + $0x50] sm:$0xff]  ;;  %v316_v2 = vld [vmem:[%s2176_s1 + $0x58] sm:$0xff]  ;;  %v398_v5 = vpack.c.bf16 %v364_v61, %v363_v60  ;;  %v334_v7 = vld [vmem:[%s2176_s1 + $0xe8] sm:$0xff] }
  0x15   : > { %v347_v3 = vld [vmem:[%s2176_s1 + $0x150] sm:$0xff]  ;;  %v348_v4 = vld [vmem:[%s2176_s1 + $0x158] sm:$0xff]  ;;  %v365_v8 = vld [vmem:[%s2176_s1 + $0x1e0] sm:$0xff]  ;;  %v374_v12 = vpack.c.bf16 %v316_v2, %v315_v63  ;;  %v383_v17 = vpack.c.bf16 %v334_v7, %v333_v6 }
  0x16   : > { %1362 = vmatpush3.bf16.msra.mxu0 %v372_v50  ;;  %v366_v9 = vld [vmem:[%s2176_s1 + $0x1e8] sm:$0xff]  ;;  %v317_v10 = vld [vmem:[%s2176_s1 + $0x60] sm:$0xff]  ;;  %v335_v15 = vld [vmem:[%s2176_s1 + $0xf0] sm:$0xff]  ;;  %v390_v16 = vpack.c.bf16 %v348_v4, %v347_v3 }
  0x17   : > { %1474 = vmatpush3.bf16.msra.mxu1 %v388_v51  ;;  %1363 = vmatprep.subr.bf16.mxu0 %v381_v52  ;;  %v318_v11 = vld [vmem:[%s2176_s1 + $0x68] sm:$0xff]  ;;  %v349_v13 = vld [vmem:[%s2176_s1 + $0x160] sm:$0xff]  ;;  %v336_v18 = vld [vmem:[%s2176_s1 + $0xf8] sm:$0xff]  ;;  %v399_v19 = vpack.c.bf16 %v366_v9, %v365_v8 }
  0x18   : > { %1475 = vmatprep.subr.bf16.mxu1 %v397_v56  ;;  %v350_v14 = vld [vmem:[%s2176_s1 + $0x168] sm:$0xff]  ;;  %v367_v20 = vld [vmem:[%s2176_s1 + $0x1f0] sm:$0xff]  ;;  %v368_v22 = vld [vmem:[%s2176_s1 + $0x1f8] sm:$0xff]  ;;  %v375_v24 = vpack.c.bf16 %v318_v11, %v317_v10  ;;  %v384_v27 = vpack.c.bf16 %v336_v18, %v335_v15 }
  0x19   : > { %v1589_v21 = vld [vmem:[%s1900_s7 + $0x4] ss:$16 sps:$4 sm:$0xff]   ;;  %v1592_v23 = vld [vmem:[%s1900_s7 + $0xc] ss:$16 sps:$4 sm:$0xff]   ;;  %v391_v26 = vpack.c.bf16 %v350_v14, %v349_v13  ;;  %v400_v29 = vpack.c.bf16 %v368_v22, %v367_v20  ;;  %v1587_v34 = vld [vmem:[%s1900_s7] ss:$16 sps:$4 sm:$0xff]  }
  0x1a   : > { %1364 = vmatpush3.bf16.msra.mxu0 %v373_v62  ;;  %v319_v25 = vld [vmem:[%s2176_s1 + $0x70] sm:$0xff]  ;;  %753 = vmatprep.mubr.bf16.mxu0 %v1589_v21  ;;  %v320_v28 = vld [vmem:[%s2176_s1 + $0x78] sm:$0xff] }
  0x1b   : > { %1476 = vmatpush3.bf16.msra.mxu1 %v389_v0  ;;  %1365 = vmatprep.subr.bf16.mxu0 %v382_v1  ;;  %v351_v30 = vld [vmem:[%s2176_s1 + $0x170] sm:$0xff]  ;;  %v352_v31 = vld [vmem:[%s2176_s1 + $0x178] sm:$0xff]  ;;  %v376_v32 = vpack.c.bf16 %v320_v28, %v319_v25 }
  0x1c   : > { %1477 = vmatprep.subr.bf16.mxu1 %v398_v5  ;;  %914 = vmatprep.mubr.bf16.mxu1 %v1592_v23  ;;  %v392_v33 = vpack.c.bf16 %v352_v31, %v351_v30  ;;  %v1590_v35 = vld [vmem:[%s1900_s7 + $0x8] ss:$16 sps:$4 sm:$0xff]   ;;  %v1593_v36 = vld [vmem:[%s1900_s7 + $0x24] ss:$16 sps:$4 sm:$0xff]   ;;  %v1595_v37 = vld [vmem:[%s1900_s7 + $0x2c] ss:$16 sps:$4 sm:$0xff]  }
  0x1d   : > { %v1597_v38 = vld [vmem:[%s1900_s7 + $0x20] ss:$16 sps:$4 sm:$0xff]   ;;  %v1598_v39 = vld [vmem:[%s1900_s7 + $0x28] ss:$16 sps:$4 sm:$0xff]   ;;  %v1599_v40 = vld [vmem:[%s1900_s7 + $0x44] ss:$16 sps:$4 sm:$0xff]  }
  0x1e   : > { %1366 = vmatpush3.bf16.msra.mxu0 %v374_v12  ;;  %v1601_v41 = vld [vmem:[%s1900_s7 + $0x4c] ss:$16 sps:$4 sm:$0xff]   ;;  %v1603_v42 = vld [vmem:[%s1900_s7 + $0x40] ss:$16 sps:$4 sm:$0xff]   ;;  %v1604_v43 = vld [vmem:[%s1900_s7 + $0x48] ss:$16 sps:$4 sm:$0xff]  }
  0x1f   : > { %1478 = vmatpush3.bf16.msra.mxu1 %v390_v16  ;;  %1367 = vmatprep.subr.bf16.mxu0 %v383_v17  ;;  %v1605_v44 = vld [vmem:[%s1900_s7 + $0x64] ss:$16 sps:$4 sm:$0xff]   ;;  %v1607_v45 = vld [vmem:[%s1900_s7 + $0x6c] ss:$16 sps:$4 sm:$0xff]   ;;  %v1609_v46 = vld [vmem:[%s1900_s7 + $0x60] ss:$16 sps:$4 sm:$0xff]  }
  0x20   : > { %1479 = vmatprep.subr.bf16.mxu1 %v399_v19  ;;  %v1610_v47 = vld [vmem:[%s1900_s7 + $0x68] ss:$16 sps:$4 sm:$0xff]   ;;  %v1611_v48 = vld [vmem:[%s1900_s7 + $0x84] ss:$16 sps:$4 sm:$0xff]   ;;  %v1613_v49 = vld [vmem:[%s1900_s7 + $0x8c] ss:$16 sps:$4 sm:$0xff]  }
  0x21   : > { %v1615_v50 = vld [vmem:[%s1900_s7 + $0x80] ss:$16 sps:$4 sm:$0xff]   ;;  %v1616_v51 = vld [vmem:[%s1900_s7 + $0x88] ss:$16 sps:$4 sm:$0xff]   ;;  %v1617_v52 = vld [vmem:[%s1900_s7 + $0xa4] ss:$16 sps:$4 sm:$0xff]  }
  0x22   : > { %1368 = vmatpush3.bf16.msra.mxu0 %v375_v24  ;;  %v1619_v53 = vld [vmem:[%s1900_s7 + $0xac] ss:$16 sps:$4 sm:$0xff]   ;;  %v1621_v54 = vld [vmem:[%s1900_s7 + $0xa0] ss:$16 sps:$4 sm:$0xff]   ;;  %v1622_v55 = vld [vmem:[%s1900_s7 + $0xa8] ss:$16 sps:$4 sm:$0xff]  }
  0x23   : > { %1480 = vmatpush3.bf16.msra.mxu1 %v391_v26  ;;  %1369 = vmatprep.subr.bf16.mxu0 %v384_v27  ;;  %v1623_v56 = vld [vmem:[%s1900_s7 + $0xc4] ss:$16 sps:$4 sm:$0xff]   ;;  %v1625_v57 = vld [vmem:[%s1900_s7 + $0xcc] ss:$16 sps:$4 sm:$0xff]   ;;  %v1627_v58 = vld [vmem:[%s1900_s7 + $0xc0] ss:$16 sps:$4 sm:$0xff]  }
  0x24   : > { %1481 = vmatprep.subr.bf16.mxu1 %v400_v29  ;;  %v1628_v59 = vld [vmem:[%s1900_s7 + $0xc8] ss:$16 sps:$4 sm:$0xff]   ;;  %v1629_v60 = vld [vmem:[%s1900_s7 + $0xe4] ss:$16 sps:$4 sm:$0xff]   ;;  %v1631_v61 = vld [vmem:[%s1900_s7 + $0xec] ss:$16 sps:$4 sm:$0xff]  }
  0x25   : > { %v1633_v62 = vld [vmem:[%s1900_s7 + $0xe0] ss:$16 sps:$4 sm:$0xff]   ;;  %v1634_v63 = vld [vmem:[%s1900_s7 + $0xe8] ss:$16 sps:$4 sm:$0xff]   ;;  %v1635_v0 = vld [vmem:[%s1900_s7 + $0x104] ss:$16 sps:$4 sm:$0xff]  }
  0x26   : > { %1370 = vmatpush3.bf16.msra.mxu0 %v376_v32  ;;  %v1637_v1 = vld [vmem:[%s1900_s7 + $0x10c] ss:$16 sps:$4 sm:$0xff]   ;;  %v1639_v2 = vld [vmem:[%s1900_s7 + $0x100] ss:$16 sps:$4 sm:$0xff]   ;;  %v1640_v3 = vld [vmem:[%s1900_s7 + $0x108] ss:$16 sps:$4 sm:$0xff]  }
  0x27   : > { %1482 = vmatpush3.bf16.msra.mxu1 %v392_v33  ;;  %v1641_v4 = vld [vmem:[%s1900_s7 + $0x124] ss:$16 sps:$4 sm:$0xff]   ;;  %v1643_v5 = vld [vmem:[%s1900_s7 + $0x12c] ss:$16 sps:$4 sm:$0xff]   ;;  %v1645_v6 = vld [vmem:[%s1900_s7 + $0x120] ss:$16 sps:$4 sm:$0xff]  }
  0x28   : > { %v1646_v7 = vld [vmem:[%s1900_s7 + $0x128] ss:$16 sps:$4 sm:$0xff]   ;;  %v1647_v8 = vld [vmem:[%s1900_s7 + $0x144] ss:$16 sps:$4 sm:$0xff]   ;;  %v1649_v9 = vld [vmem:[%s1900_s7 + $0x14c] ss:$16 sps:$4 sm:$0xff]  }
  0x29   : > { %754 = vmatmul.mubr.bf16.vlgmr.msra.gmra.mrb[0].mxu0 %v1587_v34  ;;  %v1651_v10 = vld [vmem:[%s1900_s7 + $0x140] ss:$16 sps:$4 sm:$0xff]   ;;  %v1652_v11 = vld [vmem:[%s1900_s7 + $0x148] ss:$16 sps:$4 sm:$0xff]   ;;  %v1653_v12 = vld [vmem:[%s1900_s7 + $0x164] ss:$16 sps:$4 sm:$0xff]  }
  0x2a   : > { %915 = vmatmul.mubr.bf16.vlgmr.msra.gmra.mrb[0].mxu1 %v1590_v35  ;;  %761 = vmatprep.mubr.bf16.mxu0 %v1593_v36  ;;  %v1655_v13 = vld [vmem:[%s1900_s7 + $0x16c] ss:$16 sps:$4 sm:$0xff]   ;;  %v1657_v14 = vld [vmem:[%s1900_s7 + $0x160] ss:$16 sps:$4 sm:$0xff]   ;;  %v1658_v15 = vld [vmem:[%s1900_s7 + $0x168] ss:$16 sps:$4 sm:$0xff]  }
  0x2b   : > { %922 = vmatprep.mubr.bf16.mxu1 %v1595_v37  ;;  %v1659_v16 = vld [vmem:[%s1900_s7 + $0x184] ss:$16 sps:$4 sm:$0xff]   ;;  %v1661_v17 = vld [vmem:[%s1900_s7 + $0x18c] ss:$16 sps:$4 sm:$0xff]   ;;  %v1663_v18 = vld [vmem:[%s1900_s7 + $0x180] ss:$16 sps:$4 sm:$0xff]  }
  0x2c   : > { %v1664_v19 = vld [vmem:[%s1900_s7 + $0x188] ss:$16 sps:$4 sm:$0xff]   ;;  %v1665_v20 = vld [vmem:[%s1900_s7 + $0x1a4] ss:$16 sps:$4 sm:$0xff]   ;;  %v1667_v21 = vld [vmem:[%s1900_s7 + $0x1ac] ss:$16 sps:$4 sm:$0xff]  }
  0x2d   : > { %v1669_v22 = vld [vmem:[%s1900_s7 + $0x1a0] ss:$16 sps:$4 sm:$0xff]   ;;  %v1670_v23 = vld [vmem:[%s1900_s7 + $0x1a8] ss:$16 sps:$4 sm:$0xff]   ;;  %v1671_v24 = vld [vmem:[%s1900_s7 + $0x1c4] ss:$16 sps:$4 sm:$0xff]  }
  0x2e   : > { %v1673_v25 = vld [vmem:[%s1900_s7 + $0x1cc] ss:$16 sps:$4 sm:$0xff]   ;;  %v1675_v26 = vld [vmem:[%s1900_s7 + $0x1c0] ss:$16 sps:$4 sm:$0xff]   ;;  %v1676_v27 = vld [vmem:[%s1900_s7 + $0x1c8] ss:$16 sps:$4 sm:$0xff]  }
  0x2f   : > { %v1677_v28 = vld [vmem:[%s1900_s7 + $0x1e4] ss:$16 sps:$4 sm:$0xff]   ;;  %v1679_v29 = vld [vmem:[%s1900_s7 + $0x1ec] ss:$16 sps:$4 sm:$0xff]   ;;  %v1681_v30 = vld [vmem:[%s1900_s7 + $0x1e0] ss:$16 sps:$4 sm:$0xff]  }
  0x30   : > { %v1682_v31 = vld [vmem:[%s1900_s7 + $0x1e8] ss:$16 sps:$4 sm:$0xff]  }
  0x31   : > { %762 = vmatmul.mubr.bf16.gmra.mrb[4].mxu0 %v1597_v38 }
  0x32   : > { %923 = vmatmul.mubr.bf16.gmra.mrb[4].mxu1 %v1598_v39  ;;  %769 = vmatprep.mubr.bf16.mxu0 %v1599_v40 }
  0x33   : > { %930 = vmatprep.mubr.bf16.mxu1 %v1601_v41  ;;  %v1076_v41 = vld [vmem:[%s2000_s8] sm:$0xff] }
  0x39   : > { %770 = vmatmul.mubr.bf16.gmra.mrb[8].mxu0 %v1603_v42 }
  0x3a   : > { %931 = vmatmul.mubr.bf16.gmra.mrb[8].mxu1 %v1604_v43  ;;  %777 = vmatprep.mubr.bf16.mxu0 %v1605_v44 }
  0x3b   : > { %938 = vmatprep.mubr.bf16.mxu1 %v1607_v45 }
  0x41   : > { %778 = vmatmul.mubr.bf16.gmra.mrb[12].mxu0 %v1609_v46  ;;  %v1077_v46 = vld [vmem:[%s2000_s8 + $0x8] sm:$0xff] }
  0x42   : > { %939 = vmatmul.mubr.bf16.gmra.mrb[12].mxu1 %v1610_v47  ;;  %785 = vmatprep.mubr.bf16.mxu0 %v1611_v48 }
  0x43   : > { %946 = vmatprep.mubr.bf16.mxu1 %v1613_v49 }
  0x49   : > { %786 = vmatmul.mubr.bf16.gmra.mrb[16].mxu0 %v1615_v50 }
  0x4a   : > { %947 = vmatmul.mubr.bf16.gmra.mrb[16].mxu1 %v1616_v51  ;;  %793 = vmatprep.mubr.bf16.mxu0 %v1617_v52 }
  0x4b   : > { %954 = vmatprep.mubr.bf16.mxu1 %v1619_v53 }
  0x51   : > { %794 = vmatmul.mubr.bf16.gmra.mrb[20].mxu0 %v1621_v54 }
  0x52   : > { %955 = vmatmul.mubr.bf16.gmra.mrb[20].mxu1 %v1622_v55  ;;  %801 = vmatprep.mubr.bf16.mxu0 %v1623_v56 }
  0x53   : > { %962 = vmatprep.mubr.bf16.mxu1 %v1625_v57 }
  0x59   : > { %802 = vmatmul.mubr.bf16.gmra.mrb[24].mxu0 %v1627_v58 }
  0x5a   : > { %963 = vmatmul.mubr.bf16.gmra.mrb[24].mxu1 %v1628_v59  ;;  %809 = vmatprep.mubr.bf16.mxu0 %v1629_v60  ;;  %v1078_v59 = vld [vmem:[%s2000_s8 + $0x10] sm:$0xff] }
  0x5b   : > { %970 = vmatprep.mubr.bf16.mxu1 %v1631_v61 }
  0x61   : > { %810 = vmatmul.mubr.bf16.gmra.mrb[28].mxu0 %v1633_v62 }
  0x62   : > { %971 = vmatmul.mubr.bf16.gmra.mrb[28].mxu1 %v1634_v63  ;;  %817 = vmatprep.mubr.bf16.mxu0 %v1635_v0  ;;  %v1079_v0 = vld [vmem:[%s2000_s8 + $0x18] sm:$0xff] }
  0x63   : > { %978 = vmatprep.mubr.bf16.mxu1 %v1637_v1 }
  0x69   : > { %818 = vmatmul.mubr.bf16.gmra.mrb[32].mxu0 %v1639_v2 }
  0x6a   : > { %979 = vmatmul.mubr.bf16.gmra.mrb[32].mxu1 %v1640_v3  ;;  %825 = vmatprep.mubr.bf16.mxu0 %v1641_v4 }
  0x6b   : > { %986 = vmatprep.mubr.bf16.mxu1 %v1643_v5 }
  0x71   : > { %826 = vmatmul.mubr.bf16.gmra.mrb[36].mxu0 %v1645_v6 }
  0x72   : > { %987 = vmatmul.mubr.bf16.gmra.mrb[36].mxu1 %v1646_v7  ;;  %833 = vmatprep.mubr.bf16.mxu0 %v1647_v8 }
  0x73   : > { %994 = vmatprep.mubr.bf16.mxu1 %v1649_v9 }
  0x79   : > { %834 = vmatmul.mubr.bf16.gmra.mrb[40].mxu0 %v1651_v10 }
  0x7a   : > { %995 = vmatmul.mubr.bf16.gmra.mrb[40].mxu1 %v1652_v11  ;;  %841 = vmatprep.mubr.bf16.mxu0 %v1653_v12 }
  0x7b   : > { %1002 = vmatprep.mubr.bf16.mxu1 %v1655_v13  ;;  %v1080_v13 = vld [vmem:[%s2000_s8 + $0x20] sm:$0xff] }
  0x81   : > { %842 = vmatmul.mubr.bf16.gmra.mrb[44].mxu0 %v1657_v14 }
  0x82   : > { %1003 = vmatmul.mubr.bf16.gmra.mrb[44].mxu1 %v1658_v15  ;;  %849 = vmatprep.mubr.bf16.mxu0 %v1659_v16 }
  0x83   : > { %1010 = vmatprep.mubr.bf16.mxu1 %v1661_v17 }
  0x89   : > { %850 = vmatmul.mubr.bf16.gmra.mrb[48].mxu0 %v1663_v18  ;;  %v1081_v18 = vld [vmem:[%s2000_s8 + $0x28] sm:$0xff] }
  0x8a   : > { %1011 = vmatmul.mubr.bf16.gmra.mrb[48].mxu1 %v1664_v19  ;;  %857 = vmatprep.mubr.bf16.mxu0 %v1665_v20 }
  0x8b   : > { %1018 = vmatprep.mubr.bf16.mxu1 %v1667_v21 }
  0x91   : > { %858 = vmatmul.mubr.bf16.gmra.mrb[52].mxu0 %v1669_v22 }
  0x92   : > { %1019 = vmatmul.mubr.bf16.gmra.mrb[52].mxu1 %v1670_v23  ;;  %865 = vmatprep.mubr.bf16.mxu0 %v1671_v24 }
  0x93   : > { %1026 = vmatprep.mubr.bf16.mxu1 %v1673_v25 }
  0x99   : > { %866 = vmatmul.mubr.bf16.gmra.mrb[56].mxu0 %v1675_v26 }
  0x9a   : > { %1027 = vmatmul.mubr.bf16.gmra.mrb[56].mxu1 %v1676_v27  ;;  %873 = vmatprep.mubr.bf16.mxu0 %v1677_v28 }
  0x9b   : > { %1034 = vmatprep.mubr.bf16.mxu1 %v1679_v29 }
  0xa1   : > { %874 = vmatmul.mubr.bf16.gmra.mrb[60].mxu0 %v1681_v30 }
  0xa2   : > { %1035 = vmatmul.mubr.bf16.gmra.mrb[60].mxu1 %v1682_v31  ;;  %v1082_v31 = vld [vmem:[%s2000_s8 + $0x30] sm:$0xff] }
  0xfc   : > { %v1371_v32 = vpop.f32.mrb[0].mxu0 }
  0xfd   : > { %v1483_v33 = vpop.f32.mrb[0].mxu1  ;;  %v1372_v34 = vpop.f32.mrb[1].mxu0 }
  0xfe   : > { %v1373_v35 = vadd.f32 %v1372_v34, %v1371_v32  ;;  %v1484_v36 = vpop.f32.mrb[1].mxu1  ;;  %v1374_v37 = vpop.f32.mrb[2].mxu0 }
  0xff   : > { %v1485_v38 = vadd.f32 %v1484_v36, %v1483_v33  ;;  %v1486_v39 = vpop.f32.mrb[2].mxu1  ;;  %v1375_v40 = vpop.f32.mrb[3].mxu0  ;;  %v1083_v36 = vld [vmem:[%s2000_s8 + $0x38] sm:$0xff] }
 0x100   : > { %v1376_v42 = vadd.f32 %v1375_v40, %v1374_v37  ;;  %v1487_v43 = vpop.f32.mrb[3].mxu1 }
 0x101   : > { %v917_v44 = vadd.f32 %v1485_v38, %v1373_v35  ;;  %v1488_v45 = vadd.f32 %v1487_v43, %v1486_v39 }
 0x103   : > { %1044 = vst.msk [vmem:[%s2005_s29] sm:$0xff] %vm1043_vm0, %v917_v44  ;;  %v1108_v47 = vadd.f32 %v1076_v41, %v917_v44  ;;  %v920_v48 = vadd.f32 %v1488_v45, %v1376_v42 }
 0x104   : > { %v1377_v49 = vpop.f32.mrb[4].mxu0 }
 0x105   : > { %1140 = vst.msk [vmem:[%s2011_s12] sm:$0xff] %vm1043_vm0, %v1108_v47  ;;  %1045 = vst.msk [vmem:[%s2005_s29 + $0x8] sm:$0xff] %vm1043_vm0, %v920_v48  ;;  %v1109_v50 = vadd.f32 %v1077_v46, %v920_v48  ;;  %v1489_v51 = vpop.f32.mrb[4].mxu1  ;;  %v1378_v52 = vpop.f32.mrb[5].mxu0 }
 0x106   : > { %v1379_v53 = vadd.f32 %v1378_v52, %v1377_v49  ;;  %v1490_v54 = vpop.f32.mrb[5].mxu1  ;;  %v1380_v55 = vpop.f32.mrb[6].mxu0  ;;  %v1084_v49 = vld [vmem:[%s2000_s8 + $0x40] sm:$0xff] }
 0x107   : > { %1141 = vst.msk [vmem:[%s2011_s12 + $0x8] sm:$0xff] %vm1043_vm0, %v1109_v50  ;;  %v1491_v56 = vadd.f32 %v1490_v54, %v1489_v51  ;;  %v1492_v57 = vpop.f32.mrb[6].mxu1  ;;  %v1381_v58 = vpop.f32.mrb[7].mxu0  ;;  %v1085_v54 = vld [vmem:[%s2000_s8 + $0x48] sm:$0xff] }
 0x108   : > { %v1382_v60 = vadd.f32 %v1381_v58, %v1380_v55  ;;  %v1493_v61 = vpop.f32.mrb[7].mxu1 }
 0x109   : > { %v925_v62 = vadd.f32 %v1491_v56, %v1379_v53  ;;  %v1494_v63 = vadd.f32 %v1493_v61, %v1492_v57 }
 0x10b   : > { %1046 = vst.msk [vmem:[%s2005_s29 + $0x10] sm:$0xff] %vm1043_vm0, %v925_v62  ;;  %v1110_v1 = vadd.f32 %v1078_v59, %v925_v62  ;;  %v928_v2 = vadd.f32 %v1494_v63, %v1382_v60 }
 0x10c   : > { %v1383_v3 = vpop.f32.mrb[8].mxu0 }
 0x10d   : > { %1142 = vst.msk [vmem:[%s2011_s12 + $0x10] sm:$0xff] %vm1043_vm0, %v1110_v1  ;;  %1047 = vst.msk [vmem:[%s2005_s29 + $0x18] sm:$0xff] %vm1043_vm0, %v928_v2  ;;  %v1111_v4 = vadd.f32 %v1079_v0, %v928_v2  ;;  %v1495_v5 = vpop.f32.mrb[8].mxu1  ;;  %v1384_v6 = vpop.f32.mrb[9].mxu0 }
 0x10e   : > { %v1385_v7 = vadd.f32 %v1384_v6, %v1383_v3  ;;  %v1496_v8 = vpop.f32.mrb[9].mxu1  ;;  %v1386_v9 = vpop.f32.mrb[10].mxu0  ;;  %v1086_v3 = vld [vmem:[%s2000_s8 + $0x50] sm:$0xff] }
 0x10f   : > { %1143 = vst.msk [vmem:[%s2011_s12 + $0x18] sm:$0xff] %vm1043_vm0, %v1111_v4  ;;  %v1497_v10 = vadd.f32 %v1496_v8, %v1495_v5  ;;  %v1498_v11 = vpop.f32.mrb[10].mxu1  ;;  %v1387_v12 = vpop.f32.mrb[11].mxu0  ;;  %v1087_v8 = vld [vmem:[%s2000_s8 + $0x58] sm:$0xff] }
 0x110   : > { %v1388_v14 = vadd.f32 %v1387_v12, %v1386_v9  ;;  %v1499_v15 = vpop.f32.mrb[11].mxu1 }
 0x111   : > { %v933_v16 = vadd.f32 %v1497_v10, %v1385_v7  ;;  %v1500_v17 = vadd.f32 %v1499_v15, %v1498_v11 }
 0x113   : > { %1048 = vst.msk [vmem:[%s2005_s29 + $0x20] sm:$0xff] %vm1043_vm0, %v933_v16  ;;  %v1112_v19 = vadd.f32 %v1080_v13, %v933_v16  ;;  %v936_v20 = vadd.f32 %v1500_v17, %v1388_v14 }
 0x114   : > { %v1389_v21 = vpop.f32.mrb[12].mxu0 }
 0x115   : > { %1144 = vst.msk [vmem:[%s2011_s12 + $0x20] sm:$0xff] %vm1043_vm0, %v1112_v19  ;;  %1049 = vst.msk [vmem:[%s2005_s29 + $0x28] sm:$0xff] %vm1043_vm0, %v936_v20  ;;  %v1113_v22 = vadd.f32 %v1081_v18, %v936_v20  ;;  %v1501_v23 = vpop.f32.mrb[12].mxu1  ;;  %v1390_v24 = vpop.f32.mrb[13].mxu0 }
 0x116   : > { %v1391_v25 = vadd.f32 %v1390_v24, %v1389_v21  ;;  %v1502_v26 = vpop.f32.mrb[13].mxu1  ;;  %v1392_v27 = vpop.f32.mrb[14].mxu0  ;;  %v1088_v21 = vld [vmem:[%s2000_s8 + $0x60] sm:$0xff] }
 0x117   : > { %1145 = vst.msk [vmem:[%s2011_s12 + $0x28] sm:$0xff] %vm1043_vm0, %v1113_v22  ;;  %v1503_v28 = vadd.f32 %v1502_v26, %v1501_v23  ;;  %v1504_v29 = vpop.f32.mrb[14].mxu1  ;;  %v1393_v30 = vpop.f32.mrb[15].mxu0  ;;  %v1089_v26 = vld [vmem:[%s2000_s8 + $0x68] sm:$0xff] }
 0x118   : > { %v1394_v32 = vadd.f32 %v1393_v30, %v1392_v27  ;;  %v1505_v33 = vpop.f32.mrb[15].mxu1 }
 0x119   : > { %v941_v34 = vadd.f32 %v1503_v28, %v1391_v25  ;;  %v1506_v35 = vadd.f32 %v1505_v33, %v1504_v29 }
 0x11b   : > { %1050 = vst.msk [vmem:[%s2005_s29 + $0x30] sm:$0xff] %vm1043_vm0, %v941_v34  ;;  %v1114_v37 = vadd.f32 %v1082_v31, %v941_v34  ;;  %v944_v38 = vadd.f32 %v1506_v35, %v1394_v32 }
 0x11c   : > { %v1395_v39 = vpop.f32.mrb[16].mxu0 }
 0x11d   : > { %1146 = vst.msk [vmem:[%s2011_s12 + $0x30] sm:$0xff] %vm1043_vm0, %v1114_v37  ;;  %1051 = vst.msk [vmem:[%s2005_s29 + $0x38] sm:$0xff] %vm1043_vm0, %v944_v38  ;;  %v1115_v40 = vadd.f32 %v1083_v36, %v944_v38  ;;  %v1507_v41 = vpop.f32.mrb[16].mxu1  ;;  %v1396_v42 = vpop.f32.mrb[17].mxu0 }
 0x11e   : > { %v1397_v43 = vadd.f32 %v1396_v42, %v1395_v39  ;;  %v1508_v44 = vpop.f32.mrb[17].mxu1  ;;  %v1398_v45 = vpop.f32.mrb[18].mxu0  ;;  %v1090_v39 = vld [vmem:[%s2000_s8 + $0x70] sm:$0xff] }
 0x11f   : > { %1147 = vst.msk [vmem:[%s2011_s12 + $0x38] sm:$0xff] %vm1043_vm0, %v1115_v40  ;;  %v1509_v46 = vadd.f32 %v1508_v44, %v1507_v41  ;;  %v1510_v47 = vpop.f32.mrb[18].mxu1  ;;  %v1399_v48 = vpop.f32.mrb[19].mxu0  ;;  %v1091_v44 = vld [vmem:[%s2000_s8 + $0x78] sm:$0xff] }
 0x120   : > { %v1400_v50 = vadd.f32 %v1399_v48, %v1398_v45  ;;  %v1511_v51 = vpop.f32.mrb[19].mxu1 }
 0x121   : > { %v949_v52 = vadd.f32 %v1509_v46, %v1397_v43  ;;  %v1512_v53 = vadd.f32 %v1511_v51, %v1510_v47 }
 0x123   : > { %1052 = vst.msk [vmem:[%s2005_s29 + $0x40] sm:$0xff] %vm1043_vm0, %v949_v52  ;;  %v1116_v55 = vadd.f32 %v1084_v49, %v949_v52  ;;  %v952_v56 = vadd.f32 %v1512_v53, %v1400_v50 }
 0x124   : > { %v1401_v57 = vpop.f32.mrb[20].mxu0 }
 0x125   : > { %1148 = vst.msk [vmem:[%s2011_s12 + $0x40] sm:$0xff] %vm1043_vm0, %v1116_v55  ;;  %1053 = vst.msk [vmem:[%s2005_s29 + $0x48] sm:$0xff] %vm1043_vm0, %v952_v56  ;;  %v1117_v58 = vadd.f32 %v1085_v54, %v952_v56  ;;  %v1513_v59 = vpop.f32.mrb[20].mxu1  ;;  %v1402_v60 = vpop.f32.mrb[21].mxu0 }
 0x126   : > { %v1403_v61 = vadd.f32 %v1402_v60, %v1401_v57  ;;  %v1514_v62 = vpop.f32.mrb[21].mxu1  ;;  %v1404_v63 = vpop.f32.mrb[22].mxu0  ;;  %v1092_v57 = vld [vmem:[%s2000_s8 + $0x80] sm:$0xff] }
 0x127   : > { %1149 = vst.msk [vmem:[%s2011_s12 + $0x48] sm:$0xff] %vm1043_vm0, %v1117_v58  ;;  %v1515_v0 = vadd.f32 %v1514_v62, %v1513_v59  ;;  %v1516_v1 = vpop.f32.mrb[22].mxu1  ;;  %v1405_v2 = vpop.f32.mrb[23].mxu0  ;;  %v1093_v62 = vld [vmem:[%s2000_s8 + $0x88] sm:$0xff] }
 0x128   : > { %v1406_v4 = vadd.f32 %v1405_v2, %v1404_v63  ;;  %v1517_v5 = vpop.f32.mrb[23].mxu1 }
 0x129   : > { %v957_v6 = vadd.f32 %v1515_v0, %v1403_v61  ;;  %v1518_v7 = vadd.f32 %v1517_v5, %v1516_v1 }
 0x12b   : > { %1054 = vst.msk [vmem:[%s2005_s29 + $0x50] sm:$0xff] %vm1043_vm0, %v957_v6  ;;  %v1118_v9 = vadd.f32 %v1086_v3, %v957_v6  ;;  %v960_v10 = vadd.f32 %v1518_v7, %v1406_v4 }
 0x12c   : > { %v1407_v11 = vpop.f32.mrb[24].mxu0 }
 0x12d   : > { %1150 = vst.msk [vmem:[%s2011_s12 + $0x50] sm:$0xff] %vm1043_vm0, %v1118_v9  ;;  %1055 = vst.msk [vmem:[%s2005_s29 + $0x58] sm:$0xff] %vm1043_vm0, %v960_v10  ;;  %v1119_v12 = vadd.f32 %v1087_v8, %v960_v10  ;;  %v1519_v13 = vpop.f32.mrb[24].mxu1  ;;  %v1408_v14 = vpop.f32.mrb[25].mxu0 }
 0x12e   : > { %v1409_v15 = vadd.f32 %v1408_v14, %v1407_v11  ;;  %v1520_v16 = vpop.f32.mrb[25].mxu1  ;;  %v1410_v17 = vpop.f32.mrb[26].mxu0  ;;  %v1094_v11 = vld [vmem:[%s2000_s8 + $0x90] sm:$0xff] }
 0x12f   : > { %1151 = vst.msk [vmem:[%s2011_s12 + $0x58] sm:$0xff] %vm1043_vm0, %v1119_v12  ;;  %v1521_v18 = vadd.f32 %v1520_v16, %v1519_v13  ;;  %v1522_v19 = vpop.f32.mrb[26].mxu1  ;;  %v1411_v20 = vpop.f32.mrb[27].mxu0  ;;  %v1095_v16 = vld [vmem:[%s2000_s8 + $0x98] sm:$0xff] }
 0x130   : > { %v1412_v22 = vadd.f32 %v1411_v20, %v1410_v17  ;;  %v1523_v23 = vpop.f32.mrb[27].mxu1 }
 0x131   : > { %v965_v24 = vadd.f32 %v1521_v18, %v1409_v15  ;;  %v1524_v25 = vadd.f32 %v1523_v23, %v1522_v19 }
 0x133   : > { %1056 = vst.msk [vmem:[%s2005_s29 + $0x60] sm:$0xff] %vm1043_vm0, %v965_v24  ;;  %v1120_v27 = vadd.f32 %v1088_v21, %v965_v24  ;;  %v968_v28 = vadd.f32 %v1524_v25, %v1412_v22 }
 0x134   : > { %v1413_v29 = vpop.f32.mrb[28].mxu0 }
 0x135   : > { %1152 = vst.msk [vmem:[%s2011_s12 + $0x60] sm:$0xff] %vm1043_vm0, %v1120_v27  ;;  %1057 = vst.msk [vmem:[%s2005_s29 + $0x68] sm:$0xff] %vm1043_vm0, %v968_v28  ;;  %v1121_v30 = vadd.f32 %v1089_v26, %v968_v28  ;;  %v1525_v31 = vpop.f32.mrb[28].mxu1  ;;  %v1414_v32 = vpop.f32.mrb[29].mxu0 }
 0x136   : > { %v1415_v33 = vadd.f32 %v1414_v32, %v1413_v29  ;;  %v1526_v34 = vpop.f32.mrb[29].mxu1  ;;  %v1416_v35 = vpop.f32.mrb[30].mxu0  ;;  %v1096_v29 = vld [vmem:[%s2000_s8 + $0xa0] sm:$0xff] }
 0x137   : > { %1153 = vst.msk [vmem:[%s2011_s12 + $0x68] sm:$0xff] %vm1043_vm0, %v1121_v30  ;;  %v1527_v36 = vadd.f32 %v1526_v34, %v1525_v31  ;;  %v1528_v37 = vpop.f32.mrb[30].mxu1  ;;  %v1417_v38 = vpop.f32.mrb[31].mxu0  ;;  %v1097_v34 = vld [vmem:[%s2000_s8 + $0xa8] sm:$0xff] }
 0x138   : > { %v1418_v40 = vadd.f32 %v1417_v38, %v1416_v35  ;;  %v1529_v41 = vpop.f32.mrb[31].mxu1 }
 0x139   : > { %v973_v42 = vadd.f32 %v1527_v36, %v1415_v33  ;;  %v1530_v43 = vadd.f32 %v1529_v41, %v1528_v37 }
 0x13b   : > { %1058 = vst.msk [vmem:[%s2005_s29 + $0x70] sm:$0xff] %vm1043_vm0, %v973_v42  ;;  %v1122_v45 = vadd.f32 %v1090_v39, %v973_v42  ;;  %v976_v46 = vadd.f32 %v1530_v43, %v1418_v40 }
 0x13c   : > { %v1419_v47 = vpop.f32.mrb[32].mxu0 }
 0x13d   : > { %1154 = vst.msk [vmem:[%s2011_s12 + $0x70] sm:$0xff] %vm1043_vm0, %v1122_v45  ;;  %1059 = vst.msk [vmem:[%s2005_s29 + $0x78] sm:$0xff] %vm1043_vm0, %v976_v46  ;;  %v1123_v48 = vadd.f32 %v1091_v44, %v976_v46  ;;  %v1531_v49 = vpop.f32.mrb[32].mxu1  ;;  %v1420_v50 = vpop.f32.mrb[33].mxu0 }
 0x13e   : > { %v1421_v51 = vadd.f32 %v1420_v50, %v1419_v47  ;;  %v1532_v52 = vpop.f32.mrb[33].mxu1  ;;  %v1422_v53 = vpop.f32.mrb[34].mxu0  ;;  %v1098_v47 = vld [vmem:[%s2000_s8 + $0xb0] sm:$0xff] }
 0x13f   : > { %1155 = vst.msk [vmem:[%s2011_s12 + $0x78] sm:$0xff] %vm1043_vm0, %v1123_v48  ;;  %v1533_v54 = vadd.f32 %v1532_v52, %v1531_v49  ;;  %v1534_v55 = vpop.f32.mrb[34].mxu1  ;;  %v1423_v56 = vpop.f32.mrb[35].mxu0  ;;  %v1099_v52 = vld [vmem:[%s2000_s8 + $0xb8] sm:$0xff] }
 0x140   : > { %v1424_v58 = vadd.f32 %v1423_v56, %v1422_v53  ;;  %v1535_v59 = vpop.f32.mrb[35].mxu1 }
 0x141   : > { %v981_v60 = vadd.f32 %v1533_v54, %v1421_v51  ;;  %v1536_v61 = vadd.f32 %v1535_v59, %v1534_v55 }
 0x143   : > { %1060 = vst.msk [vmem:[%s2005_s29 + $0x80] sm:$0xff] %vm1043_vm0, %v981_v60  ;;  %v1124_v63 = vadd.f32 %v1092_v57, %v981_v60  ;;  %v984_v0 = vadd.f32 %v1536_v61, %v1424_v58 }
 0x144   : > { %v1425_v1 = vpop.f32.mrb[36].mxu0 }
 0x145   : > { %1156 = vst.msk [vmem:[%s2011_s12 + $0x80] sm:$0xff] %vm1043_vm0, %v1124_v63  ;;  %1061 = vst.msk [vmem:[%s2005_s29 + $0x88] sm:$0xff] %vm1043_vm0, %v984_v0  ;;  %v1125_v2 = vadd.f32 %v1093_v62, %v984_v0  ;;  %v1537_v3 = vpop.f32.mrb[36].mxu1  ;;  %v1426_v4 = vpop.f32.mrb[37].mxu0 }
 0x146   : > { %v1427_v5 = vadd.f32 %v1426_v4, %v1425_v1  ;;  %v1538_v6 = vpop.f32.mrb[37].mxu1  ;;  %v1428_v7 = vpop.f32.mrb[38].mxu0  ;;  %v1100_v1 = vld [vmem:[%s2000_s8 + $0xc0] sm:$0xff] }
 0x147   : > { %1157 = vst.msk [vmem:[%s2011_s12 + $0x88] sm:$0xff] %vm1043_vm0, %v1125_v2  ;;  %v1539_v8 = vadd.f32 %v1538_v6, %v1537_v3  ;;  %v1540_v9 = vpop.f32.mrb[38].mxu1  ;;  %v1429_v10 = vpop.f32.mrb[39].mxu0  ;;  %v1101_v6 = vld [vmem:[%s2000_s8 + $0xc8] sm:$0xff] }
 0x148   : > { %v1430_v12 = vadd.f32 %v1429_v10, %v1428_v7  ;;  %v1541_v13 = vpop.f32.mrb[39].mxu1 }
 0x149   : > { %v989_v14 = vadd.f32 %v1539_v8, %v1427_v5  ;;  %v1542_v15 = vadd.f32 %v1541_v13, %v1540_v9 }
 0x14b   : > { %1062 = vst.msk [vmem:[%s2005_s29 + $0x90] sm:$0xff] %vm1043_vm0, %v989_v14  ;;  %v1126_v17 = vadd.f32 %v1094_v11, %v989_v14  ;;  %v992_v18 = vadd.f32 %v1542_v15, %v1430_v12 }
 0x14c   : > { %v1431_v19 = vpop.f32.mrb[40].mxu0 }
 0x14d   : > { %1158 = vst.msk [vmem:[%s2011_s12 + $0x90] sm:$0xff] %vm1043_vm0, %v1126_v17  ;;  %1063 = vst.msk [vmem:[%s2005_s29 + $0x98] sm:$0xff] %vm1043_vm0, %v992_v18  ;;  %v1127_v20 = vadd.f32 %v1095_v16, %v992_v18  ;;  %v1543_v21 = vpop.f32.mrb[40].mxu1  ;;  %v1432_v22 = vpop.f32.mrb[41].mxu0 }
 0x14e   : > { %v1433_v23 = vadd.f32 %v1432_v22, %v1431_v19  ;;  %v1544_v24 = vpop.f32.mrb[41].mxu1  ;;  %v1434_v25 = vpop.f32.mrb[42].mxu0  ;;  %v1102_v19 = vld [vmem:[%s2000_s8 + $0xd0] sm:$0xff] }
 0x14f   : > { %1159 = vst.msk [vmem:[%s2011_s12 + $0x98] sm:$0xff] %vm1043_vm0, %v1127_v20  ;;  %v1545_v26 = vadd.f32 %v1544_v24, %v1543_v21  ;;  %v1546_v27 = vpop.f32.mrb[42].mxu1  ;;  %v1435_v28 = vpop.f32.mrb[43].mxu0  ;;  %v1103_v24 = vld [vmem:[%s2000_s8 + $0xd8] sm:$0xff] }
 0x150   : > { %v1436_v30 = vadd.f32 %v1435_v28, %v1434_v25  ;;  %v1547_v31 = vpop.f32.mrb[43].mxu1 }
 0x151   : > { %v997_v32 = vadd.f32 %v1545_v26, %v1433_v23  ;;  %v1548_v33 = vadd.f32 %v1547_v31, %v1546_v27 }
 0x153   : > { %1064 = vst.msk [vmem:[%s2005_s29 + $0xa0] sm:$0xff] %vm1043_vm0, %v997_v32  ;;  %v1128_v35 = vadd.f32 %v1096_v29, %v997_v32  ;;  %v1000_v36 = vadd.f32 %v1548_v33, %v1436_v30 }
 0x154   : > { %v1437_v37 = vpop.f32.mrb[44].mxu0 }
 0x155   : > { %1160 = vst.msk [vmem:[%s2011_s12 + $0xa0] sm:$0xff] %vm1043_vm0, %v1128_v35  ;;  %1065 = vst.msk [vmem:[%s2005_s29 + $0xa8] sm:$0xff] %vm1043_vm0, %v1000_v36  ;;  %v1129_v38 = vadd.f32 %v1097_v34, %v1000_v36  ;;  %v1549_v39 = vpop.f32.mrb[44].mxu1  ;;  %v1438_v40 = vpop.f32.mrb[45].mxu0 }
 0x156   : > { %v1439_v41 = vadd.f32 %v1438_v40, %v1437_v37  ;;  %v1550_v42 = vpop.f32.mrb[45].mxu1  ;;  %v1440_v43 = vpop.f32.mrb[46].mxu0  ;;  %v1104_v37 = vld [vmem:[%s2000_s8 + $0xe0] sm:$0xff] }
 0x157   : > { %1161 = vst.msk [vmem:[%s2011_s12 + $0xa8] sm:$0xff] %vm1043_vm0, %v1129_v38  ;;  %v1551_v44 = vadd.f32 %v1550_v42, %v1549_v39  ;;  %v1552_v45 = vpop.f32.mrb[46].mxu1  ;;  %v1441_v46 = vpop.f32.mrb[47].mxu0  ;;  %v1105_v42 = vld [vmem:[%s2000_s8 + $0xe8] sm:$0xff] }
 0x158   : > { %v1442_v48 = vadd.f32 %v1441_v46, %v1440_v43  ;;  %v1553_v49 = vpop.f32.mrb[47].mxu1 }
 0x159   : > { %v1005_v50 = vadd.f32 %v1551_v44, %v1439_v41  ;;  %v1554_v51 = vadd.f32 %v1553_v49, %v1552_v45 }
 0x15b   : > { %1066 = vst.msk [vmem:[%s2005_s29 + $0xb0] sm:$0xff] %vm1043_vm0, %v1005_v50  ;;  %v1130_v53 = vadd.f32 %v1098_v47, %v1005_v50  ;;  %v1008_v54 = vadd.f32 %v1554_v51, %v1442_v48 }
 0x15c   : > { %v1443_v55 = vpop.f32.mrb[48].mxu0 }
 0x15d   : > { %1162 = vst.msk [vmem:[%s2011_s12 + $0xb0] sm:$0xff] %vm1043_vm0, %v1130_v53  ;;  %1067 = vst.msk [vmem:[%s2005_s29 + $0xb8] sm:$0xff] %vm1043_vm0, %v1008_v54  ;;  %v1131_v56 = vadd.f32 %v1099_v52, %v1008_v54  ;;  %v1555_v57 = vpop.f32.mrb[48].mxu1  ;;  %v1444_v58 = vpop.f32.mrb[49].mxu0 }
 0x15e   : > { %v1445_v59 = vadd.f32 %v1444_v58, %v1443_v55  ;;  %v1556_v60 = vpop.f32.mrb[49].mxu1  ;;  %v1446_v61 = vpop.f32.mrb[50].mxu0  ;;  %v1106_v55 = vld [vmem:[%s2000_s8 + $0xf0] sm:$0xff] }
 0x15f   : > { %1163 = vst.msk [vmem:[%s2011_s12 + $0xb8] sm:$0xff] %vm1043_vm0, %v1131_v56  ;;  %v1557_v62 = vadd.f32 %v1556_v60, %v1555_v57  ;;  %v1558_v63 = vpop.f32.mrb[50].mxu1  ;;  %v1447_v0 = vpop.f32.mrb[51].mxu0  ;;  %v1107_v60 = vld [vmem:[%s2000_s8 + $0xf8] sm:$0xff] }
 0x160   : > { %v1448_v2 = vadd.f32 %v1447_v0, %v1446_v61  ;;  %v1559_v3 = vpop.f32.mrb[51].mxu1 }
 0x161   : > { %v1013_v4 = vadd.f32 %v1557_v62, %v1445_v59  ;;  %v1560_v5 = vadd.f32 %v1559_v3, %v1558_v63 }
 0x163   : > { %1068 = vst.msk [vmem:[%s2005_s29 + $0xc0] sm:$0xff] %vm1043_vm0, %v1013_v4  ;;  %v1132_v7 = vadd.f32 %v1100_v1, %v1013_v4  ;;  %v1016_v8 = vadd.f32 %v1560_v5, %v1448_v2 }
 0x164   : > { %v1449_v9 = vpop.f32.mrb[52].mxu0 }
 0x165   : > { %1164 = vst.msk [vmem:[%s2011_s12 + $0xc0] sm:$0xff] %vm1043_vm0, %v1132_v7  ;;  %1069 = vst.msk [vmem:[%s2005_s29 + $0xc8] sm:$0xff] %vm1043_vm0, %v1016_v8  ;;  %v1133_v10 = vadd.f32 %v1101_v6, %v1016_v8  ;;  %v1561_v11 = vpop.f32.mrb[52].mxu1  ;;  %v1450_v12 = vpop.f32.mrb[53].mxu0 }
 0x166   : > { %v1451_v13 = vadd.f32 %v1450_v12, %v1449_v9  ;;  %v1562_v14 = vpop.f32.mrb[53].mxu1  ;;  %v1452_v15 = vpop.f32.mrb[54].mxu0 }
 0x167   : > { %1165 = vst.msk [vmem:[%s2011_s12 + $0xc8] sm:$0xff] %vm1043_vm0, %v1133_v10  ;;  %v1563_v16 = vadd.f32 %v1562_v14, %v1561_v11  ;;  %v1564_v17 = vpop.f32.mrb[54].mxu1  ;;  %v1453_v18 = vpop.f32.mrb[55].mxu0 }
 0x168   : > { %v1454_v20 = vadd.f32 %v1453_v18, %v1452_v15  ;;  %v1565_v21 = vpop.f32.mrb[55].mxu1 }
 0x169   : > { %v1021_v22 = vadd.f32 %v1563_v16, %v1451_v13  ;;  %v1566_v23 = vadd.f32 %v1565_v21, %v1564_v17 }
 0x16b   : > { %1070 = vst.msk [vmem:[%s2005_s29 + $0xd0] sm:$0xff] %vm1043_vm0, %v1021_v22  ;;  %v1134_v25 = vadd.f32 %v1102_v19, %v1021_v22  ;;  %v1024_v26 = vadd.f32 %v1566_v23, %v1454_v20 }
 0x16c   : > { %v1455_v27 = vpop.f32.mrb[56].mxu0 }
 0x16d   : > { %1166 = vst.msk [vmem:[%s2011_s12 + $0xd0] sm:$0xff] %vm1043_vm0, %v1134_v25  ;;  %1071 = vst.msk [vmem:[%s2005_s29 + $0xd8] sm:$0xff] %vm1043_vm0, %v1024_v26  ;;  %v1135_v28 = vadd.f32 %v1103_v24, %v1024_v26  ;;  %v1567_v29 = vpop.f32.mrb[56].mxu1  ;;  %v1456_v30 = vpop.f32.mrb[57].mxu0 }
 0x16e   : > { %v1457_v31 = vadd.f32 %v1456_v30, %v1455_v27  ;;  %v1568_v32 = vpop.f32.mrb[57].mxu1  ;;  %v1458_v33 = vpop.f32.mrb[58].mxu0 }
 0x16f   : > { %1167 = vst.msk [vmem:[%s2011_s12 + $0xd8] sm:$0xff] %vm1043_vm0, %v1135_v28  ;;  %v1569_v34 = vadd.f32 %v1568_v32, %v1567_v29  ;;  %v1570_v35 = vpop.f32.mrb[58].mxu1  ;;  %v1459_v36 = vpop.f32.mrb[59].mxu0 }
 0x170   : > { %v1460_v38 = vadd.f32 %v1459_v36, %v1458_v33  ;;  %v1571_v39 = vpop.f32.mrb[59].mxu1 }
 0x171   : > { %v1029_v40 = vadd.f32 %v1569_v34, %v1457_v31  ;;  %v1572_v41 = vadd.f32 %v1571_v39, %v1570_v35 }
 0x173   : > { %1072 = vst.msk [vmem:[%s2005_s29 + $0xe0] sm:$0xff] %vm1043_vm0, %v1029_v40  ;;  %v1136_v43 = vadd.f32 %v1104_v37, %v1029_v40  ;;  %v1032_v44 = vadd.f32 %v1572_v41, %v1460_v38 }
 0x174   : > { %v1461_v45 = vpop.f32.mrb[60].mxu0 }
 0x175   : > { %1168 = vst.msk [vmem:[%s2011_s12 + $0xe0] sm:$0xff] %vm1043_vm0, %v1136_v43  ;;  %1073 = vst.msk [vmem:[%s2005_s29 + $0xe8] sm:$0xff] %vm1043_vm0, %v1032_v44  ;;  %v1137_v46 = vadd.f32 %v1105_v42, %v1032_v44  ;;  %v1573_v47 = vpop.f32.mrb[60].mxu1  ;;  %v1462_v48 = vpop.f32.mrb[61].mxu0 }
 0x176   : > { %v1463_v49 = vadd.f32 %v1462_v48, %v1461_v45  ;;  %v1574_v50 = vpop.f32.mrb[61].mxu1  ;;  %v1464_v51 = vpop.f32.mrb[62].mxu0 }
 0x177   : > { %1169 = vst.msk [vmem:[%s2011_s12 + $0xe8] sm:$0xff] %vm1043_vm0, %v1137_v46  ;;  %v1575_v52 = vadd.f32 %v1574_v50, %v1573_v47  ;;  %v1576_v53 = vpop.f32.mrb[62].mxu1  ;;  %v1465_v54 = vpop.f32.mrb[63].mxu0 }
 0x178   : > { %v1466_v56 = vadd.f32 %v1465_v54, %v1464_v51  ;;  %v1577_v57 = vpop.f32.mrb[63].mxu1 }
 0x179   : > { %v1037_v58 = vadd.f32 %v1575_v52, %v1463_v49  ;;  %v1578_v59 = vadd.f32 %v1577_v57, %v1576_v53 }
 0x17b   : > { %1074 = vst.msk [vmem:[%s2005_s29 + $0xf0] sm:$0xff] %vm1043_vm0, %v1037_v58  ;;  %v1138_v61 = vadd.f32 %v1106_v55, %v1037_v58  ;;  %v1040_v62 = vadd.f32 %v1578_v59, %v1466_v56 }
 0x17d   : > { %1170 = vst.msk [vmem:[%s2011_s12 + $0xf0] sm:$0xff] %vm1043_vm0, %v1138_v61  ;;  %1075 = vst.msk [vmem:[%s2005_s29 + $0xf8] sm:$0xff] %vm1043_vm0, %v1040_v62  ;;  %v1139_v63 = vadd.f32 %v1107_v60, %v1040_v62 }
 0x17f   : > { %1171 = vst.msk [vmem:[%s2011_s12 + $0xf8] sm:$0xff] %vm1043_vm0, %v1139_v63 }
 0x180 PF: > { %s15_s15 = sadd.s32 1, %s1689_s15  }
 0x181   : > { %p12_p4 = scmp.ge.s32.totalorder %s15_s15, 4  }
 0x183   :  { %14 = sbr.rel (!%p12_p4) target bundleno = 1 (0x1), region = 77 }

// kernel: lightgcn_lc_forward.7
= control target key start
LH: loop header
LB: loop body
LE: loop exit
PB: predicated region body
PF: predicated region fallthrough
CT: control target
= control target key end

     0   :  { %s2227_s18 = smov 0   ;;  %s3047_s0 = inlined_call_operand.vmem [shape: bf16[512,512], index: 0, kind: input, shape index: {}]   ;;  %s3048_s1 = inlined_call_operand.vmem [shape: f32[512,32], index: 1, kind: input, shape index: {}]   ;;  %s3049_s2 = inlined_call_operand.vmem [shape: f32[512,32], index: 2, kind: input, shape index: {}]   ;;  %s3050_s3 = inlined_call_operand.vmem [shape: f32[1,32], index: 3, kind: input, shape index: {}]   ;;  %s3051_s4 = inlined_call_operand.vmem [shape: f32[1,32], index: 4, kind: input, shape index: {}]   ;;  %s3052_s5 = inlined_call_operand.vmem [shape: f32[512,32], index: 5, kind: output, shape index: {}]  }
   0x1 LB: > { %s1716_s19 = sadd.s32 4294967295, %s2195_s18   ;;  %p1720_p0 = scmp.ge.s32.totalorder %s2195_s18, 1  ;;  %s2195_s18 = sphi %s2227_s18, %s15_s18  }
   0x2   : > { %p200_p1 = scmp.lt.s32.totalorder %s2195_s18, 3 }
   0x4   : > { %p201_p2 = pnand %p1720_p0, %p200_p1 }
   0x5   : > { %v334_v0 = vld [vmem:[%s3048_s1 + $0x80] sm:$0xff] (!%p201_p2)  ;;  %v335_v1 = vld [vmem:[%s3048_s1 + $0x88] sm:$0xff] (!%p201_p2)  ;;  %v336_v11 = vld [vmem:[%s3048_s1 + $0x90] sm:$0xff] (!%p201_p2)  ;;  %s2291_s8 = sshll.u32 (!%p201_p2), %s1716_s19, 5  ;;  %vm1122_vm0 = vcmask (!%p201_p2), 261120  }
   0x6   : > { %204 = sbr.rel (%p201_p2) target bundleno = 697 (0x2b9), region = 40  ;;  %v366_v2 = vld [vmem:[%s3048_s1 + $0x180] sm:$0xff] (!%p201_p2)  ;;  %v390_v3 = vpack.c.bf16 (!%p201_p2), %v335_v1, %v334_v0  ;;  %v367_v4 = vld [vmem:[%s3048_s1 + $0x188] sm:$0xff] (!%p201_p2)  ;;  %v337_v13 = vld [vmem:[%s3048_s1 + $0x98] sm:$0xff] (!%p201_p2)  ;;  %p235_p3 = scmp.lt.s32.totalorder (!%p201_p2), %s2291_s8, 63 }
   0x7   : > { %v318_v5 = vld [vmem:[%s3048_s1] sm:$0xff] (!%p201_p2)  ;;  %v319_v6 = vld [vmem:[%s3048_s1 + $0x8] sm:$0xff] (!%p201_p2)  ;;  %v406_v7 = vpack.c.bf16 (!%p201_p2), %v367_v4, %v366_v2  ;;  %v368_v14 = vld [vmem:[%s3048_s1 + $0x190] sm:$0xff] (!%p201_p2)  ;;  %v391_v16 = vpack.c.bf16 (!%p201_p2), %v337_v13, %v336_v11 }
   0x8   : > { %v382_v8 = vpack.c.bf16 (!%p201_p2), %v319_v6, %v318_v5  ;;  %v350_v9 = vld [vmem:[%s3048_s1 + $0x100] sm:$0xff] (!%p201_p2)  ;;  %v351_v10 = vld [vmem:[%s3048_s1 + $0x108] sm:$0xff] (!%p201_p2)  ;;  %1797 = vmatprep.subr.bf16.mxu0 (!%p201_p2), %v390_v3  ;;  %v369_v15 = vld [vmem:[%s3048_s1 + $0x198] sm:$0xff] (!%p201_p2) }
   0x9   : > { %v398_v12 = vpack.c.bf16 (!%p201_p2), %v351_v10, %v350_v9  ;;  %1909 = vmatprep.subr.bf16.mxu1 (!%p201_p2), %v406_v7  ;;  %v407_v17 = vpack.c.bf16 (!%p201_p2), %v369_v15, %v368_v14  ;;  %v320_v18 = vld [vmem:[%s3048_s1 + $0x10] sm:$0xff] (!%p201_p2)  ;;  %v321_v19 = vld [vmem:[%s3048_s1 + $0x18] sm:$0xff] (!%p201_p2)  ;;  %v338_v23 = vld [vmem:[%s3048_s1 + $0xa0] sm:$0xff] (!%p201_p2) }
   0xa   : > { %1798 = vmatpush3.bf16.msra.mxu0 (!%p201_p2), %v382_v8  ;;  %v352_v20 = vld [vmem:[%s3048_s1 + $0x110] sm:$0xff] (!%p201_p2)  ;;  %v383_v21 = vpack.c.bf16 (!%p201_p2), %v321_v19, %v320_v18  ;;  %v353_v22 = vld [vmem:[%s3048_s1 + $0x118] sm:$0xff] (!%p201_p2)  ;;  %v339_v24 = vld [vmem:[%s3048_s1 + $0xa8] sm:$0xff] (!%p201_p2) }
   0xb   : > { %1910 = vmatpush3.bf16.msra.mxu1 (!%p201_p2), %v398_v12  ;;  %1799 = vmatprep.subr.bf16.mxu0 (!%p201_p2), %v391_v16  ;;  %v399_v25 = vpack.c.bf16 (!%p201_p2), %v353_v22, %v352_v20  ;;  %v392_v26 = vpack.c.bf16 (!%p201_p2), %v339_v24, %v338_v23  ;;  %v370_v27 = vld [vmem:[%s3048_s1 + $0x1a0] sm:$0xff] (!%p201_p2)  ;;  %v371_v28 = vld [vmem:[%s3048_s1 + $0x1a8] sm:$0xff] (!%p201_p2)  ;;  %v340_v35 = vld [vmem:[%s3048_s1 + $0xb0] sm:$0xff] (!%p201_p2) }
   0xc   : > { %1911 = vmatprep.subr.bf16.mxu1 (!%p201_p2), %v407_v17  ;;  %v322_v29 = vld [vmem:[%s3048_s1 + $0x20] sm:$0xff] (!%p201_p2)  ;;  %v408_v30 = vpack.c.bf16 (!%p201_p2), %v371_v28, %v370_v27  ;;  %v323_v31 = vld [vmem:[%s3048_s1 + $0x28] sm:$0xff] (!%p201_p2)  ;;  %v341_v36 = vld [vmem:[%s3048_s1 + $0xb8] sm:$0xff] (!%p201_p2) }
   0xd   : > { %v354_v32 = vld [vmem:[%s3048_s1 + $0x120] sm:$0xff]  ;;  %v355_v33 = vld [vmem:[%s3048_s1 + $0x128] sm:$0xff]  ;;  %v384_v34 = vpack.c.bf16 %v323_v31, %v322_v29  ;;  %v372_v37 = vld [vmem:[%s3048_s1 + $0x1b0] sm:$0xff]  ;;  %v393_v39 = vpack.c.bf16 %v341_v36, %v340_v35  ;;  %s3054_s8 = smov (!%p235_p3, %s2291_s8), 63 }
   0xe   : > { %1800 = vmatpush3.bf16.msra.mxu0 %v383_v21  ;;  %v400_v38 = vpack.c.bf16 %v355_v33, %v354_v32  ;;  %v373_v40 = vld [vmem:[%s3048_s1 + $0x1b8] sm:$0xff]  ;;  %v324_v41 = vld [vmem:[%s3048_s1 + $0x30] sm:$0xff]  ;;  %v342_v46 = vld [vmem:[%s3048_s1 + $0xc0] sm:$0xff]  ;;  %s1796_s16 = sshll.u32 %s3054_s8, 4  ;;  %s1725_s13 = sshll.u32 %s3054_s8, 3 }
   0xf   : > { %1912 = vmatpush3.bf16.msra.mxu1 %v399_v25  ;;  %1801 = vmatprep.subr.bf16.mxu0 %v392_v26  ;;  %v325_v42 = vld [vmem:[%s3048_s1 + $0x38] sm:$0xff]  ;;  %v409_v43 = vpack.c.bf16 %v373_v40, %v372_v37  ;;  %v356_v44 = vld [vmem:[%s3048_s1 + $0x130] sm:$0xff]  ;;  %v343_v47 = vld [vmem:[%s3048_s1 + $0xc8] sm:$0xff]  ;;  %s2411_s19 = scalar_lea.vmem %s3047_s0, %s1796_s16  ;;  %s2513_s17 = scalar_lea.vmem %s3049_s2, %s1725_s13 }
  0x10   : > { %1913 = vmatprep.subr.bf16.mxu1 %v408_v30  ;;  %v357_v45 = vld [vmem:[%s3048_s1 + $0x138] sm:$0xff]  ;;  %v374_v48 = vld [vmem:[%s3048_s1 + $0x1c0] sm:$0xff]  ;;  %v375_v49 = vld [vmem:[%s3048_s1 + $0x1c8] sm:$0xff]  ;;  %v385_v50 = vpack.c.bf16 %v325_v42, %v324_v41  ;;  %v394_v52 = vpack.c.bf16 %v343_v47, %v342_v46  ;;  %s2884_s24 = scalar_lea.vmem %s3052_s5, %s1725_s13 }
  0x11   : > { %v401_v51 = vpack.c.bf16 %v357_v45, %v356_v44  ;;  %v326_v53 = vld [vmem:[%s3048_s1 + $0x40] sm:$0xff]  ;;  %v327_v54 = vld [vmem:[%s3048_s1 + $0x48] sm:$0xff]  ;;  %v410_v56 = vpack.c.bf16 %v375_v49, %v374_v48  ;;  %v344_v58 = vld [vmem:[%s3048_s1 + $0xd0] sm:$0xff] }
  0x12   : > { %1802 = vmatpush3.bf16.msra.mxu0 %v384_v34  ;;  %v358_v55 = vld [vmem:[%s3048_s1 + $0x140] sm:$0xff]  ;;  %v359_v57 = vld [vmem:[%s3048_s1 + $0x148] sm:$0xff]  ;;  %v345_v59 = vld [vmem:[%s3048_s1 + $0xd8] sm:$0xff]  ;;  %v386_v62 = vpack.c.bf16 %v327_v54, %v326_v53 }
  0x13   : > { %1914 = vmatpush3.bf16.msra.mxu1 %v400_v38  ;;  %1803 = vmatprep.subr.bf16.mxu0 %v393_v39  ;;  %v376_v60 = vld [vmem:[%s3048_s1 + $0x1d0] sm:$0xff]  ;;  %v377_v61 = vld [vmem:[%s3048_s1 + $0x1d8] sm:$0xff]  ;;  %v402_v0 = vpack.c.bf16 %v359_v57, %v358_v55  ;;  %v395_v1 = vpack.c.bf16 %v345_v59, %v344_v58  ;;  %v346_v6 = vld [vmem:[%s3048_s1 + $0xe0] sm:$0xff] }
  0x14   : > { %1915 = vmatprep.subr.bf16.mxu1 %v409_v43  ;;  %v328_v63 = vld [vmem:[%s3048_s1 + $0x50] sm:$0xff]  ;;  %v329_v2 = vld [vmem:[%s3048_s1 + $0x58] sm:$0xff]  ;;  %v411_v5 = vpack.c.bf16 %v377_v61, %v376_v60  ;;  %v347_v7 = vld [vmem:[%s3048_s1 + $0xe8] sm:$0xff] }
  0x15   : > { %v360_v3 = vld [vmem:[%s3048_s1 + $0x150] sm:$0xff]  ;;  %v361_v4 = vld [vmem:[%s3048_s1 + $0x158] sm:$0xff]  ;;  %v378_v8 = vld [vmem:[%s3048_s1 + $0x1e0] sm:$0xff]  ;;  %v387_v12 = vpack.c.bf16 %v329_v2, %v328_v63  ;;  %v396_v17 = vpack.c.bf16 %v347_v7, %v346_v6 }
  0x16   : > { %1804 = vmatpush3.bf16.msra.mxu0 %v385_v50  ;;  %v379_v9 = vld [vmem:[%s3048_s1 + $0x1e8] sm:$0xff]  ;;  %v330_v10 = vld [vmem:[%s3048_s1 + $0x60] sm:$0xff]  ;;  %v348_v15 = vld [vmem:[%s3048_s1 + $0xf0] sm:$0xff]  ;;  %v403_v16 = vpack.c.bf16 %v361_v4, %v360_v3 }
  0x17   : > { %1916 = vmatpush3.bf16.msra.mxu1 %v401_v51  ;;  %1805 = vmatprep.subr.bf16.mxu0 %v394_v52  ;;  %v331_v11 = vld [vmem:[%s3048_s1 + $0x68] sm:$0xff]  ;;  %v362_v13 = vld [vmem:[%s3048_s1 + $0x160] sm:$0xff]  ;;  %v349_v18 = vld [vmem:[%s3048_s1 + $0xf8] sm:$0xff]  ;;  %v412_v19 = vpack.c.bf16 %v379_v9, %v378_v8 }
  0x18   : > { %1917 = vmatprep.subr.bf16.mxu1 %v410_v56  ;;  %v363_v14 = vld [vmem:[%s3048_s1 + $0x168] sm:$0xff]  ;;  %v380_v20 = vld [vmem:[%s3048_s1 + $0x1f0] sm:$0xff]  ;;  %v381_v22 = vld [vmem:[%s3048_s1 + $0x1f8] sm:$0xff]  ;;  %v388_v24 = vpack.c.bf16 %v331_v11, %v330_v10  ;;  %v397_v27 = vpack.c.bf16 %v349_v18, %v348_v15 }
  0x19   : > { %v2031_v21 = vld [vmem:[%s2411_s19 + $0x4] ss:$16 sps:$4 sm:$0xff]   ;;  %v2034_v23 = vld [vmem:[%s2411_s19 + $0xc] ss:$16 sps:$4 sm:$0xff]   ;;  %v404_v26 = vpack.c.bf16 %v363_v14, %v362_v13  ;;  %v413_v29 = vpack.c.bf16 %v381_v22, %v380_v20  ;;  %v2029_v34 = vld [vmem:[%s2411_s19] ss:$16 sps:$4 sm:$0xff]  }
  0x1a   : > { %1806 = vmatpush3.bf16.msra.mxu0 %v386_v62  ;;  %v332_v25 = vld [vmem:[%s3048_s1 + $0x70] sm:$0xff]  ;;  %766 = vmatprep.mubr.bf16.mxu0 %v2031_v21  ;;  %v333_v28 = vld [vmem:[%s3048_s1 + $0x78] sm:$0xff] }
  0x1b   : > { %1918 = vmatpush3.bf16.msra.mxu1 %v402_v0  ;;  %1807 = vmatprep.subr.bf16.mxu0 %v395_v1  ;;  %v364_v30 = vld [vmem:[%s3048_s1 + $0x170] sm:$0xff]  ;;  %v365_v31 = vld [vmem:[%s3048_s1 + $0x178] sm:$0xff]  ;;  %v389_v32 = vpack.c.bf16 %v333_v28, %v332_v25 }
  0x1c   : > { %1919 = vmatprep.subr.bf16.mxu1 %v411_v5  ;;  %927 = vmatprep.mubr.bf16.mxu1 %v2034_v23  ;;  %v405_v33 = vpack.c.bf16 %v365_v31, %v364_v30  ;;  %v2032_v35 = vld [vmem:[%s2411_s19 + $0x8] ss:$16 sps:$4 sm:$0xff]   ;;  %v2035_v36 = vld [vmem:[%s2411_s19 + $0x24] ss:$16 sps:$4 sm:$0xff]   ;;  %v2037_v37 = vld [vmem:[%s2411_s19 + $0x2c] ss:$16 sps:$4 sm:$0xff]  }
  0x1d   : > { %v2039_v38 = vld [vmem:[%s2411_s19 + $0x20] ss:$16 sps:$4 sm:$0xff]   ;;  %v2040_v39 = vld [vmem:[%s2411_s19 + $0x28] ss:$16 sps:$4 sm:$0xff]   ;;  %v2041_v40 = vld [vmem:[%s2411_s19 + $0x44] ss:$16 sps:$4 sm:$0xff]  }
  0x1e   : > { %1808 = vmatpush3.bf16.msra.mxu0 %v387_v12  ;;  %v2043_v41 = vld [vmem:[%s2411_s19 + $0x4c] ss:$16 sps:$4 sm:$0xff]   ;;  %v2045_v42 = vld [vmem:[%s2411_s19 + $0x40] ss:$16 sps:$4 sm:$0xff]   ;;  %v2046_v43 = vld [vmem:[%s2411_s19 + $0x48] ss:$16 sps:$4 sm:$0xff]  }
  0x1f   : > { %1920 = vmatpush3.bf16.msra.mxu1 %v403_v16  ;;  %1809 = vmatprep.subr.bf16.mxu0 %v396_v17  ;;  %v2047_v44 = vld [vmem:[%s2411_s19 + $0x64] ss:$16 sps:$4 sm:$0xff]   ;;  %v2049_v45 = vld [vmem:[%s2411_s19 + $0x6c] ss:$16 sps:$4 sm:$0xff]   ;;  %v2051_v46 = vld [vmem:[%s2411_s19 + $0x60] ss:$16 sps:$4 sm:$0xff]  }
  0x20   : > { %1921 = vmatprep.subr.bf16.mxu1 %v412_v19  ;;  %v2052_v47 = vld [vmem:[%s2411_s19 + $0x68] ss:$16 sps:$4 sm:$0xff]   ;;  %v2053_v48 = vld [vmem:[%s2411_s19 + $0x84] ss:$16 sps:$4 sm:$0xff]   ;;  %v2055_v49 = vld [vmem:[%s2411_s19 + $0x8c] ss:$16 sps:$4 sm:$0xff]  }
  0x21   : > { %v2057_v50 = vld [vmem:[%s2411_s19 + $0x80] ss:$16 sps:$4 sm:$0xff]   ;;  %v2058_v51 = vld [vmem:[%s2411_s19 + $0x88] ss:$16 sps:$4 sm:$0xff]   ;;  %v2059_v52 = vld [vmem:[%s2411_s19 + $0xa4] ss:$16 sps:$4 sm:$0xff]  }
  0x22   : > { %1810 = vmatpush3.bf16.msra.mxu0 %v388_v24  ;;  %v2061_v53 = vld [vmem:[%s2411_s19 + $0xac] ss:$16 sps:$4 sm:$0xff]   ;;  %v2063_v54 = vld [vmem:[%s2411_s19 + $0xa0] ss:$16 sps:$4 sm:$0xff]   ;;  %v2064_v55 = vld [vmem:[%s2411_s19 + $0xa8] ss:$16 sps:$4 sm:$0xff]  }
  0x23   : > { %1922 = vmatpush3.bf16.msra.mxu1 %v404_v26  ;;  %1811 = vmatprep.subr.bf16.mxu0 %v397_v27  ;;  %v2065_v56 = vld [vmem:[%s2411_s19 + $0xc4] ss:$16 sps:$4 sm:$0xff]   ;;  %v2067_v57 = vld [vmem:[%s2411_s19 + $0xcc] ss:$16 sps:$4 sm:$0xff]   ;;  %v2069_v58 = vld [vmem:[%s2411_s19 + $0xc0] ss:$16 sps:$4 sm:$0xff]  }
  0x24   : > { %1923 = vmatprep.subr.bf16.mxu1 %v413_v29  ;;  %v2070_v59 = vld [vmem:[%s2411_s19 + $0xc8] ss:$16 sps:$4 sm:$0xff]   ;;  %v2071_v60 = vld [vmem:[%s2411_s19 + $0xe4] ss:$16 sps:$4 sm:$0xff]   ;;  %v2073_v61 = vld [vmem:[%s2411_s19 + $0xec] ss:$16 sps:$4 sm:$0xff]  }
  0x25   : > { %v2075_v62 = vld [vmem:[%s2411_s19 + $0xe0] ss:$16 sps:$4 sm:$0xff]   ;;  %v2076_v63 = vld [vmem:[%s2411_s19 + $0xe8] ss:$16 sps:$4 sm:$0xff]   ;;  %v2077_v0 = vld [vmem:[%s2411_s19 + $0x104] ss:$16 sps:$4 sm:$0xff]  }
  0x26   : > { %1812 = vmatpush3.bf16.msra.mxu0 %v389_v32  ;;  %v2079_v1 = vld [vmem:[%s2411_s19 + $0x10c] ss:$16 sps:$4 sm:$0xff]   ;;  %v2081_v2 = vld [vmem:[%s2411_s19 + $0x100] ss:$16 sps:$4 sm:$0xff]   ;;  %v2082_v3 = vld [vmem:[%s2411_s19 + $0x108] ss:$16 sps:$4 sm:$0xff]  }
  0x27   : > { %1924 = vmatpush3.bf16.msra.mxu1 %v405_v33  ;;  %v2083_v4 = vld [vmem:[%s2411_s19 + $0x124] ss:$16 sps:$4 sm:$0xff]   ;;  %v2085_v5 = vld [vmem:[%s2411_s19 + $0x12c] ss:$16 sps:$4 sm:$0xff]   ;;  %v2087_v6 = vld [vmem:[%s2411_s19 + $0x120] ss:$16 sps:$4 sm:$0xff]  }
  0x28   : > { %v2088_v7 = vld [vmem:[%s2411_s19 + $0x128] ss:$16 sps:$4 sm:$0xff]   ;;  %v2089_v8 = vld [vmem:[%s2411_s19 + $0x144] ss:$16 sps:$4 sm:$0xff]   ;;  %v2091_v9 = vld [vmem:[%s2411_s19 + $0x14c] ss:$16 sps:$4 sm:$0xff]  }
  0x29   : > { %767 = vmatmul.mubr.bf16.vlgmr.msra.gmra.mrb[0].mxu0 %v2029_v34  ;;  %v2093_v10 = vld [vmem:[%s2411_s19 + $0x140] ss:$16 sps:$4 sm:$0xff]   ;;  %v2094_v11 = vld [vmem:[%s2411_s19 + $0x148] ss:$16 sps:$4 sm:$0xff]   ;;  %v2095_v12 = vld [vmem:[%s2411_s19 + $0x164] ss:$16 sps:$4 sm:$0xff]  }
  0x2a   : > { %928 = vmatmul.mubr.bf16.vlgmr.msra.gmra.mrb[0].mxu1 %v2032_v35  ;;  %774 = vmatprep.mubr.bf16.mxu0 %v2035_v36  ;;  %v2097_v13 = vld [vmem:[%s2411_s19 + $0x16c] ss:$16 sps:$4 sm:$0xff]   ;;  %v2099_v14 = vld [vmem:[%s2411_s19 + $0x160] ss:$16 sps:$4 sm:$0xff]   ;;  %v2100_v15 = vld [vmem:[%s2411_s19 + $0x168] ss:$16 sps:$4 sm:$0xff]  }
  0x2b   : > { %935 = vmatprep.mubr.bf16.mxu1 %v2037_v37  ;;  %v2101_v16 = vld [vmem:[%s2411_s19 + $0x184] ss:$16 sps:$4 sm:$0xff]   ;;  %v2103_v17 = vld [vmem:[%s2411_s19 + $0x18c] ss:$16 sps:$4 sm:$0xff]   ;;  %v2105_v18 = vld [vmem:[%s2411_s19 + $0x180] ss:$16 sps:$4 sm:$0xff]  }
  0x2c   : > { %v2106_v19 = vld [vmem:[%s2411_s19 + $0x188] ss:$16 sps:$4 sm:$0xff]   ;;  %v2107_v20 = vld [vmem:[%s2411_s19 + $0x1a4] ss:$16 sps:$4 sm:$0xff]   ;;  %v2109_v21 = vld [vmem:[%s2411_s19 + $0x1ac] ss:$16 sps:$4 sm:$0xff]  }
  0x2d   : > { %v2111_v22 = vld [vmem:[%s2411_s19 + $0x1a0] ss:$16 sps:$4 sm:$0xff]   ;;  %v2112_v23 = vld [vmem:[%s2411_s19 + $0x1a8] ss:$16 sps:$4 sm:$0xff]   ;;  %v2113_v24 = vld [vmem:[%s2411_s19 + $0x1c4] ss:$16 sps:$4 sm:$0xff]  }
  0x2e   : > { %v2115_v25 = vld [vmem:[%s2411_s19 + $0x1cc] ss:$16 sps:$4 sm:$0xff]   ;;  %v2117_v26 = vld [vmem:[%s2411_s19 + $0x1c0] ss:$16 sps:$4 sm:$0xff]   ;;  %v2118_v27 = vld [vmem:[%s2411_s19 + $0x1c8] ss:$16 sps:$4 sm:$0xff]  }
  0x2f   : > { %v2119_v28 = vld [vmem:[%s2411_s19 + $0x1e4] ss:$16 sps:$4 sm:$0xff]   ;;  %v2121_v29 = vld [vmem:[%s2411_s19 + $0x1ec] ss:$16 sps:$4 sm:$0xff]   ;;  %v2123_v30 = vld [vmem:[%s2411_s19 + $0x1e0] ss:$16 sps:$4 sm:$0xff]  }
  0x30   : > { %v2124_v31 = vld [vmem:[%s2411_s19 + $0x1e8] ss:$16 sps:$4 sm:$0xff]  }
  0x31   : > { %775 = vmatmul.mubr.bf16.gmra.mrb[4].mxu0 %v2039_v38 }
  0x32   : > { %936 = vmatmul.mubr.bf16.gmra.mrb[4].mxu1 %v2040_v39  ;;  %782 = vmatprep.mubr.bf16.mxu0 %v2041_v40 }
  0x33   : > { %943 = vmatprep.mubr.bf16.mxu1 %v2043_v41 }
  0x39   : > { %783 = vmatmul.mubr.bf16.gmra.mrb[8].mxu0 %v2045_v42 }
  0x3a   : > { %944 = vmatmul.mubr.bf16.gmra.mrb[8].mxu1 %v2046_v43  ;;  %790 = vmatprep.mubr.bf16.mxu0 %v2047_v44  ;;  %v1056_v43 = vld [vmem:[%s2513_s17] sm:$0xff] }
  0x3b   : > { %951 = vmatprep.mubr.bf16.mxu1 %v2049_v45 }
  0x41   : > { %791 = vmatmul.mubr.bf16.gmra.mrb[12].mxu0 %v2051_v46  ;;  %v1057_v46 = vld [vmem:[%s2513_s17 + $0x8] sm:$0xff] }
  0x42   : > { %952 = vmatmul.mubr.bf16.gmra.mrb[12].mxu1 %v2052_v47  ;;  %798 = vmatprep.mubr.bf16.mxu0 %v2053_v48 }
  0x43   : > { %959 = vmatprep.mubr.bf16.mxu1 %v2055_v49 }
  0x49   : > { %799 = vmatmul.mubr.bf16.gmra.mrb[16].mxu0 %v2057_v50 }
  0x4a   : > { %960 = vmatmul.mubr.bf16.gmra.mrb[16].mxu1 %v2058_v51  ;;  %806 = vmatprep.mubr.bf16.mxu0 %v2059_v52 }
  0x4b   : > { %967 = vmatprep.mubr.bf16.mxu1 %v2061_v53 }
  0x51   : > { %807 = vmatmul.mubr.bf16.gmra.mrb[20].mxu0 %v2063_v54 }
  0x52   : > { %968 = vmatmul.mubr.bf16.gmra.mrb[20].mxu1 %v2064_v55  ;;  %814 = vmatprep.mubr.bf16.mxu0 %v2065_v56 }
  0x53   : > { %975 = vmatprep.mubr.bf16.mxu1 %v2067_v57 }
  0x59   : > { %815 = vmatmul.mubr.bf16.gmra.mrb[24].mxu0 %v2069_v58 }
  0x5a   : > { %976 = vmatmul.mubr.bf16.gmra.mrb[24].mxu1 %v2070_v59  ;;  %822 = vmatprep.mubr.bf16.mxu0 %v2071_v60 }
  0x5b   : > { %983 = vmatprep.mubr.bf16.mxu1 %v2073_v61 }
  0x61   : > { %823 = vmatmul.mubr.bf16.gmra.mrb[28].mxu0 %v2075_v62  ;;  %v1058_v62 = vld [vmem:[%s2513_s17 + $0x10] sm:$0xff] }
  0x62   : > { %984 = vmatmul.mubr.bf16.gmra.mrb[28].mxu1 %v2076_v63  ;;  %830 = vmatprep.mubr.bf16.mxu0 %v2077_v0 }
  0x63   : > { %991 = vmatprep.mubr.bf16.mxu1 %v2079_v1 }
  0x69   : > { %831 = vmatmul.mubr.bf16.gmra.mrb[32].mxu0 %v2081_v2  ;;  %v1059_v2 = vld [vmem:[%s2513_s17 + $0x18] sm:$0xff] }
  0x6a   : > { %992 = vmatmul.mubr.bf16.gmra.mrb[32].mxu1 %v2082_v3  ;;  %838 = vmatprep.mubr.bf16.mxu0 %v2083_v4 }
  0x6b   : > { %999 = vmatprep.mubr.bf16.mxu1 %v2085_v5 }
  0x71   : > { %839 = vmatmul.mubr.bf16.gmra.mrb[36].mxu0 %v2087_v6 }
  0x72   : > { %1000 = vmatmul.mubr.bf16.gmra.mrb[36].mxu1 %v2088_v7  ;;  %846 = vmatprep.mubr.bf16.mxu0 %v2089_v8 }
  0x73   : > { %1007 = vmatprep.mubr.bf16.mxu1 %v2091_v9 }
  0x79   : > { %847 = vmatmul.mubr.bf16.gmra.mrb[40].mxu0 %v2093_v10 }
  0x7a   : > { %1008 = vmatmul.mubr.bf16.gmra.mrb[40].mxu1 %v2094_v11  ;;  %854 = vmatprep.mubr.bf16.mxu0 %v2095_v12 }
  0x7b   : > { %1015 = vmatprep.mubr.bf16.mxu1 %v2097_v13 }
  0x81   : > { %855 = vmatmul.mubr.bf16.gmra.mrb[44].mxu0 %v2099_v14 }
  0x82   : > { %1016 = vmatmul.mubr.bf16.gmra.mrb[44].mxu1 %v2100_v15  ;;  %862 = vmatprep.mubr.bf16.mxu0 %v2101_v16 }
  0x83   : > { %1023 = vmatprep.mubr.bf16.mxu1 %v2103_v17 }
  0x89   : > { %863 = vmatmul.mubr.bf16.gmra.mrb[48].mxu0 %v2105_v18  ;;  %v1060_v18 = vld [vmem:[%s2513_s17 + $0x20] sm:$0xff] }
  0x8a   : > { %1024 = vmatmul.mubr.bf16.gmra.mrb[48].mxu1 %v2106_v19  ;;  %870 = vmatprep.mubr.bf16.mxu0 %v2107_v20 }
  0x8b   : > { %1031 = vmatprep.mubr.bf16.mxu1 %v2109_v21 }
  0x91   : > { %871 = vmatmul.mubr.bf16.gmra.mrb[52].mxu0 %v2111_v22  ;;  %v1061_v22 = vld [vmem:[%s2513_s17 + $0x28] sm:$0xff] }
  0x92   : > { %1032 = vmatmul.mubr.bf16.gmra.mrb[52].mxu1 %v2112_v23  ;;  %878 = vmatprep.mubr.bf16.mxu0 %v2113_v24 }
  0x93   : > { %1039 = vmatprep.mubr.bf16.mxu1 %v2115_v25 }
  0x99   : > { %879 = vmatmul.mubr.bf16.gmra.mrb[56].mxu0 %v2117_v26 }
  0x9a   : > { %1040 = vmatmul.mubr.bf16.gmra.mrb[56].mxu1 %v2118_v27  ;;  %886 = vmatprep.mubr.bf16.mxu0 %v2119_v28 }
  0x9b   : > { %1047 = vmatprep.mubr.bf16.mxu1 %v2121_v29 }
  0xa1   : > { %887 = vmatmul.mubr.bf16.gmra.mrb[60].mxu0 %v2123_v30 }
  0xa2   : > { %1048 = vmatmul.mubr.bf16.gmra.mrb[60].mxu1 %v2124_v31 }
  0xfc   : > { %v1813_v32 = vpop.f32.mrb[0].mxu0 }
  0xfd   : > { %v1925_v33 = vpop.f32.mrb[0].mxu1  ;;  %v1814_v34 = vpop.f32.mrb[1].mxu0 }
  0xfe   : > { %v1815_v35 = vadd.f32 %v1814_v34, %v1813_v32  ;;  %v1926_v36 = vpop.f32.mrb[1].mxu1  ;;  %v1816_v37 = vpop.f32.mrb[2].mxu0 }
  0xff   : > { %v1927_v38 = vadd.f32 %v1926_v36, %v1925_v33  ;;  %v1928_v39 = vpop.f32.mrb[2].mxu1  ;;  %v1817_v40 = vpop.f32.mrb[3].mxu0 }
 0x100   : > { %v1818_v41 = vadd.f32 %v1817_v40, %v1816_v37  ;;  %v1929_v42 = vpop.f32.mrb[3].mxu1 }
 0x101   : > { %v930_v44 = vadd.f32 %v1927_v38, %v1815_v35  ;;  %v1930_v45 = vadd.f32 %v1929_v42, %v1928_v39  ;;  %v1062_v39 = vld [vmem:[%s2513_s17 + $0x30] sm:$0xff]  ;;  %v1063_v42 = vld [vmem:[%s2513_s17 + $0x38] sm:$0xff] }
 0x103   : > { %v933_v47 = vadd.f32 %v1930_v45, %v1818_v41  ;;  %v2517_v48 = vadd.f32 %v1056_v43, %v930_v44 }
 0x104   : > { %v1819_v49 = vpop.f32.mrb[4].mxu0 }
 0x105   : > { %v1931_v50 = vpop.f32.mrb[4].mxu1  ;;  %v1820_v51 = vpop.f32.mrb[5].mxu0  ;;  %v1123_v52 = vsel %vm1122_vm0, %v2517_v48, 0.0  ;;  %v2521_v53 = vadd.f32 %v1057_v46, %v933_v47 }
 0x106   : > { %v1821_v54 = vadd.f32 %v1820_v51, %v1819_v49  ;;  %v1932_v55 = vpop.f32.mrb[5].mxu1  ;;  %1124 = vadd.xlane.f32.xlu0 %v1123_v52  ;;  %v1822_v56 = vpop.f32.mrb[6].mxu0 }
 0x107   : > { %v1933_v57 = vadd.f32 %v1932_v55, %v1931_v50  ;;  %v1934_v58 = vpop.f32.mrb[6].mxu1  ;;  %v1823_v59 = vpop.f32.mrb[7].mxu0  ;;  %v1126_v1 = vsel %vm1122_vm0, %v2521_v53, 0.0 }
 0x108   : > { %v1824_v60 = vadd.f32 %v1823_v59, %v1822_v56  ;;  %v1935_v61 = vpop.f32.mrb[7].mxu1 }
 0x109   : > { %v938_v63 = vadd.f32 %v1933_v57, %v1821_v54  ;;  %v1936_v0 = vadd.f32 %v1935_v61, %v1934_v58  ;;  %v1064_v61 = vld [vmem:[%s2513_s17 + $0x40] sm:$0xff] }
 0x10a   : > { %1127 = vadd.xlane.f32.xlu0 %v1126_v1 }
 0x10b   : > { %v941_v3 = vadd.f32 %v1936_v0, %v1824_v60  ;;  %v2527_v4 = vadd.f32 %v1058_v62, %v938_v63  ;;  %v1065_v0 = vld [vmem:[%s2513_s17 + $0x48] sm:$0xff] }
 0x10c   : > { %v1825_v5 = vpop.f32.mrb[8].mxu0 }
 0x10d   : > { %v1937_v6 = vpop.f32.mrb[8].mxu1  ;;  %v1826_v7 = vpop.f32.mrb[9].mxu0  ;;  %v1129_v8 = vsel %vm1122_vm0, %v2527_v4, 0.0  ;;  %v2531_v9 = vadd.f32 %v1059_v2, %v941_v3 }
 0x10e   : > { %v1827_v10 = vadd.f32 %v1826_v7, %v1825_v5  ;;  %v1938_v11 = vpop.f32.mrb[9].mxu1  ;;  %1130 = vadd.xlane.f32.xlu1 %v1129_v8  ;;  %v1828_v12 = vpop.f32.mrb[10].mxu0 }
 0x10f   : > { %v1939_v13 = vadd.f32 %v1938_v11, %v1937_v6  ;;  %v1940_v14 = vpop.f32.mrb[10].mxu1  ;;  %v1829_v15 = vpop.f32.mrb[11].mxu0  ;;  %v1132_v21 = vsel %vm1122_vm0, %v2531_v9, 0.0 }
 0x110   : > { %v1830_v16 = vadd.f32 %v1829_v15, %v1828_v12  ;;  %v1941_v17 = vpop.f32.mrb[11].mxu1 }
 0x111   : > { %v946_v19 = vadd.f32 %v1939_v13, %v1827_v10  ;;  %v1942_v20 = vadd.f32 %v1941_v17, %v1940_v14 }
 0x112   : > { %1133 = vadd.xlane.f32.xlu1 %v1132_v21 }
 0x113   : > { %v949_v23 = vadd.f32 %v1942_v20, %v1830_v16  ;;  %v2537_v24 = vadd.f32 %v1060_v18, %v946_v19  ;;  %v1066_v19 = vld [vmem:[%s2513_s17 + $0x50] sm:$0xff] }
 0x114   : > { %v1831_v25 = vpop.f32.mrb[12].mxu0 }
 0x115   : > { %v1943_v26 = vpop.f32.mrb[12].mxu1  ;;  %v1832_v27 = vpop.f32.mrb[13].mxu0  ;;  %v1135_v28 = vsel %vm1122_vm0, %v2537_v24, 0.0  ;;  %v2541_v29 = vadd.f32 %v1061_v22, %v949_v23  ;;  %v1067_v22 = vld [vmem:[%s2513_s17 + $0x58] sm:$0xff] }
 0x116   : > { %v1833_v30 = vadd.f32 %v1832_v27, %v1831_v25  ;;  %v1944_v31 = vpop.f32.mrb[13].mxu1  ;;  %1136 = vadd.xlane.f32.xlu0 %v1135_v28  ;;  %v1834_v32 = vpop.f32.mrb[14].mxu0 }
 0x117   : > { %v1945_v33 = vadd.f32 %v1944_v31, %v1943_v26  ;;  %v1946_v34 = vpop.f32.mrb[14].mxu1  ;;  %v1835_v35 = vpop.f32.mrb[15].mxu0  ;;  %v1138_v36 = vsel %vm1122_vm0, %v2541_v29, 0.0 }
 0x118   : > { %v1836_v37 = vadd.f32 %v1835_v35, %v1834_v32  ;;  %v1947_v38 = vpop.f32.mrb[15].mxu1  ;;  %1139 = vadd.xlane.f32.xlu1 %v1138_v36 }
 0x119   : > { %v954_v40 = vadd.f32 %v1945_v33, %v1833_v30  ;;  %v1948_v41 = vadd.f32 %v1947_v38, %v1946_v34 }
 0x11b   : > { %v957_v43 = vadd.f32 %v1948_v41, %v1836_v37  ;;  %v2547_v44 = vadd.f32 %v1062_v39, %v954_v40  ;;  %v1068_v41 = vld [vmem:[%s2513_s17 + $0x60] sm:$0xff] }
 0x11c   : > { %v1837_v45 = vpop.f32.mrb[16].mxu0 }
 0x11d   : > { %v1949_v46 = vpop.f32.mrb[16].mxu1  ;;  %v1838_v47 = vpop.f32.mrb[17].mxu0  ;;  %v1141_v49 = vsel %vm1122_vm0, %v2547_v44, 0.0  ;;  %v2551_v50 = vadd.f32 %v1063_v42, %v957_v43 }
 0x11e   : > { %v1839_v51 = vadd.f32 %v1838_v47, %v1837_v45  ;;  %v1950_v52 = vpop.f32.mrb[17].mxu1  ;;  %1142 = vadd.xlane.f32.xlu0 %v1141_v49  ;;  %v1840_v54 = vpop.f32.mrb[18].mxu0  ;;  %v1069_v45 = vld [vmem:[%s2513_s17 + $0x68] sm:$0xff] }
 0x11f   : > { %v1951_v55 = vadd.f32 %v1950_v52, %v1949_v46  ;;  %v1952_v56 = vpop.f32.mrb[18].mxu1  ;;  %v1841_v57 = vpop.f32.mrb[19].mxu0  ;;  %v1144_v58 = vsel %vm1122_vm0, %v2551_v50, 0.0 }
 0x120   : > { %v1842_v59 = vadd.f32 %v1841_v57, %v1840_v54  ;;  %v1953_v60 = vpop.f32.mrb[19].mxu1  ;;  %1145 = vadd.xlane.f32.xlu1 %v1144_v58 }
 0x121   : > { %v962_v62 = vadd.f32 %v1951_v55, %v1839_v51  ;;  %v1954_v63 = vadd.f32 %v1953_v60, %v1952_v56 }
 0x123   : > { %v965_v1 = vadd.f32 %v1954_v63, %v1842_v59  ;;  %v2557_v2 = vadd.f32 %v1064_v61, %v962_v62 }
 0x124   : > { %v1843_v3 = vpop.f32.mrb[20].mxu0 }
 0x125   : > { %v1955_v5 = vpop.f32.mrb[20].mxu1  ;;  %v1844_v6 = vpop.f32.mrb[21].mxu0  ;;  %v1147_v7 = vsel %vm1122_vm0, %v2557_v2, 0.0  ;;  %v2561_v8 = vadd.f32 %v1065_v0, %v965_v1  ;;  %v1070_v1 = vld [vmem:[%s2513_s17 + $0x70] sm:$0xff] }
 0x126   : > { %v1845_v10 = vadd.f32 %v1844_v6, %v1843_v3  ;;  %v1956_v11 = vpop.f32.mrb[21].mxu1  ;;  %1148 = vadd.xlane.f32.xlu0 %v1147_v7  ;;  %v1846_v12 = vpop.f32.mrb[22].mxu0  ;;  %v1071_v6 = vld [vmem:[%s2513_s17 + $0x78] sm:$0xff] }
 0x127   : > { %v1957_v13 = vadd.f32 %v1956_v11, %v1955_v5  ;;  %v1958_v14 = vpop.f32.mrb[22].mxu1  ;;  %v1847_v15 = vpop.f32.mrb[23].mxu0  ;;  %v1150_v16 = vsel %vm1122_vm0, %v2561_v8, 0.0 }
 0x128   : > { %v1848_v17 = vadd.f32 %v1847_v15, %v1846_v12  ;;  %v1959_v18 = vpop.f32.mrb[23].mxu1  ;;  %1151 = vadd.xlane.f32.xlu1 %v1150_v16 }
 0x129   : > { %v970_v20 = vadd.f32 %v1957_v13, %v1845_v10  ;;  %v1960_v21 = vadd.f32 %v1959_v18, %v1958_v14 }
 0x12b   : > { %v973_v23 = vadd.f32 %v1960_v21, %v1848_v17  ;;  %v2567_v25 = vadd.f32 %v1066_v19, %v970_v20 }
 0x12c   : > { %v1849_v26 = vpop.f32.mrb[24].mxu0 }
 0x12d   : > { %v1961_v27 = vpop.f32.mrb[24].mxu1  ;;  %v1850_v28 = vpop.f32.mrb[25].mxu0  ;;  %v1153_v30 = vsel %vm1122_vm0, %v2567_v25, 0.0  ;;  %v2571_v31 = vadd.f32 %v1067_v22, %v973_v23 }
 0x12e   : > { %v1851_v32 = vadd.f32 %v1850_v28, %v1849_v26  ;;  %v1962_v33 = vpop.f32.mrb[25].mxu1  ;;  %1154 = vadd.xlane.f32.xlu0 %v1153_v30  ;;  %v1852_v34 = vpop.f32.mrb[26].mxu0 }
 0x12f   : > { %v1963_v35 = vadd.f32 %v1962_v33, %v1961_v27  ;;  %v1964_v36 = vpop.f32.mrb[26].mxu1  ;;  %v1853_v37 = vpop.f32.mrb[27].mxu0  ;;  %v1156_v38 = vsel %vm1122_vm0, %v2571_v31, 0.0  ;;  %v1072_v27 = vld [vmem:[%s2513_s17 + $0x80] sm:$0xff] }
 0x130   : > { %v1854_v39 = vadd.f32 %v1853_v37, %v1852_v34  ;;  %v1965_v40 = vpop.f32.mrb[27].mxu1  ;;  %1157 = vadd.xlane.f32.xlu1 %v1156_v38 }
 0x131   : > { %v978_v42 = vadd.f32 %v1963_v35, %v1851_v32  ;;  %v1966_v43 = vadd.f32 %v1965_v40, %v1964_v36  ;;  %v1073_v32 = vld [vmem:[%s2513_s17 + $0x88] sm:$0xff] }
 0x133   : > { %v981_v46 = vadd.f32 %v1966_v43, %v1854_v39  ;;  %v2577_v47 = vadd.f32 %v1068_v41, %v978_v42 }
 0x134   : > { %v1855_v49 = vpop.f32.mrb[28].mxu0 }
 0x135   : > { %v1967_v51 = vpop.f32.mrb[28].mxu1  ;;  %v1856_v52 = vpop.f32.mrb[29].mxu0  ;;  %v1159_v54 = vsel %vm1122_vm0, %v2577_v47, 0.0  ;;  %v2581_v55 = vadd.f32 %v1069_v45, %v981_v46 }
 0x136   : > { %v1857_v56 = vadd.f32 %v1856_v52, %v1855_v49  ;;  %v1968_v57 = vpop.f32.mrb[29].mxu1  ;;  %1160 = vadd.xlane.f32.xlu0 %v1159_v54  ;;  %v1858_v58 = vpop.f32.mrb[30].mxu0  ;;  %v1074_v54 = vld [vmem:[%s2513_s17 + $0x90] sm:$0xff] }
 0x137   : > { %v1969_v59 = vadd.f32 %v1968_v57, %v1967_v51  ;;  %v1970_v60 = vpop.f32.mrb[30].mxu1  ;;  %v1859_v61 = vpop.f32.mrb[31].mxu0  ;;  %v1162_v62 = vsel %vm1122_vm0, %v2581_v55, 0.0 }
 0x138   : > { %v1860_v63 = vadd.f32 %v1859_v61, %v1858_v58  ;;  %v1971_v0 = vpop.f32.mrb[31].mxu1  ;;  %1163 = vadd.xlane.f32.xlu1 %v1162_v62  ;;  %v1075_v58 = vld [vmem:[%s2513_s17 + $0x98] sm:$0xff] }
 0x139   : > { %v986_v3 = vadd.f32 %v1969_v59, %v1857_v56  ;;  %v1972_v5 = vadd.f32 %v1971_v0, %v1970_v60 }
 0x13b   : > { %v989_v7 = vadd.f32 %v1972_v5, %v1860_v63  ;;  %v2587_v10 = vadd.f32 %v1070_v1, %v986_v3 }
 0x13c   : > { %v1861_v11 = vpop.f32.mrb[32].mxu0 }
 0x13d   : > { %v1973_v12 = vpop.f32.mrb[32].mxu1  ;;  %v1862_v13 = vpop.f32.mrb[33].mxu0  ;;  %v1165_v14 = vsel %vm1122_vm0, %v2587_v10, 0.0  ;;  %v2591_v15 = vadd.f32 %v1071_v6, %v989_v7 }
 0x13e   : > { %v1863_v16 = vadd.f32 %v1862_v13, %v1861_v11  ;;  %v1974_v17 = vpop.f32.mrb[33].mxu1  ;;  %1166 = vadd.xlane.f32.xlu0 %v1165_v14  ;;  %v1864_v18 = vpop.f32.mrb[34].mxu0 }
 0x13f   : > { %v1975_v19 = vadd.f32 %v1974_v17, %v1973_v12  ;;  %v1976_v20 = vpop.f32.mrb[34].mxu1  ;;  %v1865_v21 = vpop.f32.mrb[35].mxu0  ;;  %v1168_v22 = vsel %vm1122_vm0, %v2591_v15, 0.0  ;;  %v1076_v17 = vld [vmem:[%s2513_s17 + $0xa0] sm:$0xff] }
 0x140   : > { %v1866_v23 = vadd.f32 %v1865_v21, %v1864_v18  ;;  %v1977_v26 = vpop.f32.mrb[35].mxu1  ;;  %1169 = vadd.xlane.f32.xlu1 %v1168_v22 }
 0x141   : > { %v994_v28 = vadd.f32 %v1975_v19, %v1863_v16  ;;  %v1978_v30 = vadd.f32 %v1977_v26, %v1976_v20  ;;  %v1077_v20 = vld [vmem:[%s2513_s17 + $0xa8] sm:$0xff] }
 0x143   : > { %v997_v33 = vadd.f32 %v1978_v30, %v1866_v23  ;;  %v2597_v34 = vadd.f32 %v1072_v27, %v994_v28 }
 0x144   : > { %v1867_v35 = vpop.f32.mrb[36].mxu0 }
 0x145   : > { %v1979_v36 = vpop.f32.mrb[36].mxu1  ;;  %v1868_v37 = vpop.f32.mrb[37].mxu0  ;;  %v1171_v38 = vsel %vm1122_vm0, %v2597_v34, 0.0  ;;  %v2601_v39 = vadd.f32 %v1073_v32, %v997_v33 }
 0x146   : > { %v1869_v40 = vadd.f32 %v1868_v37, %v1867_v35  ;;  %v1980_v41 = vpop.f32.mrb[37].mxu1  ;;  %1172 = vadd.xlane.f32.xlu0 %v1171_v38  ;;  %v1870_v42 = vpop.f32.mrb[38].mxu0 }
 0x147   : > { %v1981_v43 = vadd.f32 %v1980_v41, %v1979_v36  ;;  %v1982_v45 = vpop.f32.mrb[38].mxu1  ;;  %v1871_v46 = vpop.f32.mrb[39].mxu0  ;;  %v1174_v49 = vsel %vm1122_vm0, %v2601_v39, 0.0 }
 0x148   : > { %v1872_v51 = vadd.f32 %v1871_v46, %v1870_v42  ;;  %v1983_v52 = vpop.f32.mrb[39].mxu1  ;;  %1175 = vadd.xlane.f32.xlu1 %v1174_v49  ;;  %v1079_v49 = vld [vmem:[%s2513_s17 + $0xb8] sm:$0xff] }
 0x149   : > { %v1002_v56 = vadd.f32 %v1981_v43, %v1869_v40  ;;  %v1984_v57 = vadd.f32 %v1983_v52, %v1982_v45  ;;  %v1078_v43 = vld [vmem:[%s2513_s17 + $0xb0] sm:$0xff] }
 0x14b   : > { %v1005_v59 = vadd.f32 %v1984_v57, %v1872_v51  ;;  %v2607_v60 = vadd.f32 %v1074_v54, %v1002_v56 }
 0x14c   : > { %v1873_v61 = vpop.f32.mrb[40].mxu0 }
 0x14d   : > { %v1985_v62 = vpop.f32.mrb[40].mxu1  ;;  %v1874_v63 = vpop.f32.mrb[41].mxu0  ;;  %v1177_v0 = vsel %vm1122_vm0, %v2607_v60, 0.0  ;;  %v2611_v1 = vadd.f32 %v1075_v58, %v1005_v59 }
 0x14e   : > { %v1875_v3 = vadd.f32 %v1874_v63, %v1873_v61  ;;  %v1986_v5 = vpop.f32.mrb[41].mxu1  ;;  %1178 = vadd.xlane.f32.xlu0 %v1177_v0  ;;  %v1876_v6 = vpop.f32.mrb[42].mxu0 }
 0x14f   : > { %v1987_v7 = vadd.f32 %v1986_v5, %v1985_v62  ;;  %v1988_v11 = vpop.f32.mrb[42].mxu1  ;;  %v1877_v12 = vpop.f32.mrb[43].mxu0  ;;  %v1180_v13 = vsel %vm1122_vm0, %v2611_v1, 0.0 }
 0x150   : > { %v1878_v14 = vadd.f32 %v1877_v12, %v1876_v6  ;;  %v1989_v16 = vpop.f32.mrb[43].mxu1  ;;  %1181 = vadd.xlane.f32.xlu1 %v1180_v13  ;;  %v1080_v12 = vld [vmem:[%s2513_s17 + $0xc0] sm:$0xff] }
 0x151   : > { %v1010_v18 = vadd.f32 %v1987_v7, %v1875_v3  ;;  %v1990_v19 = vadd.f32 %v1989_v16, %v1988_v11  ;;  %v1081_v16 = vld [vmem:[%s2513_s17 + $0xc8] sm:$0xff] }
 0x153   : > { %v1013_v21 = vadd.f32 %v1990_v19, %v1878_v14  ;;  %v2617_v22 = vadd.f32 %v1076_v17, %v1010_v18 }
 0x154   : > { %v1879_v23 = vpop.f32.mrb[44].mxu0 }
 0x155   : > { %v1991_v26 = vpop.f32.mrb[44].mxu1  ;;  %v1880_v27 = vpop.f32.mrb[45].mxu0  ;;  %v1183_v28 = vsel %vm1122_vm0, %v2617_v22, 0.0  ;;  %v2621_v30 = vadd.f32 %v1077_v20, %v1013_v21 }
 0x156   : > { %v1881_v32 = vadd.f32 %v1880_v27, %v1879_v23  ;;  %v1992_v33 = vpop.f32.mrb[45].mxu1  ;;  %1184 = vadd.xlane.f32.xlu0 %v1183_v28  ;;  %v1882_v35 = vpop.f32.mrb[46].mxu0 }
 0x157   : > { %v1993_v36 = vadd.f32 %v1992_v33, %v1991_v26  ;;  %v1994_v37 = vpop.f32.mrb[46].mxu1  ;;  %v1883_v38 = vpop.f32.mrb[47].mxu0  ;;  %v1186_v40 = vsel %vm1122_vm0, %v2621_v30, 0.0 }
 0x158   : > { %v1884_v41 = vadd.f32 %v1883_v38, %v1882_v35  ;;  %v1995_v42 = vpop.f32.mrb[47].mxu1  ;;  %1187 = vadd.xlane.f32.xlu1 %v1186_v40 }
 0x159   : > { %v1018_v45 = vadd.f32 %v1993_v36, %v1881_v32  ;;  %v1996_v46 = vadd.f32 %v1995_v42, %v1994_v37 }
 0x15b   : > { %v1021_v51 = vadd.f32 %v1996_v46, %v1884_v41  ;;  %v2627_v52 = vadd.f32 %v1078_v43, %v1018_v45  ;;  %v1082_v41 = vld [vmem:[%s2513_s17 + $0xd0] sm:$0xff]  ;;  %v1083_v45 = vld [vmem:[%s2513_s17 + $0xd8] sm:$0xff] }
 0x15c   : > { %v1885_v54 = vpop.f32.mrb[48].mxu0 }
 0x15d   : > { %v1997_v56 = vpop.f32.mrb[48].mxu1  ;;  %v1886_v57 = vpop.f32.mrb[49].mxu0  ;;  %v1189_v58 = vsel %vm1122_vm0, %v2627_v52, 0.0  ;;  %v2631_v59 = vadd.f32 %v1079_v49, %v1021_v51 }
 0x15e   : > { %v1887_v61 = vadd.f32 %v1886_v57, %v1885_v54  ;;  %v1998_v62 = vpop.f32.mrb[49].mxu1  ;;  %1190 = vadd.xlane.f32.xlu0 %v1189_v58  ;;  %v1888_v63 = vpop.f32.mrb[50].mxu0 }
 0x15f   : > { %v1999_v0 = vadd.f32 %v1998_v62, %v1997_v56  ;;  %v2000_v3 = vpop.f32.mrb[50].mxu1  ;;  %v1889_v5 = vpop.f32.mrb[51].mxu0  ;;  %v1192_v6 = vsel %vm1122_vm0, %v2631_v59, 0.0 }
 0x160   : > { %v1890_v7 = vadd.f32 %v1889_v5, %v1888_v63  ;;  %v2001_v11 = vpop.f32.mrb[51].mxu1  ;;  %1193 = vadd.xlane.f32.xlu1 %v1192_v6 }
 0x161   : > { %v1026_v13 = vadd.f32 %v1999_v0, %v1887_v61  ;;  %v2002_v14 = vadd.f32 %v2001_v11, %v2000_v3 }
 0x163   : > { %v1029_v17 = vadd.f32 %v2002_v14, %v1890_v7  ;;  %v2637_v18 = vadd.f32 %v1080_v12, %v1026_v13  ;;  %v1084_v12 = vld [vmem:[%s2513_s17 + $0xe0] sm:$0xff] }
 0x164   : > { %v1891_v19 = vpop.f32.mrb[52].mxu0 }
 0x165   : > { %v2003_v20 = vpop.f32.mrb[52].mxu1  ;;  %v1892_v21 = vpop.f32.mrb[53].mxu0  ;;  %v1195_v23 = vsel %vm1122_vm0, %v2637_v18, 0.0  ;;  %v2641_v26 = vadd.f32 %v1081_v16, %v1029_v17  ;;  %v1085_v16 = vld [vmem:[%s2513_s17 + $0xe8] sm:$0xff] }
 0x166   : > { %v1893_v27 = vadd.f32 %v1892_v21, %v1891_v19  ;;  %v2004_v28 = vpop.f32.mrb[53].mxu1  ;;  %1196 = vadd.xlane.f32.xlu0 %v1195_v23  ;;  %v1894_v32 = vpop.f32.mrb[54].mxu0 }
 0x167   : > { %v2005_v33 = vadd.f32 %v2004_v28, %v2003_v20  ;;  %v2006_v35 = vpop.f32.mrb[54].mxu1  ;;  %v1895_v36 = vpop.f32.mrb[55].mxu0  ;;  %v1198_v37 = vsel %vm1122_vm0, %v2641_v26, 0.0 }
 0x168   : > { %v1896_v38 = vadd.f32 %v1895_v36, %v1894_v32  ;;  %v2007_v40 = vpop.f32.mrb[55].mxu1  ;;  %1199 = vadd.xlane.f32.xlu1 %v1198_v37 }
 0x169   : > { %v1034_v42 = vadd.f32 %v2005_v33, %v1893_v27  ;;  %v2008_v43 = vadd.f32 %v2007_v40, %v2006_v35 }
 0x16b   : > { %v1037_v46 = vadd.f32 %v2008_v43, %v1896_v38  ;;  %v2647_v49 = vadd.f32 %v1082_v41, %v1034_v42  ;;  %v1086_v43 = vld [vmem:[%s2513_s17 + $0xf0] sm:$0xff] }
 0x16c   : > { %v1897_v51 = vpop.f32.mrb[56].mxu0 }
 0x16d   : > { %v2009_v54 = vpop.f32.mrb[56].mxu1  ;;  %v1898_v56 = vpop.f32.mrb[57].mxu0  ;;  %v1201_v57 = vsel %vm1122_vm0, %v2647_v49, 0.0  ;;  %v2651_v58 = vadd.f32 %v1083_v45, %v1037_v46 }
 0x16e   : > { %v1899_v61 = vadd.f32 %v1898_v56, %v1897_v51  ;;  %v2010_v62 = vpop.f32.mrb[57].mxu1  ;;  %1202 = vadd.xlane.f32.xlu0 %v1201_v57  ;;  %v1900_v63 = vpop.f32.mrb[58].mxu0  ;;  %v1087_v51 = vld [vmem:[%s2513_s17 + $0xf8] sm:$0xff] }
 0x16f   : > { %v2011_v0 = vadd.f32 %v2010_v62, %v2009_v54  ;;  %v2012_v3 = vpop.f32.mrb[58].mxu1  ;;  %v1901_v5 = vpop.f32.mrb[59].mxu0  ;;  %v1204_v6 = vsel %vm1122_vm0, %v2651_v58, 0.0 }
 0x170   : > { %v1902_v7 = vadd.f32 %v1901_v5, %v1900_v63  ;;  %v2013_v11 = vpop.f32.mrb[59].mxu1  ;;  %1205 = vadd.xlane.f32.xlu1 %v1204_v6 }
 0x171   : > { %v1042_v13 = vadd.f32 %v2011_v0, %v1899_v61  ;;  %v2014_v14 = vadd.f32 %v2013_v11, %v2012_v3 }
 0x173   : > { %v1045_v17 = vadd.f32 %v2014_v14, %v1902_v7  ;;  %v2657_v19 = vadd.f32 %v1084_v12, %v1042_v13 }
 0x174   : > { %v1903_v20 = vpop.f32.mrb[60].mxu0 }
 0x175   : > { %v2015_v21 = vpop.f32.mrb[60].mxu1  ;;  %v1904_v23 = vpop.f32.mrb[61].mxu0  ;;  %v1207_v27 = vsel %vm1122_vm0, %v2657_v19, 0.0  ;;  %v2661_v28 = vadd.f32 %v1085_v16, %v1045_v17 }
 0x176   : > { %v1905_v32 = vadd.f32 %v1904_v23, %v1903_v20  ;;  %v2016_v33 = vpop.f32.mrb[61].mxu1  ;;  %1208 = vadd.xlane.f32.xlu0 %v1207_v27  ;;  %v1906_v35 = vpop.f32.mrb[62].mxu0 }
 0x177   : > { %v2017_v36 = vadd.f32 %v2016_v33, %v2015_v21  ;;  %v2018_v37 = vpop.f32.mrb[62].mxu1  ;;  %v1907_v38 = vpop.f32.mrb[63].mxu0  ;;  %v1210_v40 = vsel %vm1122_vm0, %v2661_v28, 0.0 }
 0x178   : > { %v1908_v41 = vadd.f32 %v1907_v38, %v1906_v35  ;;  %v2019_v42 = vpop.f32.mrb[63].mxu1  ;;  %1211 = vadd.xlane.f32.xlu1 %v1210_v40 }
 0x179   : > { %v1050_v45 = vadd.f32 %v2017_v36, %v1905_v32  ;;  %v2020_v46 = vadd.f32 %v2019_v42, %v2018_v37 }
 0x17b   : > { %v1053_v54 = vadd.f32 %v2020_v46, %v1908_v41  ;;  %v2667_v56 = vadd.f32 %v1086_v43, %v1050_v45 }
 0x17d   : > { %v1213_v57 = vsel %vm1122_vm0, %v2667_v56, 0.0  ;;  %v2671_v61 = vadd.f32 %v1087_v51, %v1053_v54 }
 0x17e   : > { %1214 = vadd.xlane.f32.xlu0 %v1213_v57 }
 0x17f   : > { %v1216_v62 = vsel %vm1122_vm0, %v2671_v61, 0.0 }
 0x180   : > { %1217 = vadd.xlane.f32.xlu1 %v1216_v62 }
 0x193   : > { %v1125_v63 = vpop.xlane.xlu0 %1124 }
 0x194   : > { %v1220_v0 = vmul.f32 0.03125, %v1125_v63 }
 0x196   : > { %v2676_v3 = vsub.f32 %v2517_v48, %v1220_v0 }
 0x197   : > { %v1128_v5 = vpop.xlane.xlu0 %1127 }
 0x198   : > { %v1221_v6 = vmul.f32 0.03125, %v1128_v5  ;;  %v1284_v7 = vmul.f32 %v2676_v3, %v2676_v3 }
 0x19a   : > { %v2681_v11 = vsub.f32 %v2521_v53, %v1221_v6  ;;  %v1316_v12 = vsel %vm1122_vm0, %v1284_v7, 0.0 }
 0x19b   : > { %v1131_v13 = vpop.xlane.xlu1 %1130  ;;  %1317 = vadd.xlane.f32.xlu0 %v1316_v12 }
 0x19c   : > { %v1222_v14 = vmul.f32 0.03125, %v1131_v13  ;;  %v1285_v16 = vmul.f32 %v2681_v11, %v2681_v11 }
 0x19e   : > { %v2687_v17 = vsub.f32 %v2527_v4, %v1222_v14  ;;  %v1319_v48 = vsel %vm1122_vm0, %v1285_v16, 0.0 }
 0x19f   : > { %v1134_v20 = vpop.xlane.xlu1 %1133  ;;  %1320 = vadd.xlane.f32.xlu1 %v1319_v48 }
 0x1a0   : > { %v1223_v21 = vmul.f32 0.03125, %v1134_v20  ;;  %v1286_v53 = vmul.f32 %v2687_v17, %v2687_v17 }
 0x1a2   : > { %v2693_v23 = vsub.f32 %v2531_v9, %v1223_v21  ;;  %v1322_v27 = vsel %vm1122_vm0, %v1286_v53, 0.0 }
 0x1a3   : > { %1323 = vadd.xlane.f32.xlu0 %v1322_v27  ;;  %v1137_v32 = vpop.xlane.xlu0 %1136 }
 0x1a4   : > { %v1224_v33 = vmul.f32 0.03125, %v1137_v32  ;;  %v1287_v4 = vmul.f32 %v2693_v23, %v2693_v23 }
 0x1a5   : > { %v1140_v35 = vpop.xlane.xlu1 %1139 }
 0x1a6   : > { %v2699_v36 = vsub.f32 %v2537_v24, %v1224_v33  ;;  %v1225_v37 = vmul.f32 0.03125, %v1140_v35  ;;  %v1325_v38 = vsel %vm1122_vm0, %v1287_v4, 0.0 }
 0x1a7   : > { %1326 = vadd.xlane.f32.xlu1 %v1325_v38 }
 0x1a8   : > { %v2703_v40 = vsub.f32 %v2541_v29, %v1225_v37  ;;  %v1288_v9 = vmul.f32 %v2699_v36, %v2699_v36 }
 0x1aa   : > { %v1328_v41 = vsel %vm1122_vm0, %v1288_v9, 0.0  ;;  %v1289_v42 = vmul.f32 %v2703_v40, %v2703_v40 }
 0x1ab   : > { %1329 = vadd.xlane.f32.xlu0 %v1328_v41  ;;  %v1143_v43 = vpop.xlane.xlu0 %1142 }
 0x1ac   : > { %v1226_v45 = vmul.f32 0.03125, %v1143_v43  ;;  %v1331_v24 = vsel %vm1122_vm0, %v1289_v42, 0.0 }
 0x1ad   : > { %v1146_v46 = vpop.xlane.xlu1 %1145  ;;  %1332 = vadd.xlane.f32.xlu1 %v1331_v24 }
 0x1ae   : > { %v2712_v51 = vsub.f32 %v2547_v44, %v1226_v45  ;;  %v1227_v29 = vmul.f32 0.03125, %v1146_v46 }
 0x1b0   : > { %v2715_v54 = vsub.f32 %v2551_v50, %v1227_v29  ;;  %v1290_v57 = vmul.f32 %v2712_v51, %v2712_v51 }
 0x1b2   : > { %v1334_v62 = vsel %vm1122_vm0, %v1290_v57, 0.0  ;;  %v1291_v63 = vmul.f32 %v2715_v54, %v2715_v54 }
 0x1b3   : > { %1335 = vadd.xlane.f32.xlu0 %v1334_v62  ;;  %v1149_v0 = vpop.xlane.xlu0 %1148 }
 0x1b4   : > { %v1228_v5 = vmul.f32 0.03125, %v1149_v0  ;;  %v1337_v6 = vsel %vm1122_vm0, %v1291_v63, 0.0 }
 0x1b5   : > { %v1152_v7 = vpop.xlane.xlu1 %1151  ;;  %1338 = vadd.xlane.f32.xlu1 %v1337_v6 }
 0x1b6   : > { %v2724_v44 = vsub.f32 %v2557_v2, %v1228_v5  ;;  %v1229_v50 = vmul.f32 0.03125, %v1152_v7 }
 0x1b8   : > { %v2727_v12 = vsub.f32 %v2561_v8, %v1229_v50  ;;  %v1292_v13 = vmul.f32 %v2724_v44, %v2724_v44 }
 0x1ba   : > { %v1340_v14 = vsel %vm1122_vm0, %v1292_v13, 0.0  ;;  %v1293_v16 = vmul.f32 %v2727_v12, %v2727_v12 }
 0x1bb   : > { %1341 = vadd.xlane.f32.xlu0 %v1340_v14  ;;  %v1155_v48 = vpop.xlane.xlu0 %1154 }
 0x1bc   : > { %v1230_v20 = vmul.f32 0.03125, %v1155_v48  ;;  %v1343_v21 = vsel %vm1122_vm0, %v1293_v16, 0.0 }
 0x1bd   : > { %v1158_v53 = vpop.xlane.xlu1 %1157  ;;  %1344 = vadd.xlane.f32.xlu1 %v1343_v21 }
 0x1be   : > { %v2736_v2 = vsub.f32 %v2567_v25, %v1230_v20  ;;  %v1231_v8 = vmul.f32 0.03125, %v1158_v53 }
 0x1c0   : > { %v2739_v27 = vsub.f32 %v2571_v31, %v1231_v8  ;;  %v1294_v32 = vmul.f32 %v2736_v2, %v2736_v2 }
 0x1c2   : > { %v1346_v33 = vsel %vm1122_vm0, %v1294_v32, 0.0  ;;  %v1295_v4 = vmul.f32 %v2739_v27, %v2739_v27 }
 0x1c3   : > { %1347 = vadd.xlane.f32.xlu0 %v1346_v33  ;;  %v1161_v35 = vpop.xlane.xlu0 %1160 }
 0x1c4   : > { %v1232_v37 = vmul.f32 0.03125, %v1161_v35  ;;  %v1349_v38 = vsel %vm1122_vm0, %v1295_v4, 0.0 }
 0x1c5   : > { %v1164_v9 = vpop.xlane.xlu1 %1163  ;;  %1350 = vadd.xlane.f32.xlu1 %v1349_v38 }
 0x1c6   : > { %v2748_v25 = vsub.f32 %v2577_v47, %v1232_v37  ;;  %v1233_v31 = vmul.f32 0.03125, %v1164_v9 }
 0x1c8   : > { %v2751_v41 = vsub.f32 %v2581_v55, %v1233_v31  ;;  %v1296_v42 = vmul.f32 %v2748_v25, %v2748_v25 }
 0x1ca   : > { %v1352_v43 = vsel %vm1122_vm0, %v1296_v42, 0.0  ;;  %v1297_v45 = vmul.f32 %v2751_v41, %v2751_v41 }
 0x1cb   : > { %1353 = vadd.xlane.f32.xlu0 %v1352_v43  ;;  %v1167_v24 = vpop.xlane.xlu0 %1166 }
 0x1cc   : > { %v1234_v46 = vmul.f32 0.03125, %v1167_v24  ;;  %v1355_v29 = vsel %vm1122_vm0, %v1297_v45, 0.0 }
 0x1cd   : > { %v1170_v57 = vpop.xlane.xlu1 %1169  ;;  %1356 = vadd.xlane.f32.xlu1 %v1355_v29 }
 0x1ce   : > { %v2760_v47 = vsub.f32 %v2587_v10, %v1234_v46  ;;  %v1235_v55 = vmul.f32 0.03125, %v1170_v57 }
 0x1d0   : > { %v2763_v62 = vsub.f32 %v2591_v15, %v1235_v55  ;;  %v1298_v63 = vmul.f32 %v2760_v47, %v2760_v47 }
 0x1d2   : > { %v1358_v0 = vsel %vm1122_vm0, %v1298_v63, 0.0  ;;  %v1299_v5 = vmul.f32 %v2763_v62, %v2763_v62 }
 0x1d3   : > { %1359 = vadd.xlane.f32.xlu0 %v1358_v0  ;;  %v1173_v6 = vpop.xlane.xlu0 %1172 }
 0x1d4   : > { %v1236_v7 = vmul.f32 0.03125, %v1173_v6  ;;  %v1361_v50 = vsel %vm1122_vm0, %v1299_v5, 0.0 }
 0x1d5   : > { %v1176_v13 = vpop.xlane.xlu1 %1175  ;;  %1362 = vadd.xlane.f32.xlu1 %v1361_v50 }
 0x1d6   : > { %v2772_v10 = vsub.f32 %v2597_v34, %v1236_v7  ;;  %v1237_v15 = vmul.f32 0.03125, %v1176_v13 }
 0x1d8   : > { %v2775_v14 = vsub.f32 %v2601_v39, %v1237_v15  ;;  %v1300_v16 = vmul.f32 %v2772_v10, %v2772_v10 }
 0x1da   : > { %v1364_v48 = vsel %vm1122_vm0, %v1300_v16, 0.0  ;;  %v1301_v20 = vmul.f32 %v2775_v14, %v2775_v14 }
 0x1db   : > { %1365 = vadd.xlane.f32.xlu0 %v1364_v48  ;;  %v1179_v21 = vpop.xlane.xlu0 %1178 }
 0x1dc   : > { %v1238_v53 = vmul.f32 0.03125, %v1179_v21  ;;  %v1367_v8 = vsel %vm1122_vm0, %v1301_v20, 0.0 }
 0x1dd   : > { %v1182_v32 = vpop.xlane.xlu1 %1181  ;;  %1368 = vadd.xlane.f32.xlu1 %v1367_v8 }
 0x1de   : > { %v2784_v34 = vsub.f32 %v2607_v60, %v1238_v53  ;;  %v1239_v39 = vmul.f32 0.03125, %v1182_v32 }
 0x1e0   : > { %v2787_v33 = vsub.f32 %v2611_v1, %v1239_v39  ;;  %v1302_v4 = vmul.f32 %v2784_v34, %v2784_v34 }
 0x1e2   : > { %v1370_v35 = vsel %vm1122_vm0, %v1302_v4, 0.0  ;;  %v1303_v37 = vmul.f32 %v2787_v33, %v2787_v33 }
 0x1e3   : > { %1371 = vadd.xlane.f32.xlu0 %v1370_v35  ;;  %v1185_v38 = vpop.xlane.xlu0 %1184 }
 0x1e4   : > { %v1240_v9 = vmul.f32 0.03125, %v1185_v38  ;;  %v1373_v31 = vsel %vm1122_vm0, %v1303_v37, 0.0 }
 0x1e5   : > { %v1188_v42 = vpop.xlane.xlu1 %1187  ;;  %1374 = vadd.xlane.f32.xlu1 %v1373_v31 }
 0x1e6   : > { %v2796_v60 = vsub.f32 %v2617_v22, %v1240_v9  ;;  %v1241_v1 = vmul.f32 0.03125, %v1188_v42 }
 0x1e8   : > { %v2799_v43 = vsub.f32 %v2621_v30, %v1241_v1  ;;  %v1304_v45 = vmul.f32 %v2796_v60, %v2796_v60 }
 0x1ea   : > { %v1376_v24 = vsel %vm1122_vm0, %v1304_v45, 0.0  ;;  %v1305_v46 = vmul.f32 %v2799_v43, %v2799_v43 }
 0x1eb   : > { %1377 = vadd.xlane.f32.xlu0 %v1376_v24  ;;  %v1191_v29 = vpop.xlane.xlu0 %1190 }
 0x1ec   : > { %v1242_v57 = vmul.f32 0.03125, %v1191_v29  ;;  %v1379_v55 = vsel %vm1122_vm0, %v1305_v46, 0.0 }
 0x1ed   : > { %v1194_v63 = vpop.xlane.xlu1 %1193  ;;  %1380 = vadd.xlane.f32.xlu1 %v1379_v55 }
 0x1ee   : > { %v2808_v22 = vsub.f32 %v2627_v52, %v1242_v57  ;;  %v1243_v30 = vmul.f32 0.03125, %v1194_v63 }
 0x1f0   : > { %v2811_v0 = vsub.f32 %v2631_v59, %v1243_v30  ;;  %v1306_v5 = vmul.f32 %v2808_v22, %v2808_v22 }
 0x1f2   : > { %v1382_v6 = vsel %vm1122_vm0, %v1306_v5, 0.0  ;;  %v1307_v7 = vmul.f32 %v2811_v0, %v2811_v0 }
 0x1f3   : > { %1383 = vadd.xlane.f32.xlu0 %v1382_v6  ;;  %v1197_v50 = vpop.xlane.xlu0 %1196 }
 0x1f4   : > { %v1244_v13 = vmul.f32 0.03125, %v1197_v50  ;;  %v1385_v15 = vsel %vm1122_vm0, %v1307_v7, 0.0 }
 0x1f5   : > { %v1200_v16 = vpop.xlane.xlu1 %1199  ;;  %1386 = vadd.xlane.f32.xlu1 %v1385_v15 }
 0x1f6   : > { %v2820_v52 = vsub.f32 %v2637_v18, %v1244_v13  ;;  %v1245_v59 = vmul.f32 0.03125, %v1200_v16 }
 0x1f8   : > { %v2823_v48 = vsub.f32 %v2641_v26, %v1245_v59  ;;  %v1308_v20 = vmul.f32 %v2820_v52, %v2820_v52 }
 0x1fa   : > { %v1388_v21 = vsel %vm1122_vm0, %v1308_v20, 0.0  ;;  %v1309_v53 = vmul.f32 %v2823_v48, %v2823_v48 }
 0x1fb   : > { %1389 = vadd.xlane.f32.xlu0 %v1388_v21  ;;  %v1203_v8 = vpop.xlane.xlu0 %1202 }
 0x1fc   : > { %v1246_v32 = vmul.f32 0.03125, %v1203_v8  ;;  %v1391_v39 = vsel %vm1122_vm0, %v1309_v53, 0.0 }
 0x1fd   : > { %v1206_v4 = vpop.xlane.xlu1 %1205  ;;  %1392 = vadd.xlane.f32.xlu1 %v1391_v39 }
 0x1fe   : > { %v2832_v18 = vsub.f32 %v2647_v49, %v1246_v32  ;;  %v1247_v26 = vmul.f32 0.03125, %v1206_v4 }
 0x200   : > { %v2835_v35 = vsub.f32 %v2651_v58, %v1247_v26  ;;  %v1310_v37 = vmul.f32 %v2832_v18, %v2832_v18 }
 0x202   : > { %v1394_v38 = vsel %vm1122_vm0, %v1310_v37, 0.0  ;;  %v1311_v9 = vmul.f32 %v2835_v35, %v2835_v35  ;;  %v2870_v37 = vld [vmem:[%s3050_s3] ss:$0 sm:$0xff] }
 0x203   : > { %1395 = vadd.xlane.f32.xlu0 %v1394_v38  ;;  %v1209_v31 = vpop.xlane.xlu0 %1208 }
 0x204   : > { %v1248_v42 = vmul.f32 0.03125, %v1209_v31  ;;  %v1397_v1 = vsel %vm1122_vm0, %v1311_v9, 0.0 }
 0x205   : > { %v1212_v45 = vpop.xlane.xlu1 %1211  ;;  %1398 = vadd.xlane.f32.xlu1 %v1397_v1 }
 0x206   : > { %v2844_v49 = vsub.f32 %v2657_v19, %v1248_v42  ;;  %v1249_v58 = vmul.f32 0.03125, %v1212_v45  ;;  %v2876_v42 = vld [vmem:[%s3051_s4] ss:$0 sm:$0xff] }
 0x208   : > { %v2847_v24 = vsub.f32 %v2661_v28, %v1249_v58  ;;  %v1312_v46 = vmul.f32 %v2844_v49, %v2844_v49 }
 0x20a   : > { %v1400_v29 = vsel %vm1122_vm0, %v1312_v46, 0.0  ;;  %v1313_v57 = vmul.f32 %v2847_v24, %v2847_v24 }
 0x20b   : > { %1401 = vadd.xlane.f32.xlu0 %v1400_v29  ;;  %v1215_v55 = vpop.xlane.xlu0 %1214 }
 0x20c   : > { %v1250_v63 = vmul.f32 0.03125, %v1215_v55  ;;  %v1403_v30 = vsel %vm1122_vm0, %v1313_v57, 0.0 }
 0x20d   : > { %v1218_v5 = vpop.xlane.xlu1 %1217  ;;  %1404 = vadd.xlane.f32.xlu1 %v1403_v30 }
 0x20e   : > { %v2856_v19 = vsub.f32 %v2667_v56, %v1250_v63  ;;  %v1251_v28 = vmul.f32 0.03125, %v1218_v5 }
 0x210   : > { %v2859_v6 = vsub.f32 %v2671_v61, %v1251_v28  ;;  %v1314_v7 = vmul.f32 %v2856_v19, %v2856_v19 }
 0x212   : > { %v1406_v50 = vsel %vm1122_vm0, %v1314_v7, 0.0  ;;  %v1315_v13 = vmul.f32 %v2859_v6, %v2859_v6 }
 0x213   : > { %1407 = vadd.xlane.f32.xlu0 %v1406_v50 }
 0x214   : > { %v1409_v15 = vsel %vm1122_vm0, %v1315_v13, 0.0 }
 0x215   : > { %1410 = vadd.xlane.f32.xlu1 %v1409_v15 }
 0x228   : > { %v1318_v16 = vpop.xlane.xlu0 %1317 }
 0x229   : > { %v1412_v59 = vmul.f32 0.03125, %v1318_v16 }
 0x22b   : > { %v1444_v56 = vadd.f32 1e-05, %v1412_v59 }
 0x22c   : > { %v1321_v20 = vpop.xlane.xlu1 %1320 }
 0x22d   : > { %2125 = vrsqrt.f32 %v1444_v56  ;;  %v1413_v21 = vmul.f32 0.03125, %v1321_v20 }
 0x22f   : > { %v1445_v61 = vadd.f32 1e-05, %v1413_v21 }
 0x230   : > { %v1324_v53 = vpop.xlane.xlu0 %1323 }
 0x231   : > { %2127 = vrsqrt.f32 %v1445_v61  ;;  %v1414_v8 = vmul.f32 0.03125, %v1324_v53 }
 0x233   : > { %v1446_v32 = vadd.f32 1e-05, %v1414_v8 }
 0x234   : > { %v1327_v39 = vpop.xlane.xlu1 %1326 }
 0x235   : > { %2129 = vrsqrt.f32 %v1446_v32  ;;  %v1415_v4 = vmul.f32 0.03125, %v1327_v39 }
 0x237   : > { %v2126_v26 = vpop.eup %2125  ;;  %v1447_v38 = vadd.f32 1e-05, %v1415_v4 }
 0x238   : > { %v1508_v9 = vmul.f32 %v2126_v26, %v2676_v3  ;;  %v1330_v31 = vpop.xlane.xlu0 %1329 }
 0x239   : > { %2131 = vrsqrt.f32 %v1447_v38  ;;  %v1416_v1 = vmul.f32 0.03125, %v1330_v31 }
 0x23a   : > { %v1546_v45 = vmul.f32 %v2870_v37, %v1508_v9  ;;  %v1333_v58 = vpop.xlane.xlu1 %1332 }
 0x23b   : > { %v2128_v46 = vpop.eup %2127  ;;  %v1448_v3 = vadd.f32 1e-05, %v1416_v1  ;;  %v1417_v29 = vmul.f32 0.03125, %v1333_v58 }
 0x23c   : > { %v1584_v57 = vadd.f32 %v2876_v42, %v1546_v45  ;;  %v1509_v55 = vmul.f32 %v2128_v46, %v2681_v11 }
 0x23d   : > { %2133 = vrsqrt.f32 %v1448_v3  ;;  %v1449_v63 = vadd.f32 1e-05, %v1417_v29 }
 0x23e   : > { %1616 = vst.msk [vmem:[%s2884_s24] sm:$0xff] %vm1122_vm0, %v1584_v57  ;;  %v1547_v30 = vmul.f32 %v2870_v37, %v1509_v55 }
 0x23f   : > { %v2130_v5 = vpop.eup %2129  ;;  %2135 = vrsqrt.f32 %v1449_v63 }
 0x240   : > { %v1585_v28 = vadd.f32 %v2876_v42, %v1547_v30  ;;  %v1510_v7 = vmul.f32 %v2130_v5, %v2687_v17  ;;  %v1336_v50 = vpop.xlane.xlu0 %1335 }
 0x241   : > { %v1418_v13 = vmul.f32 0.03125, %v1336_v50 }
 0x242   : > { %1617 = vst.msk [vmem:[%s2884_s24 + $0x8] sm:$0xff] %vm1122_vm0, %v1585_v28  ;;  %v1548_v15 = vmul.f32 %v2870_v37, %v1510_v7  ;;  %v1339_v11 = vpop.xlane.xlu1 %1338 }
 0x243   : > { %v2132_v16 = vpop.eup %2131  ;;  %v1450_v59 = vadd.f32 1e-05, %v1418_v13  ;;  %v1419_v56 = vmul.f32 0.03125, %v1339_v11 }
 0x244   : > { %v1586_v20 = vadd.f32 %v2876_v42, %v1548_v15  ;;  %v1511_v21 = vmul.f32 %v2132_v16, %v2693_v23 }
 0x245   : > { %2137 = vrsqrt.f32 %v1450_v59  ;;  %v1451_v61 = vadd.f32 1e-05, %v1419_v56 }
 0x246   : > { %1618 = vst.msk [vmem:[%s2884_s24 + $0x10] sm:$0xff] %vm1122_vm0, %v1586_v20  ;;  %v1549_v17 = vmul.f32 %v2870_v37, %v1511_v21 }
 0x247   : > { %v2134_v53 = vpop.eup %2133  ;;  %2139 = vrsqrt.f32 %v1451_v61 }
 0x248   : > { %v1587_v8 = vadd.f32 %v2876_v42, %v1549_v17  ;;  %v1512_v32 = vmul.f32 %v2134_v53, %v2699_v36  ;;  %v1342_v39 = vpop.xlane.xlu0 %1341 }
 0x249   : > { %v2136_v4 = vpop.eup %2135  ;;  %v1420_v26 = vmul.f32 0.03125, %v1342_v39 }
 0x24a   : > { %1619 = vst.msk [vmem:[%s2884_s24 + $0x18] sm:$0xff] %vm1122_vm0, %v1587_v8  ;;  %v1550_v23 = vmul.f32 %v2870_v37, %v1512_v32  ;;  %v1513_v38 = vmul.f32 %v2136_v4, %v2703_v40  ;;  %v1345_v9 = vpop.xlane.xlu1 %1344 }
 0x24b   : > { %v1452_v31 = vadd.f32 1e-05, %v1420_v26  ;;  %v1421_v1 = vmul.f32 0.03125, %v1345_v9 }
 0x24c   : > { %v1588_v45 = vadd.f32 %v2876_v42, %v1550_v23  ;;  %v1551_v58 = vmul.f32 %v2870_v37, %v1513_v38 }
 0x24d   : > { %2141 = vrsqrt.f32 %v1452_v31  ;;  %v1453_v46 = vadd.f32 1e-05, %v1421_v1 }
 0x24e   : > { %1620 = vst.msk [vmem:[%s2884_s24 + $0x20] sm:$0xff] %vm1122_vm0, %v1588_v45  ;;  %v1589_v36 = vadd.f32 %v2876_v42, %v1551_v58 }
 0x24f   : > { %v2138_v3 = vpop.eup %2137  ;;  %2143 = vrsqrt.f32 %v1453_v46 }
 0x250   : > { %1621 = vst.msk [vmem:[%s2884_s24 + $0x28] sm:$0xff] %vm1122_vm0, %v1589_v36  ;;  %v1514_v40 = vmul.f32 %v2138_v3, %v2712_v51  ;;  %v1348_v29 = vpop.xlane.xlu0 %1347 }
 0x251   : > { %v2140_v57 = vpop.eup %2139  ;;  %v1422_v55 = vmul.f32 0.03125, %v1348_v29 }
 0x252   : > { %v1552_v63 = vmul.f32 %v2870_v37, %v1514_v40  ;;  %v1515_v30 = vmul.f32 %v2140_v57, %v2715_v54  ;;  %v1351_v5 = vpop.xlane.xlu1 %1350 }
 0x253   : > { %v1454_v28 = vadd.f32 1e-05, %v1422_v55  ;;  %v1423_v7 = vmul.f32 0.03125, %v1351_v5 }
 0x254   : > { %v1590_v50 = vadd.f32 %v2876_v42, %v1552_v63  ;;  %v1553_v13 = vmul.f32 %v2870_v37, %v1515_v30 }
 0x255   : > { %2145 = vrsqrt.f32 %v1454_v28  ;;  %v1455_v15 = vadd.f32 1e-05, %v1423_v7 }
 0x256   : > { %1622 = vst.msk [vmem:[%s2884_s24 + $0x30] sm:$0xff] %vm1122_vm0, %v1590_v50  ;;  %v1591_v51 = vadd.f32 %v2876_v42, %v1553_v13 }
 0x257   : > { %v2142_v11 = vpop.eup %2141  ;;  %2147 = vrsqrt.f32 %v1455_v15 }
 0x258   : > { %1623 = vst.msk [vmem:[%s2884_s24 + $0x38] sm:$0xff] %vm1122_vm0, %v1591_v51  ;;  %v1516_v54 = vmul.f32 %v2142_v11, %v2724_v44  ;;  %v1354_v16 = vpop.xlane.xlu0 %1353 }
 0x259   : > { %v2144_v59 = vpop.eup %2143  ;;  %v1424_v56 = vmul.f32 0.03125, %v1354_v16 }
 0x25a   : > { %v1554_v20 = vmul.f32 %v2870_v37, %v1516_v54  ;;  %v1517_v21 = vmul.f32 %v2144_v59, %v2727_v12  ;;  %v1357_v61 = vpop.xlane.xlu1 %1356 }
 0x25b   : > { %v1456_v17 = vadd.f32 1e-05, %v1424_v56  ;;  %v1425_v53 = vmul.f32 0.03125, %v1357_v61 }
 0x25c   : > { %v1592_v8 = vadd.f32 %v2876_v42, %v1554_v20  ;;  %v1555_v32 = vmul.f32 %v2870_v37, %v1517_v21 }
 0x25d   : > { %2149 = vrsqrt.f32 %v1456_v17  ;;  %v1457_v39 = vadd.f32 1e-05, %v1425_v53 }
 0x25e   : > { %1624 = vst.msk [vmem:[%s2884_s24 + $0x40] sm:$0xff] %vm1122_vm0, %v1592_v8  ;;  %v1593_v44 = vadd.f32 %v2876_v42, %v1555_v32 }
 0x25f   : > { %v2146_v4 = vpop.eup %2145  ;;  %2151 = vrsqrt.f32 %v1457_v39 }
 0x260   : > { %1625 = vst.msk [vmem:[%s2884_s24 + $0x48] sm:$0xff] %vm1122_vm0, %v1593_v44  ;;  %v1518_v12 = vmul.f32 %v2146_v4, %v2736_v2  ;;  %v1360_v26 = vpop.xlane.xlu0 %1359 }
 0x261   : > { %v2148_v23 = vpop.eup %2147  ;;  %v1426_v38 = vmul.f32 0.03125, %v1360_v26 }
 0x262   : > { %v1556_v9 = vmul.f32 %v2870_v37, %v1518_v12  ;;  %v1519_v31 = vmul.f32 %v2148_v23, %v2739_v27  ;;  %v1363_v1 = vpop.xlane.xlu1 %1362 }
 0x263   : > { %v1458_v45 = vadd.f32 1e-05, %v1426_v38  ;;  %v1427_v58 = vmul.f32 0.03125, %v1363_v1 }
 0x264   : > { %v1594_v46 = vadd.f32 %v2876_v42, %v1556_v9  ;;  %v1557_v36 = vmul.f32 %v2870_v37, %v1519_v31 }
 0x265   : > { %2153 = vrsqrt.f32 %v1458_v45  ;;  %v1459_v3 = vadd.f32 1e-05, %v1427_v58 }
 0x266   : > { %1626 = vst.msk [vmem:[%s2884_s24 + $0x50] sm:$0xff] %vm1122_vm0, %v1594_v46  ;;  %v1595_v2 = vadd.f32 %v2876_v42, %v1557_v36 }
 0x267   : > { %v2150_v40 = vpop.eup %2149  ;;  %2155 = vrsqrt.f32 %v1459_v3 }
 0x268   : > { %1627 = vst.msk [vmem:[%s2884_s24 + $0x58] sm:$0xff] %vm1122_vm0, %v1595_v2  ;;  %v1520_v27 = vmul.f32 %v2150_v40, %v2748_v25  ;;  %v1366_v29 = vpop.xlane.xlu0 %1365 }
 0x269   : > { %v2152_v57 = vpop.eup %2151  ;;  %v1428_v55 = vmul.f32 0.03125, %v1366_v29 }
 0x26a   : > { %v1558_v63 = vmul.f32 %v2870_v37, %v1520_v27  ;;  %v1521_v30 = vmul.f32 %v2152_v57, %v2751_v41  ;;  %v1369_v5 = vpop.xlane.xlu1 %1368 }
 0x26b   : > { %v1460_v28 = vadd.f32 1e-05, %v1428_v55  ;;  %v1429_v7 = vmul.f32 0.03125, %v1369_v5 }
 0x26c   : > { %v1596_v50 = vadd.f32 %v2876_v42, %v1558_v63  ;;  %v1559_v13 = vmul.f32 %v2870_v37, %v1521_v30 }
 0x26d   : > { %2157 = vrsqrt.f32 %v1460_v28  ;;  %v1461_v15 = vadd.f32 1e-05, %v1429_v7 }
 0x26e   : > { %1628 = vst.msk [vmem:[%s2884_s24 + $0x60] sm:$0xff] %vm1122_vm0, %v1596_v50  ;;  %v1597_v25 = vadd.f32 %v2876_v42, %v1559_v13 }
 0x26f   : > { %v2154_v51 = vpop.eup %2153  ;;  %2159 = vrsqrt.f32 %v1461_v15 }
 0x270   : > { %1629 = vst.msk [vmem:[%s2884_s24 + $0x68] sm:$0xff] %vm1122_vm0, %v1597_v25  ;;  %v1522_v41 = vmul.f32 %v2154_v51, %v2760_v47  ;;  %v1372_v11 = vpop.xlane.xlu0 %1371 }
 0x271   : > { %v2156_v54 = vpop.eup %2155  ;;  %v1430_v16 = vmul.f32 0.03125, %v1372_v11 }
 0x272   : > { %v1560_v59 = vmul.f32 %v2870_v37, %v1522_v41  ;;  %v1523_v56 = vmul.f32 %v2156_v54, %v2763_v62  ;;  %v1375_v20 = vpop.xlane.xlu1 %1374 }
 0x273   : > { %v1462_v21 = vadd.f32 1e-05, %v1430_v16  ;;  %v1431_v61 = vmul.f32 0.03125, %v1375_v20 }
 0x274   : > { %v1598_v17 = vadd.f32 %v2876_v42, %v1560_v59  ;;  %v1561_v53 = vmul.f32 %v2870_v37, %v1523_v56 }
 0x275   : > { %2161 = vrsqrt.f32 %v1462_v21  ;;  %v1463_v8 = vadd.f32 1e-05, %v1431_v61 }
 0x276   : > { %1630 = vst.msk [vmem:[%s2884_s24 + $0x70] sm:$0xff] %vm1122_vm0, %v1598_v17  ;;  %v1599_v47 = vadd.f32 %v2876_v42, %v1561_v53 }
 0x277   : > { %v2158_v32 = vpop.eup %2157  ;;  %2163 = vrsqrt.f32 %v1463_v8 }
 0x278   : > { %1631 = vst.msk [vmem:[%s2884_s24 + $0x78] sm:$0xff] %vm1122_vm0, %v1599_v47  ;;  %v1524_v62 = vmul.f32 %v2158_v32, %v2772_v10  ;;  %v1378_v39 = vpop.xlane.xlu0 %1377 }
 0x279   : > { %v2160_v44 = vpop.eup %2159  ;;  %v1432_v4 = vmul.f32 0.03125, %v1378_v39 }
 0x27a   : > { %v1562_v12 = vmul.f32 %v2870_v37, %v1524_v62  ;;  %v1525_v26 = vmul.f32 %v2160_v44, %v2775_v14  ;;  %v1381_v23 = vpop.xlane.xlu1 %1380 }
 0x27b   : > { %v1464_v38 = vadd.f32 1e-05, %v1432_v4  ;;  %v1433_v9 = vmul.f32 0.03125, %v1381_v23 }
 0x27c   : > { %v1600_v31 = vadd.f32 %v2876_v42, %v1562_v12  ;;  %v1563_v1 = vmul.f32 %v2870_v37, %v1525_v26 }
 0x27d   : > { %2165 = vrsqrt.f32 %v1464_v38  ;;  %v1465_v45 = vadd.f32 1e-05, %v1433_v9 }
 0x27e   : > { %1632 = vst.msk [vmem:[%s2884_s24 + $0x80] sm:$0xff] %vm1122_vm0, %v1600_v31  ;;  %v1601_v10 = vadd.f32 %v2876_v42, %v1563_v1 }
 0x27f   : > { %v2162_v58 = vpop.eup %2161  ;;  %2167 = vrsqrt.f32 %v1465_v45 }
 0x280   : > { %1633 = vst.msk [vmem:[%s2884_s24 + $0x88] sm:$0xff] %vm1122_vm0, %v1601_v10  ;;  %v1526_v14 = vmul.f32 %v2162_v58, %v2784_v34  ;;  %v1384_v46 = vpop.xlane.xlu0 %1383 }
 0x281   : > { %v2164_v36 = vpop.eup %2163  ;;  %v1434_v3 = vmul.f32 0.03125, %v1384_v46 }
 0x282   : > { %v1564_v2 = vmul.f32 %v2870_v37, %v1526_v14  ;;  %v1527_v40 = vmul.f32 %v2164_v36, %v2787_v33  ;;  %v1387_v27 = vpop.xlane.xlu1 %1386 }
 0x283   : > { %v1466_v29 = vadd.f32 1e-05, %v1434_v3  ;;  %v1435_v57 = vmul.f32 0.03125, %v1387_v27 }
 0x284   : > { %v1602_v55 = vadd.f32 %v2876_v42, %v1564_v2  ;;  %v1565_v63 = vmul.f32 %v2870_v37, %v1527_v40 }
 0x285   : > { %2169 = vrsqrt.f32 %v1466_v29  ;;  %v1467_v30 = vadd.f32 1e-05, %v1435_v57 }
 0x286   : > { %1634 = vst.msk [vmem:[%s2884_s24 + $0x90] sm:$0xff] %vm1122_vm0, %v1602_v55  ;;  %v1603_v34 = vadd.f32 %v2876_v42, %v1565_v63 }
 0x287   : > { %v2166_v5 = vpop.eup %2165  ;;  %2171 = vrsqrt.f32 %v1467_v30 }
 0x288   : > { %1635 = vst.msk [vmem:[%s2884_s24 + $0x98] sm:$0xff] %vm1122_vm0, %v1603_v34  ;;  %v1528_v33 = vmul.f32 %v2166_v5, %v2796_v60  ;;  %v1390_v28 = vpop.xlane.xlu0 %1389 }
 0x289   : > { %v2168_v7 = vpop.eup %2167  ;;  %v1436_v50 = vmul.f32 0.03125, %v1390_v28 }
 0x28a   : > { %v1566_v13 = vmul.f32 %v2870_v37, %v1528_v33  ;;  %v1529_v15 = vmul.f32 %v2168_v7, %v2799_v43  ;;  %v1393_v25 = vpop.xlane.xlu1 %1392 }
 0x28b   : > { %v1468_v51 = vadd.f32 1e-05, %v1436_v50  ;;  %v1437_v41 = vmul.f32 0.03125, %v1393_v25 }
 0x28c   : > { %v1604_v11 = vadd.f32 %v2876_v42, %v1566_v13  ;;  %v1567_v54 = vmul.f32 %v2870_v37, %v1529_v15 }
 0x28d   : > { %2173 = vrsqrt.f32 %v1468_v51  ;;  %v1469_v16 = vadd.f32 1e-05, %v1437_v41 }
 0x28e   : > { %1636 = vst.msk [vmem:[%s2884_s24 + $0xa0] sm:$0xff] %vm1122_vm0, %v1604_v11  ;;  %v1605_v60 = vadd.f32 %v2876_v42, %v1567_v54 }
 0x28f   : > { %v2170_v59 = vpop.eup %2169  ;;  %2175 = vrsqrt.f32 %v1469_v16 }
 0x290   : > { %1637 = vst.msk [vmem:[%s2884_s24 + $0xa8] sm:$0xff] %vm1122_vm0, %v1605_v60  ;;  %v1530_v43 = vmul.f32 %v2170_v59, %v2808_v22  ;;  %v1396_v56 = vpop.xlane.xlu0 %1395 }
 0x291   : > { %v2172_v20 = vpop.eup %2171  ;;  %v1438_v21 = vmul.f32 0.03125, %v1396_v56 }
 0x292   : > { %v1568_v61 = vmul.f32 %v2870_v37, %v1530_v43  ;;  %v1531_v17 = vmul.f32 %v2172_v20, %v2811_v0  ;;  %v1399_v53 = vpop.xlane.xlu1 %1398 }
 0x293   : > { %v1470_v8 = vadd.f32 1e-05, %v1438_v21  ;;  %v1439_v47 = vmul.f32 0.03125, %v1399_v53 }
 0x294   : > { %v1606_v32 = vadd.f32 %v2876_v42, %v1568_v61  ;;  %v1569_v62 = vmul.f32 %v2870_v37, %v1531_v17 }
 0x295   : > { %2177 = vrsqrt.f32 %v1470_v8  ;;  %v1471_v39 = vadd.f32 1e-05, %v1439_v47 }
 0x296   : > { %1638 = vst.msk [vmem:[%s2884_s24 + $0xb0] sm:$0xff] %vm1122_vm0, %v1606_v32  ;;  %v1607_v22 = vadd.f32 %v2876_v42, %v1569_v62 }
 0x297   : > { %v2174_v44 = vpop.eup %2173  ;;  %2179 = vrsqrt.f32 %v1471_v39 }
 0x298   : > { %1639 = vst.msk [vmem:[%s2884_s24 + $0xb8] sm:$0xff] %vm1122_vm0, %v1607_v22  ;;  %v1532_v0 = vmul.f32 %v2174_v44, %v2820_v52  ;;  %v1402_v4 = vpop.xlane.xlu0 %1401 }
 0x299   : > { %v2176_v12 = vpop.eup %2175  ;;  %v1440_v26 = vmul.f32 0.03125, %v1402_v4 }
 0x29a   : > { %v1570_v23 = vmul.f32 %v2870_v37, %v1532_v0  ;;  %v1533_v38 = vmul.f32 %v2176_v12, %v2823_v48  ;;  %v1405_v9 = vpop.xlane.xlu1 %1404 }
 0x29b   : > { %v1472_v31 = vadd.f32 1e-05, %v1440_v26  ;;  %v1441_v1 = vmul.f32 0.03125, %v1405_v9 }
 0x29c   : > { %v1608_v45 = vadd.f32 %v2876_v42, %v1570_v23  ;;  %v1571_v10 = vmul.f32 %v2870_v37, %v1533_v38 }
 0x29d   : > { %2181 = vrsqrt.f32 %v1472_v31  ;;  %v1473_v58 = vadd.f32 1e-05, %v1441_v1 }
 0x29e   : > { %1640 = vst.msk [vmem:[%s2884_s24 + $0xc0] sm:$0xff] %vm1122_vm0, %v1608_v45  ;;  %v1609_v52 = vadd.f32 %v2876_v42, %v1571_v10 }
 0x29f   : > { %v2178_v14 = vpop.eup %2177  ;;  %2183 = vrsqrt.f32 %v1473_v58 }
 0x2a0   : > { %1641 = vst.msk [vmem:[%s2884_s24 + $0xc8] sm:$0xff] %vm1122_vm0, %v1609_v52  ;;  %v1534_v48 = vmul.f32 %v2178_v14, %v2832_v18  ;;  %v1408_v46 = vpop.xlane.xlu0 %1407 }
 0x2a1   : > { %v2180_v36 = vpop.eup %2179  ;;  %v1442_v3 = vmul.f32 0.03125, %v1408_v46 }
 0x2a2   : > { %v1572_v2 = vmul.f32 %v2870_v37, %v1534_v48  ;;  %v1535_v40 = vmul.f32 %v2180_v36, %v2835_v35  ;;  %v1411_v27 = vpop.xlane.xlu1 %1410 }
 0x2a3   : > { %v1474_v29 = vadd.f32 1e-05, %v1442_v3  ;;  %v1443_v57 = vmul.f32 0.03125, %v1411_v27 }
 0x2a4   : > { %v1610_v55 = vadd.f32 %v2876_v42, %v1572_v2  ;;  %v1573_v63 = vmul.f32 %v2870_v37, %v1535_v40 }
 0x2a5   : > { %2185 = vrsqrt.f32 %v1474_v29  ;;  %v1475_v30 = vadd.f32 1e-05, %v1443_v57 }
 0x2a6   : > { %1642 = vst.msk [vmem:[%s2884_s24 + $0xd0] sm:$0xff] %vm1122_vm0, %v1610_v55  ;;  %v1611_v18 = vadd.f32 %v2876_v42, %v1573_v63 }
 0x2a7   : > { %v2182_v34 = vpop.eup %2181  ;;  %2187 = vrsqrt.f32 %v1475_v30 }
 0x2a8   : > { %1643 = vst.msk [vmem:[%s2884_s24 + $0xd8] sm:$0xff] %vm1122_vm0, %v1611_v18  ;;  %v1536_v35 = vmul.f32 %v2182_v34, %v2844_v49 }
 0x2a9   : > { %v2184_v5 = vpop.eup %2183 }
 0x2aa   : > { %v1574_v33 = vmul.f32 %v2870_v37, %v1536_v35  ;;  %v1537_v28 = vmul.f32 %v2184_v5, %v2847_v24 }
 0x2ac   : > { %v1612_v7 = vadd.f32 %v2876_v42, %v1574_v33  ;;  %v1575_v50 = vmul.f32 %v2870_v37, %v1537_v28 }
 0x2ae   : > { %1644 = vst.msk [vmem:[%s2884_s24 + $0xe0] sm:$0xff] %vm1122_vm0, %v1612_v7  ;;  %v1613_v13 = vadd.f32 %v2876_v42, %v1575_v50 }
 0x2af   : > { %v2186_v15 = vpop.eup %2185 }
 0x2b0   : > { %1645 = vst.msk [vmem:[%s2884_s24 + $0xe8] sm:$0xff] %vm1122_vm0, %v1613_v13  ;;  %v1538_v49 = vmul.f32 %v2186_v15, %v2856_v19 }
 0x2b1   : > { %v2188_v25 = vpop.eup %2187 }
 0x2b2   : > { %v1576_v51 = vmul.f32 %v2870_v37, %v1538_v49  ;;  %v1539_v41 = vmul.f32 %v2188_v25, %v2859_v6 }
 0x2b4   : > { %v1614_v24 = vadd.f32 %v2876_v42, %v1576_v51  ;;  %v1577_v11 = vmul.f32 %v2870_v37, %v1539_v41 }
 0x2b6   : > { %1646 = vst.msk [vmem:[%s2884_s24 + $0xf0] sm:$0xff] %vm1122_vm0, %v1614_v24  ;;  %v1615_v54 = vadd.f32 %v2876_v42, %v1577_v11 }
 0x2b8   : > { %1647 = vst.msk [vmem:[%s2884_s24 + $0xf8] sm:$0xff] %vm1122_vm0, %v1615_v54 }
 0x2b9 PF: > { %s15_s18 = sadd.s32 1, %s2195_s18  }
 0x2ba   : > { %p12_p4 = scmp.ge.s32.totalorder %s15_s18, 4  }
 0x2bc   :  { %14 = sbr.rel (!%p12_p4) target bundleno = 1 (0x1), region = 73 }

// kernel: lightgcn_lc_forward.8
= control target key start
LH: loop header
LB: loop body
LE: loop exit
PB: predicated region body
PF: predicated region fallthrough
CT: control target
= control target key end

     0   :  { %v364_v0 = vmov 0.0   ;;  %vm51_vm0 = vcmask 261120   ;;  %vm365_vm1 = vmmov 0   ;;  %vm258_vm3 = vcmask 1043456   ;;  %s491_s1 = inlined_call_operand.vmem [shape: f32[32,32], index: 1, kind: input, shape index: {}]   ;;  %s492_s8 = inlined_call_operand.vmem [shape: f32[1,32], index: 8, kind: input, shape index: {}]   ;;  %s493_s9 = inlined_call_operand.vmem [shape: f32[1,32], index: 9, kind: input, shape index: {}]   ;;  %s494_s6 = inlined_call_operand.vmem [shape: f32[32,32], index: 6, kind: input, shape index: {}]   ;;  %s495_s0 = inlined_call_operand.vmem [shape: f32[16,32], index: 0, kind: input, shape index: {}]   ;;  %s496_s5 = inlined_call_operand.vmem [shape: f32[8,32], index: 5, kind: input, shape index: {}]   ;;  %s497_s3 = inlined_call_operand.vmem [shape: f32[8,32], index: 3, kind: input, shape index: {}]   ;;  %s498_s2 = inlined_call_operand.vmem [shape: f32[1,32], index: 2, kind: input, shape index: {}]   ;;  %s499_s7 = inlined_call_operand.vmem [shape: f32[1,32], index: 7, kind: input, shape index: {}]   ;;  %s500_s4 = inlined_call_operand.vmem [shape: f32[1,8], index: 4, kind: input, shape index: {}]   ;;  %s501_s10 = inlined_call_operand.vmem [shape: f32[16,32], index: 10, kind: output, shape index: {}]  }
   0x1   :  { %334 = vmatprep.subr.bf16.mxu1 %v364_v0  ;;  %v103_v1 = vld [vmem:[%s491_s1] sm:$0xff]  ;;  %v104_v2 = vld [vmem:[%s491_s1 + $0x8] sm:$0xff]  ;;  %338 = vmatprep.mubr.msk.bf16.mxu1 %vm365_vm1, %v364_v0  ;;  %v105_v4 = vld [vmem:[%s491_s1 + $0x10] sm:$0xff]  ;;  %vm230_vm5 = vcmask 64512  }
   0x2   :  { %v108_v3 = vpack.c.bf16 %v104_v2, %v103_v1  ;;  %326 = vmatprep.subr.bf16.mxu0 %v364_v0  ;;  %330 = vmatprep.mubr.msk.bf16.mxu0 %vm365_vm1, %v364_v0  ;;  %v106_v5 = vld [vmem:[%s491_s1 + $0x18] sm:$0xff]  ;;  %v37_v6 = vld [vmem:[%s494_s6] sm:$0xff]  ;;  %v38_v7 = vld [vmem:[%s494_s6 + $0x8] sm:$0xff] }
   0x3   :  { %v42_v9 = vpack.c.bf16 %v38_v7, %v37_v6  ;;  %v39_v10 = vld [vmem:[%s494_s6 + $0x10] sm:$0xff]  ;;  %v40_v11 = vld [vmem:[%s494_s6 + $0x18] sm:$0xff]  ;;  %v109_v12 = vpack.c.bf16 %v106_v5, %v105_v4  ;;  %v101_v17 = vld [vmem:[%s495_s0] sm:$0xff] }
   0x4   :  { %v121_v8 = vsel %vm51_vm0, %v108_v3, 0  ;;  %v43_v14 = vpack.c.bf16 %v40_v11, %v39_v10  ;;  %v102_v18 = vld [vmem:[%s495_s0 + $0x8] sm:$0xff]  ;;  %v36_v19 = vld [vmem:[%s496_s5] sm:$0xff] }
   0x5   :  { %335 = vmatpush3.bf16.xpose.msra.mxu1 %v121_v8  ;;  %v56_v13 = vsel %vm51_vm0, %v42_v9, 0  ;;  %v124_v15 = vsel %vm51_vm0, %v109_v12, 0  ;;  %v107_v20 = vpack.c.bf16 %v102_v18, %v101_v17  ;;  %v41_v21 = vpack.c.bf16 %v36_v19, %v36_v19  ;;  %v173_v22 = vld [vmem:[%s497_s3] sm:$0xff] }
   0x6   :  { %336 = vmatprep.subr.bf16.mxu1 %v364_v0  ;;  %327 = vmatpush3.bf16.xpose.msra.mxu0 %v56_v13  ;;  %v59_v16 = vsel %vm51_vm0, %v43_v14, 0  ;;  %v175_v23 = vpack.c.bf16 %v173_v22, %v173_v22  ;;  %v311_v25 = vld [vmem:[%s498_s2] ss:$0 sm:$0xff] }
   0x7   :  { %328 = vmatprep.subr.bf16.mxu0 %v364_v0  ;;  %v309_v27 = vld [vmem:[%s499_s7] ss:$0 sm:$0xff] }
   0x8   :  { %v187_v24 = vsel %vm51_vm0, %v175_v23, 0  ;;  %v313_v45 = vld [vmem:[%s500_s4] ss:$0 sm:$0xff] }
   0xd   :  { %337 = vmatpush3.bf16.xpose.msra.mxu1 %v124_v15 }
   0xe   :  { %348 = vmatprep.subr.bf16.mxu1 %v364_v0  ;;  %329 = vmatpush3.bf16.xpose.msra.mxu0 %v59_v16 }
   0xf   :  { %342 = vmatprep.subr.bf16.mxu0 %v364_v0 }
  0x14   :  { %339 = vmatmul.mubr.msk.bf16.vlgmr.msra.gmra.mrb[0].mxu1 %vm51_vm0, %v107_v20 }
  0x15   :  { %350 = vmatprep.mubr.msk.bf16.mxu1 %vm365_vm1, %v364_v0  ;;  %331 = vmatmul.mubr.msk.bf16.vlgmr.msra.gmra.mrb[0].mxu0 %vm51_vm0, %v41_v21 }
  0x16   :  { %344 = vmatprep.mubr.msk.bf16.mxu0 %vm365_vm1, %v364_v0  ;;  %343 = vmatpush3.bf16.xpose.msra.mxu0 %v187_v24 }
  0xe7   :  { %v160_v26 = vpop.f32.mrb[0].mxu1 }
  0xe8   :  { %v161_v28 = vadd.f32 %v311_v25, %v160_v26  ;;  %v340_v29 = vpop.f32.mrb[1].mxu1  ;;  %v95_v31 = vpop.f32.mrb[0].mxu0 }
  0xe9   :  { %v163_v30 = vpop.f32.mrb[2].mxu1  ;;  %v96_v35 = vadd.f32 %v309_v27, %v95_v31  ;;  %v332_v36 = vpop.f32.mrb[1].mxu0 }
  0xea   :  { %v169_v32 = vmul.f32 0.01, %v161_v28  ;;  %v164_v33 = vadd.f32 %v311_v25, %v163_v30  ;;  %v341_v34 = vpop.f32.mrb[3].mxu1  ;;  %vm167_vm2 = vcmp.ge.f32.partialorder %v161_v28, 0.0  ;;  %v98_v37 = vpop.f32.mrb[2].mxu0 }
  0xeb   :  { %v254_v39 = vpack.c.bf16 %v96_v35, %v96_v35  ;;  %v333_v40 = vpop.f32.mrb[3].mxu0 }
  0xec   :  { %vm168_vm4 = vcmp.ge.f32.partialorder %v164_v33, 0.0  ;;  %v170_v38 = vmul.f32 0.01, %v164_v33  ;;  %v171_v41 = vsel %vm167_vm2, %v161_v28, %v169_v32 }
  0xed   :  { %v260_v43 = vsel %vm258_vm3, %v254_v39, 0 }
  0xee   :  { %v172_v42 = vsel %vm168_vm4, %v164_v33, %v170_v38  ;;  %349 = vmatpush3.bf16.msra.mxu1 %v260_v43 }
  0xef   :  { %v174_v44 = vpack.c.bf16 %v172_v42, %v171_v41 }
  0xf1   :  { %345 = vmatmul.mubr.msk.bf16.vlgmr.msra.gmra.mrb[4].mxu0 %vm51_vm0, %v174_v44 }
 0x1c4   :  { %v223_v46 = vpop.f32.mrb[4].mxu0 }
 0x1c5   :  { %v224_v47 = vadd.f32 %v313_v45, %v223_v46  ;;  %v346_v48 = vpop.f32.mrb[5].mxu0 }
 0x1c6   :  { %v226_v49 = vpop.f32.mrb[6].mxu0 }
 0x1c7   :  { %v227_v50 = vadd.f32 %v313_v45, %v226_v49  ;;  %v347_v51 = vpop.f32.mrb[7].mxu0  ;;  %v231_v52 = vsel %vm230_vm5, %v224_v47, -inf }
 0x1c8   :  { %232 = vmax.xlane.f32.xlu0 %v231_v52 }
 0x1c9   :  { %v234_v53 = vsel %vm230_vm5, %v227_v50, -inf }
 0x1cc   :  { %235 = vmax.xlane.f32.xlu0 %v234_v53 }
 0x255   :  { %v233_v54 = vpop.xlane.xlu0 %232 }
 0x256   :  { %v237_v55 = vsub.f32 %v224_v47, %v233_v54 }
 0x258   :  { %v239_v56 = vmul.f32 1.442695, %v237_v55 }
 0x259   :  { %v236_v57 = vpop.xlane.xlu0 %235 }
 0x25a   :  { %356 = vpow2.f32 %v239_v56  ;;  %v238_v58 = vsub.f32 %v227_v50, %v236_v57 }
 0x25c   :  { %v241_v59 = vmul.f32 1.442695, %v238_v58 }
 0x25e   :  { %358 = vpow2.f32 %v241_v59 }
 0x264   :  { %v357_v60 = vpop.eup %356 }
 0x265   :  { %v243_v61 = vsel %vm230_vm5, %v357_v60, 0.0 }
 0x266   :  { %244 = vadd.xlane.f32.xlu1 %v243_v61 }
 0x268   :  { %v359_v62 = vpop.eup %358 }
 0x269   :  { %v246_v63 = vsel %vm230_vm5, %v359_v62, 0.0 }
 0x26a   :  { %247 = vadd.xlane.f32.xlu1 %v246_v63 }
 0x2f3   :  { %v245_v0 = vpop.xlane.xlu1 %244 }
 0x2f4   :  { %360 = vrcp.f32 %v245_v0 }
 0x2f7   :  { %v248_v1 = vpop.xlane.xlu1 %247 }
 0x2f8   :  { %362 = vrcp.f32 %v248_v1 }
 0x2fe   :  { %v361_v2 = vpop.eup %360 }
 0x2ff   :  { %v250_v4 = vmul.f32 %v361_v2, %v357_v60 }
 0x302   :  { %v363_v3 = vpop.eup %362 }
 0x303   :  { %v252_v5 = vmul.f32 %v363_v3, %v359_v62 }
 0x305   :  { %v253_v6 = vpack.c.bf16 %v252_v5, %v250_v4 }
 0x307   :  { %351 = vmatmul.mubr.msk.bf16.vlgmr.msra.gmra.mrb[4].mxu1 %vm230_vm5, %v253_v6 }
 0x3da   :  { %v296_v7 = vpop.f32.mrb[4].mxu1 }
 0x3db   :  { %303 = vst.msk [vmem:[%s501_s10] sm:$0xff] %vm51_vm0, %v296_v7  ;;  %v352_v8 = vpop.f32.mrb[5].mxu1 }
 0x3dc   :  { %v299_v9 = vpop.f32.mrb[6].mxu1 }
 0x3dd   :  { %304 = vst.msk [vmem:[%s501_s10 + $0x8] sm:$0xff] %vm51_vm0, %v299_v9  ;;  %v353_v10 = vpop.f32.mrb[7].mxu1 }

// kernel: lightgcn_lc_forward.11
= control target key start
LH: loop header
LB: loop body
LE: loop exit
PB: predicated region body
PF: predicated region fallthrough
CT: control target
= control target key end

     0   :  { %s1638_s0 = inlined_call_operand.vmem [shape: f32[2,32], index: 0, kind: input, shape index: {}]   ;;  %s1639_s1 = inlined_call_operand.vmem [shape: f32[2,32], index: 1, kind: input, shape index: {}]   ;;  %s1640_s2 = inlined_call_operand.vmem [shape: bf16[512,32], index: 2, kind: input, shape index: {}]   ;;  %s1641_s3 = inlined_call_operand.vmem [shape: bf16[512,32], index: 3, kind: input, shape index: {}]   ;;  %s1642_s4 = inlined_call_operand.vmem [shape: f32[1,2], index: 4, kind: input, shape index: {}]   ;;  %s1643_s5 = inlined_call_operand.hbm [shape: f32[2,512], index: 5, kind: output, shape index: {0}]   ;;  %s1644_s6 = inlined_call_operand.hbm [shape: f32[2,512], index: 6, kind: output, shape index: {1}]   ;;  %s1645_s7 = inlined_call_operand.hbm [shape: f32[2,512], index: 7, kind: output, shape index: {2}]  }
   0x1   :  { %1648 = sst [smem:[#allocation9_spill]] %s1638_s0 }
   0x2   :  { %1649 = sst [smem:[#allocation10_spill]] %s1639_s1 }
   0x3   :  { %13 = vsyncpa [#allocation3], 0 }
   0x4   :  { %15 = vsyncpa [#allocation3 + $0x1], 0 }
   0x5   :  { %16 = vsyncpa [#allocation5], 0 }
   0x6   :  { %18 = vsyncpa [#allocation5 + $0x1], 0  ;;  %s1356_s24 = smov 0   ;;  %s1358_s25 = smov 0  }
   0x7   :  { %s1360_s26 = smov 0   ;;  %s1362_s27 = smov 0  }
   0x8 LB: > { %s1377_s28 = sadd.s32 4294967295, %s1309_s27   ;;  %s1646_s29 = sadd.s32 4294967294, %s1309_s27   ;;  %s1309_s27 = sphi %s1362_s27, %s1659_s27   ;;  %s1305_s26 = sphi %s1360_s26, %s1658_s26   ;;  %s1301_s25 = sphi %s1358_s25, %s1657_s25   ;;  %s1297_s24 = sphi %s1356_s24, %s1656_s24  }
   0x9   : > { %s1381_s30 = sadd.s32 1, %s1309_s27   ;;  %s146_s8 = sadd.s32 1, %s1305_s26 }
   0xa   : > { %s143_s9 = ssub.s32 %s1309_s27, %s1381_s30  ;;  %p156_p0 = scmp.ne.s32.totalorder %s1305_s26, %s1301_s25 }
   0xb   : > { %p144_p1 = scmp.eq.s32.totalorder %s143_s9, 0  ;;  %p157_p2 = scmp.eq.s32.totalorder %s1377_s28, 1 }
   0xc   : > { %p162_p3 = scmp.ne.s32.totalorder %s1301_s25, %s1297_s24  ;;  %p163_p4 = scmp.eq.s32.totalorder %s1646_s29, 1 }
   0xd   : > { %s1394_s10 = scalar_select %p144_p1, %s1305_s26, %s146_s8  }
   0xe   : > { %p1396_p5 = por %p157_p2, %p156_p0  ;;  %p1400_p6 = por %p163_p4, %p162_p3 }
   0xf   : > { %p986_p7 = scmp.ge.s32.totalorder %s1309_s27, 1  ;;  %p260_p8 = scmp.lt.s32.totalorder %s1309_s27, 3 }
  0x11   : > { %p261_p9 = pnand %p986_p7, %p260_p8 }
  0x12   : > { %s990_s13 = sshll.u32 (!%p261_p9), %s1377_s28, 5  ;;  %s1652_s0 = sld [smem:[#allocation9_spill]] (!%p261_p9)  ;;  %v736_v4 = vld [vmem:[%s1642_s4] sm:$0x1] (!%p261_p9)  ;;  %vm437_vm0 = vcmask (!%p261_p9), 261120   ;;  %v1311_v5 = vmov (!%p261_p9), 0   ;;  %v744_v19 = vlaneseq (!%p261_p9) }
  0x13   : > { %264 = sbr.rel (%p261_p9) target bundleno = 372 (0x174), region = 40  ;;  %s1653_s1 = sld [smem:[#allocation10_spill]] (!%p261_p9)  ;;  %1149 = vset.pattern.permute.xlu0 (!%p261_p9), %v1311_v5  ;;  %v1028_v6 = vmul.f32 (!%p261_p9), -1.442695, %v736_v4  ;;  %v1312_v40 = vmov (!%p261_p9), 1  }
  0x14   : > { %p308_p10 = scmp.lt.s32.totalorder (!%p261_p9), %s990_s13, 63  ;;  %v745_v24 = vshrl.u32 (!%p261_p9), %v744_v19, 7  ;;  %s803_s16 = sand.u32 (!%p261_p9), 1, %s1377_s28  }
  0x15   : > { %1183 = vpow2.f32 (!%p261_p9), %v1028_v6  ;;  %s1509_s17 = sshll.u32 (!%p261_p9), %s1377_s28, 6  ;;  %s1313_s9 = smov (!%p261_p9), [#allocation4]  }
  0x16   : > { %v746_v27 = vsub.s32 (!%p261_p9), 0, %v745_v24  ;;  %s1517_s8 = scalar_lea.hbm (!%p261_p9), %s1644_s6, %s1509_s17  ;;  %s1525_s29 = scalar_lea.hbm (!%p261_p9), %s1645_s7, %s1509_s17 }
  0x18   : > { %v323_v0 = vld [vmem:[%s1652_s0] sm:$0x3] (!%p261_p9) }
  0x19   : > { %v530_v1 = vld [vmem:[%s1653_s1] sm:$0x3] (!%p261_p9)  ;;  %v1413_v2 = vpack.c.bf16 (!%p261_p9), %v323_v0, %v323_v0 }
  0x1a   : > { %v1415_v3 = vpack.c.bf16 %v530_v1, %v530_v1  ;;  %s1661_s13 = smov (!%p308_p10, %s990_s13), 63 }
  0x1b   : > { %1062 = vmatprep.mubr.msk.bf16.mxu0 %vm437_vm0, %v1413_v2  ;;  %s991_s20 = sshll.u32 %s1661_s13, 2  ;;  %s1647_s13 = sand.u32 1, %s1301_s25  }
  0x1c   : > { %1080 = vmatprep.mubr.msk.bf16.mxu1 %vm437_vm0, %v1415_v3  ;;  %s1427_s23 = scalar_lea.vmem %s1640_s2, %s991_s20  ;;  %s1432_s14 = scalar_lea.vmem %s1641_s3, %s991_s20 }
  0x1d   : > { %v1151_v7 = vld [vmem:[%s1427_s23 + $0x40] sm:$0xff]   ;;  %v1155_v12 = vld [vmem:[%s1427_s23 + $0x48] sm:$0xff]   ;;  %v1159_v20 = vld [vmem:[%s1427_s23 + $0x50] sm:$0xff]   ;;  %s1505_s15 = sshll.u32 %s1647_s13, 2  ;;  %s1538_s13 = scalar_lea.sflag [#allocation5], %s803_s16 }
  0x1e   : > { %v1152_v8 = vld [vmem:[%s1432_s14 + $0x40] sm:$0xff]   ;;  %1082 = vmatprep.subr.msk.bf16.mxu0 %vm437_vm0, %v1151_v7  ;;  %v1156_v14 = vld [vmem:[%s1432_s14 + $0x48] sm:$0xff]   ;;  %v1160_v23 = vld [vmem:[%s1432_s14 + $0x50] sm:$0xff]   ;;  %s299_s18 = scalar_lea.vmem [#allocation4], %s1505_s15  ;;  %s306_s20 = scalar_lea.vmem [#allocation6], %s1505_s15 }
  0x1f   : > { %v1153_v9 = vld [vmem:[%s1427_s23] sm:$0xff]   ;;  %1090 = vmatprep.subr.msk.bf16.mxu1 %vm437_vm0, %v1152_v8  ;;  %v1157_v15 = vld [vmem:[%s1427_s23 + $0x8] sm:$0xff]   ;;  %v1184_v16 = vpop.eup %1183  ;;  %v1161_v25 = vld [vmem:[%s1427_s23 + $0x10] sm:$0xff]   ;;  %s837_s19 = sshll.u32 %s299_s18, 4  ;;  %s851_s21 = sshll.u32 %s306_s20, 4  ;;  %s1519_s19 = int_to_ptr.vmem [resolvable:$true] %s837_s19  ;;  %s1527_s21 = int_to_ptr.vmem [resolvable:$true] %s851_s21 }
  0x20   : > { %v1154_v10 = vld [vmem:[%s1432_s14] sm:$0xff]   ;;  %v442_v11 = vsel %vm437_vm0, %v1153_v9, 0  ;;  %v1158_v17 = vld [vmem:[%s1432_s14 + $0x8] sm:$0xff]   ;;  %v445_v18 = vsel %vm437_vm0, %v1157_v15, 0  ;;  %v740_v21 = vadd.f32 1.0, %v1184_v16  ;;  %v1162_v26 = vld [vmem:[%s1432_s14 + $0x10] sm:$0xff]  }
  0x21   : > { %1047 = vmatpush3.bf16.xpose.msra.mxu0 %v442_v11  ;;  %v648_v13 = vsel %vm437_vm0, %v1154_v10, 0  ;;  %v651_v22 = vsel %vm437_vm0, %v1158_v17, 0  ;;  %v448_v28 = vsel %vm437_vm0, %v1161_v25, 0  ;;  %v1163_v29 = vld [vmem:[%s1427_s23 + $0x58] sm:$0xff]   ;;  %v654_v30 = vsel %vm437_vm0, %v1162_v26, 0  ;;  %v1167_v37 = vld [vmem:[%s1427_s23 + $0x60] sm:$0xff]  }
  0x22   : > { %1065 = vmatpush3.bf16.xpose.msra.mxu1 %v648_v13  ;;  %1083 = vmatprep.subr.msk.bf16.mxu0 %vm437_vm0, %v1155_v12  ;;  %1185 = vrcp.f32 %v740_v21  ;;  %v1164_v31 = vld [vmem:[%s1432_s14 + $0x58] sm:$0xff]   ;;  %v1168_v39 = vld [vmem:[%s1432_s14 + $0x60] sm:$0xff]   ;;  %v1171_v44 = vld [vmem:[%s1427_s23 + $0x68] sm:$0xff]   ;;  %s292_s22 = scalar_lea.vmem [#allocation2], %s1505_s15  ;;  %s1187_s0 = scalar_lea.vmem %s1519_s19, 64 }
  0x23   : > { %1091 = vmatprep.subr.msk.bf16.mxu1 %vm437_vm0, %v1156_v14  ;;  %v1165_v33 = vld [vmem:[%s1427_s23 + $0x18] sm:$0xff]   ;;  %v1169_v41 = vld [vmem:[%s1427_s23 + $0x20] sm:$0xff]   ;;  %v1172_v46 = vld [vmem:[%s1432_s14 + $0x68] sm:$0xff]   ;;  %p1188_p11 = scmp.ne.s32.totalorder %s1519_s19, %s1187_s0 }
  0x24   : > { %v1166_v34 = vld [vmem:[%s1432_s14 + $0x18] sm:$0xff]   ;;  %v451_v36 = vsel %vm437_vm0, %v1165_v33, 0  ;;  %v1170_v42 = vld [vmem:[%s1432_s14 + $0x20] sm:$0xff]   ;;  %v454_v43 = vsel %vm437_vm0, %v1169_v41, 0  ;;  %v1173_v47 = vld [vmem:[%s1427_s23 + $0x28] sm:$0xff]  }
  0x25   : > { %v657_v38 = vsel %vm437_vm0, %v1166_v34, 0  ;;  %v660_v45 = vsel %vm437_vm0, %v1170_v42, 0  ;;  %v1174_v48 = vld [vmem:[%s1432_s14 + $0x28] sm:$0xff]   ;;  %v457_v49 = vsel %vm437_vm0, %v1173_v47, 0  ;;  %v1175_v50 = vld [vmem:[%s1427_s23 + $0x70] sm:$0xff]   ;;  %v1179_v56 = vld [vmem:[%s1427_s23 + $0x78] sm:$0xff]   ;;  %p1189_p12 = pnand %p1188_p11, %p1396_p5 }
  0x26   : > { %v663_v51 = vsel %vm437_vm0, %v1174_v48, 0  ;;  %v1176_v52 = vld [vmem:[%s1432_s14 + $0x70] sm:$0xff]   ;;  %v1180_v58 = vld [vmem:[%s1432_s14 + $0x78] sm:$0xff]  }
  0x27   : > { %v1177_v53 = vld [vmem:[%s1427_s23 + $0x30] sm:$0xff]   ;;  %v1181_v59 = vld [vmem:[%s1427_s23 + $0x38] sm:$0xff]   ;;  %s1534_s23 = sshll.u32 %s292_s22, 4  ;;  %p1190_p13 = pneg %p1189_p12  ;;  %s1592_s23 = int_to_ptr.vmem [resolvable:$true] %s1534_s23 }
  0x28   : > { %v1178_v54 = vld [vmem:[%s1432_s14 + $0x30] sm:$0xff]   ;;  %v460_v55 = vsel %vm437_vm0, %v1177_v53, 0  ;;  %v1182_v60 = vld [vmem:[%s1432_s14 + $0x38] sm:$0xff]   ;;  %v463_v61 = vsel %vm437_vm0, %v1181_v59, 0  ;;  %s1191_s14 = sshll.u32 %s1313_s9, 4  ;;  %s1192_s14 = int_to_ptr.vmem [resolvable:$false] %s1191_s14 }
  0x29   : > { %1049 = vmatpush3.bf16.xpose.msra.mxu0 %v445_v18  ;;  %v666_v57 = vsel %vm437_vm0, %v1178_v54, 0  ;;  %v669_v62 = vsel %vm437_vm0, %v1182_v60, 0  ;;  %s1193_s1 = scalar_lea.vmem %s1192_s14, 128  ;;  %p1194_p0 = scmp.lt.s32.totalorder %s1519_s19, %s1192_s14 }
  0x2a   : > { %1067 = vmatpush3.bf16.xpose.msra.mxu1 %v651_v22  ;;  %1084 = vmatprep.subr.msk.bf16.mxu0 %vm437_vm0, %v1159_v20  ;;  %p1195_p1 = scmp.lt.s32.totalorder %s1193_s1, %s1187_s0 }
  0x2b   : > { %1092 = vmatprep.subr.msk.bf16.mxu1 %vm437_vm0, %v1160_v23 }
  0x2c   : > { %v1186_v32 = vpop.eup %1185  ;;  %p1196_p2 = por %p1195_p1, %p1194_p0 }
  0x2d   : > { %v747_v35 = vrot.slane %v1186_v32, %v746_v27 }
  0x2e   : > { %p1197_p3 = pnand %p1196_p2, %p1190_p13 }
  0x2f   : > { %749 = vperm.xlu0 %1149, %v747_v35  }
  0x31   : > { %1051 = vmatpush3.bf16.xpose.msra.mxu0 %v448_v28 }
  0x32   : > { %1069 = vmatpush3.bf16.xpose.msra.mxu1 %v654_v30  ;;  %1085 = vmatprep.subr.msk.bf16.mxu0 %vm437_vm0, %v1163_v29 }
  0x33   : > { %1093 = vmatprep.subr.msk.bf16.mxu1 %vm437_vm0, %v1164_v31  ;;  %1150 = vset.pattern.permute.xlu0 %v1312_v40 }
  0x34   : > { %755 = vperm.xlu0 %1150, %v747_v35  }
  0x39   : > { %1053 = vmatpush3.bf16.xpose.msra.mxu0 %v451_v36 }
  0x3a   : > { %1071 = vmatpush3.bf16.xpose.msra.mxu1 %v657_v38  ;;  %1086 = vmatprep.subr.msk.bf16.mxu0 %vm437_vm0, %v1167_v37 }
  0x3b   : > { %1094 = vmatprep.subr.msk.bf16.mxu1 %vm437_vm0, %v1168_v39 }
  0x41   : > { %1055 = vmatpush3.bf16.xpose.msra.mxu0 %v454_v43 }
  0x42   : > { %1073 = vmatpush3.bf16.xpose.msra.mxu1 %v660_v45  ;;  %1087 = vmatprep.subr.msk.bf16.mxu0 %vm437_vm0, %v1171_v44 }
  0x43   : > { %1095 = vmatprep.subr.msk.bf16.mxu1 %vm437_vm0, %v1172_v46 }
  0x49   : > { %1057 = vmatpush3.bf16.xpose.msra.mxu0 %v457_v49 }
  0x4a   : > { %1075 = vmatpush3.bf16.xpose.msra.mxu1 %v663_v51  ;;  %1088 = vmatprep.subr.msk.bf16.mxu0 %vm437_vm0, %v1175_v50 }
  0x4b   : > { %1096 = vmatprep.subr.msk.bf16.mxu1 %vm437_vm0, %v1176_v52 }
  0x51   : > { %1059 = vmatpush3.bf16.xpose.msra.mxu0 %v460_v55 }
  0x52   : > { %1077 = vmatpush3.bf16.xpose.msra.mxu1 %v666_v57  ;;  %1089 = vmatprep.subr.msk.bf16.mxu0 %vm437_vm0, %v1179_v56 }
  0x53   : > { %1097 = vmatprep.subr.msk.bf16.mxu1 %vm437_vm0, %v1180_v58 }
  0x59   : > { %1061 = vmatpush3.bf16.xpose.msra.mxu0 %v463_v61 }
  0x5a   : > { %1079 = vmatpush3.bf16.xpose.msra.mxu1 %v669_v62 }
  0x60   : > { %1063 = vmatmul.mubr.msk.bf16.vlgmr.msra.gmra.mrb[0].mxu0 %vm437_vm0, %v1413_v2 }
  0x61   : > { %1081 = vmatmul.mubr.msk.bf16.vlgmr.msra.gmra.mrb[0].mxu1 %vm437_vm0, %v1415_v3 }
  0xae   : > { %v750_v63 = vpop.permute.xlu0 %749 }
  0xb3   : > { %v756_v0 = vpop.permute.xlu0 %755 }
 0x133   : > { %v523_v1 = vpop.f32.mrb[0].mxu0 }
 0x134   : > { %v752_v2 = vmul.f32 %v750_v63, %v523_v1  ;;  %v729_v3 = vpop.f32.mrb[0].mxu1  ;;  %v525_v4 = vpop.f32.mrb[1].mxu0 }
 0x135   : > { %v758_v5 = vmul.f32 %v756_v0, %v729_v3  ;;  %v753_v6 = vmul.f32 %v750_v63, %v525_v4  ;;  %v776_v7 = vcombine.low %v523_v1, %v525_v4  ;;  %v731_v8 = vpop.f32.mrb[1].mxu1  ;;  %v527_v9 = vpop.f32.mrb[2].mxu0 }
 0x136   : > { %v759_v10 = vmul.f32 %v756_v0, %v731_v8  ;;  %v788_v11 = vcombine.low %v729_v3, %v731_v8  ;;  %v733_v12 = vpop.f32.mrb[2].mxu1  ;;  %v528_v13 = vpop.f32.mrb[3].mxu0 }
 0x137   : > { %v1529_v14 = vadd.f32 %v758_v5, %v752_v2  ;;  %v734_v15 = vpop.f32.mrb[3].mxu1  ;;  %1030 = vst.sshfl [vmem:[%s299_s18] sm:$0x33 pattern:$0x76325410] %v776_v7 }
 0x138   : > { %v761_v16 = vadd.f32 %v759_v10, %v753_v6  ;;  %1031 = vst.sshfl [vmem:[%s306_s20] sm:$0x33 pattern:$0x76325410] %v788_v11 }
 0x139   : > { %1200 = shalt.err (!%p1197_p3)
}
 0x13a   : > { %s1201_s28 = scalar_lea.hbm %s1517_s8, 64  ;;  %s1205_s20 = scalar_lea.hbm %s1644_s6, 128 }
 0x13b   : > { %p1202_p4 = scmp.ne.s32.totalorder %s1517_s8, %s1201_s28  ;;  %p1206_p9 = scmp.lt.u32.totalorder %s1517_s8, %s1644_s6 }
 0x13c   : > { %p1207_p10 = scmp.lt.u32.totalorder %s1205_s20, %s1201_s28  ;;  %p1209_p12 = scmp.lt.u32.totalorder %s1201_s28, %s1517_s8 }
 0x13d   : > { %p1203_p7 = pnand %p1202_p4, %p1396_p5 }
 0x13e   : > { %p1208_p11 = por %p1207_p10, %p1206_p9 }
 0x13f   : > { %p1204_p8 = pneg %p1203_p7 }
 0x140   : > { %p1210_p13 = por %p1209_p12, %p1208_p11 }
 0x142   : > { %p1211_p0 = pnand %p1210_p13, %p1204_p8 }
 0x144   : > { %1214 = shalt.err (!%p1211_p0)
}
 0x145   : > { %1099 = dma.vmem_to_hbm [thread:$0]  (%p1396_p5), %s1519_s19, 64, %s1517_s8, %s1538_s13  }
 0x146   : > { %s1215_s0 = scalar_lea.vmem %s1527_s21, 64  ;;  %s1314_s1 = smov [#allocation6]  }
 0x147   : > { %p1216_p1 = scmp.ne.s32.totalorder %s1527_s21, %s1215_s0  ;;  %s1219_s28 = sshll.u32 %s1314_s1, 4  ;;  %s1220_s28 = int_to_ptr.vmem [resolvable:$false] %s1219_s28 }
 0x148   : > { %s1221_s16 = scalar_lea.vmem %s1220_s28, 128  ;;  %p1222_p4 = scmp.lt.s32.totalorder %s1527_s21, %s1220_s28 }
 0x149   : > { %p1217_p2 = pnand %p1216_p1, %p1396_p5  ;;  %p1223_p7 = scmp.lt.s32.totalorder %s1221_s16, %s1215_s0 }
 0x14b   : > { %p1218_p3 = pneg %p1217_p2  ;;  %p1224_p8 = por %p1223_p7, %p1222_p4 }
 0x14d   : > { %p1225_p9 = pnand %p1224_p8, %p1218_p3 }
 0x14f   : > { %1228 = shalt.err (!%p1225_p9)
}
 0x150   : > { %s1229_s19 = scalar_lea.hbm %s1525_s29, 64  ;;  %s1233_s20 = scalar_lea.hbm %s1645_s7, 128 }
 0x151   : > { %p1230_p10 = scmp.ne.s32.totalorder %s1525_s29, %s1229_s19  ;;  %p1234_p13 = scmp.lt.u32.totalorder %s1525_s29, %s1645_s7 }
 0x152   : > { %p1235_p0 = scmp.lt.u32.totalorder %s1233_s20, %s1229_s19  ;;  %p1237_p2 = scmp.lt.u32.totalorder %s1229_s19, %s1525_s29 }
 0x153   : > { %p1231_p11 = pnand %p1230_p10, %p1396_p5 }
 0x154   : > { %p1236_p1 = por %p1235_p0, %p1234_p13 }
 0x155   : > { %p1232_p12 = pneg %p1231_p11 }
 0x156   : > { %p1238_p3 = por %p1237_p2, %p1236_p1 }
 0x158   : > { %p1239_p4 = pnand %p1238_p3, %p1232_p12 }
 0x15a   : > { %1242 = shalt.err (!%p1239_p4)
}
 0x15b   : > { %1100 = dma.vmem_to_hbm [thread:$0]  (%p1396_p5), %s1527_s21, 64, %s1525_s29, %s1538_s13   ;;  %v764_v17 = vcombine.low %v1529_v14, %v761_v16 }
 0x15c   : > { %s1589_s28 = scalar_lea.hbm %s1643_s5, %s1509_s17  ;;  %s1654_s16 = sand.u32 1, %s1301_s25  }
 0x15d   : > { %1029 = vst.sshfl [vmem:[%s292_s22] sm:$0x33 pattern:$0x76325410] %v764_v17  ;;  %s799_s19 = scalar_lea.sflag [#allocation3], %s1654_s16  ;;  %s1243_s8 = scalar_lea.vmem %s1592_s23, 64 }
 0x15e   : > { %p1244_p7 = scmp.ne.s32.totalorder %s1592_s23, %s1243_s8  ;;  %s1315_s29 = smov [#allocation2]  }
 0x15f   : > { %s1247_s13 = sshll.u32 %s1315_s29, 4  ;;  %s1248_s13 = int_to_ptr.vmem [resolvable:$false] %s1247_s13 }
 0x160   : > { %p1245_p8 = pnand %p1244_p7, %p1396_p5  ;;  %s1249_s21 = scalar_lea.vmem %s1248_s13, 128 }
 0x161   : > { %p1250_p10 = scmp.lt.s32.totalorder %s1592_s23, %s1248_s13  ;;  %p1251_p11 = scmp.lt.s32.totalorder %s1249_s21, %s1243_s8 }
 0x162   : > { %p1246_p9 = pneg %p1245_p8 }
 0x163   : > { %p1252_p12 = por %p1251_p11, %p1250_p10 }
 0x165   : > { %p1253_p13 = pnand %p1252_p12, %p1246_p9 }
 0x167   : > { %1256 = shalt.err (!%p1253_p13)
}
 0x168   : > { %s1257_s15 = scalar_lea.hbm %s1589_s28, 64  ;;  %s1261_s18 = scalar_lea.hbm %s1643_s5, 128 }
 0x169   : > { %p1258_p0 = scmp.ne.s32.totalorder %s1589_s28, %s1257_s15  ;;  %p1262_p3 = scmp.lt.u32.totalorder %s1589_s28, %s1643_s5 }
 0x16a   : > { %p1263_p4 = scmp.lt.u32.totalorder %s1261_s18, %s1257_s15  ;;  %p1265_p8 = scmp.lt.u32.totalorder %s1257_s15, %s1589_s28 }
 0x16b   : > { %p1259_p1 = pnand %p1258_p0, %p1396_p5 }
 0x16c   : > { %p1264_p7 = por %p1263_p4, %p1262_p3 }
 0x16d   : > { %p1260_p2 = pneg %p1259_p1 }
 0x16e   : > { %p1266_p9 = por %p1265_p8, %p1264_p7 }
 0x170   : > { %p1267_p10 = pnand %p1266_p9, %p1260_p2 }
 0x172   : > { %1270 = shalt.err (!%p1267_p10)
}
 0x173   : > { %1098 = dma.vmem_to_hbm [thread:$0]  (%p1396_p5), %s1592_s23, 64, %s1589_s28, %s799_s19  }
 0x174 PF: > { %p1114_p11 = scmp.ge.s32.totalorder %s1309_s27, 2  ;;  %s863_s14 = sand.u32 1, %s1297_s24  }
 0x175   : > { %s864_s0 = scalar_lea.sflag [#allocation3], %s863_s14 }
 0x176   : > { %p1105_p12 = pnand %p1114_p11, %p1400_p6 }
 0x178   : > { %1288 = dma.done.wait (!%p1105_p12), %s864_s0, 64  }
 0x179   : > { %1290 = vsyncadd (!%p1105_p12), %s864_s0, 4294967232  ;;  %s1655_s1 = sadd.s32 4294967294, %s1309_s27  }
 0x17a   : > { %s872_s16 = sand.u32 1, %s1655_s1  }
 0x17b   : > { %s873_s8 = scalar_lea.sflag [#allocation5], %s872_s16 }
 0x17c   : > { %1292 = dma.done.wait (!%p1105_p12), %s873_s8, 128  }
 0x17d   : > { %1294 = vsyncadd (!%p1105_p12), %s873_s8, 4294967168  ;;  %p21_p5 = scmp.ge.s32.totalorder %s1381_s30, 4   ;;  %s1656_s24 = smov %s1301_s25 }
 0x17e   : > { %s1657_s25 = smov %s1305_s26  ;;  %s1658_s26 = smov %s1394_s10 }
 0x17f   : > { %s1659_s27 = smov %s1381_s30  ;;  %23 = sbr.rel (!%p21_p5) target bundleno = 8 (0x8), region = 110 }
 0x186   :  { %887 = vsyncpa [#allocation3], 1 }
 0x187   :  { %889 = vsyncpa [#allocation3 + $0x1], 1 }
 0x188   :  { %890 = vsyncpa [#allocation5], 1 }
 0x189   :  { %892 = vsyncpa [#allocation5 + $0x1], 1 }

// kernel: lightgcn_lc_forward.10
= control target key start
LH: loop header
LB: loop body
LE: loop exit
PB: predicated region body
PF: predicated region fallthrough
CT: control target
= control target key end

     0   :  { %vm61_vm0 = vcmask 261120   ;;  %v2244_v2 = vmov 0.0   ;;  %vm2245_vm1 = vmmov 0   ;;  %v2246_v8 = vmov 0   ;;  %s2247_s16 = smov 64   ;;  %s3022_s1 = inlined_call_operand.vmem [shape: f32[96,32], index: 1, kind: input, shape index: {}]   ;;  %s3023_s3 = inlined_call_operand.vmem [shape: f32[96,32], index: 3, kind: input, shape index: {}]   ;;  %s3024_s0 = inlined_call_operand.vmem [shape: f32[4,8,32], index: 0, kind: input, shape index: {}]   ;;  %s3025_s4 = inlined_call_operand.vmem [shape: f32[1,96], index: 4, kind: input, shape index: {}]   ;;  %s3026_s2 = inlined_call_operand.vmem [shape: f32[1,96], index: 2, kind: input, shape index: {}]   ;;  %s3027_s5 = inlined_call_operand.vmem [shape: s32[4,1], index: 5, kind: input, shape index: {}]   ;;  %s3028_s6 = inlined_call_operand.vmem [shape: f32[4,32], index: 6, kind: input, shape index: {}]   ;;  %s3029_s7 = inlined_call_operand.vmem [shape: f32[4,32], index: 7, kind: input, shape index: {}]   ;;  %s3030_s8 = inlined_call_operand.vmem [shape: f32[4,32], index: 8, kind: output, shape index: {}]  }
   0x1   :  { %v34_v0 = vld [vmem:[%s3022_s1] sm:$0xff]  ;;  %v35_v1 = vld [vmem:[%s3022_s1 + $0x8] sm:$0xff]  ;;  %1908 = vmatprep.subr.bf16.mxu1 %v2244_v2  ;;  %1920 = vmatprep.mubr.msk.bf16.mxu1 %vm2245_vm1, %v2244_v2  ;;  %v36_v6 = vld [vmem:[%s3022_s1 + $0x10] sm:$0xff]  ;;  %vm341_vm2 = vcmask 1041409   ;;  %vm344_vm3 = vcmask 1042434   ;;  %vm347_vm4 = vcmask 1043459  }
   0x2   :  { %v135_v3 = vld [vmem:[%s3023_s3] sm:$0xff]  ;;  %v48_v4 = vpack.c.bf16 %v35_v1, %v34_v0  ;;  %v136_v5 = vld [vmem:[%s3023_s3 + $0x8] sm:$0xff]  ;;  %v37_v7 = vld [vmem:[%s3022_s1 + $0x18] sm:$0xff]  ;;  %2048 = vset.pattern.permute.xlu0 %v2246_v8  ;;  %2047 = vset.pattern.permute.xlu1 %v2246_v8 }
   0x3   :  { %v147_v9 = vpack.c.bf16 %v136_v5, %v135_v3  ;;  %v49_v10 = vpack.c.bf16 %v37_v7, %v36_v6  ;;  %v137_v12 = vld [vmem:[%s3023_s3 + $0x10] sm:$0xff]  ;;  %v138_v13 = vld [vmem:[%s3023_s3 + $0x18] sm:$0xff]  ;;  %v38_v16 = vld [vmem:[%s3022_s1 + $0x20] sm:$0xff] }
   0x4   :  { %2036 = vmatprep.subr.msk.bf16.mxu0 %vm61_vm0, %v48_v4  ;;  %v69_v11 = vsel %vm61_vm0, %v48_v4, 0  ;;  %v148_v15 = vpack.c.bf16 %v138_v13, %v137_v12  ;;  %v39_v17 = vld [vmem:[%s3022_s1 + $0x28] sm:$0xff]  ;;  %v30_v18 = vld [vmem:[%s3024_s0] sm:$0xff]  ;;  %v40_v27 = vld [vmem:[%s3022_s1 + $0x30] sm:$0xff] }
   0x5   :  { %1893 = vmatpush3.bf16.xpose.msra.mxu0 %v69_v11  ;;  %v2326_v14 = vsel %vm61_vm0, %v147_v9, 0  ;;  %v31_v19 = vld [vmem:[%s3024_s0 + $0x8] sm:$0xff]  ;;  %v72_v20 = vsel %vm61_vm0, %v49_v10, 0  ;;  %v50_v21 = vpack.c.bf16 %v39_v17, %v38_v16  ;;  %v139_v24 = vld [vmem:[%s3023_s3 + $0x20] sm:$0xff]  ;;  %v41_v28 = vld [vmem:[%s3022_s1 + $0x38] sm:$0xff] }
   0x6   :  { %1909 = vmatpush3.bf16.xpose.msra.mxu1 %v2326_v14  ;;  %2037 = vmatprep.subr.msk.bf16.mxu0 %vm61_vm0, %v49_v10  ;;  %v46_v22 = vpack.c.bf16 %v31_v19, %v30_v18  ;;  %v2345_v23 = vsel %vm61_vm0, %v148_v15, 0  ;;  %v140_v25 = vld [vmem:[%s3023_s3 + $0x28] sm:$0xff]  ;;  %v51_v30 = vpack.c.bf16 %v41_v28, %v40_v27  ;;  %v141_v32 = vld [vmem:[%s3023_s3 + $0x30] sm:$0xff]  ;;  %v142_v33 = vld [vmem:[%s3023_s3 + $0x38] sm:$0xff] }
   0x7   :  { %1910 = vmatprep.subr.bf16.mxu1 %v2244_v2  ;;  %v149_v26 = vpack.c.bf16 %v140_v25, %v139_v24  ;;  %v75_v29 = vsel %vm61_vm0, %v50_v21, 0  ;;  %v150_v34 = vpack.c.bf16 %v142_v33, %v141_v32  ;;  %v42_v35 = vld [vmem:[%s3022_s1 + $0x40] sm:$0xff]  ;;  %v43_v36 = vld [vmem:[%s3022_s1 + $0x48] sm:$0xff]  ;;  %v44_v43 = vld [vmem:[%s3022_s1 + $0x50] sm:$0xff] }
   0x8   :  { %1904 = vmatprep.mubr.msk.bf16.mxu0 %vm61_vm0, %v46_v22  ;;  %v78_v37 = vsel %vm61_vm0, %v51_v30, 0  ;;  %v52_v38 = vpack.c.bf16 %v43_v36, %v42_v35  ;;  %v143_v40 = vld [vmem:[%s3023_s3 + $0x40] sm:$0xff]  ;;  %v144_v41 = vld [vmem:[%s3023_s3 + $0x48] sm:$0xff]  ;;  %v45_v44 = vld [vmem:[%s3022_s1 + $0x58] sm:$0xff] }
   0x9   :  { %v2365_v31 = vsel %vm61_vm0, %v149_v26, 0  ;;  %v2384_v39 = vsel %vm61_vm0, %v150_v34, 0  ;;  %v151_v42 = vpack.c.bf16 %v144_v41, %v143_v40  ;;  %v53_v46 = vpack.c.bf16 %v45_v44, %v44_v43  ;;  %v145_v48 = vld [vmem:[%s3023_s3 + $0x50] sm:$0xff]  ;;  %v146_v49 = vld [vmem:[%s3023_s3 + $0x58] sm:$0xff]  ;;  %v2460_v56 = vld [vmem:[%s3025_s4] ss:$0 sm:$0xff] }
   0xa   :  { %v81_v45 = vsel %vm61_vm0, %v52_v38, 0  ;;  %v152_v50 = vpack.c.bf16 %v146_v49, %v145_v48  ;;  %v32_v53 = vld [vmem:[%s3024_s0 + $0x10] sm:$0xff]  ;;  %v33_v54 = vld [vmem:[%s3024_s0 + $0x18] sm:$0xff]  ;;  %v1785_v6 = vld [vmem:[%s3026_s2] ss:$0 sm:$0xff]  ;;  %s2248_s2 = smov 96  }
   0xb   :  { %v2403_v47 = vsel %vm61_vm0, %v151_v42, 0  ;;  %v84_v51 = vsel %vm61_vm0, %v53_v46, 0  ;;  %v47_v55 = vpack.c.bf16 %v33_v54, %v32_v53 }
   0xc   :  { %v2416_v52 = vsel %vm61_vm0, %v152_v50, 0 }
   0xd   :  { %1895 = vmatpush3.bf16.xpose.msra.mxu0 %v72_v20 }
   0xe   :  { %1911 = vmatpush3.bf16.xpose.msra.mxu1 %v2345_v23  ;;  %2038 = vmatprep.subr.msk.bf16.mxu0 %vm61_vm0, %v50_v21 }
   0xf   :  { %1912 = vmatprep.subr.bf16.mxu1 %v2244_v2 }
  0x15   :  { %1897 = vmatpush3.bf16.xpose.msra.mxu0 %v75_v29 }
  0x16   :  { %1913 = vmatpush3.bf16.xpose.msra.mxu1 %v2365_v31  ;;  %2039 = vmatprep.subr.msk.bf16.mxu0 %vm61_vm0, %v51_v30 }
  0x17   :  { %1914 = vmatprep.subr.bf16.mxu1 %v2244_v2 }
  0x1d   :  { %1899 = vmatpush3.bf16.xpose.msra.mxu0 %v78_v37 }
  0x1e   :  { %1915 = vmatpush3.bf16.xpose.msra.mxu1 %v2384_v39  ;;  %2040 = vmatprep.subr.msk.bf16.mxu0 %vm61_vm0, %v52_v38 }
  0x1f   :  { %1916 = vmatprep.subr.bf16.mxu1 %v2244_v2 }
  0x25   :  { %1901 = vmatpush3.bf16.xpose.msra.mxu0 %v81_v45 }
  0x26   :  { %1917 = vmatpush3.bf16.xpose.msra.mxu1 %v2403_v47  ;;  %2041 = vmatprep.subr.msk.bf16.mxu0 %vm61_vm0, %v53_v46 }
  0x27   :  { %1918 = vmatprep.subr.bf16.mxu1 %v2244_v2 }
  0x2d   :  { %1903 = vmatpush3.bf16.xpose.msra.mxu0 %v84_v51 }
  0x2e   :  { %1919 = vmatpush3.bf16.xpose.msra.mxu1 %v2416_v52  ;;  %1924 = vmatprep.subr.bf16.mxu0 %v2244_v2 }
  0x2f   :  { %1940 = vmatprep.subr.bf16.mxu1 %v2244_v2 }
  0x34   :  { %1905 = vmatmul.mubr.msk.bf16.vlgmr.msra.gmra.mrb[0].mxu0 %vm61_vm0, %v47_v55 }
  0x35   :  { %1921 = vmatmul.mubr.bf16.vlgmr.msra.gmra.mrb[0].mxu1 %v2246_v8  ;;  %1925 = vmatpush3.bf16.xpose.msra.mxu0 %v2326_v14 }
  0x36   :  { %1926 = vmatprep.subr.bf16.mxu0 %v2244_v2  ;;  %1936 = vmatprep.mubr.msk.bf16.mxu0 %vm2245_vm1, %v2244_v2 }
  0x37   :  { %1941 = vmatpush3.bf16.xpose.msra.mxu1 %v2326_v14  ;;  %1952 = vmatprep.mubr.msk.bf16.mxu1 %vm2245_vm1, %v2244_v2 }
  0x38   :  { %1942 = vmatprep.subr.bf16.mxu1 %v2244_v2 }
  0x3d   :  { %1927 = vmatpush3.bf16.xpose.msra.mxu0 %v2345_v23 }
  0x3e   :  { %1928 = vmatprep.subr.bf16.mxu0 %v2244_v2 }
  0x3f   :  { %1943 = vmatpush3.bf16.xpose.msra.mxu1 %v2345_v23 }
  0x40   :  { %1944 = vmatprep.subr.bf16.mxu1 %v2244_v2 }
  0x45   :  { %1929 = vmatpush3.bf16.xpose.msra.mxu0 %v2365_v31 }
  0x46   :  { %1930 = vmatprep.subr.bf16.mxu0 %v2244_v2 }
  0x47   :  { %1945 = vmatpush3.bf16.xpose.msra.mxu1 %v2365_v31 }
  0x48   :  { %1946 = vmatprep.subr.bf16.mxu1 %v2244_v2 }
  0x4d   :  { %1931 = vmatpush3.bf16.xpose.msra.mxu0 %v2384_v39 }
  0x4e   :  { %1932 = vmatprep.subr.bf16.mxu0 %v2244_v2 }
  0x4f   :  { %1947 = vmatpush3.bf16.xpose.msra.mxu1 %v2384_v39 }
  0x50   :  { %1948 = vmatprep.subr.bf16.mxu1 %v2244_v2 }
  0x55   :  { %1933 = vmatpush3.bf16.xpose.msra.mxu0 %v2403_v47 }
  0x56   :  { %1934 = vmatprep.subr.bf16.mxu0 %v2244_v2 }
  0x57   :  { %1949 = vmatpush3.bf16.xpose.msra.mxu1 %v2403_v47 }
  0x58   :  { %1950 = vmatprep.subr.bf16.mxu1 %v2244_v2 }
  0x5d   :  { %1935 = vmatpush3.bf16.xpose.msra.mxu0 %v2416_v52 }
  0x5e   :  { %1956 = vmatprep.subr.bf16.mxu0 %v2244_v2 }
  0x5f   :  { %1951 = vmatpush3.bf16.xpose.msra.mxu1 %v2416_v52 }
  0x60   :  { %1972 = vmatprep.subr.bf16.mxu1 %v2244_v2 }
 0x107   :  { %v1906_v57 = vpop.f32.mrb[0].mxu0 }
 0x108   :  { %v216_v58 = vpop.f32.mrb[0].mxu1  ;;  %v120_v59 = vpop.f32.mrb[1].mxu0  ;;  %v2474_v10 = vadd.f32 %v1906_v57, %v1785_v6 }
 0x109   :  { %v217_v60 = vadd.f32 %v2460_v56, %v216_v58  ;;  %v1922_v61 = vpop.f32.mrb[1].mxu1  ;;  %v1907_v62 = vpop.f32.mrb[2].mxu0  ;;  %v2472_v9 = vadd.f32 %v1785_v6, %v120_v59 }
 0x10a   :  { %v219_v63 = vpop.f32.mrb[2].mxu1  ;;  %v123_v0 = vpop.f32.mrb[3].mxu0  ;;  %v2478_v13 = vadd.f32 %v1907_v62, %v1785_v6 }
 0x10b   :  { %258 = vrot.lane.b32.xlu1 %v217_v60, %s2247_s16  ;;  %v1923_v1 = vpop.f32.mrb[3].mxu1  ;;  %v223_v3 = vrot.slane %v217_v60, 1  ;;  %v225_v4 = vrot.slane %v217_v60, 3  ;;  %v224_v5 = vrot.slane %v217_v60, 2  ;;  %v2470_v7 = vadd.f32 %v1785_v6, %v123_v0 }
 0x10c   :  { %v230_v12 = vadd.f32 %v217_v60, %v2472_v9 }
 0x10d   :  { %260 = vrot.lane.b32.xlu0 %v223_v3, %s2247_s16  ;;  %v231_v11 = vadd.f32 %v223_v3, %v2470_v7  ;;  %v232_v16 = vadd.f32 %v224_v5, %v2474_v10  ;;  %v233_v18 = vadd.f32 %v225_v4, %v2478_v13 }
 0x10e   :  { %v1789_v17 = vmul.f32 -1.442695, %v230_v12 }
 0x10f   :  { %264 = vrot.lane.b32.xlu1 %v225_v4, %s2247_s16  ;;  %v1790_v15 = vmul.f32 -1.442695, %v231_v11  ;;  %v1791_v19 = vmul.f32 -1.442695, %v232_v16  ;;  %v1792_v20 = vmul.f32 -1.442695, %v233_v18 }
 0x111   :  { %262 = vrot.lane.b32.xlu0 %v224_v5, %s2247_s16  ;;  %2049 = vpow2.f32 %v1790_v15 }
 0x112   :  { %2051 = vpow2.f32 %v1789_v17 }
 0x113   :  { %2053 = vpow2.f32 %v1791_v19 }
 0x114   :  { %2055 = vpow2.f32 %v1792_v20 }
 0x11b   :  { %v2050_v21 = vpop.eup %2049 }
 0x11c   :  { %v2052_v22 = vpop.eup %2051  ;;  %v247_v24 = vadd.f32 1.0, %v2050_v21 }
 0x11d   :  { %v2054_v25 = vpop.eup %2053  ;;  %v246_v26 = vadd.f32 1.0, %v2052_v22 }
 0x11e   :  { %2057 = vrcp.f32 %v247_v24  ;;  %v248_v27 = vadd.f32 1.0, %v2054_v25  ;;  %v2056_v28 = vpop.eup %2055 }
 0x11f   :  { %2059 = vrcp.f32 %v246_v26  ;;  %v249_v29 = vadd.f32 1.0, %v2056_v28 }
 0x120   :  { %2061 = vrcp.f32 %v248_v27 }
 0x121   :  { %2063 = vrcp.f32 %v249_v29 }
 0x128   :  { %v2058_v30 = vpop.eup %2057 }
 0x129   :  { %v2060_v35 = vpop.eup %2059  ;;  %v299_v59 = vsub.f32 1.0, %v2058_v30  ;;  %v323_v61 = vmul.f32 0.0, %v2058_v30 }
 0x12a   :  { %v2062_v36 = vpop.eup %2061  ;;  %v298_v3 = vsub.f32 1.0, %v2060_v35  ;;  %v322_v12 = vmul.f32 0.0, %v2060_v35 }
 0x12b   :  { %v2064_v42 = vpop.eup %2063  ;;  %v300_v0 = vsub.f32 1.0, %v2062_v36  ;;  %v324_v5 = vmul.f32 0.0, %v2062_v36 }
 0x12c   :  { %v301_v17 = vsub.f32 1.0, %v2064_v42  ;;  %v325_v20 = vmul.f32 0.0, %v2064_v42 }
 0x17d   :  { %v259_v32 = vpop.permute.xlu1 %258 }
 0x17e   :  { %v270_v38 = vmul.f32 %v2060_v35, %v259_v32 }
 0x17f   :  { %v261_v33 = vpop.permute.xlu0 %260 }
 0x180   :  { %v271_v34 = vmul.f32 %v2058_v30, %v261_v33 }
 0x181   :  { %v265_v41 = vpop.permute.xlu1 %264 }
 0x182   :  { %280 = vrot.lane.b32.xlu0 %v271_v34, %s2247_s16  ;;  %v273_v43 = vmul.f32 %v2064_v42, %v265_v41 }
 0x183   :  { %v263_v37 = vpop.permute.xlu0 %262 }
 0x184   :  { %v272_v40 = vmul.f32 %v2062_v36, %v263_v37 }
 0x186   :  { %282 = vrot.lane.b32.xlu1 %v272_v40, %s2247_s16  ;;  %278 = vrot.lane.b32.xlu0 %v270_v38, %s2247_s16 }
 0x18a   :  { %284 = vrot.lane.b32.xlu1 %v273_v43, %s2247_s16 }
 0x1f4   :  { %v281_v44 = vpop.permute.xlu0 %280 }
 0x1f5   :  { %v291_v45 = vadd.f32 %v281_v44, %v2470_v7 }
 0x1f7   :  { %2065 = vtanh.f32 %v291_v45 }
 0x1f8   :  { %v283_v46 = vpop.permute.xlu1 %282  ;;  %v279_v48 = vpop.permute.xlu0 %278 }
 0x1f9   :  { %v292_v49 = vadd.f32 %v283_v46, %v2474_v10  ;;  %v290_v50 = vadd.f32 %v279_v48, %v2472_v9 }
 0x1fb   :  { %2067 = vtanh.f32 %v292_v49 }
 0x1fc   :  { %2069 = vtanh.f32 %v290_v50  ;;  %v285_v51 = vpop.permute.xlu1 %284 }
 0x1fd   :  { %v293_v53 = vadd.f32 %v285_v51, %v2478_v13 }
 0x1ff   :  { %2071 = vtanh.f32 %v293_v53 }
 0x201   :  { %v2066_v54 = vpop.eup %2065 }
 0x202   :  { %308 = vrot.lane.b32.xlu0 %v2066_v54, %s2248_s2 }
 0x205   :  { %v2068_v55 = vpop.eup %2067 }
 0x206   :  { %v2070_v57 = vpop.eup %2069  ;;  %310 = vrot.lane.b32.xlu1 %v2068_v55, %s2248_s2 }
 0x207   :  { %306 = vrot.lane.b32.xlu0 %v2070_v57, %s2248_s2 }
 0x209   :  { %v2072_v58 = vpop.eup %2071 }
 0x20a   :  { %312 = vrot.lane.b32.xlu1 %v2072_v58, %s2248_s2 }
 0x274   :  { %v309_v60 = vpop.permute.xlu0 %308 }
 0x275   :  { %v319_v62 = vmul.f32 %v309_v60, %v299_v59 }
 0x277   :  { %v2494_v63 = vadd.f32 %v323_v61, %v319_v62 }
 0x278   :  { %v311_v1 = vpop.permute.xlu1 %310 }
 0x279   :  { %v354_v4 = vpack.c.bf16 %v2494_v63, %v2494_v63  ;;  %v320_v6 = vmul.f32 %v311_v1, %v300_v0  ;;  %v307_v11 = vpop.permute.xlu0 %306  ;;  %v340_v18 = vrot.slane %v2494_v63, 7 }
 0x27a   :  { %v318_v15 = vmul.f32 %v307_v11, %v298_v3 }
 0x27b   :  { %v2498_v16 = vadd.f32 %v324_v5, %v320_v6  ;;  %v362_v22 = vunpack.c.l.b16 %v354_v4 }
 0x27c   :  { %v2501_v19 = vadd.f32 %v322_v12, %v318_v15  ;;  %v313_v21 = vpop.permute.xlu1 %312 }
 0x27d   :  { %v343_v24 = vrot.slane %v2498_v16, 6  ;;  %v355_v25 = vpack.c.bf16 %v2498_v16, %v2498_v16  ;;  %v321_v26 = vmul.f32 %v313_v21, %v301_v17  ;;  %v365_v34 = vrot.slane %v362_v22, 7 }
 0x27e   :  { %v353_v27 = vpack.c.bf16 %v2501_v19, %v2501_v19  ;;  %v342_v28 = vsel %vm341_vm2, %v340_v18, %v2501_v19 }
 0x27f   :  { %v363_v29 = vunpack.c.l.b16 %v355_v25  ;;  %v2512_v30 = vadd.f32 %v325_v20, %v321_v26  ;;  %v345_v32 = vsel %vm344_vm3, %v343_v24, %v342_v28 }
 0x280   :  { %v361_v33 = vunpack.c.l.b16 %v353_v27 }
 0x281   :  { %v356_v35 = vpack.c.bf16 %v2512_v30, %v2512_v30  ;;  %v346_v36 = vrot.slane %v2512_v30, 5  ;;  %v367_v37 = vrot.slane %v363_v29, 6 }
 0x282   :  { %v366_v40 = vsel %vm341_vm2, %v365_v34, %v361_v33 }
 0x283   :  { %v364_v38 = vunpack.c.l.b16 %v356_v35  ;;  %v2520_v41 = vsel %vm347_vm4, %v346_v36, %v345_v32  ;;  %v368_v43 = vsel %vm344_vm3, %v367_v37, %v366_v40 }
 0x285   :  { %v369_v42 = vrot.slane %v364_v38, 5 }
 0x287   :  { %v370_v44 = vsel %vm347_vm4, %v369_v42, %v368_v43 }
 0x288   :  { %v371_v45 = vpack.c.b16 %v370_v44, %v370_v44 }
 0x28a   :  { %372 = vrot.lane.b32.xlu0 %v371_v45, %s2248_s2 }
 0x2fc   :  { %v373_v46 = vpop.permute.xlu0 %372 }
 0x2fd   :  { %1937 = vmatmul.mubr.msk.bf16.vlgmr.msra.gmra.mrb[4].mxu0 %vm61_vm0, %v373_v46 }
 0x2fe   :  { %1957 = vmatpush3.bf16.xpose.msra.mxu0 %v2326_v14  ;;  %1968 = vmatprep.mubr.msk.bf16.mxu0 %vm2245_vm1, %v2244_v2 }
 0x2ff   :  { %1958 = vmatprep.subr.bf16.mxu0 %v2244_v2 }
 0x306   :  { %1959 = vmatpush3.bf16.xpose.msra.mxu0 %v2345_v23 }
 0x307   :  { %1960 = vmatprep.subr.bf16.mxu0 %v2244_v2 }
 0x30e   :  { %1961 = vmatpush3.bf16.xpose.msra.mxu0 %v2365_v31 }
 0x30f   :  { %1962 = vmatprep.subr.bf16.mxu0 %v2244_v2 }
 0x316   :  { %1963 = vmatpush3.bf16.xpose.msra.mxu0 %v2384_v39 }
 0x317   :  { %1964 = vmatprep.subr.bf16.mxu0 %v2244_v2 }
 0x31e   :  { %1965 = vmatpush3.bf16.xpose.msra.mxu0 %v2403_v47 }
 0x31f   :  { %1966 = vmatprep.subr.bf16.mxu0 %v2244_v2 }
 0x326   :  { %1967 = vmatpush3.bf16.xpose.msra.mxu0 %v2416_v52 }
 0x327   :  { %1988 = vmatprep.subr.bf16.mxu0 %v2244_v2 }
 0x3d0   :  { %v411_v48 = vpop.f32.mrb[4].mxu0 }
 0x3d1   :  { %v412_v49 = vadd.f32 %v2460_v56, %v411_v48  ;;  %v1938_v50 = vpop.f32.mrb[5].mxu0 }
 0x3d2   :  { %v414_v51 = vpop.f32.mrb[6].mxu0 }
 0x3d3   :  { %v1939_v53 = vpop.f32.mrb[7].mxu0  ;;  %v419_v54 = vrot.slane %v412_v49, 1  ;;  %v418_v55 = vrot.slane %v412_v49, 7  ;;  %v420_v57 = vrot.slane %v412_v49, 2  ;;  %v426_v60 = vadd.f32 %v412_v49, %v2470_v7 }
 0x3d4   :  { %v518_v53 = vrot.slane %v2498_v16, 7 }
 0x3d5   :  { %457 = vrot.lane.b32.xlu0 %v419_v54, %s2247_s16  ;;  %453 = vrot.lane.b32.xlu1 %v418_v55, %s2247_s16  ;;  %v427_v58 = vadd.f32 %v419_v54, %v2474_v10  ;;  %v425_v59 = vadd.f32 %v418_v55, %v2472_v9  ;;  %v428_v0 = vadd.f32 %v420_v57, %v2478_v13  ;;  %v1795_v1 = vmul.f32 -1.442695, %v426_v60 }
 0x3d7   :  { %v1796_v61 = vmul.f32 -1.442695, %v427_v58  ;;  %v1794_v62 = vmul.f32 -1.442695, %v425_v59  ;;  %v1797_v3 = vmul.f32 -1.442695, %v428_v0 }
 0x3d9   :  { %459 = vrot.lane.b32.xlu0 %v420_v57, %s2247_s16  ;;  %455 = vrot.lane.b32.xlu1 %v412_v49, %s2247_s16  ;;  %2073 = vpow2.f32 %v1796_v61  ;;  %v517_v57 = vrot.slane %v2501_v19, 7 }
 0x3da   :  { %2075 = vpow2.f32 %v1794_v62 }
 0x3db   :  { %2077 = vpow2.f32 %v1795_v1 }
 0x3dc   :  { %2079 = vpow2.f32 %v1797_v3  ;;  %v519_v3 = vrot.slane %v2512_v30, 7 }
 0x3e3   :  { %v2074_v4 = vpop.eup %2073 }
 0x3e4   :  { %v2076_v5 = vpop.eup %2075  ;;  %v443_v6 = vadd.f32 1.0, %v2074_v4 }
 0x3e5   :  { %v2078_v11 = vpop.eup %2077  ;;  %v441_v12 = vadd.f32 1.0, %v2076_v5 }
 0x3e6   :  { %v2080_v15 = vpop.eup %2079  ;;  %v442_v17 = vadd.f32 1.0, %v2078_v11  ;;  %2081 = vrcp.f32 %v443_v6 }
 0x3e7   :  { %2083 = vrcp.f32 %v441_v12  ;;  %v444_v20 = vadd.f32 1.0, %v2080_v15 }
 0x3e8   :  { %2085 = vrcp.f32 %v442_v17 }
 0x3e9   :  { %2087 = vrcp.f32 %v444_v20 }
 0x3f0   :  { %v2082_v21 = vpop.eup %2081 }
 0x3f1   :  { %v2084_v22 = vpop.eup %2083  ;;  %v495_v51 = vsub.f32 1.0, %v2082_v21  ;;  %v526_v58 = vmul.f32 %v2082_v21, %v518_v53 }
 0x3f2   :  { %v2086_v28 = vpop.eup %2085  ;;  %v493_v55 = vsub.f32 1.0, %v2084_v22  ;;  %v524_v61 = vmul.f32 %v2084_v22, %v517_v57 }
 0x3f3   :  { %v2088_v29 = vpop.eup %2087  ;;  %v494_v6 = vsub.f32 1.0, %v2086_v28  ;;  %v525_v17 = vmul.f32 %v2086_v28, %v340_v18 }
 0x3f4   :  { %v496_v1 = vsub.f32 1.0, %v2088_v29  ;;  %v527_v11 = vmul.f32 %v2088_v29, %v519_v3 }
 0x447   :  { %v458_v24 = vpop.permute.xlu0 %457  ;;  %v454_v25 = vpop.permute.xlu1 %453 }
 0x448   :  { %v467_v26 = vmul.f32 %v2082_v21, %v458_v24  ;;  %v465_v27 = vmul.f32 %v2084_v22, %v454_v25 }
 0x44a   :  { %477 = vrot.lane.b32.xlu0 %v467_v26, %s2247_s16  ;;  %473 = vrot.lane.b32.xlu1 %v465_v27, %s2247_s16 }
 0x44b   :  { %v460_v32 = vpop.permute.xlu0 %459  ;;  %v456_v33 = vpop.permute.xlu1 %455 }
 0x44c   :  { %v468_v34 = vmul.f32 %v2088_v29, %v460_v32  ;;  %v466_v35 = vmul.f32 %v2086_v28, %v456_v33 }
 0x44e   :  { %479 = vrot.lane.b32.xlu0 %v468_v34, %s2247_s16  ;;  %475 = vrot.lane.b32.xlu1 %v466_v35, %s2247_s16 }
 0x4bc   :  { %v478_v36 = vpop.permute.xlu0 %477  ;;  %v474_v37 = vpop.permute.xlu1 %473 }
 0x4bd   :  { %v487_v38 = vadd.f32 %v478_v36, %v2474_v10  ;;  %v485_v40 = vadd.f32 %v474_v37, %v2472_v9 }
 0x4bf   :  { %2089 = vtanh.f32 %v487_v38 }
 0x4c0   :  { %2091 = vtanh.f32 %v485_v40  ;;  %v480_v42 = vpop.permute.xlu0 %479  ;;  %v476_v43 = vpop.permute.xlu1 %475 }
 0x4c1   :  { %v488_v44 = vadd.f32 %v480_v42, %v2478_v13  ;;  %v486_v45 = vadd.f32 %v476_v43, %v2470_v7 }
 0x4c3   :  { %2093 = vtanh.f32 %v488_v44 }
 0x4c4   :  { %2095 = vtanh.f32 %v486_v45 }
 0x4c9   :  { %v2090_v46 = vpop.eup %2089 }
 0x4ca   :  { %v2092_v48 = vpop.eup %2091  ;;  %505 = vrot.lane.b32.xlu0 %v2090_v46, %s2248_s2 }
 0x4cb   :  { %501 = vrot.lane.b32.xlu1 %v2092_v48, %s2248_s2 }
 0x4cd   :  { %v2094_v49 = vpop.eup %2093 }
 0x4ce   :  { %v2096_v50 = vpop.eup %2095  ;;  %507 = vrot.lane.b32.xlu0 %v2094_v49, %s2248_s2 }
 0x4cf   :  { %503 = vrot.lane.b32.xlu1 %v2096_v50, %s2248_s2 }
 0x53c   :  { %v506_v54 = vpop.permute.xlu0 %505 }
 0x53d   :  { %v515_v59 = vmul.f32 %v506_v54, %v495_v51  ;;  %v502_v60 = vpop.permute.xlu1 %501 }
 0x53e   :  { %v513_v62 = vmul.f32 %v502_v60, %v493_v55 }
 0x53f   :  { %v2563_v0 = vadd.f32 %v526_v58, %v515_v59 }
 0x540   :  { %v2566_v4 = vadd.f32 %v524_v61, %v513_v62  ;;  %v508_v5 = vpop.permute.xlu0 %507 }
 0x541   :  { %v554_v16 = vpack.c.bf16 %v2563_v0, %v2563_v0  ;;  %v516_v12 = vmul.f32 %v508_v5, %v496_v1  ;;  %v504_v19 = vpop.permute.xlu1 %503  ;;  %v544_v25 = vrot.slane %v2563_v0, 7 }
 0x542   :  { %v552_v15 = vpack.c.bf16 %v2566_v4, %v2566_v4  ;;  %v514_v20 = vmul.f32 %v504_v19, %v494_v6  ;;  %v542_v30 = vrot.slane %v2566_v4, 1 }
 0x543   :  { %v2574_v21 = vadd.f32 %v527_v11, %v516_v12  ;;  %v562_v26 = vunpack.c.l.b16 %v554_v16 }
 0x544   :  { %v560_v22 = vunpack.c.l.b16 %v552_v15  ;;  %v2577_v24 = vadd.f32 %v525_v17, %v514_v20 }
 0x545   :  { %v546_v27 = vrot.slane %v2574_v21, 6  ;;  %v555_v29 = vpack.c.bf16 %v2574_v21, %v2574_v21  ;;  %v566_v36 = vrot.slane %v562_v26, 7 }
 0x546   :  { %v553_v63 = vpack.c.bf16 %v2577_v24, %v2577_v24  ;;  %v543_v18 = vsel %vm341_vm2, %v2577_v24, %v542_v30  ;;  %v564_v33 = vrot.slane %v560_v22, 1 }
 0x547   :  { %v563_v28 = vunpack.c.l.b16 %v555_v29  ;;  %v545_v32 = vsel %vm344_vm3, %v544_v25, %v543_v18 }
 0x548   :  { %v561_v34 = vunpack.c.l.b16 %v553_v63  ;;  %v2591_v35 = vsel %vm347_vm4, %v546_v27, %v545_v32 }
 0x549   :  { %v568_v37 = vrot.slane %v563_v28, 6 }
 0x54a   :  { %v565_v38 = vsel %vm341_vm2, %v561_v34, %v564_v33 }
 0x54b   :  { %v567_v40 = vsel %vm344_vm3, %v566_v36, %v565_v38 }
 0x54c   :  { %v569_v42 = vsel %vm347_vm4, %v568_v37, %v567_v40 }
 0x54d   :  { %v570_v43 = vpack.c.b16 %v569_v42, %v569_v42 }
 0x54f   :  { %571 = vrot.lane.b32.xlu1 %v570_v43, %s2248_s2 }
 0x5c1   :  { %v572_v44 = vpop.permute.xlu1 %571 }
 0x5c2   :  { %1953 = vmatmul.mubr.msk.bf16.vlgmr.msra.gmra.mrb[4].mxu1 %vm61_vm0, %v572_v44 }
 0x5c3   :  { %1973 = vmatpush3.bf16.xpose.msra.mxu1 %v2326_v14  ;;  %1984 = vmatprep.mubr.msk.bf16.mxu1 %vm2245_vm1, %v2244_v2 }
 0x5c4   :  { %1974 = vmatprep.subr.bf16.mxu1 %v2244_v2 }
 0x5cb   :  { %1975 = vmatpush3.bf16.xpose.msra.mxu1 %v2345_v23 }
 0x5cc   :  { %1976 = vmatprep.subr.bf16.mxu1 %v2244_v2 }
 0x5d3   :  { %1977 = vmatpush3.bf16.xpose.msra.mxu1 %v2365_v31 }
 0x5d4   :  { %1978 = vmatprep.subr.bf16.mxu1 %v2244_v2 }
 0x5db   :  { %1979 = vmatpush3.bf16.xpose.msra.mxu1 %v2384_v39 }
 0x5dc   :  { %1980 = vmatprep.subr.bf16.mxu1 %v2244_v2 }
 0x5e3   :  { %1981 = vmatpush3.bf16.xpose.msra.mxu1 %v2403_v47 }
 0x5e4   :  { %1982 = vmatprep.subr.bf16.mxu1 %v2244_v2 }
 0x5eb   :  { %1983 = vmatpush3.bf16.xpose.msra.mxu1 %v2416_v52 }
 0x5ec   :  { %2004 = vmatprep.subr.bf16.mxu1 %v2244_v2 }
 0x695   :  { %v610_v45 = vpop.f32.mrb[4].mxu1 }
 0x696   :  { %v611_v46 = vadd.f32 %v2460_v56, %v610_v45  ;;  %v1954_v48 = vpop.f32.mrb[5].mxu1 }
 0x697   :  { %v613_v49 = vpop.f32.mrb[6].mxu1 }
 0x698   :  { %v1955_v50 = vpop.f32.mrb[7].mxu1  ;;  %v618_v51 = vrot.slane %v611_v46, 7  ;;  %v617_v53 = vrot.slane %v611_v46, 6  ;;  %v619_v54 = vrot.slane %v611_v46, 1  ;;  %v626_v58 = vadd.f32 %v611_v46, %v2474_v10 }
 0x69a   :  { %654 = vrot.lane.b32.xlu1 %v618_v51, %s2247_s16  ;;  %652 = vrot.lane.b32.xlu0 %v617_v53, %s2247_s16  ;;  %v625_v55 = vadd.f32 %v618_v51, %v2470_v7  ;;  %v624_v57 = vadd.f32 %v617_v53, %v2472_v9  ;;  %v627_v61 = vadd.f32 %v619_v54, %v2478_v13  ;;  %v1801_v62 = vmul.f32 -1.442695, %v626_v58 }
 0x69b   :  { %v717_v51 = vrot.slane %v2577_v24, 7 }
 0x69c   :  { %v1800_v59 = vmul.f32 -1.442695, %v625_v55  ;;  %v1799_v60 = vmul.f32 -1.442695, %v624_v57  ;;  %v1802_v1 = vmul.f32 -1.442695, %v627_v61 }
 0x69d   :  { %v716_v55 = vrot.slane %v2566_v4, 7 }
 0x69e   :  { %656 = vrot.lane.b32.xlu1 %v611_v46, %s2247_s16  ;;  %658 = vrot.lane.b32.xlu0 %v619_v54, %s2247_s16  ;;  %2097 = vpow2.f32 %v1800_v59 }
 0x69f   :  { %2099 = vpow2.f32 %v1799_v60 }
 0x6a0   :  { %2101 = vpow2.f32 %v1801_v62 }
 0x6a1   :  { %2103 = vpow2.f32 %v1802_v1 }
 0x6a8   :  { %v2098_v3 = vpop.eup %2097 }
 0x6a9   :  { %v2100_v5 = vpop.eup %2099  ;;  %v641_v6 = vadd.f32 1.0, %v2098_v3 }
 0x6aa   :  { %v2102_v16 = vpop.eup %2101  ;;  %v640_v11 = vadd.f32 1.0, %v2100_v5 }
 0x6ab   :  { %v2104_v12 = vpop.eup %2103  ;;  %v642_v19 = vadd.f32 1.0, %v2102_v16  ;;  %2105 = vrcp.f32 %v641_v6  ;;  %v718_v16 = vrot.slane %v2574_v21, 7 }
 0x6ac   :  { %2107 = vrcp.f32 %v640_v11  ;;  %v643_v15 = vadd.f32 1.0, %v2104_v12 }
 0x6ad   :  { %2109 = vrcp.f32 %v642_v19 }
 0x6ae   :  { %2111 = vrcp.f32 %v643_v15 }
 0x6b5   :  { %v2106_v17 = vpop.eup %2105 }
 0x6b6   :  { %v2108_v20 = vpop.eup %2107  ;;  %v693_v50 = vsub.f32 1.0, %v2106_v17  ;;  %v724_v57 = vmul.f32 %v2106_v17, %v717_v51 }
 0x6b7   :  { %v2110_v29 = vpop.eup %2109  ;;  %v692_v54 = vsub.f32 1.0, %v2108_v20  ;;  %v723_v60 = vmul.f32 %v2108_v20, %v716_v55 }
 0x6b8   :  { %v2112_v63 = vpop.eup %2111  ;;  %v694_v1 = vsub.f32 1.0, %v2110_v29  ;;  %v725_v4 = vmul.f32 %v2110_v29, %v544_v25 }
 0x6b9   :  { %v695_v6 = vsub.f32 1.0, %v2112_v63 }
 0x70c   :  { %v655_v30 = vpop.permute.xlu1 %654  ;;  %v653_v22 = vpop.permute.xlu0 %652 }
 0x70d   :  { %v665_v26 = vmul.f32 %v2106_v17, %v655_v30  ;;  %v664_v27 = vmul.f32 %v2108_v20, %v653_v22  ;;  %v726_v20 = vmul.f32 %v2112_v63, %v718_v16 }
 0x70f   :  { %674 = vrot.lane.b32.xlu1 %v665_v26, %s2247_s16  ;;  %672 = vrot.lane.b32.xlu0 %v664_v27, %s2247_s16 }
 0x710   :  { %v657_v18 = vpop.permute.xlu1 %656  ;;  %v659_v28 = vpop.permute.xlu0 %658 }
 0x711   :  { %v666_v32 = vmul.f32 %v2110_v29, %v657_v18  ;;  %v667_v33 = vmul.f32 %v2112_v63, %v659_v28 }
 0x713   :  { %676 = vrot.lane.b32.xlu1 %v666_v32, %s2247_s16  ;;  %678 = vrot.lane.b32.xlu0 %v667_v33, %s2247_s16 }
 0x781   :  { %v675_v34 = vpop.permute.xlu1 %674  ;;  %v673_v36 = vpop.permute.xlu0 %672 }
 0x782   :  { %v685_v37 = vadd.f32 %v675_v34, %v2470_v7  ;;  %v684_v38 = vadd.f32 %v673_v36, %v2472_v9 }
 0x784   :  { %2113 = vtanh.f32 %v685_v37 }
 0x785   :  { %2115 = vtanh.f32 %v684_v38  ;;  %v677_v40 = vpop.permute.xlu1 %676  ;;  %v679_v42 = vpop.permute.xlu0 %678 }
 0x786   :  { %v686_v43 = vadd.f32 %v677_v40, %v2474_v10  ;;  %v687_v44 = vadd.f32 %v679_v42, %v2478_v13 }
 0x788   :  { %2117 = vtanh.f32 %v686_v43 }
 0x789   :  { %2119 = vtanh.f32 %v687_v44 }
 0x78e   :  { %v2114_v45 = vpop.eup %2113 }
 0x78f   :  { %v2116_v46 = vpop.eup %2115  ;;  %702 = vrot.lane.b32.xlu1 %v2114_v45, %s2248_s2 }
 0x790   :  { %700 = vrot.lane.b32.xlu0 %v2116_v46, %s2248_s2 }
 0x792   :  { %v2118_v48 = vpop.eup %2117 }
 0x793   :  { %v2120_v49 = vpop.eup %2119  ;;  %704 = vrot.lane.b32.xlu1 %v2118_v48, %s2248_s2 }
 0x794   :  { %706 = vrot.lane.b32.xlu0 %v2120_v49, %s2248_s2 }
 0x801   :  { %v703_v53 = vpop.permute.xlu1 %702 }
 0x802   :  { %v713_v58 = vmul.f32 %v703_v53, %v693_v50  ;;  %v701_v59 = vpop.permute.xlu0 %700 }
 0x803   :  { %v712_v61 = vmul.f32 %v701_v59, %v692_v54 }
 0x804   :  { %v2635_v62 = vadd.f32 %v724_v57, %v713_v58 }
 0x805   :  { %v2637_v3 = vadd.f32 %v723_v60, %v712_v61  ;;  %v705_v5 = vpop.permute.xlu1 %704 }
 0x806   :  { %v742_v24 = vrot.slane %v2635_v62, 1  ;;  %v752_v11 = vpack.c.bf16 %v2635_v62, %v2635_v62  ;;  %v714_v12 = vmul.f32 %v705_v5, %v694_v1  ;;  %v707_v19 = vpop.permute.xlu0 %706 }
 0x807   :  { %v741_v15 = vrot.slane %v2637_v3, 2  ;;  %v751_v17 = vpack.c.bf16 %v2637_v3, %v2637_v3  ;;  %v715_v30 = vmul.f32 %v707_v19, %v695_v6 }
 0x808   :  { %v760_v22 = vunpack.c.l.b16 %v752_v11  ;;  %v2648_v26 = vadd.f32 %v725_v4, %v714_v12 }
 0x809   :  { %v759_v21 = vunpack.c.l.b16 %v751_v17  ;;  %v2650_v27 = vadd.f32 %v726_v20, %v715_v30  ;;  %v743_v18 = vsel %vm341_vm2, %v742_v24, %v741_v15 }
 0x80a   :  { %v764_v28 = vrot.slane %v760_v22, 1  ;;  %v753_v0 = vpack.c.bf16 %v2648_v26, %v2648_v26  ;;  %v2657_v25 = vsel %vm344_vm3, %v2648_v26, %v743_v18 }
 0x80b   :  { %v763_v29 = vrot.slane %v759_v21, 2  ;;  %v754_v63 = vpack.c.bf16 %v2650_v27, %v2650_v27 }
 0x80c   :  { %v761_v32 = vunpack.c.l.b16 %v753_v0 }
 0x80d   :  { %v762_v33 = vunpack.c.l.b16 %v754_v63  ;;  %v765_v34 = vsel %vm341_vm2, %v764_v28, %v763_v29 }
 0x80e   :  { %v766_v36 = vsel %vm344_vm3, %v761_v32, %v765_v34 }
 0x80f   :  { %v767_v37 = vrot.slane %v762_v33, 7 }
 0x811   :  { %v768_v38 = vsel %vm347_vm4, %v767_v37, %v766_v36 }
 0x812   :  { %v769_v40 = vpack.c.b16 %v768_v38, %v768_v38 }
 0x814   :  { %770 = vrot.lane.b32.xlu0 %v769_v40, %s2248_s2 }
 0x886   :  { %v771_v42 = vpop.permute.xlu0 %770 }
 0x887   :  { %1969 = vmatmul.mubr.msk.bf16.vlgmr.msra.gmra.mrb[8].mxu0 %vm61_vm0, %v771_v42 }
 0x888   :  { %1989 = vmatpush3.bf16.xpose.msra.mxu0 %v2326_v14  ;;  %2000 = vmatprep.mubr.msk.bf16.mxu0 %vm2245_vm1, %v2244_v2 }
 0x889   :  { %1990 = vmatprep.subr.bf16.mxu0 %v2244_v2 }
 0x890   :  { %1991 = vmatpush3.bf16.xpose.msra.mxu0 %v2345_v23 }
 0x891   :  { %1992 = vmatprep.subr.bf16.mxu0 %v2244_v2 }
 0x898   :  { %1993 = vmatpush3.bf16.xpose.msra.mxu0 %v2365_v31 }
 0x899   :  { %1994 = vmatprep.subr.bf16.mxu0 %v2244_v2 }
 0x8a0   :  { %1995 = vmatpush3.bf16.xpose.msra.mxu0 %v2384_v39 }
 0x8a1   :  { %1996 = vmatprep.subr.bf16.mxu0 %v2244_v2 }
 0x8a8   :  { %1997 = vmatpush3.bf16.xpose.msra.mxu0 %v2403_v47 }
 0x8a9   :  { %1998 = vmatprep.subr.bf16.mxu0 %v2244_v2 }
 0x8b0   :  { %1999 = vmatpush3.bf16.xpose.msra.mxu0 %v2416_v52 }
 0x8b1   :  { %2020 = vmatprep.subr.bf16.mxu0 %v2244_v2 }
 0x95a   :  { %v809_v43 = vpop.f32.mrb[8].mxu0 }
 0x95b   :  { %v810_v44 = vadd.f32 %v2460_v56, %v809_v43  ;;  %v1970_v45 = vpop.f32.mrb[9].mxu0 }
 0x95c   :  { %v812_v46 = vpop.f32.mrb[10].mxu0 }
 0x95d   :  { %v1971_v48 = vpop.f32.mrb[11].mxu0  ;;  %v817_v49 = vrot.slane %v810_v44, 6  ;;  %v816_v50 = vrot.slane %v810_v44, 5  ;;  %v818_v51 = vrot.slane %v810_v44, 7  ;;  %v826_v56 = vadd.f32 %v810_v44, %v2478_v13 }
 0x95e   :  { %v916_v48 = vrot.slane %v2635_v62, 7  ;;  %v917_v62 = vrot.slane %v2648_v26, 7 }
 0x95f   :  { %853 = vrot.lane.b32.xlu0 %v817_v49, %s2247_s16  ;;  %851 = vrot.lane.b32.xlu1 %v816_v50, %s2247_s16  ;;  %v824_v53 = vadd.f32 %v817_v49, %v2470_v7  ;;  %v823_v54 = vadd.f32 %v816_v50, %v2472_v9  ;;  %v825_v58 = vadd.f32 %v818_v51, %v2474_v10  ;;  %v1807_v59 = vmul.f32 -1.442695, %v826_v56 }
 0x961   :  { %v1805_v55 = vmul.f32 -1.442695, %v824_v53  ;;  %v1804_v57 = vmul.f32 -1.442695, %v823_v54  ;;  %v1806_v60 = vmul.f32 -1.442695, %v825_v58 }
 0x962   :  { %v745_v58 = vrot.slane %v2650_v27, 7 }
 0x963   :  { %857 = vrot.lane.b32.xlu0 %v810_v44, %s2247_s16  ;;  %855 = vrot.lane.b32.xlu1 %v818_v51, %s2247_s16  ;;  %2121 = vpow2.f32 %v1805_v55  ;;  %v915_v51 = vrot.slane %v2637_v3, 7 }
 0x964   :  { %2123 = vpow2.f32 %v1804_v57 }
 0x965   :  { %2125 = vpow2.f32 %v1807_v59 }
 0x966   :  { %2127 = vpow2.f32 %v1806_v60 }
 0x96d   :  { %v2122_v61 = vpop.eup %2121 }
 0x96e   :  { %v2124_v1 = vpop.eup %2123  ;;  %v840_v5 = vadd.f32 1.0, %v2122_v61 }
 0x96f   :  { %v2126_v6 = vpop.eup %2125  ;;  %v839_v16 = vadd.f32 1.0, %v2124_v1 }
 0x970   :  { %v2128_v24 = vpop.eup %2127  ;;  %v842_v11 = vadd.f32 1.0, %v2126_v6  ;;  %2129 = vrcp.f32 %v840_v5 }
 0x971   :  { %2131 = vrcp.f32 %v839_v16  ;;  %v841_v4 = vadd.f32 1.0, %v2128_v24 }
 0x972   :  { %2133 = vrcp.f32 %v842_v11 }
 0x973   :  { %2135 = vrcp.f32 %v841_v4 }
 0x97a   :  { %v2130_v12 = vpop.eup %2129 }
 0x97b   :  { %v2132_v19 = vpop.eup %2131  ;;  %v892_v46 = vsub.f32 1.0, %v2130_v12  ;;  %v923_v53 = vmul.f32 %v2130_v12, %v916_v48 }
 0x97c   :  { %v2134_v22 = vpop.eup %2133  ;;  %v891_v50 = vsub.f32 1.0, %v2132_v19  ;;  %v922_v55 = vmul.f32 %v2132_v19, %v915_v51 }
 0x97d   :  { %v2136_v21 = vpop.eup %2135  ;;  %v894_v60 = vsub.f32 1.0, %v2134_v22  ;;  %v925_v16 = vmul.f32 %v2134_v22, %v745_v58 }
 0x97e   :  { %v893_v5 = vsub.f32 1.0, %v2136_v21 }
 0x9d1   :  { %v854_v15 = vpop.permute.xlu0 %853  ;;  %v852_v17 = vpop.permute.xlu1 %851 }
 0x9d2   :  { %v864_v20 = vmul.f32 %v2130_v12, %v854_v15  ;;  %v863_v30 = vmul.f32 %v2132_v19, %v852_v17  ;;  %v924_v19 = vmul.f32 %v2136_v21, %v917_v62 }
 0x9d4   :  { %873 = vrot.lane.b32.xlu0 %v864_v20, %s2247_s16  ;;  %871 = vrot.lane.b32.xlu1 %v863_v30, %s2247_s16 }
 0x9d5   :  { %v858_v18 = vpop.permute.xlu0 %857  ;;  %v856_v28 = vpop.permute.xlu1 %855 }
 0x9d6   :  { %v866_v0 = vmul.f32 %v2134_v22, %v858_v18  ;;  %v865_v29 = vmul.f32 %v2136_v21, %v856_v28 }
 0x9d8   :  { %877 = vrot.lane.b32.xlu0 %v866_v0, %s2247_s16  ;;  %875 = vrot.lane.b32.xlu1 %v865_v29, %s2247_s16 }
 0xa46   :  { %v874_v63 = vpop.permute.xlu0 %873  ;;  %v872_v32 = vpop.permute.xlu1 %871 }
 0xa47   :  { %v884_v33 = vadd.f32 %v874_v63, %v2470_v7  ;;  %v883_v34 = vadd.f32 %v872_v32, %v2472_v9 }
 0xa49   :  { %2137 = vtanh.f32 %v884_v33 }
 0xa4a   :  { %2139 = vtanh.f32 %v883_v34  ;;  %v878_v36 = vpop.permute.xlu0 %877  ;;  %v876_v37 = vpop.permute.xlu1 %875 }
 0xa4b   :  { %v886_v38 = vadd.f32 %v878_v36, %v2478_v13  ;;  %v885_v40 = vadd.f32 %v876_v37, %v2474_v10 }
 0xa4d   :  { %2141 = vtanh.f32 %v886_v38 }
 0xa4e   :  { %2143 = vtanh.f32 %v885_v40 }
 0xa53   :  { %v2138_v42 = vpop.eup %2137 }
 0xa54   :  { %v2140_v43 = vpop.eup %2139  ;;  %901 = vrot.lane.b32.xlu0 %v2138_v42, %s2248_s2 }
 0xa55   :  { %899 = vrot.lane.b32.xlu1 %v2140_v43, %s2248_s2 }
 0xa57   :  { %v2142_v44 = vpop.eup %2141 }
 0xa58   :  { %v2144_v45 = vpop.eup %2143  ;;  %905 = vrot.lane.b32.xlu0 %v2142_v44, %s2248_s2 }
 0xa59   :  { %903 = vrot.lane.b32.xlu1 %v2144_v45, %s2248_s2  ;;  %v2753_v45 = vld [vmem:[%s3025_s4] ss:$0 sm:$0xff] }
 0xac6   :  { %v902_v49 = vpop.permute.xlu0 %901 }
 0xac7   :  { %v912_v54 = vmul.f32 %v902_v49, %v892_v46  ;;  %v900_v56 = vpop.permute.xlu1 %899 }
 0xac8   :  { %v911_v57 = vmul.f32 %v900_v56, %v891_v50 }
 0xac9   :  { %v2704_v59 = vadd.f32 %v923_v53, %v912_v54 }
 0xaca   :  { %v2706_v61 = vadd.f32 %v922_v55, %v911_v57  ;;  %v906_v1 = vpop.permute.xlu0 %905 }
 0xacb   :  { %v941_v6 = vrot.slane %v2704_v59, 2  ;;  %v951_v3 = vpack.c.bf16 %v2704_v59, %v2704_v59  ;;  %v914_v24 = vmul.f32 %v906_v1, %v894_v60  ;;  %v904_v11 = vpop.permute.xlu1 %903 }
 0xacc   :  { %v940_v4 = vrot.slane %v2706_v61, 3  ;;  %v950_v12 = vpack.c.bf16 %v2706_v61, %v2706_v61  ;;  %v913_v15 = vmul.f32 %v904_v11, %v893_v5 }
 0xacd   :  { %v959_v17 = vunpack.c.l.b16 %v951_v3  ;;  %v2717_v20 = vadd.f32 %v925_v16, %v914_v24 }
 0xace   :  { %v958_v26 = vunpack.c.l.b16 %v950_v12  ;;  %v2719_v30 = vadd.f32 %v924_v19, %v913_v15  ;;  %v942_v18 = vsel %vm341_vm2, %v941_v6, %v940_v4 }
 0xacf   :  { %v963_v28 = vrot.slane %v959_v17, 2  ;;  %v953_v63 = vpack.c.bf16 %v2717_v20, %v2717_v20 }
 0xad0   :  { %v962_v0 = vrot.slane %v958_v26, 3  ;;  %v943_v22 = vrot.slane %v2719_v30, 1  ;;  %v952_v29 = vpack.c.bf16 %v2719_v30, %v2719_v30 }
 0xad1   :  { %v961_v37 = vunpack.c.l.b16 %v953_v63 }
 0xad2   :  { %v960_v21 = vunpack.c.l.b16 %v952_v29  ;;  %v964_v32 = vsel %vm341_vm2, %v963_v28, %v962_v0  ;;  %v944_v33 = vsel %vm344_vm3, %v943_v22, %v942_v18 }
 0xad3   :  { %v2731_v34 = vsel %vm347_vm4, %v2717_v20, %v944_v33 }
 0xad4   :  { %v965_v36 = vrot.slane %v960_v21, 1 }
 0xad6   :  { %v966_v38 = vsel %vm344_vm3, %v965_v36, %v964_v32 }
 0xad7   :  { %v967_v40 = vsel %vm347_vm4, %v961_v37, %v966_v38 }
 0xad8   :  { %v968_v42 = vpack.c.b16 %v967_v40, %v967_v40 }
 0xada   :  { %969 = vrot.lane.b32.xlu1 %v968_v42, %s2248_s2 }
 0xb4c   :  { %v970_v43 = vpop.permute.xlu1 %969 }
 0xb4d   :  { %1985 = vmatmul.mubr.msk.bf16.vlgmr.msra.gmra.mrb[8].mxu1 %vm61_vm0, %v970_v43 }
 0xb4e   :  { %2005 = vmatpush3.bf16.xpose.msra.mxu1 %v2326_v14  ;;  %2016 = vmatprep.mubr.msk.bf16.mxu1 %vm2245_vm1, %v2244_v2 }
 0xb4f   :  { %2006 = vmatprep.subr.bf16.mxu1 %v2244_v2 }
 0xb56   :  { %2007 = vmatpush3.bf16.xpose.msra.mxu1 %v2345_v23 }
 0xb57   :  { %2008 = vmatprep.subr.bf16.mxu1 %v2244_v2 }
 0xb5e   :  { %2009 = vmatpush3.bf16.xpose.msra.mxu1 %v2365_v31 }
 0xb5f   :  { %2010 = vmatprep.subr.bf16.mxu1 %v2244_v2 }
 0xb66   :  { %2011 = vmatpush3.bf16.xpose.msra.mxu1 %v2384_v39 }
 0xb67   :  { %2012 = vmatprep.subr.bf16.mxu1 %v2244_v2 }
 0xb6e   :  { %2013 = vmatpush3.bf16.xpose.msra.mxu1 %v2403_v47 }
 0xb6f   :  { %2014 = vmatprep.subr.bf16.mxu1 %v2244_v2 }
 0xb76   :  { %2015 = vmatpush3.bf16.xpose.msra.mxu1 %v2416_v52 }
 0xc20   :  { %v1008_v44 = vpop.f32.mrb[8].mxu1 }
 0xc21   :  { %v1009_v46 = vadd.f32 %v2753_v45, %v1008_v44  ;;  %v1986_v48 = vpop.f32.mrb[9].mxu1 }
 0xc22   :  { %v1011_v49 = vpop.f32.mrb[10].mxu1 }
 0xc23   :  { %v1987_v50 = vpop.f32.mrb[11].mxu1  ;;  %v1016_v51 = vrot.slane %v1009_v46, 5  ;;  %v1015_v53 = vrot.slane %v1009_v46, 4  ;;  %v1018_v54 = vrot.slane %v1009_v46, 7  ;;  %v1017_v56 = vrot.slane %v1009_v46, 6 }
 0xc25   :  { %1053 = vrot.lane.b32.xlu1 %v1016_v51, %s2247_s16  ;;  %1051 = vrot.lane.b32.xlu0 %v1015_v53, %s2247_s16  ;;  %v1024_v55 = vadd.f32 %v1016_v51, %v2470_v7  ;;  %v1023_v57 = vadd.f32 %v1015_v53, %v2472_v9  ;;  %v1026_v1 = vadd.f32 %v1018_v54, %v2478_v13 }
 0xc26   :  { %v1025_v62 = vadd.f32 %v1017_v56, %v2474_v10 }
 0xc27   :  { %v1810_v60 = vmul.f32 -1.442695, %v1024_v55  ;;  %v1809_v5 = vmul.f32 -1.442695, %v1023_v57  ;;  %v1812_v6 = vmul.f32 -1.442695, %v1026_v1 }
 0xc28   :  { %v1811_v3 = vmul.f32 -1.442695, %v1025_v62  ;;  %v1116_v55 = vrot.slane %v2704_v59, 7  ;;  %v1115_v1 = vrot.slane %v2706_v61, 7  ;;  %v1117_v59 = vrot.slane %v2719_v30, 7 }
 0xc29   :  { %1057 = vrot.lane.b32.xlu1 %v1018_v54, %s2247_s16  ;;  %1055 = vrot.lane.b32.xlu0 %v1017_v56, %s2247_s16  ;;  %2145 = vpow2.f32 %v1810_v60 }
 0xc2a   :  { %2147 = vpow2.f32 %v1809_v5 }
 0xc2b   :  { %2149 = vpow2.f32 %v1812_v6 }
 0xc2c   :  { %2151 = vpow2.f32 %v1811_v3 }
 0xc33   :  { %v2146_v16 = vpop.eup %2145 }
 0xc34   :  { %v2148_v24 = vpop.eup %2147  ;;  %v1040_v11 = vadd.f32 1.0, %v2146_v16 }
 0xc35   :  { %v2150_v4 = vpop.eup %2149  ;;  %v1039_v12 = vadd.f32 1.0, %v2148_v24 }
 0xc36   :  { %v2152_v19 = vpop.eup %2151  ;;  %2153 = vrcp.f32 %v1040_v11  ;;  %v1042_v15 = vadd.f32 1.0, %v2150_v4  ;;  %v1118_v4 = vrot.slane %v2717_v20, 7 }
 0xc37   :  { %2155 = vrcp.f32 %v1039_v12  ;;  %v1041_v17 = vadd.f32 1.0, %v2152_v19 }
 0xc38   :  { %2157 = vrcp.f32 %v1042_v15 }
 0xc39   :  { %2159 = vrcp.f32 %v1041_v17 }
 0xc40   :  { %v2154_v26 = vpop.eup %2153 }
 0xc41   :  { %v2156_v18 = vpop.eup %2155  ;;  %v1092_v56 = vsub.f32 1.0, %v2154_v26  ;;  %v1124_v5 = vmul.f32 %v2154_v26, %v1116_v55 }
 0xc42   :  { %v2158_v63 = vpop.eup %2157  ;;  %v1091_v60 = vsub.f32 1.0, %v2156_v18  ;;  %v1123_v3 = vmul.f32 %v2156_v18, %v1115_v1 }
 0xc43   :  { %v2160_v21 = vpop.eup %2159  ;;  %v1094_v11 = vsub.f32 1.0, %v2158_v63 }
 0xc44   :  { %v1093_v15 = vsub.f32 1.0, %v2160_v21  ;;  %v1125_v20 = vmul.f32 %v2160_v21, %v1117_v59 }
 0xc97   :  { %v1054_v28 = vpop.permute.xlu1 %1053  ;;  %v1052_v0 = vpop.permute.xlu0 %1051 }
 0xc98   :  { %v1064_v22 = vmul.f32 %v2154_v26, %v1054_v28  ;;  %v1063_v29 = vmul.f32 %v2156_v18, %v1052_v0  ;;  %v1126_v26 = vmul.f32 %v2158_v63, %v1118_v4 }
 0xc9a   :  { %1073 = vrot.lane.b32.xlu1 %v1064_v22, %s2247_s16  ;;  %1071 = vrot.lane.b32.xlu0 %v1063_v29, %s2247_s16 }
 0xc9b   :  { %v1058_v32 = vpop.permute.xlu1 %1057  ;;  %v1056_v33 = vpop.permute.xlu0 %1055 }
 0xc9c   :  { %v1066_v36 = vmul.f32 %v2158_v63, %v1058_v32  ;;  %v1065_v37 = vmul.f32 %v2160_v21, %v1056_v33 }
 0xc9e   :  { %1077 = vrot.lane.b32.xlu1 %v1066_v36, %s2247_s16  ;;  %1075 = vrot.lane.b32.xlu0 %v1065_v37, %s2247_s16 }
 0xd0c   :  { %v1074_v38 = vpop.permute.xlu1 %1073  ;;  %v1072_v40 = vpop.permute.xlu0 %1071 }
 0xd0d   :  { %v1084_v42 = vadd.f32 %v1074_v38, %v2470_v7  ;;  %v1083_v43 = vadd.f32 %v1072_v40, %v2472_v9 }
 0xd0f   :  { %2161 = vtanh.f32 %v1084_v42 }
 0xd10   :  { %2163 = vtanh.f32 %v1083_v43  ;;  %v1078_v44 = vpop.permute.xlu1 %1077  ;;  %v1076_v46 = vpop.permute.xlu0 %1075 }
 0xd11   :  { %v1086_v48 = vadd.f32 %v1078_v44, %v2478_v13  ;;  %v1085_v49 = vadd.f32 %v1076_v46, %v2474_v10 }
 0xd13   :  { %2165 = vtanh.f32 %v1086_v48 }
 0xd14   :  { %2167 = vtanh.f32 %v1085_v49 }
 0xd19   :  { %v2162_v50 = vpop.eup %2161 }
 0xd1a   :  { %v2164_v51 = vpop.eup %2163  ;;  %1101 = vrot.lane.b32.xlu1 %v2162_v50, %s2248_s2 }
 0xd1b   :  { %1099 = vrot.lane.b32.xlu0 %v2164_v51, %s2248_s2 }
 0xd1d   :  { %v2166_v53 = vpop.eup %2165 }
 0xd1e   :  { %v2168_v54 = vpop.eup %2167  ;;  %1105 = vrot.lane.b32.xlu1 %v2166_v53, %s2248_s2 }
 0xd1f   :  { %1103 = vrot.lane.b32.xlu0 %v2168_v54, %s2248_s2 }
 0xd8c   :  { %v1102_v57 = vpop.permute.xlu1 %1101 }
 0xd8d   :  { %v1112_v62 = vmul.f32 %v1102_v57, %v1092_v56  ;;  %v1100_v6 = vpop.permute.xlu0 %1099 }
 0xd8e   :  { %v1111_v16 = vmul.f32 %v1100_v6, %v1091_v60 }
 0xd8f   :  { %v2778_v24 = vadd.f32 %v1124_v5, %v1112_v62 }
 0xd90   :  { %v2781_v12 = vadd.f32 %v1123_v3, %v1111_v16  ;;  %v1106_v19 = vpop.permute.xlu1 %1105 }
 0xd91   :  { %v1142_v17 = vrot.slane %v2778_v24, 3  ;;  %v1153_v61 = vpack.c.bf16 %v2778_v24, %v2778_v24  ;;  %v1114_v28 = vmul.f32 %v1106_v19, %v1094_v11  ;;  %v1104_v18 = vpop.permute.xlu0 %1103 }
 0xd92   :  { %v1141_v0 = vrot.slane %v2781_v12, 4  ;;  %v1152_v22 = vpack.c.bf16 %v2781_v12, %v2781_v12  ;;  %v1113_v29 = vmul.f32 %v1104_v18, %v1093_v15 }
 0xd93   :  { %v1161_v32 = vunpack.c.l.b16 %v1153_v61  ;;  %v2790_v33 = vadd.f32 %v1126_v26, %v1114_v28 }
 0xd94   :  { %v1160_v36 = vunpack.c.l.b16 %v1152_v22  ;;  %v2792_v30 = vadd.f32 %v1125_v20, %v1113_v29  ;;  %v1143_v37 = vsel %vm341_vm2, %v1142_v17, %v1141_v0 }
 0xd95   :  { %v1165_v38 = vrot.slane %v1161_v32, 3  ;;  %v1146_v63 = vrot.slane %v2790_v33, 1  ;;  %v1155_v40 = vpack.c.bf16 %v2790_v33, %v2790_v33 }
 0xd96   :  { %v1164_v42 = vrot.slane %v1160_v36, 4  ;;  %v1144_v43 = vrot.slane %v2792_v30, 2  ;;  %v1154_v21 = vpack.c.bf16 %v2792_v30, %v2792_v30 }
 0xd97   :  { %v1163_v44 = vunpack.c.l.b16 %v1155_v40 }
 0xd98   :  { %v1162_v46 = vunpack.c.l.b16 %v1154_v21  ;;  %v1166_v48 = vsel %vm341_vm2, %v1165_v38, %v1164_v42  ;;  %v1145_v49 = vsel %vm344_vm3, %v1144_v43, %v1143_v37 }
 0xd99   :  { %v1169_v50 = vrot.slane %v1163_v44, 1  ;;  %v2804_v51 = vsel %vm347_vm4, %v1146_v63, %v1145_v49 }
 0xd9a   :  { %v1167_v53 = vrot.slane %v1162_v46, 2 }
 0xd9c   :  { %v1168_v54 = vsel %vm344_vm3, %v1167_v53, %v1166_v48 }
 0xd9d   :  { %v1170_v56 = vsel %vm347_vm4, %v1169_v50, %v1168_v54 }
 0xd9e   :  { %v1171_v55 = vpack.c.b16 %v1170_v56, %v1170_v56 }
 0xda0   :  { %1172 = vrot.lane.b32.xlu0 %v1171_v55, %s2248_s2 }
 0xe12   :  { %v1173_v57 = vpop.permute.xlu0 %1172 }
 0xe13   :  { %2001 = vmatmul.mubr.msk.bf16.vlgmr.msra.gmra.mrb[12].mxu0 %vm61_vm0, %v1173_v57 }
 0xe14   :  { %2021 = vmatpush3.bf16.xpose.msra.mxu0 %v2326_v14  ;;  %2032 = vmatprep.mubr.msk.bf16.mxu0 %vm2245_vm1, %v2244_v2 }
 0xe15   :  { %2022 = vmatprep.subr.bf16.mxu0 %v2244_v2 }
 0xe1c   :  { %2023 = vmatpush3.bf16.xpose.msra.mxu0 %v2345_v23 }
 0xe1d   :  { %2024 = vmatprep.subr.bf16.mxu0 %v2244_v2 }
 0xe24   :  { %2025 = vmatpush3.bf16.xpose.msra.mxu0 %v2365_v31 }
 0xe25   :  { %2026 = vmatprep.subr.bf16.mxu0 %v2244_v2 }
 0xe2c   :  { %2027 = vmatpush3.bf16.xpose.msra.mxu0 %v2384_v39 }
 0xe2d   :  { %2028 = vmatprep.subr.bf16.mxu0 %v2244_v2 }
 0xe34   :  { %2029 = vmatpush3.bf16.xpose.msra.mxu0 %v2403_v47 }
 0xe35   :  { %2030 = vmatprep.subr.bf16.mxu0 %v2244_v2 }
 0xe3c   :  { %2031 = vmatpush3.bf16.xpose.msra.mxu0 %v2416_v52 }
 0xee6   :  { %v1211_v14 = vpop.f32.mrb[12].mxu0 }
 0xee7   :  { %v1212_v60 = vadd.f32 %v2753_v45, %v1211_v14  ;;  %v2002_v23 = vpop.f32.mrb[13].mxu0 }
 0xee8   :  { %v1214_v1 = vpop.f32.mrb[14].mxu0 }
 0xee9   :  { %v2003_v5 = vpop.f32.mrb[15].mxu0  ;;  %v1219_v62 = vrot.slane %v1212_v60, 4  ;;  %v1218_v31 = vrot.slane %v1212_v60, 3  ;;  %v1221_v39 = vrot.slane %v1212_v60, 6  ;;  %v1220_v6 = vrot.slane %v1212_v60, 5 }
 0xeea   :  { %v1319_v1 = vrot.slane %v2778_v24, 7  ;;  %v1320_v24 = vrot.slane %v2792_v30, 7 }
 0xeeb   :  { %1256 = vrot.lane.b32.xlu0 %v1219_v62, %s2247_s16  ;;  %1254 = vrot.lane.b32.xlu1 %v1218_v31, %s2247_s16  ;;  %v1227_v2 = vadd.f32 %v1219_v62, %v2470_v7  ;;  %v1226_v47 = vadd.f32 %v1218_v31, %v2472_v9  ;;  %v1229_v3 = vadd.f32 %v1221_v39, %v2478_v13  ;;  %v1318_v31 = vrot.slane %v2781_v12, 7 }
 0xeec   :  { %v1228_v11 = vadd.f32 %v1220_v6, %v2474_v10 }
 0xeed   :  { %v1815_v52 = vmul.f32 -1.442695, %v1227_v2  ;;  %v1814_v16 = vmul.f32 -1.442695, %v1226_v47  ;;  %v1817_v4 = vmul.f32 -1.442695, %v1229_v3 }
 0xeee   :  { %v1816_v19 = vmul.f32 -1.442695, %v1228_v11  ;;  %v1321_v11 = vrot.slane %v2790_v33, 7 }
 0xeef   :  { %1260 = vrot.lane.b32.xlu0 %v1221_v39, %s2247_s16  ;;  %1258 = vrot.lane.b32.xlu1 %v1220_v6, %s2247_s16  ;;  %2169 = vpow2.f32 %v1815_v52 }
 0xef0   :  { %2171 = vpow2.f32 %v1814_v16 }
 0xef1   :  { %2173 = vpow2.f32 %v1817_v4 }
 0xef2   :  { %2175 = vpow2.f32 %v1816_v19 }
 0xef9   :  { %v2170_v15 = vpop.eup %2169 }
 0xefa   :  { %v2172_v59 = vpop.eup %2171  ;;  %v1243_v17 = vadd.f32 1.0, %v2170_v15 }
 0xefb   :  { %v2174_v61 = vpop.eup %2173  ;;  %v1242_v26 = vadd.f32 1.0, %v2172_v59 }
 0xefc   :  { %v2176_v28 = vpop.eup %2175  ;;  %2177 = vrcp.f32 %v1243_v17  ;;  %v1245_v18 = vadd.f32 1.0, %v2174_v61 }
 0xefd   :  { %2179 = vrcp.f32 %v1242_v26  ;;  %v1244_v0 = vadd.f32 1.0, %v2176_v28 }
 0xefe   :  { %2181 = vrcp.f32 %v1245_v18 }
 0xeff   :  { %2183 = vrcp.f32 %v1244_v0 }
 0xf06   :  { %v2178_v22 = vpop.eup %2177 }
 0xf07   :  { %v2180_v20 = vpop.eup %2179  ;;  %v1295_v23 = vsub.f32 1.0, %v2178_v22  ;;  %v1327_v39 = vmul.f32 %v2178_v22, %v1319_v1 }
 0xf08   :  { %v2182_v38 = vpop.eup %2181  ;;  %v1294_v62 = vsub.f32 1.0, %v2180_v20  ;;  %v1326_v47 = vmul.f32 %v2180_v20, %v1318_v31 }
 0xf09   :  { %v2184_v63 = vpop.eup %2183  ;;  %v1297_v16 = vsub.f32 1.0, %v2182_v38  ;;  %v1329_v17 = vmul.f32 %v2182_v38, %v1321_v11 }
 0xf0a   :  { %v1296_v15 = vsub.f32 1.0, %v2184_v63  ;;  %v1328_v33 = vmul.f32 %v2184_v63, %v1320_v24 }
 0xf5d   :  { %v1257_v29 = vpop.permute.xlu0 %1256  ;;  %v1255_v32 = vpop.permute.xlu1 %1254 }
 0xf5e   :  { %v1267_v36 = vmul.f32 %v2178_v22, %v1257_v29  ;;  %v1266_v37 = vmul.f32 %v2180_v20, %v1255_v32 }
 0xf60   :  { %1276 = vrot.lane.b32.xlu0 %v1267_v36, %s2247_s16  ;;  %1274 = vrot.lane.b32.xlu1 %v1266_v37, %s2247_s16 }
 0xf61   :  { %v1261_v40 = vpop.permute.xlu0 %1260  ;;  %v1259_v42 = vpop.permute.xlu1 %1258 }
 0xf62   :  { %v1269_v43 = vmul.f32 %v2182_v38, %v1261_v40  ;;  %v1268_v21 = vmul.f32 %v2184_v63, %v1259_v42 }
 0xf64   :  { %1280 = vrot.lane.b32.xlu0 %v1269_v43, %s2247_s16  ;;  %1278 = vrot.lane.b32.xlu1 %v1268_v21, %s2247_s16 }
 0xfd2   :  { %v1277_v44 = vpop.permute.xlu0 %1276  ;;  %v1275_v46 = vpop.permute.xlu1 %1274 }
 0xfd3   :  { %v1287_v48 = vadd.f32 %v1277_v44, %v2470_v7  ;;  %v1286_v49 = vadd.f32 %v1275_v46, %v2472_v9 }
 0xfd5   :  { %2185 = vtanh.f32 %v1287_v48 }
 0xfd6   :  { %2187 = vtanh.f32 %v1286_v49  ;;  %v1281_v50 = vpop.permute.xlu0 %1280  ;;  %v1279_v53 = vpop.permute.xlu1 %1278 }
 0xfd7   :  { %v1289_v54 = vadd.f32 %v1281_v50, %v2478_v13  ;;  %v1288_v56 = vadd.f32 %v1279_v53, %v2474_v10 }
 0xfd9   :  { %2189 = vtanh.f32 %v1289_v54 }
 0xfda   :  { %2191 = vtanh.f32 %v1288_v56 }
 0xfdf   :  { %v2186_v55 = vpop.eup %2185 }
 0xfe0   :  { %v2188_v57 = vpop.eup %2187  ;;  %1304 = vrot.lane.b32.xlu0 %v2186_v55, %s2248_s2 }
 0xfe1   :  { %1302 = vrot.lane.b32.xlu1 %v2188_v57, %s2248_s2 }
 0xfe3   :  { %v2190_v14 = vpop.eup %2189 }
 0xfe4   :  { %v2192_v60 = vpop.eup %2191  ;;  %1308 = vrot.lane.b32.xlu0 %v2190_v14, %s2248_s2 }
 0xfe5   :  { %1306 = vrot.lane.b32.xlu1 %v2192_v60, %s2248_s2 }
0x1052   :  { %v1305_v5 = vpop.permute.xlu0 %1304 }
0x1053   :  { %v1315_v6 = vmul.f32 %v1305_v5, %v1295_v23  ;;  %v1303_v2 = vpop.permute.xlu1 %1302 }
0x1054   :  { %v1314_v52 = vmul.f32 %v1303_v2, %v1294_v62 }
0x1055   :  { %v2846_v3 = vadd.f32 %v1327_v39, %v1315_v6 }
0x1056   :  { %v2849_v4 = vadd.f32 %v1326_v47, %v1314_v52  ;;  %v1309_v19 = vpop.permute.xlu0 %1308 }
0x1057   :  { %v1345_v59 = vrot.slane %v2846_v3, 4  ;;  %v1356_v12 = vpack.c.bf16 %v2846_v3, %v2846_v3  ;;  %v1317_v61 = vmul.f32 %v1309_v19, %v1297_v16  ;;  %v1307_v26 = vpop.permute.xlu1 %1306 }
0x1058   :  { %v1344_v28 = vrot.slane %v2849_v4, 5  ;;  %v1355_v18 = vpack.c.bf16 %v2849_v4, %v2849_v4  ;;  %v1316_v0 = vmul.f32 %v1307_v26, %v1296_v15 }
0x1059   :  { %v1364_v22 = vunpack.c.l.b16 %v1356_v12  ;;  %v2858_v20 = vadd.f32 %v1329_v17, %v1317_v61 }
0x105a   :  { %v1363_v29 = vunpack.c.l.b16 %v1355_v18  ;;  %v2860_v30 = vadd.f32 %v1328_v33, %v1316_v0  ;;  %v1346_v32 = vsel %vm341_vm2, %v1345_v59, %v1344_v28 }
0x105b   :  { %v1368_v36 = vrot.slane %v1364_v22, 4  ;;  %v1349_v37 = vrot.slane %v2858_v20, 2  ;;  %v1358_v38 = vpack.c.bf16 %v2858_v20, %v2858_v20 }
0x105c   :  { %v1367_v40 = vrot.slane %v1363_v29, 5  ;;  %v1347_v42 = vrot.slane %v2860_v30, 3  ;;  %v1357_v63 = vpack.c.bf16 %v2860_v30, %v2860_v30 }
0x105d   :  { %v1366_v43 = vunpack.c.l.b16 %v1358_v38 }
0x105e   :  { %v1365_v21 = vunpack.c.l.b16 %v1357_v63  ;;  %v1369_v44 = vsel %vm341_vm2, %v1368_v36, %v1367_v40  ;;  %v1348_v46 = vsel %vm344_vm3, %v1347_v42, %v1346_v32 }
0x105f   :  { %v1372_v48 = vrot.slane %v1366_v43, 2  ;;  %v2872_v49 = vsel %vm347_vm4, %v1349_v37, %v1348_v46 }
0x1060   :  { %v1370_v50 = vrot.slane %v1365_v21, 3 }
0x1062   :  { %v1371_v53 = vsel %vm344_vm3, %v1370_v50, %v1369_v44 }
0x1063   :  { %v1373_v54 = vsel %vm347_vm4, %v1372_v48, %v1371_v53 }
0x1064   :  { %v1374_v56 = vpack.c.b16 %v1373_v54, %v1373_v54 }
0x1066   :  { %1375 = vrot.lane.b32.xlu1 %v1374_v56, %s2248_s2 }
0x10d8   :  { %v1376_v55 = vpop.permute.xlu1 %1375 }
0x10d9   :  { %2017 = vmatmul.mubr.msk.bf16.vlgmr.msra.gmra.mrb[12].mxu1 %vm61_vm0, %v1376_v55 }
0x11ac   :  { %v1414_v57 = vpop.f32.mrb[12].mxu1 }
0x11ad   :  { %v1415_v14 = vadd.f32 %v2753_v45, %v1414_v57  ;;  %v2018_v60 = vpop.f32.mrb[13].mxu1 }
0x11ae   :  { %v1417_v23 = vpop.f32.mrb[14].mxu1 }
0x11af   :  { %v2019_v1 = vpop.f32.mrb[15].mxu1  ;;  %v1422_v5 = vrot.slane %v1415_v14, 3  ;;  %v1421_v62 = vrot.slane %v1415_v14, 2  ;;  %v1424_v31 = vrot.slane %v1415_v14, 5  ;;  %v1423_v39 = vrot.slane %v1415_v14, 4 }
0x11b0   :  { %v1522_v1 = vrot.slane %v2846_v3, 7  ;;  %v1523_v3 = vrot.slane %v2860_v30, 7 }
0x11b1   :  { %1459 = vrot.lane.b32.xlu1 %v1422_v5, %s2247_s16  ;;  %1457 = vrot.lane.b32.xlu0 %v1421_v62, %s2247_s16  ;;  %v1430_v6 = vadd.f32 %v1422_v5, %v2470_v7  ;;  %v1429_v2 = vadd.f32 %v1421_v62, %v2472_v9  ;;  %v1432_v52 = vadd.f32 %v1424_v31, %v2478_v13 }
0x11b2   :  { %v1431_v11 = vadd.f32 %v1423_v39, %v2474_v10 }
0x11b3   :  { %v1820_v47 = vmul.f32 -1.442695, %v1430_v6  ;;  %v1819_v16 = vmul.f32 -1.442695, %v1429_v2  ;;  %v1822_v19 = vmul.f32 -1.442695, %v1432_v52 }
0x11b4   :  { %v1821_v15 = vmul.f32 -1.442695, %v1431_v11 }
0x11b5   :  { %1463 = vrot.lane.b32.xlu1 %v1424_v31, %s2247_s16  ;;  %1461 = vrot.lane.b32.xlu0 %v1423_v39, %s2247_s16  ;;  %2193 = vpow2.f32 %v1820_v47  ;;  %v1521_v31 = vrot.slane %v2849_v4, 7 }
0x11b6   :  { %2195 = vpow2.f32 %v1819_v16 }
0x11b7   :  { %2197 = vpow2.f32 %v1822_v19  ;;  %v1524_v19 = vrot.slane %v2858_v20, 7 }
0x11b8   :  { %2199 = vpow2.f32 %v1821_v15 }
0x11bf   :  { %v2194_v24 = vpop.eup %2193 }
0x11c0   :  { %v2196_v59 = vpop.eup %2195  ;;  %v1446_v12 = vadd.f32 1.0, %v2194_v24 }
0x11c1   :  { %v2198_v17 = vpop.eup %2197  ;;  %v1445_v61 = vadd.f32 1.0, %v2196_v59 }
0x11c2   :  { %v2200_v26 = vpop.eup %2199  ;;  %2201 = vrcp.f32 %v1446_v12  ;;  %v1448_v28 = vadd.f32 1.0, %v2198_v17 }
0x11c3   :  { %2203 = vrcp.f32 %v1445_v61  ;;  %v1447_v18 = vadd.f32 1.0, %v2200_v26 }
0x11c4   :  { %2205 = vrcp.f32 %v1448_v28 }
0x11c5   :  { %2207 = vrcp.f32 %v1447_v18 }
0x11cc   :  { %v2202_v33 = vpop.eup %2201 }
0x11cd   :  { %v2204_v0 = vpop.eup %2203  ;;  %v1498_v23 = vsub.f32 1.0, %v2202_v33  ;;  %v1530_v39 = vmul.f32 %v2202_v33, %v1522_v1 }
0x11ce   :  { %v2206_v37 = vpop.eup %2205  ;;  %v1497_v62 = vsub.f32 1.0, %v2204_v0  ;;  %v1529_v47 = vmul.f32 %v2204_v0, %v1521_v31 }
0x11cf   :  { %v2208_v38 = vpop.eup %2207  ;;  %v1500_v11 = vsub.f32 1.0, %v2206_v37  ;;  %v1532_v17 = vmul.f32 %v2206_v37, %v1524_v19 }
0x11d0   :  { %v1499_v59 = vsub.f32 1.0, %v2208_v38  ;;  %v1531_v20 = vmul.f32 %v2208_v38, %v1523_v3 }
0x1223   :  { %v1460_v22 = vpop.permute.xlu1 %1459  ;;  %v1458_v29 = vpop.permute.xlu0 %1457 }
0x1224   :  { %v1470_v32 = vmul.f32 %v2202_v33, %v1460_v22  ;;  %v1469_v36 = vmul.f32 %v2204_v0, %v1458_v29 }
0x1226   :  { %1479 = vrot.lane.b32.xlu1 %v1470_v32, %s2247_s16  ;;  %1477 = vrot.lane.b32.xlu0 %v1469_v36, %s2247_s16 }
0x1227   :  { %v1464_v40 = vpop.permute.xlu1 %1463  ;;  %v1462_v42 = vpop.permute.xlu0 %1461 }
0x1228   :  { %v1472_v63 = vmul.f32 %v2206_v37, %v1464_v40  ;;  %v1471_v43 = vmul.f32 %v2208_v38, %v1462_v42 }
0x122a   :  { %1483 = vrot.lane.b32.xlu1 %v1472_v63, %s2247_s16  ;;  %1481 = vrot.lane.b32.xlu0 %v1471_v43, %s2247_s16 }
0x1298   :  { %v1480_v21 = vpop.permute.xlu1 %1479  ;;  %v1478_v44 = vpop.permute.xlu0 %1477 }
0x1299   :  { %v1490_v46 = vadd.f32 %v1480_v21, %v2470_v7  ;;  %v1489_v48 = vadd.f32 %v1478_v44, %v2472_v9 }
0x129b   :  { %2209 = vtanh.f32 %v1490_v46 }
0x129c   :  { %2211 = vtanh.f32 %v1489_v48  ;;  %v1484_v50 = vpop.permute.xlu1 %1483  ;;  %v1482_v53 = vpop.permute.xlu0 %1481 }
0x129d   :  { %v1492_v54 = vadd.f32 %v1484_v50, %v2478_v13  ;;  %v1491_v56 = vadd.f32 %v1482_v53, %v2474_v10 }
0x129f   :  { %2213 = vtanh.f32 %v1492_v54 }
0x12a0   :  { %2215 = vtanh.f32 %v1491_v56 }
0x12a5   :  { %v2210_v55 = vpop.eup %2209 }
0x12a6   :  { %v2212_v57 = vpop.eup %2211  ;;  %1507 = vrot.lane.b32.xlu1 %v2210_v55, %s2248_s2 }
0x12a7   :  { %1505 = vrot.lane.b32.xlu0 %v2212_v57, %s2248_s2 }
0x12a9   :  { %v2214_v14 = vpop.eup %2213 }
0x12aa   :  { %v2216_v60 = vpop.eup %2215  ;;  %1511 = vrot.lane.b32.xlu1 %v2214_v14, %s2248_s2 }
0x12ab   :  { %1509 = vrot.lane.b32.xlu0 %v2216_v60, %s2248_s2 }
0x1318   :  { %v1508_v5 = vpop.permute.xlu1 %1507 }
0x1319   :  { %v1518_v6 = vmul.f32 %v1508_v5, %v1498_v23  ;;  %v1506_v2 = vpop.permute.xlu0 %1505 }
0x131a   :  { %v1517_v52 = vmul.f32 %v1506_v2, %v1497_v62 }
0x131b   :  { %v2901_v16 = vadd.f32 %v1530_v39, %v1518_v6 }
0x131c   :  { %v2904_v15 = vadd.f32 %v1529_v47, %v1517_v52  ;;  %v1512_v24 = vpop.permute.xlu1 %1511 }
0x131d   :  { %v1548_v12 = vrot.slane %v2901_v16, 5  ;;  %v1559_v4 = vpack.c.bf16 %v2901_v16, %v2901_v16  ;;  %v1520_v61 = vmul.f32 %v1512_v24, %v1500_v11  ;;  %v1510_v26 = vpop.permute.xlu0 %1509 }
0x131e   :  { %v1547_v28 = vrot.slane %v2904_v15, 6  ;;  %v1558_v18 = vpack.c.bf16 %v2904_v15, %v2904_v15  ;;  %v1519_v33 = vmul.f32 %v1510_v26, %v1499_v59 }
0x131f   :  { %v1567_v0 = vunpack.c.l.b16 %v1559_v4  ;;  %v2913_v22 = vadd.f32 %v1532_v17, %v1520_v61 }
0x1320   :  { %v1566_v29 = vunpack.c.l.b16 %v1558_v18  ;;  %v2915_v30 = vadd.f32 %v1531_v20, %v1519_v33  ;;  %v1549_v32 = vsel %vm341_vm2, %v1548_v12, %v1547_v28 }
0x1321   :  { %v1571_v36 = vrot.slane %v1567_v0, 5  ;;  %v1552_v37 = vrot.slane %v2913_v22, 3  ;;  %v1561_v40 = vpack.c.bf16 %v2913_v22, %v2913_v22 }
0x1322   :  { %v1570_v42 = vrot.slane %v1566_v29, 6  ;;  %v1550_v63 = vrot.slane %v2915_v30, 4  ;;  %v1560_v38 = vpack.c.bf16 %v2915_v30, %v2915_v30 }
0x1323   :  { %v1569_v43 = vunpack.c.l.b16 %v1561_v40 }
0x1324   :  { %v1568_v21 = vunpack.c.l.b16 %v1560_v38  ;;  %v1572_v44 = vsel %vm341_vm2, %v1571_v36, %v1570_v42  ;;  %v1551_v46 = vsel %vm344_vm3, %v1550_v63, %v1549_v32 }
0x1325   :  { %v1575_v48 = vrot.slane %v1569_v43, 3  ;;  %v2927_v50 = vsel %vm347_vm4, %v1552_v37, %v1551_v46 }
0x1326   :  { %v1573_v53 = vrot.slane %v1568_v21, 4 }
0x1328   :  { %v1574_v54 = vsel %vm344_vm3, %v1573_v53, %v1572_v44 }
0x1329   :  { %v1576_v56 = vsel %vm347_vm4, %v1575_v48, %v1574_v54 }
0x132a   :  { %v1577_v55 = vpack.c.b16 %v1576_v56, %v1576_v56 }
0x132c   :  { %1578 = vrot.lane.b32.xlu0 %v1577_v55, %s2248_s2 }
0x139e   :  { %v1579_v57 = vpop.permute.xlu0 %1578 }
0x139f   :  { %2033 = vmatmul.mubr.msk.bf16.vlgmr.msra.gmra.mrb[16].mxu0 %vm61_vm0, %v1579_v57 }
0x1472   :  { %v1617_v14 = vpop.f32.mrb[16].mxu0 }
0x1473   :  { %v1618_v60 = vadd.f32 %v2753_v45, %v1617_v14  ;;  %v2034_v23 = vpop.f32.mrb[17].mxu0  ;;  %v154_v14 = vld [vmem:[%s3027_s5] sm:$0xf] }
0x1474   :  { %v1620_v1 = vpop.f32.mrb[18].mxu0  ;;  %vm532_vm5 = vcmp.eq.s32.totalorder %v154_v14, 2  ;;  %vm330_vm6 = vcmp.eq.s32.totalorder %v154_v14, 1  ;;  %vm1131_vm7 = vcmp.eq.s32.totalorder %v154_v14, 5  ;;  %vm731_vm8 = vcmp.eq.s32.totalorder %v154_v14, 3 }
0x1475   :  { %v2035_v5 = vpop.f32.mrb[19].mxu0  ;;  %v1625_v62 = vrot.slane %v1618_v60, 2  ;;  %v1624_v31 = vrot.slane %v1618_v60, 1  ;;  %v1627_v39 = vrot.slane %v1618_v60, 4  ;;  %v1626_v6 = vrot.slane %v1618_v60, 3 }
0x1476   :  { %v1132_v23 = vsel %vm1131_vm7, 1, %v2246_v8  ;;  %v732_v1 = vsel %vm731_vm8, 1, %v2246_v8  ;;  %vm1537_vm9 = vcmp.eq.s32.totalorder %v154_v14, 7  ;;  %vm930_vm10 = vcmp.eq.s32.totalorder %v154_v14, 4 }
0x1477   :  { %1662 = vrot.lane.b32.xlu0 %v1625_v62, %s2247_s16  ;;  %1660 = vrot.lane.b32.xlu1 %v1624_v31, %s2247_s16  ;;  %v1633_v2 = vadd.f32 %v1625_v62, %v2470_v7  ;;  %v1632_v47 = vadd.f32 %v1624_v31, %v2472_v9  ;;  %v1635_v52 = vadd.f32 %v1627_v39, %v2478_v13  ;;  %v1538_v5 = vsel %vm1537_vm9, 1, %v2246_v8 }
0x1478   :  { %v1634_v19 = vadd.f32 %v1626_v6, %v2474_v10  ;;  %v931_v62 = vsel %vm930_vm10, 1, %v2246_v8  ;;  %vm1334_vm11 = vcmp.eq.s32.totalorder %v154_v14, 6  ;;  %vm1740_vm12 = vcmp.eq.s32.totalorder %v154_v14, 8 }
0x1479   :  { %v1825_v45 = vmul.f32 -1.442695, %v1633_v2  ;;  %v1824_v11 = vmul.f32 -1.442695, %v1632_v47  ;;  %v1827_v24 = vmul.f32 -1.442695, %v1635_v52 }
0x147a   :  { %v1826_v59 = vmul.f32 -1.442695, %v1634_v19  ;;  %v1335_v31 = vsel %vm1334_vm11, 1, %v2246_v8  ;;  %v1726_v19 = vrot.slane %v2915_v30, 7 }
0x147b   :  { %1666 = vrot.lane.b32.xlu0 %v1627_v39, %s2247_s16  ;;  %1664 = vrot.lane.b32.xlu1 %v1626_v6, %s2247_s16  ;;  %2217 = vpow2.f32 %v1825_v45  ;;  %v1741_v39 = vsel %vm1740_vm12, 1, %v2246_v8  ;;  %v746_v6 = vsel %vm347_vm4, %v745_v58, %v2657_v25  ;;  %v1724_v58 = vrot.slane %v2904_v15, 7 }
0x147c   :  { %2219 = vpow2.f32 %v1824_v11 }
0x147d   :  { %2221 = vpow2.f32 %v1827_v24 }
0x147e   :  { %2223 = vpow2.f32 %v1826_v59 }
0x1485   :  { %v2218_v3 = vpop.eup %2217 }
0x1486   :  { %v2220_v12 = vpop.eup %2219  ;;  %v1649_v4 = vadd.f32 1.0, %v2218_v3 }
0x1487   :  { %v2222_v17 = vpop.eup %2221  ;;  %v1648_v61 = vadd.f32 1.0, %v2220_v12 }
0x1488   :  { %v2224_v26 = vpop.eup %2223  ;;  %2225 = vrcp.f32 %v1649_v4  ;;  %v1651_v28 = vadd.f32 1.0, %v2222_v17 }
0x1489   :  { %2227 = vrcp.f32 %v1648_v61  ;;  %v1650_v18 = vadd.f32 1.0, %v2224_v26 }
0x148a   :  { %2229 = vrcp.f32 %v1651_v28 }
0x148b   :  { %2231 = vrcp.f32 %v1650_v18 }
0x1492   :  { %v2942_v20 = vpop.eup %2225 }
0x1493   :  { %v2944_v33 = vpop.eup %2227 }
0x1494   :  { %v2948_v37 = vpop.eup %2229  ;;  %v1700_v25 = vsub.f32 1.0, %v2944_v33 }
0x1495   :  { %v2952_v40 = vpop.eup %2231  ;;  %v1703_v45 = vsub.f32 1.0, %v2948_v37 }
0x1496   :  { %v1734_v4 = vmul.f32 %v2952_v40, %v1726_v19 }
0x14e9   :  { %v1663_v0 = vpop.permute.xlu0 %1662  ;;  %v1661_v29 = vpop.permute.xlu1 %1660 }
0x14ea   :  { %v1673_v32 = vmul.f32 %v2942_v20, %v1663_v0  ;;  %v1672_v36 = vmul.f32 %v2944_v33, %v1661_v29 }
0x14ec   :  { %1682 = vrot.lane.b32.xlu0 %v1673_v32, %s2247_s16  ;;  %1680 = vrot.lane.b32.xlu1 %v1672_v36, %s2247_s16 }
0x14ed   :  { %v1667_v42 = vpop.permute.xlu0 %1666  ;;  %v1665_v63 = vpop.permute.xlu1 %1664 }
0x14ee   :  { %v1675_v38 = vmul.f32 %v2948_v37, %v1667_v42  ;;  %v1674_v43 = vmul.f32 %v2952_v40, %v1665_v63 }
0x14f0   :  { %1686 = vrot.lane.b32.xlu0 %v1675_v38, %s2247_s16  ;;  %1684 = vrot.lane.b32.xlu1 %v1674_v43, %s2247_s16 }
0x155e   :  { %v1683_v21 = vpop.permute.xlu0 %1682  ;;  %v1681_v44 = vpop.permute.xlu1 %1680 }
0x155f   :  { %v1693_v46 = vadd.f32 %v1683_v21, %v2470_v7  ;;  %v1692_v48 = vadd.f32 %v1681_v44, %v2472_v9 }
0x1561   :  { %2233 = vtanh.f32 %v1693_v46 }
0x1562   :  { %2235 = vtanh.f32 %v1692_v48  ;;  %v1687_v53 = vpop.permute.xlu0 %1686  ;;  %v1685_v54 = vpop.permute.xlu1 %1684 }
0x1563   :  { %v1695_v56 = vadd.f32 %v1687_v53, %v2478_v13  ;;  %v1694_v55 = vadd.f32 %v1685_v54, %v2474_v10  ;;  %v533_v10 = vsel %vm532_vm5, 1, %v2246_v8  ;;  %v331_v13 = vsel %vm330_vm6, 1, %v2246_v8 }
0x1564   :  { %v1701_v8 = vsub.f32 1.0, %v2942_v20 }
0x1565   :  { %2237 = vtanh.f32 %v1695_v56 }
0x1566   :  { %2239 = vtanh.f32 %v1694_v55 }
0x156b   :  { %v2234_v57 = vpop.eup %2233 }
0x156c   :  { %v2236_v60 = vpop.eup %2235  ;;  %1710 = vrot.lane.b32.xlu0 %v2234_v57, %s2248_s2 }
0x156d   :  { %1708 = vrot.lane.b32.xlu1 %v2236_v60, %s2248_s2 }
0x156f   :  { %v2238_v7 = vpop.eup %2237 }
0x1570   :  { %v2240_v9 = vpop.eup %2239  ;;  %1714 = vrot.lane.b32.xlu0 %v2238_v7, %s2248_s2 }
0x1571   :  { %1712 = vrot.lane.b32.xlu1 %v2240_v9, %s2248_s2 }
0x1574   :  { %535 = vperm.xlu0 %2048, %v533_v10  }
0x1575   :  { %333 = vperm.xlu1 %2047, %v331_v13  }
0x1578   :  { %1134 = vperm.xlu0 %2048, %v1132_v23  }
0x1579   :  { %734 = vperm.xlu1 %2047, %v732_v1  }
0x157c   :  { %1540 = vperm.xlu0 %2048, %v1538_v5  }
0x157d   :  { %933 = vperm.xlu1 %2047, %v931_v62  }
0x1580   :  { %349 = vrot.lane.b32.xlu0 %v2520_v41, %s2248_s2  ;;  %v1725_v41 = vrot.slane %v2901_v16, 7  ;;  %v1702_v16 = vsub.f32 1.0, %v2952_v40 }
0x1581   :  { %1337 = vperm.xlu1 %2047, %v1335_v31  }
0x1584   :  { %747 = vrot.lane.b32.xlu0 %v746_v6, %s2248_s2 }
0x1585   :  { %1743 = vperm.xlu1 %2047, %v1741_v39  }
0x1588   :  { %1148 = vrot.lane.b32.xlu0 %v2804_v51, %s2248_s2 }
0x1589   :  { %548 = vrot.lane.b32.xlu1 %v2591_v35, %s2248_s2  ;;  %v1733_v35 = vmul.f32 %v2942_v20, %v1725_v41  ;;  %v1761_v41 = vld [vmem:[%s3028_s6] sm:$0xf] }
0x158c   :  { %1554 = vrot.lane.b32.xlu0 %v2927_v50, %s2248_s2  ;;  %v1732_v50 = vmul.f32 %v2944_v33, %v1724_v58 }
0x158d   :  { %946 = vrot.lane.b32.xlu1 %v2731_v34, %s2248_s2 }
0x1591   :  { %1351 = vrot.lane.b32.xlu1 %v2872_v49, %s2248_s2  ;;  %v1727_v49 = vrot.slane %v2913_v22, 7 }
0x1593   :  { %v1735_v15 = vmul.f32 %v2948_v37, %v1727_v49 }
0x15de   :  { %v1711_v27 = vpop.permute.xlu0 %1710 }
0x15df   :  { %v1721_v51 = vmul.f32 %v1711_v27, %v1701_v8  ;;  %v1709_v2 = vpop.permute.xlu1 %1708 }
0x15e0   :  { %v1720_v47 = vmul.f32 %v1709_v2, %v1700_v25  ;;  %v1762_v25 = vld [vmem:[%s3029_s7] sm:$0xf] }
0x15e1   :  { %v1737_v34 = vadd.f32 %v1733_v35, %v1721_v51 }
0x15e2   :  { %v1736_v52 = vadd.f32 %v1732_v50, %v1720_v47  ;;  %v1715_v11 = vpop.permute.xlu0 %1714 }
0x15e3   :  { %v1751_v24 = vrot.slane %v1737_v34, 6  ;;  %v1723_v59 = vmul.f32 %v1715_v11, %v1703_v45  ;;  %v1713_v3 = vpop.permute.xlu1 %1712 }
0x15e4   :  { %v1750_v12 = vrot.slane %v1736_v52, 7  ;;  %v1722_v17 = vmul.f32 %v1713_v3, %v1702_v16 }
0x15e5   :  { %v1739_v61 = vadd.f32 %v1735_v15, %v1723_v59 }
0x15e6   :  { %v1752_v26 = vsel %vm341_vm2, %v1751_v24, %v1750_v12  ;;  %v1738_v28 = vadd.f32 %v1734_v4, %v1722_v17 }
0x15e7   :  { %v1755_v22 = vrot.slane %v1739_v61, 4 }
0x15e8   :  { %v1753_v18 = vrot.slane %v1738_v28, 5 }
0x15ea   :  { %v1754_v20 = vsel %vm344_vm3, %v1753_v18, %v1752_v26 }
0x15eb   :  { %v1756_v33 = vsel %vm347_vm4, %v1755_v22, %v1754_v20  ;;  %vm1763_vm4 = vcmask 257024  }
0x15ec   :  { %1757 = vrot.lane.b32.xlu1 %v1756_v33, %s2248_s2 }
0x15f3   :  { %v536_v29 = vpop.permute.xlu0 %535 }
0x15f4   :  { %v334_v30 = vpop.permute.xlu1 %333  ;;  %vm537_vm14 = vcmp.eq.s32.totalorder %v536_v29, 1 }
0x15f5   :  { %vm335_vm13 = vcmp.eq.s32.totalorder %v334_v30, 1 }
0x15f7   :  { %v1135_v36 = vpop.permute.xlu0 %1134 }
0x15f8   :  { %v735_v0 = vpop.permute.xlu1 %734  ;;  %vm1136_vm1 = vcmp.eq.s32.totalorder %v1135_v36, 1 }
0x15f9   :  { %vm736_vm15 = vcmp.eq.s32.totalorder %v735_v0, 1 }
0x15fb   :  { %v1541_v40 = vpop.permute.xlu0 %1540 }
0x15fc   :  { %v934_v32 = vpop.permute.xlu1 %933  ;;  %vm1542_vm3 = vcmp.eq.s32.totalorder %v1541_v40, 1 }
0x15fd   :  { %vm935_vm0 = vcmp.eq.s32.totalorder %v934_v32, 1 }
0x15ff   :  { %v350_v63 = vpop.permute.xlu0 %349 }
0x1600   :  { %v1338_v37 = vpop.permute.xlu1 %1337  ;;  %v352_v21 = vsel %vm335_vm13, %v350_v63, 0.0 }
0x1601   :  { %vm1339_vm2 = vcmp.eq.s32.totalorder %v1338_v37, 1 }
0x1603   :  { %v748_v43 = vpop.permute.xlu0 %747 }
0x1604   :  { %v1744_v42 = vpop.permute.xlu1 %1743 }
0x1605   :  { %vm1745_vm5 = vcmp.eq.s32.totalorder %v1744_v42, 1 }
0x1607   :  { %v1149_v53 = vpop.permute.xlu0 %1148 }
0x1608   :  { %v549_v38 = vpop.permute.xlu1 %548 }
0x1609   :  { %v551_v46 = vsel %vm537_vm14, %v549_v38, %v352_v21 }
0x160a   :  { %v750_v48 = vsel %vm736_vm15, %v748_v43, %v551_v46 }
0x160b   :  { %v1555_v14 = vpop.permute.xlu0 %1554 }
0x160c   :  { %v947_v44 = vpop.permute.xlu1 %946 }
0x160d   :  { %v949_v54 = vsel %vm935_vm0, %v947_v44, %v750_v48 }
0x160e   :  { %v1151_v55 = vsel %vm1136_vm1, %v1149_v53, %v949_v54 }
0x1610   :  { %v1352_v56 = vpop.permute.xlu1 %1351 }
0x1611   :  { %v1354_v57 = vsel %vm1339_vm2, %v1352_v56, %v1151_v55 }
0x1612   :  { %v1557_v7 = vsel %vm1542_vm3, %v1555_v14, %v1354_v57 }
0x165e   :  { %v1758_v60 = vpop.permute.xlu1 %1757 }
0x165f   :  { %v1760_v9 = vsel %vm1745_vm5, %v1758_v60, %v1557_v7 }
0x1660   :  { %v1764_v10 = vsel %vm1763_vm4, %v1760_v9, 0.0 }
0x1661   :  { %1765 = vadd.xlane.f32.xlu0 %v1764_v10 }
0x16ee   :  { %v1766_v13 = vpop.xlane.xlu0 %1765 }
0x16ef   :  { %v1768_v23 = vmul.f32 0.03125, %v1766_v13 }
0x16f1   :  { %v1769_v1 = vsub.f32 %v1760_v9, %v1768_v23 }
0x16f3   :  { %v1770_v5 = vmul.f32 %v1769_v1, %v1769_v1 }
0x16f5   :  { %v1771_v62 = vsel %vm1763_vm4, %v1770_v5, 0.0 }
0x16f6   :  { %1772 = vadd.xlane.f32.xlu1 %v1771_v62 }
0x1783   :  { %v1773_v31 = vpop.xlane.xlu1 %1772 }
0x1784   :  { %v1774_v39 = vmul.f32 0.03125, %v1773_v31 }
0x1786   :  { %v1775_v6 = vadd.f32 1e-05, %v1774_v39 }
0x1788   :  { %2241 = vrsqrt.f32 %v1775_v6 }
0x1792   :  { %v2242_v8 = vpop.eup %2241 }
0x1793   :  { %v1777_v27 = vmul.f32 %v2242_v8, %v1769_v1 }
0x1795   :  { %v1778_v58 = vmul.f32 %v1777_v27, %v1761_v41 }
0x1797   :  { %v1779_v35 = vadd.f32 %v1778_v58, %v1762_v25 }
0x1799   :  { %1780 = vst.msk [vmem:[%s3030_s8] sm:$0xf] %vm1763_vm4, %v1779_v35 }

// kernel: lightgcn_lc_forward.9
= control target key start
LH: loop header
LB: loop body
LE: loop exit
PB: predicated region body
PF: predicated region fallthrough
CT: control target
= control target key end

     0   :  { %s2713_s13 = smov 0   ;;  %s3805_s0 = inlined_call_operand.vmem [shape: f32[512,32], index: 0, kind: input, shape index: {}]   ;;  %s3806_s1 = inlined_call_operand.vmem [shape: f32[32,32], index: 1, kind: input, shape index: {}]   ;;  %s3807_s2 = inlined_call_operand.vmem [shape: f32[1,32], index: 2, kind: input, shape index: {}]   ;;  %s3808_s3 = inlined_call_operand.vmem [shape: f32[8,32], index: 3, kind: input, shape index: {}]   ;;  %s3809_s4 = inlined_call_operand.vmem [shape: f32[1,8], index: 4, kind: input, shape index: {}]   ;;  %s3810_s5 = inlined_call_operand.vmem [shape: f32[8,32], index: 5, kind: input, shape index: {}]   ;;  %s3811_s6 = inlined_call_operand.vmem [shape: f32[32,32], index: 6, kind: input, shape index: {}]   ;;  %s3812_s7 = inlined_call_operand.vmem [shape: f32[1,32], index: 7, kind: input, shape index: {}]   ;;  %s3813_s8 = inlined_call_operand.vmem [shape: f32[1,32], index: 8, kind: input, shape index: {}]   ;;  %s3814_s9 = inlined_call_operand.vmem [shape: f32[1,32], index: 9, kind: input, shape index: {}]   ;;  %s3815_s10 = inlined_call_operand.vmem [shape: f32[512,32], index: 10, kind: output, shape index: {}]  }
   0x1 LB: > { %s2204_s14 = sadd.s32 4294967295, %s2654_s13   ;;  %p2208_p0 = scmp.ge.s32.totalorder %s2654_s13, 1  ;;  %s2654_s13 = sphi %s2713_s13, %s20_s13  }
   0x2   : > { %p313_p1 = scmp.lt.s32.totalorder %s2654_s13, 3 }
   0x4   : > { %p314_p2 = pnand %p2208_p0, %p313_p1 }
   0x5   : > { %v365_v0 = vld [vmem:[%s3811_s6] sm:$0xff] (!%p314_p2)  ;;  %v366_v1 = vld [vmem:[%s3811_s6 + $0x8] sm:$0xff] (!%p314_p2)  ;;  %vm379_vm0 = vcmask (!%p314_p2), 261120   ;;  %v2656_v2 = vmov (!%p314_p2), 0.0   ;;  %v367_v4 = vld [vmem:[%s3811_s6 + $0x10] sm:$0xff] (!%p314_p2)  ;;  %vm2657_vm1 = vmmov (!%p314_p2), 0  }
   0x6   : > { %317 = sbr.rel (%p314_p2) target bundleno = 1391 (0x56f), region = 60  ;;  %2324 = vmatprep.subr.bf16.mxu0 (!%p314_p2), %v2656_v2  ;;  %v370_v3 = vpack.c.bf16 (!%p314_p2), %v366_v1, %v365_v0  ;;  %v368_v5 = vld [vmem:[%s3811_s6 + $0x18] sm:$0xff] (!%p314_p2)  ;;  %2328 = vmatprep.mubr.msk.bf16.mxu0 (!%p314_p2), %vm2657_vm1, %v2656_v2  ;;  %v461_v6 = vld [vmem:[%s3806_s1] sm:$0xff] (!%p314_p2)  ;;  %s2209_s25 = sshll.u32 (!%p314_p2), %s2204_s14, 5  ;;  %v462_v7 = vld [vmem:[%s3806_s1 + $0x8] sm:$0xff] (!%p314_p2)  ;;  %vm1456_vm2 = vcmask (!%p314_p2), 1043456  }
   0x7   : > { %v463_v8 = vld [vmem:[%s3806_s1 + $0x10] sm:$0xff] (!%p314_p2)  ;;  %v464_v9 = vld [vmem:[%s3806_s1 + $0x18] sm:$0xff] (!%p314_p2)  ;;  %p352_p3 = scmp.lt.s32.totalorder (!%p314_p2), %s2209_s25, 63  ;;  %v481_v11 = vpack.c.bf16 (!%p314_p2), %v462_v7, %v461_v6  ;;  %v371_v12 = vpack.c.bf16 (!%p314_p2), %v368_v5, %v367_v4  ;;  %v364_v16 = vld [vmem:[%s3810_s5] sm:$0xff] (!%p314_p2) }
   0x8   : > { %v384_v10 = vsel (!%p314_p2), %vm379_vm0, %v370_v3, 0  ;;  %v482_v14 = vpack.c.bf16 (!%p314_p2), %v464_v9, %v463_v8  ;;  %v369_v25 = vpack.c.bf16 (!%p314_p2), %v364_v16, %v364_v16  ;;  %v801_v3 = vld [vmem:[%s3808_s3] sm:$0xff] (!%p314_p2) }
   0x9   : > { %2325 = vmatpush3.bf16.xpose.msra.mxu0 (!%p314_p2), %v384_v10  ;;  %v539_v13 = vsel (!%p314_p2), %vm379_vm0, %v481_v11, 0  ;;  %2441 = vmatprep.subr.msk.bf16.mxu1 (!%p314_p2), %vm379_vm0, %v481_v11  ;;  %v387_v15 = vsel (!%p314_p2), %vm379_vm0, %v371_v12, 0  ;;  %v818_v4 = vpack.c.bf16 (!%p314_p2), %v801_v3, %v801_v3  ;;  %v2213_v6 = vld [vmem:[%s3812_s7] ss:$0 sm:$0xff] (!%p314_p2) }
   0xa   : > { %2326 = vmatprep.subr.bf16.mxu0 (!%p314_p2), %v2656_v2  ;;  %2438 = vmatpush3.bf16.xpose.msra.mxu1 (!%p314_p2), %v539_v13  ;;  %v542_v19 = vsel (!%p314_p2), %vm379_vm0, %v482_v14, 0 }
   0xb   : > { %2443 = vmatprep.subr.msk.bf16.mxu1 (!%p314_p2), %vm379_vm0, %v482_v14  ;;  %v875_v5 = vsel (!%p314_p2), %vm379_vm0, %v818_v4, 0 }
   0xd   : > { %s3817_s25 = smov (!%p352_p3, %s2209_s25), 63 }
   0xe   : > { %s2210_s12 = sshll.u32 %s3817_s25, 3 }
   0xf   : > { %s2758_s16 = scalar_lea.vmem %s3805_s0, %s2210_s12 }
  0x10   : > { %v441_v17 = vld [vmem:[%s2758_s16 + $0x60] sm:$0xff]  ;;  %v442_v18 = vld [vmem:[%s2758_s16 + $0x68] sm:$0xff]  ;;  %v443_v23 = vld [vmem:[%s2758_s16 + $0x70] sm:$0xff] }
  0x11   : > { %2327 = vmatpush3.bf16.xpose.msra.mxu0 %v387_v15  ;;  %v429_v20 = vld [vmem:[%s2758_s16] sm:$0xff]  ;;  %v430_v21 = vld [vmem:[%s2758_s16 + $0x8] sm:$0xff]  ;;  %v471_v22 = vpack.c.bf16 %v442_v18, %v441_v17  ;;  %v444_v24 = vld [vmem:[%s2758_s16 + $0x78] sm:$0xff] }
  0x12   : > { %2440 = vmatprep.subr.msk.bf16.mxu0 %vm379_vm0, %v481_v11  ;;  %2439 = vmatpush3.bf16.xpose.msra.mxu1 %v542_v19  ;;  %v445_v26 = vld [vmem:[%s2758_s16 + $0x80] sm:$0xff]  ;;  %v446_v27 = vld [vmem:[%s2758_s16 + $0x88] sm:$0xff]  ;;  %v465_v28 = vpack.c.bf16 %v430_v21, %v429_v20  ;;  %v472_v29 = vpack.c.bf16 %v444_v24, %v443_v23  ;;  %v447_v31 = vld [vmem:[%s2758_s16 + $0x90] sm:$0xff] }
  0x13   : > { %2348 = vmatprep.mubr.msk.bf16.mxu1 %vm379_vm0, %v471_v22  ;;  %v473_v30 = vpack.c.bf16 %v446_v27, %v445_v26  ;;  %v448_v32 = vld [vmem:[%s2758_s16 + $0x98] sm:$0xff]  ;;  %v449_v33 = vld [vmem:[%s2758_s16 + $0xa0] sm:$0xff]  ;;  %v450_v34 = vld [vmem:[%s2758_s16 + $0xa8] sm:$0xff] }
  0x14   : > { %v474_v35 = vpack.c.bf16 %v448_v32, %v447_v31  ;;  %v475_v36 = vpack.c.bf16 %v450_v34, %v449_v33  ;;  %v431_v37 = vld [vmem:[%s2758_s16 + $0x10] sm:$0xff]  ;;  %v432_v38 = vld [vmem:[%s2758_s16 + $0x18] sm:$0xff]  ;;  %v433_v39 = vld [vmem:[%s2758_s16 + $0x20] sm:$0xff] }
  0x15   : > { %v434_v40 = vld [vmem:[%s2758_s16 + $0x28] sm:$0xff]  ;;  %v451_v41 = vld [vmem:[%s2758_s16 + $0xb0] sm:$0xff]  ;;  %v452_v42 = vld [vmem:[%s2758_s16 + $0xb8] sm:$0xff]  ;;  %v466_v43 = vpack.c.bf16 %v432_v38, %v431_v37 }
  0x16   : > { %v453_v44 = vld [vmem:[%s2758_s16 + $0xc0] sm:$0xff]  ;;  %v454_v45 = vld [vmem:[%s2758_s16 + $0xc8] sm:$0xff]  ;;  %v467_v46 = vpack.c.bf16 %v434_v40, %v433_v39  ;;  %v476_v47 = vpack.c.bf16 %v452_v42, %v451_v41  ;;  %v435_v49 = vld [vmem:[%s2758_s16 + $0x30] sm:$0xff] }
  0x17   : > { %v477_v48 = vpack.c.bf16 %v454_v45, %v453_v44  ;;  %v436_v50 = vld [vmem:[%s2758_s16 + $0x38] sm:$0xff]  ;;  %v437_v51 = vld [vmem:[%s2758_s16 + $0x40] sm:$0xff]  ;;  %v438_v52 = vld [vmem:[%s2758_s16 + $0x48] sm:$0xff] }
  0x18   : > { %2329 = vmatmul.mubr.msk.bf16.vlgmr.msra.gmra.mrb[0].mxu0 %vm379_vm0, %v369_v25  ;;  %v455_v53 = vld [vmem:[%s2758_s16 + $0xd0] sm:$0xff]  ;;  %v456_v54 = vld [vmem:[%s2758_s16 + $0xd8] sm:$0xff]  ;;  %v468_v55 = vpack.c.bf16 %v436_v50, %v435_v49  ;;  %v457_v56 = vld [vmem:[%s2758_s16 + $0xe0] sm:$0xff]  ;;  %v469_v58 = vpack.c.bf16 %v438_v52, %v437_v51 }
  0x19   : > { %2333 = vmatpush3.bf16.xpose.msra.mxu0 %v539_v13  ;;  %2336 = vmatprep.mubr.msk.bf16.mxu0 %vm379_vm0, %v465_v28  ;;  %v458_v57 = vld [vmem:[%s2758_s16 + $0xe8] sm:$0xff]  ;;  %v478_v59 = vpack.c.bf16 %v456_v54, %v455_v53  ;;  %v439_v61 = vld [vmem:[%s2758_s16 + $0x50] sm:$0xff]  ;;  %v440_v62 = vld [vmem:[%s2758_s16 + $0x58] sm:$0xff] }
  0x1a   : > { %2442 = vmatprep.subr.msk.bf16.mxu0 %vm379_vm0, %v482_v14  ;;  %2349 = vmatmul.mubr.msk.bf16.vlgmr.msra.gmra.mrb[0].mxu1 %vm379_vm0, %v472_v29  ;;  %v479_v60 = vpack.c.bf16 %v458_v57, %v457_v56  ;;  %v459_v63 = vld [vmem:[%s2758_s16 + $0xf0] sm:$0xff]  ;;  %v460_v0 = vld [vmem:[%s2758_s16 + $0xf8] sm:$0xff]  ;;  %v470_v1 = vpack.c.bf16 %v440_v62, %v439_v61  ;;  %v2826_v11 = vld [vmem:[%s3807_s2] ss:$0 sm:$0xff]  ;;  %s3643_s16 = scalar_lea.vmem %s3815_s10, %s2210_s12 }
  0x1b   : > { %2352 = vmatprep.mubr.msk.bf16.mxu1 %vm379_vm0, %v473_v30  ;;  %v480_v2 = vpack.c.bf16 %v460_v0, %v459_v63 }
  0x21   : > { %2335 = vmatpush3.bf16.xpose.msra.mxu0 %v542_v19 }
  0x22   : > { %2353 = vmatmul.mubr.msk.bf16.gmra.mrb[4].mxu1 %vm379_vm0, %v474_v35  ;;  %2444 = vmatprep.subr.msk.bf16.mxu0 %vm379_vm0, %v818_v4 }
  0x23   : > { %2356 = vmatprep.mubr.msk.bf16.mxu1 %vm379_vm0, %v475_v36 }
  0x28   : > { %2337 = vmatmul.mubr.msk.bf16.vlgmr.msra.gmra.mrb[4].mxu0 %vm379_vm0, %v466_v43 }
  0x29   : > { %2340 = vmatprep.mubr.msk.bf16.mxu0 %vm379_vm0, %v467_v46  ;;  %2369 = vmatpush3.bf16.xpose.msra.mxu0 %v875_v5 }
  0x2a   : > { %2357 = vmatmul.mubr.msk.bf16.gmra.mrb[8].mxu1 %vm379_vm0, %v476_v47 }
  0x2b   : > { %2360 = vmatprep.mubr.msk.bf16.mxu1 %vm379_vm0, %v477_v48 }
  0x30   : > { %2341 = vmatmul.mubr.msk.bf16.gmra.mrb[8].mxu0 %vm379_vm0, %v468_v55 }
  0x31   : > { %2344 = vmatprep.mubr.msk.bf16.mxu0 %vm379_vm0, %v469_v58 }
  0x32   : > { %2361 = vmatmul.mubr.msk.bf16.gmra.mrb[12].mxu1 %vm379_vm0, %v478_v59 }
  0x33   : > { %2364 = vmatprep.mubr.msk.bf16.mxu1 %vm379_vm0, %v479_v60 }
  0x38   : > { %2345 = vmatmul.mubr.msk.bf16.gmra.mrb[12].mxu0 %vm379_vm0, %v470_v1 }
  0x3a   : > { %2365 = vmatmul.mubr.msk.bf16.gmra.mrb[16].mxu1 %vm379_vm0, %v480_v2 }
  0xeb   : > { %v423_v7 = vpop.f32.mrb[0].mxu0 }
  0xec   : > { %v424_v8 = vadd.f32 %v2213_v6, %v423_v7  ;;  %v2330_v9 = vpop.f32.mrb[1].mxu0 }
  0xed   : > { %v426_v10 = vpop.f32.mrb[2].mxu0  ;;  %v2350_v12 = vpop.f32.mrb[0].mxu1 }
  0xee   : > { %v1407_v13 = vpack.c.bf16 %v424_v8, %v424_v8  ;;  %v2331_v14 = vpop.f32.mrb[3].mxu0  ;;  %v635_v15 = vadd.f32 %v2350_v12, %v2826_v11  ;;  %v626_v16 = vpop.f32.mrb[1].mxu1 }
  0xef   : > { %v627_v17 = vadd.f32 %v2826_v11, %v626_v16  ;;  %v2351_v18 = vpop.f32.mrb[2].mxu1 }
  0xf0   : > { %v1458_v19 = vsel %vm1456_vm2, %v1407_v13, 0  ;;  %2445 = vmatprep.subr.msk.bf16.mxu1 %vm1456_vm2, %v1407_v13  ;;  %vm719_vm3 = vcmp.ge.f32.partialorder %v635_v15, 0.0  ;;  %v751_v20 = vmul.f32 0.01, %v635_v15  ;;  %v638_v21 = vadd.f32 %v2351_v18, %v2826_v11  ;;  %v629_v22 = vpop.f32.mrb[3].mxu1 }
  0xf1   : > { %2403 = vmatpush3.bf16.msra.mxu1 %v1458_v19  ;;  %vm717_vm4 = vcmp.ge.f32.partialorder %v627_v17, 0.0  ;;  %v749_v23 = vmul.f32 0.01, %v627_v17  ;;  %v630_v24 = vadd.f32 %v2826_v11, %v629_v22 }
  0xf2   : > { %v2832_v25 = vsel %vm719_vm3, %v635_v15, %v751_v20  ;;  %vm720_vm5 = vcmp.ge.f32.partialorder %v638_v21, 0.0  ;;  %v752_v26 = vmul.f32 0.01, %v638_v21 }
  0xf3   : > { %v2834_v27 = vsel %vm717_vm4, %v627_v17, %v749_v23  ;;  %vm718_vm6 = vcmp.ge.f32.partialorder %v630_v24, 0.0  ;;  %v750_v28 = vmul.f32 0.01, %v630_v24 }
  0xf4   : > { %v2836_v29 = vsel %vm720_vm5, %v638_v21, %v752_v26 }
  0xf5   : > { %v809_v30 = vpack.c.bf16 %v2836_v29, %v2832_v25  ;;  %v2840_v31 = vsel %vm718_vm6, %v630_v24, %v750_v28  ;;  %v2354_v32 = vpop.f32.mrb[4].mxu1 }
  0xf6   : > { %v808_v33 = vpack.c.bf16 %v2840_v31, %v2834_v27  ;;  %v651_v34 = vadd.f32 %v2354_v32, %v2826_v11  ;;  %v642_v35 = vpop.f32.mrb[5].mxu1 }
  0xf7   : > { %v643_v36 = vadd.f32 %v2826_v11, %v642_v35  ;;  %v2355_v37 = vpop.f32.mrb[6].mxu1 }
  0xf8   : > { %vm723_vm7 = vcmp.ge.f32.partialorder %v651_v34, 0.0  ;;  %v755_v38 = vmul.f32 0.01, %v651_v34  ;;  %v654_v39 = vadd.f32 %v2355_v37, %v2826_v11  ;;  %v645_v40 = vpop.f32.mrb[7].mxu1 }
  0xf9   : > { %vm721_vm8 = vcmp.ge.f32.partialorder %v643_v36, 0.0  ;;  %v753_v41 = vmul.f32 0.01, %v643_v36  ;;  %v646_v42 = vadd.f32 %v2826_v11, %v645_v40 }
  0xfa   : > { %v2848_v43 = vsel %vm723_vm7, %v651_v34, %v755_v38  ;;  %vm724_vm9 = vcmp.ge.f32.partialorder %v654_v39, 0.0  ;;  %v756_v44 = vmul.f32 0.01, %v654_v39 }
  0xfb   : > { %v2338_v45 = vpop.f32.mrb[4].mxu0  ;;  %v2850_v46 = vsel %vm721_vm8, %v643_v36, %v753_v41  ;;  %vm722_vm10 = vcmp.ge.f32.partialorder %v646_v42, 0.0  ;;  %v754_v47 = vmul.f32 0.01, %v646_v42 }
  0xfc   : > { %v587_v48 = vadd.f32 %v2338_v45, %v2826_v11  ;;  %v578_v49 = vpop.f32.mrb[5].mxu0  ;;  %v2853_v50 = vsel %vm724_vm9, %v654_v39, %v756_v44 }
  0xfd   : > { %v579_v51 = vadd.f32 %v2826_v11, %v578_v49  ;;  %v2339_v52 = vpop.f32.mrb[6].mxu0  ;;  %v811_v53 = vpack.c.bf16 %v2853_v50, %v2848_v43  ;;  %v2858_v54 = vsel %vm722_vm10, %v646_v42, %v754_v47  ;;  %v2358_v55 = vpop.f32.mrb[8].mxu1 }
  0xfe   : > { %vm707_vm11 = vcmp.ge.f32.partialorder %v587_v48, 0.0  ;;  %v739_v56 = vmul.f32 0.01, %v587_v48  ;;  %v590_v57 = vadd.f32 %v2339_v52, %v2826_v11  ;;  %v581_v58 = vpop.f32.mrb[7].mxu0  ;;  %v810_v59 = vpack.c.bf16 %v2858_v54, %v2850_v46  ;;  %v658_v60 = vpop.f32.mrb[9].mxu1 }
  0xff   : > { %vm705_vm12 = vcmp.ge.f32.partialorder %v579_v51, 0.0  ;;  %v737_v61 = vmul.f32 0.01, %v579_v51  ;;  %v582_v62 = vadd.f32 %v2826_v11, %v581_v58  ;;  %v667_v63 = vadd.f32 %v2358_v55, %v2826_v11  ;;  %v2359_v0 = vpop.f32.mrb[10].mxu1 }
 0x100   : > { %v771_v1 = vsel %vm707_vm11, %v587_v48, %v739_v56  ;;  %vm708_vm13 = vcmp.ge.f32.partialorder %v590_v57, 0.0  ;;  %v740_v2 = vmul.f32 0.01, %v590_v57  ;;  %v659_v3 = vadd.f32 %v2826_v11, %v658_v60  ;;  %v661_v4 = vpop.f32.mrb[11].mxu1 }
 0x101   : > { %v769_v5 = vsel %vm705_vm12, %v579_v51, %v737_v61  ;;  %vm706_vm14 = vcmp.ge.f32.partialorder %v582_v62, 0.0  ;;  %v738_v6 = vmul.f32 0.01, %v582_v62  ;;  %vm727_vm15 = vcmp.ge.f32.partialorder %v667_v63, 0.0 }
 0x102   : > { %v772_v7 = vsel %vm708_vm13, %v590_v57, %v740_v2  ;;  %v759_v8 = vmul.f32 0.01, %v667_v63  ;;  %vm725_vm1 = vcmp.ge.f32.partialorder %v659_v3, 0.0  ;;  %v757_v9 = vmul.f32 0.01, %v659_v3 }
 0x103   : > { %v803_v10 = vpack.c.bf16 %v772_v7, %v771_v1  ;;  %v770_v12 = vsel %vm706_vm14, %v582_v62, %v738_v6  ;;  %v2342_v13 = vpop.f32.mrb[8].mxu0  ;;  %v670_v14 = vadd.f32 %v2359_v0, %v2826_v11  ;;  %v662_v15 = vadd.f32 %v2826_v11, %v661_v4 }
 0x104   : > { %v802_v16 = vpack.c.bf16 %v770_v12, %v769_v5  ;;  %v603_v17 = vadd.f32 %v2342_v13, %v2826_v11  ;;  %v594_v18 = vpop.f32.mrb[9].mxu0  ;;  %v2869_v19 = vsel %vm727_vm15, %v667_v63, %v759_v8  ;;  %v2871_v20 = vsel %vm725_vm1, %v659_v3, %v757_v9 }
 0x105   : > { %v595_v21 = vadd.f32 %v2826_v11, %v594_v18  ;;  %v2343_v22 = vpop.f32.mrb[10].mxu0  ;;  %vm728_vm2 = vcmp.ge.f32.partialorder %v670_v14, 0.0  ;;  %v760_v23 = vmul.f32 0.01, %v670_v14  ;;  %vm726_vm3 = vcmp.ge.f32.partialorder %v662_v15, 0.0  ;;  %v2362_v24 = vpop.f32.mrb[12].mxu1 }
 0x106   : > { %vm711_vm4 = vcmp.ge.f32.partialorder %v603_v17, 0.0  ;;  %v743_v26 = vmul.f32 0.01, %v603_v17  ;;  %v606_v28 = vadd.f32 %v2343_v22, %v2826_v11  ;;  %v597_v32 = vpop.f32.mrb[11].mxu0  ;;  %2370 = vmatprep.mubr.msk.bf16.mxu0 %vm379_vm0, %v802_v16  ;;  %v758_v34 = vmul.f32 0.01, %v662_v15 }
 0x107   : > { %vm709_vm5 = vcmp.ge.f32.partialorder %v595_v21, 0.0  ;;  %v741_v35 = vmul.f32 0.01, %v595_v21  ;;  %v598_v36 = vadd.f32 %v2826_v11, %v597_v32  ;;  %2371 = vmatmul.mubr.msk.bf16.vlgmr.msra.gmra.mrb[16].mxu0 %vm379_vm0, %v803_v10  ;;  %v2878_v37 = vsel %vm728_vm2, %v670_v14, %v760_v23  ;;  %v674_v38 = vpop.f32.mrb[13].mxu1 }
 0x108   : > { %v775_v39 = vsel %vm711_vm4, %v603_v17, %v743_v26  ;;  %vm712_vm6 = vcmp.ge.f32.partialorder %v606_v28, 0.0  ;;  %v744_v40 = vmul.f32 0.01, %v606_v28  ;;  %v813_v41 = vpack.c.bf16 %v2878_v37, %v2869_v19  ;;  %v2363_v42 = vpop.f32.mrb[14].mxu1 }
 0x109   : > { %v773_v44 = vsel %vm709_vm5, %v595_v21, %v741_v35  ;;  %vm710_vm7 = vcmp.ge.f32.partialorder %v598_v36, 0.0  ;;  %v742_v45 = vmul.f32 0.01, %v598_v36  ;;  %v2883_v47 = vsel %vm726_vm3, %v662_v15, %v758_v34  ;;  %v677_v48 = vpop.f32.mrb[15].mxu1 }
 0x10a   : > { %v776_v49 = vsel %vm712_vm6, %v606_v28, %v744_v40  ;;  %v812_v51 = vpack.c.bf16 %v2883_v47, %v2871_v20  ;;  %v683_v52 = vadd.f32 %v2362_v24, %v2826_v11  ;;  %v675_v55 = vadd.f32 %v2826_v11, %v674_v38 }
 0x10b   : > { %v805_v56 = vpack.c.bf16 %v776_v49, %v775_v39  ;;  %v774_v57 = vsel %vm710_vm7, %v598_v36, %v742_v45  ;;  %v2346_v58 = vpop.f32.mrb[12].mxu0  ;;  %v686_v60 = vadd.f32 %v2363_v42, %v2826_v11  ;;  %v678_v61 = vadd.f32 %v2826_v11, %v677_v48 }
 0x10c   : > { %v804_v62 = vpack.c.bf16 %v774_v57, %v773_v44  ;;  %v619_v63 = vadd.f32 %v2346_v58, %v2826_v11  ;;  %v610_v0 = vpop.f32.mrb[13].mxu0  ;;  %vm731_vm8 = vcmp.ge.f32.partialorder %v683_v52, 0.0  ;;  %v763_v1 = vmul.f32 0.01, %v683_v52 }
 0x10d   : > { %v611_v2 = vadd.f32 %v2826_v11, %v610_v0  ;;  %v2347_v3 = vpop.f32.mrb[14].mxu0  ;;  %vm729_vm9 = vcmp.ge.f32.partialorder %v675_v55, 0.0  ;;  %v761_v4 = vmul.f32 0.01, %v675_v55  ;;  %vm732_vm10 = vcmp.ge.f32.partialorder %v686_v60, 0.0  ;;  %v2366_v5 = vpop.f32.mrb[16].mxu1 }
 0x10e   : > { %vm715_vm11 = vcmp.ge.f32.partialorder %v619_v63, 0.0  ;;  %v747_v6 = vmul.f32 0.01, %v619_v63  ;;  %v622_v7 = vadd.f32 %v2347_v3, %v2826_v11  ;;  %v613_v8 = vpop.f32.mrb[15].mxu0  ;;  %2374 = vmatprep.mubr.msk.bf16.mxu0 %vm379_vm0, %v804_v62  ;;  %v795_v9 = vsel %vm731_vm8, %v683_v52, %v763_v1  ;;  %v690_v10 = vpop.f32.mrb[17].mxu1 }
 0x10f   : > { %vm713_vm12 = vcmp.ge.f32.partialorder %v611_v2, 0.0  ;;  %v745_v12 = vmul.f32 0.01, %v611_v2  ;;  %v614_v13 = vadd.f32 %v2826_v11, %v613_v8  ;;  %2375 = vmatmul.mubr.msk.bf16.gmra.mrb[20].mxu0 %vm379_vm0, %v805_v56  ;;  %v793_v14 = vsel %vm729_vm9, %v675_v55, %v761_v4  ;;  %v2367_v15 = vpop.f32.mrb[18].mxu1 }
 0x110   : > { %v779_v16 = vsel %vm715_vm11, %v619_v63, %v747_v6  ;;  %vm716_vm13 = vcmp.ge.f32.partialorder %v622_v7, 0.0  ;;  %v748_v17 = vmul.f32 0.01, %v622_v7  ;;  %v764_v18 = vmul.f32 0.01, %v686_v60  ;;  %v693_v21 = vpop.f32.mrb[19].mxu1 }
 0x111   : > { %v777_v22 = vsel %vm713_vm12, %v611_v2, %v745_v12  ;;  %vm714_vm14 = vcmp.ge.f32.partialorder %v614_v13, 0.0  ;;  %v746_v23 = vmul.f32 0.01, %v614_v13  ;;  %vm730_vm15 = vcmp.ge.f32.partialorder %v678_v61, 0.0 }
 0x112   : > { %v780_v24 = vsel %vm716_vm13, %v622_v7, %v748_v17  ;;  %v796_v26 = vsel %vm732_vm10, %v686_v60, %v764_v18  ;;  %v762_v28 = vmul.f32 0.01, %v678_v61  ;;  %v699_v32 = vadd.f32 %v2366_v5, %v2826_v11 }
 0x113   : > { %v807_v34 = vpack.c.bf16 %v780_v24, %v779_v16  ;;  %v778_v35 = vsel %vm714_vm14, %v614_v13, %v746_v23  ;;  %v815_v36 = vpack.c.bf16 %v796_v26, %v795_v9  ;;  %v691_v38 = vadd.f32 %v2826_v11, %v690_v10 }
 0x114   : > { %v806_v39 = vpack.c.bf16 %v778_v35, %v777_v22  ;;  %v794_v40 = vsel %vm730_vm15, %v678_v61, %v762_v28  ;;  %vm735_vm1 = vcmp.ge.f32.partialorder %v699_v32, 0.0  ;;  %v767_v42 = vmul.f32 0.01, %v699_v32 }
 0x115   : > { %v814_v44 = vpack.c.bf16 %v794_v40, %v793_v14  ;;  %vm733_vm2 = vcmp.ge.f32.partialorder %v691_v38, 0.0  ;;  %v765_v45 = vmul.f32 0.01, %v691_v38  ;;  %v702_v48 = vadd.f32 %v2367_v15, %v2826_v11 }
 0x116   : > { %2378 = vmatprep.mubr.msk.bf16.mxu0 %vm379_vm0, %v806_v39  ;;  %v694_v49 = vadd.f32 %v2826_v11, %v693_v21  ;;  %v799_v52 = vsel %vm735_vm1, %v699_v32, %v767_v42  ;;  %v2935_v11 = vld [vmem:[%s3809_s4] ss:$0 sm:$0xff]  ;;  %vm1038_vm5 = vcmask 64512  }
 0x117   : > { %2379 = vmatmul.mubr.msk.bf16.gmra.mrb[24].mxu0 %vm379_vm0, %v807_v34  ;;  %vm736_vm3 = vcmp.ge.f32.partialorder %v702_v48, 0.0  ;;  %v768_v55 = vmul.f32 0.01, %v702_v48  ;;  %v797_v56 = vsel %vm733_vm2, %v691_v38, %v765_v45 }
 0x118   : > { %2382 = vmatprep.mubr.msk.bf16.mxu0 %vm379_vm0, %v808_v33  ;;  %vm734_vm4 = vcmp.ge.f32.partialorder %v694_v49, 0.0  ;;  %v766_v57 = vmul.f32 0.01, %v694_v49 }
 0x119   : > { %v800_v58 = vsel %vm736_vm3, %v702_v48, %v768_v55 }
 0x11a   : > { %v817_v60 = vpack.c.bf16 %v800_v58, %v799_v52  ;;  %v798_v61 = vsel %vm734_vm4, %v694_v49, %v766_v57 }
 0x11b   : > { %v816_v62 = vpack.c.bf16 %v798_v61, %v797_v56 }
 0x11f   : > { %2383 = vmatmul.mubr.msk.bf16.gmra.mrb[28].mxu0 %vm379_vm0, %v809_v30 }
 0x120   : > { %2386 = vmatprep.mubr.msk.bf16.mxu0 %vm379_vm0, %v810_v59 }
 0x127   : > { %2387 = vmatmul.mubr.msk.bf16.gmra.mrb[32].mxu0 %vm379_vm0, %v811_v53 }
 0x128   : > { %2390 = vmatprep.mubr.msk.bf16.mxu0 %vm379_vm0, %v812_v51 }
 0x12f   : > { %2391 = vmatmul.mubr.msk.bf16.gmra.mrb[36].mxu0 %vm379_vm0, %v813_v41 }
 0x130   : > { %2394 = vmatprep.mubr.msk.bf16.mxu0 %vm379_vm0, %v814_v44 }
 0x137   : > { %2395 = vmatmul.mubr.msk.bf16.gmra.mrb[40].mxu0 %vm379_vm0, %v815_v36 }
 0x138   : > { %2398 = vmatprep.mubr.msk.bf16.mxu0 %vm379_vm0, %v816_v62 }
 0x13f   : > { %2399 = vmatmul.mubr.msk.bf16.gmra.mrb[44].mxu0 %vm379_vm0, %v817_v60 }
 0x1da   : > { %v2372_v25 = vpop.f32.mrb[16].mxu0 }
 0x1db   : > { %v2938_v27 = vadd.f32 %v2372_v25, %v2935_v11  ;;  %v911_v29 = vpop.f32.mrb[17].mxu0 }
 0x1dc   : > { %v2941_v30 = vadd.f32 %v2935_v11, %v911_v29  ;;  %v2373_v31 = vpop.f32.mrb[18].mxu0 }
 0x1dd   : > { %v2944_v33 = vadd.f32 %v2373_v31, %v2935_v11  ;;  %v914_v43 = vpop.f32.mrb[19].mxu0  ;;  %v1045_v46 = vsel %vm1038_vm5, %v2938_v27, -inf }
 0x1de   : > { %v2949_v50 = vadd.f32 %v2935_v11, %v914_v43  ;;  %1046 = vmax.xlane.f32.xlu1 %v1045_v46  ;;  %v1039_v53 = vsel %vm1038_vm5, %v2941_v30, -inf }
 0x1df   : > { %1040 = vmax.xlane.f32.xlu0 %v1039_v53  ;;  %v1048_v54 = vsel %vm1038_vm5, %v2944_v33, -inf }
 0x1e0   : > { %v1042_v19 = vsel %vm1038_vm5, %v2949_v50, -inf }
 0x1e2   : > { %1049 = vmax.xlane.f32.xlu1 %v1048_v54  ;;  %v2376_v59 = vpop.f32.mrb[20].mxu0 }
 0x1e3   : > { %v927_v20 = vpop.f32.mrb[21].mxu0  ;;  %1043 = vmax.xlane.f32.xlu0 %v1042_v19  ;;  %v2961_v51 = vadd.f32 %v2376_v59, %v2935_v11 }
 0x1e4   : > { %v2958_v37 = vadd.f32 %v2935_v11, %v927_v20  ;;  %v2377_v41 = vpop.f32.mrb[22].mxu0 }
 0x1e5   : > { %v930_v47 = vpop.f32.mrb[23].mxu0  ;;  %v2969_v1 = vadd.f32 %v2377_v41, %v2935_v11  ;;  %v1057_v4 = vsel %vm1038_vm5, %v2961_v51, -inf }
 0x1e6   : > { %v2964_v63 = vadd.f32 %v2935_v11, %v930_v47  ;;  %v1051_v0 = vsel %vm1038_vm5, %v2958_v37, -inf }
 0x1e7   : > { %1052 = vmax.xlane.f32.xlu0 %v1051_v0  ;;  %v1060_v8 = vsel %vm1038_vm5, %v2969_v1, -inf }
 0x1e8   : > { %v1054_v2 = vsel %vm1038_vm5, %v2964_v63, -inf }
 0x1e9   : > { %1055 = vmax.xlane.f32.xlu1 %v1054_v2 }
 0x1ea   : > { %v2380_v3 = vpop.f32.mrb[24].mxu0 }
 0x1eb   : > { %v943_v5 = vpop.f32.mrb[25].mxu0  ;;  %1058 = vmax.xlane.f32.xlu0 %v1057_v4  ;;  %v2981_v10 = vadd.f32 %v2380_v3, %v2935_v11 }
 0x1ec   : > { %v2976_v6 = vadd.f32 %v2935_v11, %v943_v5  ;;  %v2381_v7 = vpop.f32.mrb[26].mxu0 }
 0x1ed   : > { %v946_v9 = vpop.f32.mrb[27].mxu0  ;;  %1061 = vmax.xlane.f32.xlu1 %v1060_v8  ;;  %v2989_v14 = vadd.f32 %v2381_v7, %v2935_v11  ;;  %v1069_v17 = vsel %vm1038_vm5, %v2981_v10, -inf }
 0x1ee   : > { %v2984_v12 = vadd.f32 %v2935_v11, %v946_v9  ;;  %v1063_v13 = vsel %vm1038_vm5, %v2976_v6, -inf }
 0x1ef   : > { %1064 = vmax.xlane.f32.xlu0 %v1063_v13  ;;  %v1072_v23 = vsel %vm1038_vm5, %v2989_v14, -inf }
 0x1f0   : > { %v1066_v15 = vsel %vm1038_vm5, %v2984_v12, -inf }
 0x1f1   : > { %1067 = vmax.xlane.f32.xlu1 %v1066_v15 }
 0x1f2   : > { %v2384_v16 = vpop.f32.mrb[28].mxu0 }
 0x1f3   : > { %v959_v18 = vpop.f32.mrb[29].mxu0  ;;  %1070 = vmax.xlane.f32.xlu0 %v1069_v17  ;;  %v3001_v26 = vadd.f32 %v2384_v16, %v2935_v11 }
 0x1f4   : > { %v2996_v21 = vadd.f32 %v2935_v11, %v959_v18  ;;  %v2385_v22 = vpop.f32.mrb[30].mxu0 }
 0x1f5   : > { %v962_v24 = vpop.f32.mrb[31].mxu0  ;;  %1073 = vmax.xlane.f32.xlu1 %v1072_v23  ;;  %v3009_v34 = vadd.f32 %v2385_v22, %v2935_v11  ;;  %v1081_v38 = vsel %vm1038_vm5, %v3001_v26, -inf }
 0x1f6   : > { %v3004_v28 = vadd.f32 %v2935_v11, %v962_v24  ;;  %v1075_v32 = vsel %vm1038_vm5, %v2996_v21, -inf }
 0x1f7   : > { %1076 = vmax.xlane.f32.xlu0 %v1075_v32  ;;  %v1084_v44 = vsel %vm1038_vm5, %v3009_v34, -inf }
 0x1f8   : > { %v1078_v35 = vsel %vm1038_vm5, %v3004_v28, -inf }
 0x1f9   : > { %1079 = vmax.xlane.f32.xlu1 %v1078_v35 }
 0x1fa   : > { %v2388_v36 = vpop.f32.mrb[32].mxu0 }
 0x1fb   : > { %v975_v39 = vpop.f32.mrb[33].mxu0  ;;  %1082 = vmax.xlane.f32.xlu0 %v1081_v38  ;;  %v3021_v48 = vadd.f32 %v2388_v36, %v2935_v11 }
 0x1fc   : > { %v3016_v40 = vadd.f32 %v2935_v11, %v975_v39  ;;  %v2389_v42 = vpop.f32.mrb[34].mxu0 }
 0x1fd   : > { %v978_v45 = vpop.f32.mrb[35].mxu0  ;;  %1085 = vmax.xlane.f32.xlu1 %v1084_v44  ;;  %v3029_v55 = vadd.f32 %v2389_v42, %v2935_v11  ;;  %v1093_v58 = vsel %vm1038_vm5, %v3021_v48, -inf }
 0x1fe   : > { %v3024_v49 = vadd.f32 %v2935_v11, %v978_v45  ;;  %v1087_v52 = vsel %vm1038_vm5, %v3016_v40, -inf }
 0x1ff   : > { %1088 = vmax.xlane.f32.xlu0 %v1087_v52  ;;  %v1096_v25 = vsel %vm1038_vm5, %v3029_v55, -inf }
 0x200   : > { %v1090_v56 = vsel %vm1038_vm5, %v3024_v49, -inf }
 0x201   : > { %1091 = vmax.xlane.f32.xlu1 %v1090_v56 }
 0x202   : > { %v2392_v57 = vpop.f32.mrb[36].mxu0 }
 0x203   : > { %v991_v60 = vpop.f32.mrb[37].mxu0  ;;  %1094 = vmax.xlane.f32.xlu0 %v1093_v58  ;;  %v3041_v31 = vadd.f32 %v2392_v57, %v2935_v11 }
 0x204   : > { %v3036_v61 = vadd.f32 %v2935_v11, %v991_v60  ;;  %v2393_v62 = vpop.f32.mrb[38].mxu0 }
 0x205   : > { %v994_v29 = vpop.f32.mrb[39].mxu0  ;;  %1097 = vmax.xlane.f32.xlu1 %v1096_v25  ;;  %v3049_v53 = vadd.f32 %v2393_v62, %v2935_v11  ;;  %v1105_v19 = vsel %vm1038_vm5, %v3041_v31, -inf }
 0x206   : > { %v3044_v43 = vadd.f32 %v2935_v11, %v994_v29  ;;  %v1099_v46 = vsel %vm1038_vm5, %v3036_v61, -inf }
 0x207   : > { %1100 = vmax.xlane.f32.xlu0 %v1099_v46  ;;  %v1108_v0 = vsel %vm1038_vm5, %v3049_v53, -inf }
 0x208   : > { %v1102_v54 = vsel %vm1038_vm5, %v3044_v43, -inf }
 0x209   : > { %1103 = vmax.xlane.f32.xlu1 %v1102_v54 }
 0x20a   : > { %v2396_v59 = vpop.f32.mrb[40].mxu0 }
 0x20b   : > { %v1007_v20 = vpop.f32.mrb[41].mxu0  ;;  %1106 = vmax.xlane.f32.xlu0 %v1105_v19  ;;  %v3061_v3 = vadd.f32 %v2396_v59, %v2935_v11 }
 0x20c   : > { %v3056_v41 = vadd.f32 %v2935_v11, %v1007_v20  ;;  %v2397_v47 = vpop.f32.mrb[42].mxu0 }
 0x20d   : > { %v1010_v2 = vpop.f32.mrb[43].mxu0  ;;  %1109 = vmax.xlane.f32.xlu1 %v1108_v0  ;;  %v3069_v7 = vadd.f32 %v2397_v47, %v2935_v11  ;;  %v1117_v13 = vsel %vm1038_vm5, %v3061_v3, -inf }
 0x20e   : > { %v3064_v4 = vadd.f32 %v2935_v11, %v1010_v2  ;;  %v1111_v5 = vsel %vm1038_vm5, %v3056_v41, -inf }
 0x20f   : > { %1112 = vmax.xlane.f32.xlu0 %v1111_v5  ;;  %v1120_v18 = vsel %vm1038_vm5, %v3069_v7, -inf }
 0x210   : > { %v1114_v8 = vsel %vm1038_vm5, %v3064_v4, -inf }
 0x211   : > { %1115 = vmax.xlane.f32.xlu1 %v1114_v8 }
 0x212   : > { %v2400_v9 = vpop.f32.mrb[44].mxu0 }
 0x213   : > { %v1023_v15 = vpop.f32.mrb[45].mxu0  ;;  %1118 = vmax.xlane.f32.xlu0 %v1117_v13  ;;  %v3081_v23 = vadd.f32 %v2400_v9, %v2935_v11 }
 0x214   : > { %v3076_v16 = vadd.f32 %v2935_v11, %v1023_v15  ;;  %v2401_v17 = vpop.f32.mrb[46].mxu0 }
 0x215   : > { %v1026_v22 = vpop.f32.mrb[47].mxu0  ;;  %1121 = vmax.xlane.f32.xlu1 %v1120_v18  ;;  %v3089_v35 = vadd.f32 %v2401_v17, %v2935_v11  ;;  %v1129_v38 = vsel %vm1038_vm5, %v3081_v23, -inf }
 0x216   : > { %v3084_v24 = vadd.f32 %v2935_v11, %v1026_v22  ;;  %v1123_v32 = vsel %vm1038_vm5, %v3076_v16, -inf }
 0x217   : > { %1124 = vmax.xlane.f32.xlu0 %v1123_v32  ;;  %v1132_v39 = vsel %vm1038_vm5, %v3089_v35, -inf }
 0x218   : > { %v1126_v36 = vsel %vm1038_vm5, %v3084_v24, -inf }
 0x219   : > { %1127 = vmax.xlane.f32.xlu1 %v1126_v36 }
 0x21b   : > { %1130 = vmax.xlane.f32.xlu0 %v1129_v38 }
 0x21d   : > { %1133 = vmax.xlane.f32.xlu1 %v1132_v39 }
 0x26b   : > { %v1047_v42 = vpop.xlane.xlu1 %1046 }
 0x26c   : > { %v1137_v44 = vsub.f32 %v2938_v27, %v1047_v42  ;;  %v1041_v45 = vpop.xlane.xlu0 %1040 }
 0x26d   : > { %v1135_v52 = vsub.f32 %v2941_v30, %v1041_v45 }
 0x26e   : > { %v1171_v11 = vmul.f32 1.442695, %v1137_v44 }
 0x26f   : > { %v1167_v56 = vmul.f32 1.442695, %v1135_v52  ;;  %v1050_v57 = vpop.xlane.xlu1 %1049 }
 0x270   : > { %v1138_v58 = vsub.f32 %v2944_v33, %v1050_v57  ;;  %v1044_v60 = vpop.xlane.xlu0 %1043 }
 0x271   : > { %2456 = vpow2.f32 %v1167_v56  ;;  %v1136_v62 = vsub.f32 %v2949_v50, %v1044_v60 }
 0x272   : > { %2458 = vpow2.f32 %v1171_v11  ;;  %v1173_v25 = vmul.f32 1.442695, %v1138_v58 }
 0x273   : > { %v1169_v29 = vmul.f32 1.442695, %v1136_v62 }
 0x274   : > { %v1053_v46 = vpop.xlane.xlu0 %1052 }
 0x275   : > { %2460 = vpow2.f32 %v1169_v29  ;;  %v1139_v54 = vsub.f32 %v2958_v37, %v1053_v46 }
 0x276   : > { %v1056_v27 = vpop.xlane.xlu1 %1055  ;;  %2462 = vpow2.f32 %v1173_v25 }
 0x277   : > { %v1175_v59 = vmul.f32 1.442695, %v1139_v54  ;;  %v1140_v30 = vsub.f32 %v2964_v63, %v1056_v27 }
 0x278   : > { %v1059_v19 = vpop.xlane.xlu0 %1058 }
 0x279   : > { %2464 = vpow2.f32 %v1175_v59  ;;  %v1177_v20 = vmul.f32 1.442695, %v1140_v30  ;;  %v1141_v33 = vsub.f32 %v2961_v51, %v1059_v19 }
 0x27a   : > { %v1062_v47 = vpop.xlane.xlu1 %1061 }
 0x27b   : > { %v3104_v0 = vpop.eup %2456  ;;  %2466 = vpow2.f32 %v1177_v20  ;;  %v1179_v50 = vmul.f32 1.442695, %v1141_v33  ;;  %v1142_v2 = vsub.f32 %v2969_v1, %v1062_v47 }
 0x27c   : > { %v1065_v5 = vpop.xlane.xlu0 %1064  ;;  %v1231_v37 = vsel %vm1038_vm5, %v3104_v0, 0.0  ;;  %v3109_v8 = vpop.eup %2458 }
 0x27d   : > { %2468 = vpow2.f32 %v1179_v50  ;;  %v1181_v63 = vmul.f32 1.442695, %v1142_v2  ;;  %v1143_v9 = vsub.f32 %v2976_v6, %v1065_v5  ;;  %1232 = vadd.xlane.f32.xlu0 %v1231_v37  ;;  %v1237_v1 = vsel %vm1038_vm5, %v3109_v8, 0.0 }
 0x27e   : > { %v1068_v13 = vpop.xlane.xlu1 %1067 }
 0x27f   : > { %v3112_v51 = vpop.eup %2460  ;;  %2470 = vpow2.f32 %v1181_v63  ;;  %v1183_v15 = vmul.f32 1.442695, %v1143_v9  ;;  %v1144_v17 = vsub.f32 %v2984_v12, %v1068_v13 }
 0x280   : > { %v1071_v18 = vpop.xlane.xlu0 %1070  ;;  %v1234_v22 = vsel %vm1038_vm5, %v3112_v51, 0.0  ;;  %v3119_v32 = vpop.eup %2462 }
 0x281   : > { %2472 = vpow2.f32 %v1183_v15  ;;  %v1185_v36 = vmul.f32 1.442695, %v1144_v17  ;;  %v1145_v6 = vsub.f32 %v2981_v10, %v1071_v18  ;;  %1238 = vadd.xlane.f32.xlu0 %v1237_v1  ;;  %1235 = vadd.xlane.f32.xlu1 %v1234_v22  ;;  %v1240_v45 = vsel %vm1038_vm5, %v3119_v32, 0.0 }
 0x282   : > { %v1074_v38 = vpop.xlane.xlu1 %1073 }
 0x283   : > { %v3122_v39 = vpop.eup %2464  ;;  %2474 = vpow2.f32 %v1185_v36  ;;  %v1187_v12 = vmul.f32 1.442695, %v1145_v6  ;;  %v1146_v42 = vsub.f32 %v2989_v14, %v1074_v38 }
 0x284   : > { %v1077_v44 = vpop.xlane.xlu0 %1076  ;;  %v1243_v52 = vsel %vm1038_vm5, %v3122_v39, 0.0 }
 0x285   : > { %v3129_v11 = vpop.eup %2466  ;;  %2476 = vpow2.f32 %v1187_v12  ;;  %v1189_v10 = vmul.f32 1.442695, %v1146_v42  ;;  %v1147_v56 = vsub.f32 %v2996_v21, %v1077_v44  ;;  %1241 = vadd.xlane.f32.xlu1 %v1240_v45  ;;  %1244 = vadd.xlane.f32.xlu0 %v1243_v52 }
 0x286   : > { %v1080_v57 = vpop.xlane.xlu1 %1079  ;;  %v1246_v25 = vsel %vm1038_vm5, %v3129_v11, 0.0 }
 0x287   : > { %v3132_v58 = vpop.eup %2468  ;;  %2478 = vpow2.f32 %v1189_v10  ;;  %v1191_v14 = vmul.f32 1.442695, %v1147_v56  ;;  %v1148_v60 = vsub.f32 %v3004_v28, %v1080_v57 }
 0x288   : > { %v1083_v62 = vpop.xlane.xlu0 %1082  ;;  %v1249_v29 = vsel %vm1038_vm5, %v3132_v58, 0.0 }
 0x289   : > { %v3139_v46 = vpop.eup %2470  ;;  %2480 = vpow2.f32 %v1191_v14  ;;  %v1193_v21 = vmul.f32 1.442695, %v1148_v60  ;;  %v1149_v54 = vsub.f32 %v3001_v26, %v1083_v62  ;;  %1247 = vadd.xlane.f32.xlu1 %v1246_v25  ;;  %1250 = vadd.xlane.f32.xlu0 %v1249_v29 }
 0x28a   : > { %v1086_v27 = vpop.xlane.xlu1 %1085  ;;  %v1252_v20 = vsel %vm1038_vm5, %v3139_v46, 0.0 }
 0x28b   : > { %v3142_v59 = vpop.eup %2472  ;;  %2482 = vpow2.f32 %v1193_v21  ;;  %v1195_v28 = vmul.f32 1.442695, %v1149_v54  ;;  %v1150_v30 = vsub.f32 %v3009_v34, %v1086_v27 }
 0x28c   : > { %v1089_v19 = vpop.xlane.xlu0 %1088  ;;  %v1255_v33 = vsel %vm1038_vm5, %v3142_v59, 0.0 }
 0x28d   : > { %v3149_v47 = vpop.eup %2474  ;;  %2484 = vpow2.f32 %v1195_v28  ;;  %v1197_v26 = vmul.f32 1.442695, %v1150_v30  ;;  %v1151_v50 = vsub.f32 %v3016_v40, %v1089_v19  ;;  %1253 = vadd.xlane.f32.xlu1 %v1252_v20  ;;  %1256 = vadd.xlane.f32.xlu0 %v1255_v33 }
 0x28e   : > { %v1092_v2 = vpop.xlane.xlu1 %1091  ;;  %v1258_v9 = vsel %vm1038_vm5, %v3149_v47, 0.0 }
 0x28f   : > { %v3152_v5 = vpop.eup %2476  ;;  %2486 = vpow2.f32 %v1197_v26  ;;  %v1199_v34 = vmul.f32 1.442695, %v1151_v50  ;;  %v1152_v37 = vsub.f32 %v3024_v49, %v1092_v2 }
 0x290   : > { %v1095_v63 = vpop.xlane.xlu0 %1094  ;;  %v1261_v13 = vsel %vm1038_vm5, %v3152_v5, 0.0 }
 0x291   : > { %v3159_v15 = vpop.eup %2478  ;;  %2488 = vpow2.f32 %v1199_v34  ;;  %v1201_v40 = vmul.f32 1.442695, %v1152_v37  ;;  %v1153_v17 = vsub.f32 %v3021_v48, %v1095_v63  ;;  %1259 = vadd.xlane.f32.xlu1 %v1258_v9  ;;  %1262 = vadd.xlane.f32.xlu0 %v1261_v13 }
 0x292   : > { %v1098_v18 = vpop.xlane.xlu1 %1097  ;;  %v1264_v6 = vsel %vm1038_vm5, %v3159_v15, 0.0 }
 0x293   : > { %v3162_v1 = vpop.eup %2480  ;;  %2490 = vpow2.f32 %v1201_v40  ;;  %v1203_v49 = vmul.f32 1.442695, %v1153_v17  ;;  %v1154_v22 = vsub.f32 %v3029_v55, %v1098_v18 }
 0x294   : > { %v1101_v36 = vpop.xlane.xlu0 %1100  ;;  %v1267_v38 = vsel %vm1038_vm5, %v3162_v1, 0.0 }
 0x295   : > { %v3169_v12 = vpop.eup %2482  ;;  %2492 = vpow2.f32 %v1203_v49  ;;  %v1205_v48 = vmul.f32 1.442695, %v1154_v22  ;;  %v1155_v42 = vsub.f32 %v3036_v61, %v1101_v36  ;;  %1265 = vadd.xlane.f32.xlu1 %v1264_v6  ;;  %1268 = vadd.xlane.f32.xlu0 %v1267_v38 }
 0x296   : > { %v1104_v44 = vpop.xlane.xlu1 %1103  ;;  %v1270_v56 = vsel %vm1038_vm5, %v3169_v12, 0.0 }
 0x297   : > { %v3172_v45 = vpop.eup %2484  ;;  %2494 = vpow2.f32 %v1205_v48  ;;  %v1207_v55 = vmul.f32 1.442695, %v1155_v42  ;;  %v1156_v52 = vsub.f32 %v3044_v43, %v1104_v44 }
 0x298   : > { %v1107_v10 = vpop.xlane.xlu0 %1106  ;;  %v1273_v57 = vsel %vm1038_vm5, %v3172_v45, 0.0 }
 0x299   : > { %v3179_v14 = vpop.eup %2486  ;;  %2496 = vpow2.f32 %v1207_v55  ;;  %v1209_v61 = vmul.f32 1.442695, %v1156_v52  ;;  %v1157_v60 = vsub.f32 %v3041_v31, %v1107_v10  ;;  %1271 = vadd.xlane.f32.xlu1 %v1270_v56  ;;  %1274 = vadd.xlane.f32.xlu0 %v1273_v57 }
 0x29a   : > { %v1110_v62 = vpop.xlane.xlu1 %1109  ;;  %v1276_v54 = vsel %vm1038_vm5, %v3179_v14, 0.0 }
 0x29b   : > { %v3182_v25 = vpop.eup %2488  ;;  %2498 = vpow2.f32 %v1209_v61  ;;  %v1211_v43 = vmul.f32 1.442695, %v1157_v60  ;;  %v1158_v29 = vsub.f32 %v3049_v53, %v1110_v62 }
 0x29c   : > { %v1113_v21 = vpop.xlane.xlu0 %1112  ;;  %v1279_v27 = vsel %vm1038_vm5, %v3182_v25, 0.0 }
 0x29d   : > { %v3189_v28 = vpop.eup %2490  ;;  %2500 = vpow2.f32 %v1211_v43  ;;  %v1213_v31 = vmul.f32 1.442695, %v1158_v29  ;;  %v1159_v30 = vsub.f32 %v3056_v41, %v1113_v21  ;;  %1277 = vadd.xlane.f32.xlu1 %v1276_v54  ;;  %1280 = vadd.xlane.f32.xlu0 %v1279_v27 }
 0x29e   : > { %v1116_v19 = vpop.xlane.xlu1 %1115  ;;  %v1282_v50 = vsel %vm1038_vm5, %v3189_v28, 0.0 }
 0x29f   : > { %v3192_v20 = vpop.eup %2492  ;;  %2502 = vpow2.f32 %v1213_v31  ;;  %v1215_v53 = vmul.f32 1.442695, %v1159_v30  ;;  %v1160_v33 = vsub.f32 %v3064_v4, %v1116_v19 }
 0x2a0   : > { %v1119_v26 = vpop.xlane.xlu0 %1118  ;;  %v1285_v2 = vsel %vm1038_vm5, %v3192_v20, 0.0 }
 0x2a1   : > { %v3199_v34 = vpop.eup %2494  ;;  %2504 = vpow2.f32 %v1215_v53  ;;  %v1217_v41 = vmul.f32 1.442695, %v1160_v33  ;;  %v1161_v37 = vsub.f32 %v3061_v3, %v1119_v26  ;;  %1283 = vadd.xlane.f32.xlu1 %v1282_v50  ;;  %1286 = vadd.xlane.f32.xlu0 %v1285_v2 }
 0x2a2   : > { %v1122_v63 = vpop.xlane.xlu1 %1121  ;;  %v1288_v17 = vsel %vm1038_vm5, %v3199_v34, 0.0 }
 0x2a3   : > { %v3202_v9 = vpop.eup %2496  ;;  %2506 = vpow2.f32 %v1217_v41  ;;  %v1219_v4 = vmul.f32 1.442695, %v1161_v37  ;;  %v1162_v13 = vsub.f32 %v3069_v7, %v1122_v63 }
 0x2a4   : > { %v1125_v40 = vpop.xlane.xlu0 %1124  ;;  %v1291_v18 = vsel %vm1038_vm5, %v3202_v9, 0.0 }
 0x2a5   : > { %v3209_v49 = vpop.eup %2498  ;;  %2508 = vpow2.f32 %v1219_v4  ;;  %v1221_v3 = vmul.f32 1.442695, %v1162_v13  ;;  %v1163_v22 = vsub.f32 %v3076_v16, %v1125_v40  ;;  %1289 = vadd.xlane.f32.xlu1 %v1288_v17  ;;  %1292 = vadd.xlane.f32.xlu0 %v1291_v18 }
 0x2a6   : > { %v1128_v36 = vpop.xlane.xlu1 %1127  ;;  %v1294_v42 = vsel %vm1038_vm5, %v3209_v49, 0.0 }
 0x2a7   : > { %v3212_v6 = vpop.eup %2500  ;;  %2510 = vpow2.f32 %v1221_v3  ;;  %v1223_v7 = vmul.f32 1.442695, %v1163_v22  ;;  %v1164_v38 = vsub.f32 %v3084_v24, %v1128_v36 }
 0x2a8   : > { %v1131_v48 = vpop.xlane.xlu0 %1130  ;;  %v1297_v44 = vsel %vm1038_vm5, %v3212_v6, 0.0 }
 0x2a9   : > { %v3219_v55 = vpop.eup %2502  ;;  %2512 = vpow2.f32 %v1223_v7  ;;  %v1225_v16 = vmul.f32 1.442695, %v1164_v38  ;;  %v1165_v52 = vsub.f32 %v3081_v23, %v1131_v48  ;;  %1295 = vadd.xlane.f32.xlu1 %v1294_v42  ;;  %1298 = vadd.xlane.f32.xlu0 %v1297_v44 }
 0x2aa   : > { %v1134_v10 = vpop.xlane.xlu1 %1133  ;;  %v1300_v61 = vsel %vm1038_vm5, %v3219_v55, 0.0 }
 0x2ab   : > { %v3222_v56 = vpop.eup %2504  ;;  %2514 = vpow2.f32 %v1225_v16  ;;  %v1227_v24 = vmul.f32 1.442695, %v1165_v52  ;;  %v1166_v57 = vsub.f32 %v3089_v35, %v1134_v10 }
 0x2ac   : > { %v1303_v60 = vsel %vm1038_vm5, %v3222_v56, 0.0 }
 0x2ad   : > { %v3229_v62 = vpop.eup %2506  ;;  %2516 = vpow2.f32 %v1227_v24  ;;  %v1229_v43 = vmul.f32 1.442695, %v1166_v57  ;;  %1301 = vadd.xlane.f32.xlu1 %v1300_v61  ;;  %1304 = vadd.xlane.f32.xlu0 %v1303_v60 }
 0x2ae   : > { %v1306_v29 = vsel %vm1038_vm5, %v3229_v62, 0.0 }
 0x2af   : > { %v3231_v23 = vpop.eup %2508  ;;  %2518 = vpow2.f32 %v1229_v43 }
 0x2b0   : > { %v1309_v35 = vsel %vm1038_vm5, %v3231_v23, 0.0 }
 0x2b1   : > { %v3237_v21 = vpop.eup %2510  ;;  %1307 = vadd.xlane.f32.xlu1 %v1306_v29  ;;  %1310 = vadd.xlane.f32.xlu0 %v1309_v35 }
 0x2b2   : > { %v1312_v27 = vsel %vm1038_vm5, %v3237_v21, 0.0 }
 0x2b3   : > { %v3239_v54 = vpop.eup %2512 }
 0x2b4   : > { %v1315_v31 = vsel %vm1038_vm5, %v3239_v54, 0.0 }
 0x2b5   : > { %v3245_v30 = vpop.eup %2514  ;;  %1313 = vadd.xlane.f32.xlu1 %v1312_v27  ;;  %1316 = vadd.xlane.f32.xlu0 %v1315_v31 }
 0x2b6   : > { %v1318_v53 = vsel %vm1038_vm5, %v3245_v30, 0.0 }
 0x2b7   : > { %v3247_v19 = vpop.eup %2516 }
 0x2b8   : > { %v1321_v33 = vsel %vm1038_vm5, %v3247_v19, 0.0 }
 0x2b9   : > { %v3253_v26 = vpop.eup %2518  ;;  %1319 = vadd.xlane.f32.xlu1 %v1318_v53  ;;  %1322 = vadd.xlane.f32.xlu0 %v1321_v33 }
 0x2ba   : > { %v1324_v50 = vsel %vm1038_vm5, %v3253_v26, 0.0 }
 0x2bd   : > { %1325 = vadd.xlane.f32.xlu1 %v1324_v50 }
 0x30a   : > { %v1233_v2 = vpop.xlane.xlu0 %1232 }
 0x30b   : > { %2520 = vrcp.f32 %v1233_v2 }
 0x30e   : > { %v1236_v41 = vpop.xlane.xlu1 %1235  ;;  %v1239_v37 = vpop.xlane.xlu0 %1238 }
 0x30f   : > { %2522 = vrcp.f32 %v1236_v41 }
 0x310   : > { %2524 = vrcp.f32 %v1239_v37 }
 0x312   : > { %v1242_v63 = vpop.xlane.xlu1 %1241  ;;  %v1245_v4 = vpop.xlane.xlu0 %1244 }
 0x313   : > { %2526 = vrcp.f32 %v1242_v63 }
 0x314   : > { %2528 = vrcp.f32 %v1245_v4 }
 0x315   : > { %v2521_v17 = vpop.eup %2520 }
 0x316   : > { %v1248_v13 = vpop.xlane.xlu1 %1247  ;;  %v1251_v40 = vpop.xlane.xlu0 %1250  ;;  %v1328_v36 = vmul.f32 %v2521_v17, %v3104_v0 }
 0x317   : > { %2530 = vrcp.f32 %v1248_v13 }
 0x318   : > { %2532 = vrcp.f32 %v1251_v40 }
 0x319   : > { %v2523_v18 = vpop.eup %2522 }
 0x31a   : > { %v1254_v3 = vpop.xlane.xlu1 %1253  ;;  %v1257_v22 = vpop.xlane.xlu0 %1256  ;;  %v1330_v7 = vmul.f32 %v2523_v18, %v3112_v51 }
 0x31b   : > { %v2525_v38 = vpop.eup %2524  ;;  %2534 = vrcp.f32 %v1254_v3 }
 0x31c   : > { %v1391_v48 = vpack.c.bf16 %v1330_v7, %v1328_v36  ;;  %2536 = vrcp.f32 %v1257_v22  ;;  %v1332_v44 = vmul.f32 %v2525_v38, %v3109_v8 }
 0x31d   : > { %v2527_v42 = vpop.eup %2526 }
 0x31e   : > { %v1334_v16 = vmul.f32 %v2527_v42, %v3119_v32  ;;  %v1260_v52 = vpop.xlane.xlu1 %1259  ;;  %2404 = vmatprep.mubr.msk.bf16.mxu1 %vm1038_vm5, %v1391_v48  ;;  %v1263_v10 = vpop.xlane.xlu0 %1262 }
 0x31f   : > { %v2529_v24 = vpop.eup %2528  ;;  %2538 = vrcp.f32 %v1260_v52 }
 0x320   : > { %v1392_v57 = vpack.c.bf16 %v1334_v16, %v1332_v44  ;;  %2540 = vrcp.f32 %v1263_v10  ;;  %v1336_v60 = vmul.f32 %v2529_v24, %v3122_v39 }
 0x321   : > { %v2531_v61 = vpop.eup %2530 }
 0x322   : > { %v1266_v0 = vpop.xlane.xlu1 %1265  ;;  %2405 = vmatmul.mubr.msk.bf16.vlgmr.msra.gmra.mrb[20].mxu1 %vm1038_vm5, %v1392_v57  ;;  %v1269_v51 = vpop.xlane.xlu0 %1268  ;;  %v1338_v43 = vmul.f32 %v2531_v61, %v3129_v11 }
 0x323   : > { %v2533_v8 = vpop.eup %2532  ;;  %2542 = vrcp.f32 %v1266_v0 }
 0x324   : > { %v1393_v32 = vpack.c.bf16 %v1338_v43, %v1336_v60  ;;  %2544 = vrcp.f32 %v1269_v51  ;;  %v1340_v31 = vmul.f32 %v2533_v8, %v3132_v58 }
 0x325   : > { %v2535_v29 = vpop.eup %2534 }
 0x326   : > { %v1272_v35 = vpop.xlane.xlu1 %1271  ;;  %2408 = vmatprep.mubr.msk.bf16.mxu1 %vm1038_vm5, %v1393_v32  ;;  %v1275_v27 = vpop.xlane.xlu0 %1274  ;;  %v1342_v53 = vmul.f32 %v2535_v29, %v3139_v46 }
 0x327   : > { %v2537_v33 = vpop.eup %2536  ;;  %2546 = vrcp.f32 %v1272_v35 }
 0x328   : > { %v1394_v50 = vpack.c.bf16 %v1342_v53, %v1340_v31  ;;  %2548 = vrcp.f32 %v1275_v27  ;;  %v1344_v41 = vmul.f32 %v2537_v33, %v3142_v59 }
 0x329   : > { %v2539_v2 = vpop.eup %2538 }
 0x32a   : > { %v1278_v39 = vpop.xlane.xlu1 %1277  ;;  %2409 = vmatmul.mubr.msk.bf16.gmra.mrb[24].mxu1 %vm1038_vm5, %v1394_v50  ;;  %v1281_v11 = vpop.xlane.xlu0 %1280  ;;  %v1346_v37 = vmul.f32 %v2539_v2, %v3149_v47 }
 0x32b   : > { %v2541_v63 = vpop.eup %2540  ;;  %2550 = vrcp.f32 %v1278_v39 }
 0x32c   : > { %v1395_v4 = vpack.c.bf16 %v1346_v37, %v1344_v41  ;;  %2552 = vrcp.f32 %v1281_v11  ;;  %v1348_v40 = vmul.f32 %v2541_v63, %v3152_v5 }
 0x32d   : > { %v2543_v13 = vpop.eup %2542 }
 0x32e   : > { %v1284_v58 = vpop.xlane.xlu1 %1283  ;;  %2412 = vmatprep.mubr.msk.bf16.mxu1 %vm1038_vm5, %v1395_v4  ;;  %v1287_v46 = vpop.xlane.xlu0 %1286  ;;  %v1350_v17 = vmul.f32 %v2543_v13, %v3159_v15 }
 0x32f   : > { %v2545_v18 = vpop.eup %2544  ;;  %2554 = vrcp.f32 %v1284_v58 }
 0x330   : > { %v1396_v3 = vpack.c.bf16 %v1350_v17, %v1348_v40  ;;  %2556 = vrcp.f32 %v1287_v46  ;;  %v1352_v36 = vmul.f32 %v2545_v18, %v3162_v1 }
 0x331   : > { %v2547_v22 = vpop.eup %2546 }
 0x332   : > { %v1290_v59 = vpop.xlane.xlu1 %1289  ;;  %2413 = vmatmul.mubr.msk.bf16.gmra.mrb[28].mxu1 %vm1038_vm5, %v1396_v3  ;;  %v1293_v47 = vpop.xlane.xlu0 %1292  ;;  %v1354_v7 = vmul.f32 %v2547_v22, %v3169_v12 }
 0x333   : > { %v2549_v38 = vpop.eup %2548  ;;  %2558 = vrcp.f32 %v1290_v59 }
 0x334   : > { %v1397_v48 = vpack.c.bf16 %v1354_v7, %v1352_v36  ;;  %2560 = vrcp.f32 %v1293_v47  ;;  %v1356_v44 = vmul.f32 %v2549_v38, %v3172_v45 }
 0x335   : > { %v2551_v42 = vpop.eup %2550 }
 0x336   : > { %v1296_v5 = vpop.xlane.xlu1 %1295  ;;  %2416 = vmatprep.mubr.msk.bf16.mxu1 %vm1038_vm5, %v1397_v48  ;;  %v1299_v15 = vpop.xlane.xlu0 %1298  ;;  %v1358_v16 = vmul.f32 %v2551_v42, %v3179_v14 }
 0x337   : > { %v2553_v52 = vpop.eup %2552  ;;  %2562 = vrcp.f32 %v1296_v5 }
 0x338   : > { %v1398_v10 = vpack.c.bf16 %v1358_v16, %v1356_v44  ;;  %2564 = vrcp.f32 %v1299_v15  ;;  %v1360_v57 = vmul.f32 %v2553_v52, %v3182_v25 }
 0x339   : > { %v2555_v24 = vpop.eup %2554 }
 0x33a   : > { %v1302_v1 = vpop.xlane.xlu1 %1301  ;;  %2417 = vmatmul.mubr.msk.bf16.gmra.mrb[32].mxu1 %vm1038_vm5, %v1398_v10  ;;  %v1305_v12 = vpop.xlane.xlu0 %1304  ;;  %v1362_v61 = vmul.f32 %v2555_v24, %v3189_v28 }
 0x33b   : > { %v2557_v0 = vpop.eup %2556  ;;  %2566 = vrcp.f32 %v1302_v1 }
 0x33c   : > { %v1399_v51 = vpack.c.bf16 %v1362_v61, %v1360_v57  ;;  %2568 = vrcp.f32 %v1305_v12  ;;  %v1364_v43 = vmul.f32 %v2557_v0, %v3192_v20 }
 0x33d   : > { %v2559_v60 = vpop.eup %2558 }
 0x33e   : > { %v1308_v45 = vpop.xlane.xlu1 %1307  ;;  %2420 = vmatprep.mubr.msk.bf16.mxu1 %vm1038_vm5, %v1399_v51  ;;  %v1311_v14 = vpop.xlane.xlu0 %1310  ;;  %v1366_v8 = vmul.f32 %v2559_v60, %v3199_v34 }
 0x33f   : > { %v2561_v32 = vpop.eup %2560  ;;  %2570 = vrcp.f32 %v1308_v45 }
 0x340   : > { %v1400_v29 = vpack.c.bf16 %v1366_v8, %v1364_v43  ;;  %2572 = vrcp.f32 %v1311_v14  ;;  %v1368_v27 = vmul.f32 %v2561_v32, %v3202_v9 }
 0x341   : > { %v2563_v35 = vpop.eup %2562 }
 0x342   : > { %v1314_v25 = vpop.xlane.xlu1 %1313  ;;  %2421 = vmatmul.mubr.msk.bf16.gmra.mrb[36].mxu1 %vm1038_vm5, %v1400_v29  ;;  %v1317_v28 = vpop.xlane.xlu0 %1316  ;;  %v1370_v31 = vmul.f32 %v2563_v35, %v3209_v49 }
 0x343   : > { %v2565_v53 = vpop.eup %2564  ;;  %2574 = vrcp.f32 %v1314_v25 }
 0x344   : > { %v1401_v33 = vpack.c.bf16 %v1370_v31, %v1368_v27  ;;  %2576 = vrcp.f32 %v1317_v28  ;;  %v1372_v2 = vmul.f32 %v2565_v53, %v3212_v6 }
 0x345   : > { %v2567_v50 = vpop.eup %2566 }
 0x346   : > { %v1320_v20 = vpop.xlane.xlu1 %1319  ;;  %2424 = vmatprep.mubr.msk.bf16.mxu1 %vm1038_vm5, %v1401_v33  ;;  %v1323_v34 = vpop.xlane.xlu0 %1322  ;;  %v1374_v39 = vmul.f32 %v2567_v50, %v3219_v55 }
 0x347   : > { %v2569_v11 = vpop.eup %2568  ;;  %2578 = vrcp.f32 %v1320_v20 }
 0x348   : > { %v1402_v41 = vpack.c.bf16 %v1374_v39, %v1372_v2  ;;  %2580 = vrcp.f32 %v1323_v34  ;;  %v1376_v49 = vmul.f32 %v2569_v11, %v3222_v56 }
 0x349   : > { %v2571_v37 = vpop.eup %2570 }
 0x34a   : > { %v1326_v9 = vpop.xlane.xlu1 %1325  ;;  %2425 = vmatmul.mubr.msk.bf16.gmra.mrb[40].mxu1 %vm1038_vm5, %v1402_v41  ;;  %v1378_v63 = vmul.f32 %v2571_v37, %v3229_v62  ;;  %v2573_v4 = vpop.eup %2572 }
 0x34b   : > { %2582 = vrcp.f32 %v1326_v9  ;;  %v1380_v6 = vmul.f32 %v2573_v4, %v3231_v23 }
 0x34c   : > { %v1403_v13 = vpack.c.bf16 %v1378_v63, %v1376_v49 }
 0x34d   : > { %v2575_v58 = vpop.eup %2574 }
 0x34e   : > { %2428 = vmatprep.mubr.msk.bf16.mxu1 %vm1038_vm5, %v1403_v13  ;;  %v1382_v55 = vmul.f32 %v2575_v58, %v3237_v21  ;;  %v2577_v46 = vpop.eup %2576 }
 0x34f   : > { %v1384_v18 = vmul.f32 %v2577_v46, %v3239_v54 }
 0x350   : > { %v1404_v40 = vpack.c.bf16 %v1382_v55, %v1380_v6 }
 0x351   : > { %v2579_v17 = vpop.eup %2578 }
 0x352   : > { %2429 = vmatmul.mubr.msk.bf16.gmra.mrb[44].mxu1 %vm1038_vm5, %v1404_v40  ;;  %v1386_v56 = vmul.f32 %v2579_v17, %v3245_v30  ;;  %v2581_v62 = vpop.eup %2580 }
 0x353   : > { %v1388_v59 = vmul.f32 %v2581_v62, %v3247_v19 }
 0x354   : > { %v1405_v3 = vpack.c.bf16 %v1386_v56, %v1384_v18 }
 0x355   : > { %v2583_v22 = vpop.eup %2582 }
 0x356   : > { %2432 = vmatprep.mubr.msk.bf16.mxu1 %vm1038_vm5, %v1405_v3  ;;  %v1390_v23 = vmul.f32 %v2583_v22, %v3253_v26 }
 0x358   : > { %v1406_v47 = vpack.c.bf16 %v1390_v23, %v1388_v59 }
 0x35a   : > { %2433 = vmatmul.mubr.msk.bf16.gmra.mrb[48].mxu1 %vm1038_vm5, %v1406_v47 }
 0x3f5   : > { %v3305_v21 = vpop.f32.mrb[20].mxu1 }
 0x3f6   : > { %v3307_v36 = vpop.f32.mrb[21].mxu1  ;;  %v1629_v54 = vsel %vm379_vm0, %v3305_v21, 0.0 }
 0x3f7   : > { %1630 = vadd.xlane.f32.xlu0 %v1629_v54  ;;  %v3311_v30 = vpop.f32.mrb[22].mxu1  ;;  %v1623_v26 = vsel %vm379_vm0, %v3307_v36, 0.0 }
 0x3f8   : > { %v3313_v7 = vpop.f32.mrb[23].mxu1  ;;  %v1632_v19 = vsel %vm379_vm0, %v3311_v30, 0.0 }
 0x3f9   : > { %1633 = vadd.xlane.f32.xlu1 %v1632_v19  ;;  %v1626_v38 = vsel %vm379_vm0, %v3313_v7, 0.0 }
 0x3fb   : > { %1624 = vadd.xlane.f32.xlu0 %v1623_v26 }
 0x3fd   : > { %1627 = vadd.xlane.f32.xlu1 %v1626_v38  ;;  %v3321_v48 = vpop.f32.mrb[24].mxu1 }
 0x3fe   : > { %v3323_v42 = vpop.f32.mrb[25].mxu1  ;;  %v1641_v5 = vsel %vm379_vm0, %v3321_v48, 0.0 }
 0x3ff   : > { %1642 = vadd.xlane.f32.xlu0 %v1641_v5  ;;  %v3327_v15 = vpop.f32.mrb[26].mxu1  ;;  %v1635_v52 = vsel %vm379_vm0, %v3323_v42, 0.0 }
 0x400   : > { %v3329_v44 = vpop.f32.mrb[27].mxu1  ;;  %v1644_v16 = vsel %vm379_vm0, %v3327_v15, 0.0 }
 0x401   : > { %1645 = vadd.xlane.f32.xlu1 %v1644_v16  ;;  %v1638_v10 = vsel %vm379_vm0, %v3329_v44, 0.0 }
 0x403   : > { %1636 = vadd.xlane.f32.xlu0 %v1635_v52 }
 0x405   : > { %1639 = vadd.xlane.f32.xlu1 %v1638_v10  ;;  %v3337_v24 = vpop.f32.mrb[28].mxu1 }
 0x406   : > { %v3339_v1 = vpop.f32.mrb[29].mxu1  ;;  %v1653_v12 = vsel %vm379_vm0, %v3337_v24, 0.0 }
 0x407   : > { %1654 = vadd.xlane.f32.xlu0 %v1653_v12  ;;  %v3343_v57 = vpop.f32.mrb[30].mxu1  ;;  %v1647_v51 = vsel %vm379_vm0, %v3339_v1, 0.0 }
 0x408   : > { %v3345_v61 = vpop.f32.mrb[31].mxu1  ;;  %v1656_v0 = vsel %vm379_vm0, %v3343_v57, 0.0 }
 0x409   : > { %1657 = vadd.xlane.f32.xlu1 %v1656_v0  ;;  %v1650_v60 = vsel %vm379_vm0, %v3345_v61, 0.0 }
 0x40b   : > { %1648 = vadd.xlane.f32.xlu0 %v1647_v51 }
 0x40d   : > { %1651 = vadd.xlane.f32.xlu1 %v1650_v60  ;;  %v3353_v45 = vpop.f32.mrb[32].mxu1 }
 0x40e   : > { %v3355_v14 = vpop.f32.mrb[33].mxu1  ;;  %v1665_v43 = vsel %vm379_vm0, %v3353_v45, 0.0 }
 0x40f   : > { %1666 = vadd.xlane.f32.xlu0 %v1665_v43  ;;  %v3359_v8 = vpop.f32.mrb[34].mxu1  ;;  %v1659_v35 = vsel %vm379_vm0, %v3355_v14, 0.0 }
 0x410   : > { %v3361_v32 = vpop.f32.mrb[35].mxu1  ;;  %v1668_v29 = vsel %vm379_vm0, %v3359_v8, 0.0 }
 0x411   : > { %1669 = vadd.xlane.f32.xlu1 %v1668_v29  ;;  %v1662_v25 = vsel %vm379_vm0, %v3361_v32, 0.0 }
 0x413   : > { %1660 = vadd.xlane.f32.xlu0 %v1659_v35 }
 0x415   : > { %1663 = vadd.xlane.f32.xlu1 %v1662_v25  ;;  %v3369_v28 = vpop.f32.mrb[36].mxu1 }
 0x416   : > { %v3371_v27 = vpop.f32.mrb[37].mxu1  ;;  %v1677_v31 = vsel %vm379_vm0, %v3369_v28, 0.0 }
 0x417   : > { %1678 = vadd.xlane.f32.xlu0 %v1677_v31  ;;  %v3375_v53 = vpop.f32.mrb[38].mxu1  ;;  %v1671_v20 = vsel %vm379_vm0, %v3371_v27, 0.0 }
 0x418   : > { %v3377_v33 = vpop.f32.mrb[39].mxu1  ;;  %v1680_v50 = vsel %vm379_vm0, %v3375_v53, 0.0 }
 0x419   : > { %1681 = vadd.xlane.f32.xlu1 %v1680_v50  ;;  %v1674_v34 = vsel %vm379_vm0, %v3377_v33, 0.0 }
 0x41b   : > { %1672 = vadd.xlane.f32.xlu0 %v1671_v20 }
 0x41d   : > { %1675 = vadd.xlane.f32.xlu1 %v1674_v34  ;;  %v3385_v2 = vpop.f32.mrb[40].mxu1 }
 0x41e   : > { %v3387_v39 = vpop.f32.mrb[41].mxu1  ;;  %v1689_v11 = vsel %vm379_vm0, %v3385_v2, 0.0 }
 0x41f   : > { %1690 = vadd.xlane.f32.xlu0 %v1689_v11  ;;  %v3391_v41 = vpop.f32.mrb[42].mxu1  ;;  %v1683_v49 = vsel %vm379_vm0, %v3387_v39, 0.0 }
 0x420   : > { %v3393_v37 = vpop.f32.mrb[43].mxu1  ;;  %v1692_v9 = vsel %vm379_vm0, %v3391_v41, 0.0 }
 0x421   : > { %1693 = vadd.xlane.f32.xlu1 %v1692_v9  ;;  %v1686_v63 = vsel %vm379_vm0, %v3393_v37, 0.0 }
 0x423   : > { %1684 = vadd.xlane.f32.xlu0 %v1683_v49 }
 0x425   : > { %1687 = vadd.xlane.f32.xlu1 %v1686_v63  ;;  %v3401_v4 = vpop.f32.mrb[44].mxu1 }
 0x426   : > { %v3403_v13 = vpop.f32.mrb[45].mxu1  ;;  %v1701_v58 = vsel %vm379_vm0, %v3401_v4, 0.0 }
 0x427   : > { %1702 = vadd.xlane.f32.xlu0 %v1701_v58  ;;  %v3407_v6 = vpop.f32.mrb[46].mxu1  ;;  %v1695_v40 = vsel %vm379_vm0, %v3403_v13, 0.0 }
 0x428   : > { %v3409_v55 = vpop.f32.mrb[47].mxu1  ;;  %v1704_v46 = vsel %vm379_vm0, %v3407_v6, 0.0 }
 0x429   : > { %1705 = vadd.xlane.f32.xlu1 %v1704_v46  ;;  %v1698_v17 = vsel %vm379_vm0, %v3409_v55, 0.0 }
 0x42b   : > { %1696 = vadd.xlane.f32.xlu0 %v1695_v40 }
 0x42d   : > { %1699 = vadd.xlane.f32.xlu1 %v1698_v17  ;;  %v3417_v18 = vpop.f32.mrb[48].mxu1 }
 0x42e   : > { %v3419_v56 = vpop.f32.mrb[49].mxu1  ;;  %v1713_v23 = vsel %vm379_vm0, %v3417_v18, 0.0 }
 0x42f   : > { %v3421_v62 = vpop.f32.mrb[50].mxu1  ;;  %v1707_v3 = vsel %vm379_vm0, %v3419_v56, 0.0 }
 0x430   : > { %1708 = vadd.xlane.f32.xlu0 %v1707_v3  ;;  %v3425_v22 = vpop.f32.mrb[51].mxu1  ;;  %v1716_v47 = vsel %vm379_vm0, %v3421_v62, 0.0 }
 0x431   : > { %v1710_v59 = vsel %vm379_vm0, %v3425_v22, 0.0 }
 0x432   : > { %1711 = vadd.xlane.f32.xlu1 %v1710_v59 }
 0x434   : > { %1714 = vadd.xlane.f32.xlu0 %v1713_v23 }
 0x436   : > { %1717 = vadd.xlane.f32.xlu1 %v1716_v47 }
 0x484   : > { %v1631_v54 = vpop.xlane.xlu0 %1630 }
 0x485   : > { %v1722_v19 = vmul.f32 0.03125, %v1631_v54 }
 0x486   : > { %v1634_v26 = vpop.xlane.xlu1 %1633 }
 0x487   : > { %v3434_v38 = vsub.f32 %v3305_v21, %v1722_v19  ;;  %v1723_v5 = vmul.f32 0.03125, %v1634_v26 }
 0x488   : > { %v1625_v16 = vpop.xlane.xlu0 %1624 }
 0x489   : > { %v3437_v52 = vsub.f32 %v3311_v30, %v1723_v5  ;;  %v1720_v10 = vmul.f32 0.03125, %v1625_v16  ;;  %v1786_v12 = vmul.f32 %v3434_v38, %v3434_v38 }
 0x48a   : > { %v1628_v0 = vpop.xlane.xlu1 %1627 }
 0x48b   : > { %v3442_v51 = vsub.f32 %v3307_v36, %v1720_v10  ;;  %v1721_v60 = vmul.f32 0.03125, %v1628_v0  ;;  %v1822_v43 = vsel %vm379_vm0, %v1786_v12, 0.0  ;;  %v1787_v21 = vmul.f32 %v3437_v52, %v3437_v52 }
 0x48c   : > { %1823 = vadd.xlane.f32.xlu0 %v1822_v43  ;;  %v1643_v29 = vpop.xlane.xlu0 %1642 }
 0x48d   : > { %v3448_v35 = vsub.f32 %v3313_v7, %v1721_v60  ;;  %v1726_v30 = vmul.f32 0.03125, %v1643_v29  ;;  %v1825_v25 = vsel %vm379_vm0, %v1787_v21, 0.0  ;;  %v1784_v31 = vmul.f32 %v3442_v51, %v3442_v51 }
 0x48e   : > { %v1646_v50 = vpop.xlane.xlu1 %1645  ;;  %1826 = vadd.xlane.f32.xlu1 %v1825_v25 }
 0x48f   : > { %v3454_v36 = vsub.f32 %v3321_v48, %v1726_v30  ;;  %v1727_v20 = vmul.f32 0.03125, %v1646_v50  ;;  %v1816_v34 = vsel %vm379_vm0, %v1784_v31, 0.0  ;;  %v1785_v11 = vmul.f32 %v3448_v35, %v3448_v35 }
 0x490   : > { %1817 = vadd.xlane.f32.xlu0 %v1816_v34  ;;  %v1637_v7 = vpop.xlane.xlu0 %1636 }
 0x491   : > { %v3460_v9 = vsub.f32 %v3327_v15, %v1727_v20  ;;  %v1724_v49 = vmul.f32 0.03125, %v1637_v7  ;;  %v1819_v63 = vsel %vm379_vm0, %v1785_v11, 0.0  ;;  %v1790_v58 = vmul.f32 %v3454_v36, %v3454_v36 }
 0x492   : > { %v1640_v46 = vpop.xlane.xlu1 %1639  ;;  %1820 = vadd.xlane.f32.xlu1 %v1819_v63 }
 0x493   : > { %v3466_v48 = vsub.f32 %v3323_v42, %v1724_v49  ;;  %v1725_v40 = vmul.f32 0.03125, %v1640_v46  ;;  %v1834_v17 = vsel %vm379_vm0, %v1790_v58, 0.0  ;;  %v1791_v3 = vmul.f32 %v3460_v9, %v3460_v9 }
 0x494   : > { %1835 = vadd.xlane.f32.xlu0 %v1834_v17  ;;  %v1655_v15 = vpop.xlane.xlu0 %1654 }
 0x495   : > { %v3472_v59 = vsub.f32 %v3329_v44, %v1725_v40  ;;  %v1730_v23 = vmul.f32 0.03125, %v1655_v15  ;;  %v1837_v47 = vsel %vm379_vm0, %v1791_v3, 0.0  ;;  %v1788_v54 = vmul.f32 %v3466_v48, %v3466_v48 }
 0x496   : > { %v1658_v19 = vpop.xlane.xlu1 %1657  ;;  %1838 = vadd.xlane.f32.xlu1 %v1837_v47 }
 0x497   : > { %v3478_v42 = vsub.f32 %v3337_v24, %v1730_v23  ;;  %v1731_v26 = vmul.f32 0.03125, %v1658_v19  ;;  %v1828_v5 = vsel %vm379_vm0, %v1788_v54, 0.0  ;;  %v1789_v16 = vmul.f32 %v3472_v59, %v3472_v59 }
 0x498   : > { %1829 = vadd.xlane.f32.xlu0 %v1828_v5  ;;  %v1649_v44 = vpop.xlane.xlu0 %1648 }
 0x499   : > { %v3484_v10 = vsub.f32 %v3343_v57, %v1731_v26  ;;  %v1728_v12 = vmul.f32 0.03125, %v1649_v44  ;;  %v1831_v0 = vsel %vm379_vm0, %v1789_v16, 0.0  ;;  %v1794_v60 = vmul.f32 %v3478_v42, %v3478_v42 }
 0x49a   : > { %v1652_v43 = vpop.xlane.xlu1 %1651  ;;  %1832 = vadd.xlane.f32.xlu1 %v1831_v0 }
 0x49b   : > { %v3490_v24 = vsub.f32 %v3339_v1, %v1728_v12  ;;  %v1729_v21 = vmul.f32 0.03125, %v1652_v43  ;;  %v1846_v29 = vsel %vm379_vm0, %v1794_v60, 0.0  ;;  %v1795_v30 = vmul.f32 %v3484_v10, %v3484_v10 }
 0x49c   : > { %1847 = vadd.xlane.f32.xlu0 %v1846_v29  ;;  %v1667_v57 = vpop.xlane.xlu0 %1666 }
 0x49d   : > { %v3496_v25 = vsub.f32 %v3345_v61, %v1729_v21  ;;  %v1734_v31 = vmul.f32 0.03125, %v1667_v57  ;;  %v1849_v50 = vsel %vm379_vm0, %v1795_v30, 0.0  ;;  %v1792_v20 = vmul.f32 %v3490_v24, %v3490_v24 }
 0x49e   : > { %v1670_v34 = vpop.xlane.xlu1 %1669  ;;  %1850 = vadd.xlane.f32.xlu1 %v1849_v50 }
 0x49f   : > { %v3502_v1 = vsub.f32 %v3353_v45, %v1734_v31  ;;  %v1735_v11 = vmul.f32 0.03125, %v1670_v34  ;;  %v1840_v7 = vsel %vm379_vm0, %v1792_v20, 0.0  ;;  %v1793_v49 = vmul.f32 %v3496_v25, %v3496_v25 }
 0x4a0   : > { %1841 = vadd.xlane.f32.xlu0 %v1840_v7  ;;  %v1661_v61 = vpop.xlane.xlu0 %1660 }
 0x4a1   : > { %v3508_v63 = vsub.f32 %v3359_v8, %v1735_v11  ;;  %v1732_v58 = vmul.f32 0.03125, %v1661_v61  ;;  %v1843_v46 = vsel %vm379_vm0, %v1793_v49, 0.0  ;;  %v1798_v40 = vmul.f32 %v3502_v1, %v3502_v1 }
 0x4a2   : > { %v1664_v17 = vpop.xlane.xlu1 %1663  ;;  %1844 = vadd.xlane.f32.xlu1 %v1843_v46 }
 0x4a3   : > { %v3514_v45 = vsub.f32 %v3355_v14, %v1732_v58  ;;  %v1733_v3 = vmul.f32 0.03125, %v1664_v17  ;;  %v1858_v15 = vsel %vm379_vm0, %v1798_v40, 0.0  ;;  %v1799_v23 = vmul.f32 %v3508_v63, %v3508_v63 }
 0x4a4   : > { %1859 = vadd.xlane.f32.xlu0 %v1858_v15  ;;  %v1679_v8 = vpop.xlane.xlu0 %1678 }
 0x4a5   : > { %v3520_v47 = vsub.f32 %v3361_v32, %v1733_v3  ;;  %v1738_v54 = vmul.f32 0.03125, %v1679_v8  ;;  %v1861_v19 = vsel %vm379_vm0, %v1799_v23, 0.0  ;;  %v1796_v26 = vmul.f32 %v3514_v45, %v3514_v45 }
 0x4a6   : > { %v1682_v5 = vpop.xlane.xlu1 %1681  ;;  %1862 = vadd.xlane.f32.xlu1 %v1861_v19 }
 0x4a7   : > { %v3526_v14 = vsub.f32 %v3369_v28, %v1738_v54  ;;  %v1739_v16 = vmul.f32 0.03125, %v1682_v5  ;;  %v1852_v44 = vsel %vm379_vm0, %v1796_v26, 0.0  ;;  %v1797_v12 = vmul.f32 %v3520_v47, %v3520_v47 }
 0x4a8   : > { %1853 = vadd.xlane.f32.xlu0 %v1852_v44  ;;  %v1673_v32 = vpop.xlane.xlu0 %1672 }
 0x4a9   : > { %v3532_v0 = vsub.f32 %v3375_v53, %v1739_v16  ;;  %v1736_v60 = vmul.f32 0.03125, %v1673_v32  ;;  %v1855_v43 = vsel %vm379_vm0, %v1797_v12, 0.0  ;;  %v1802_v21 = vmul.f32 %v3526_v14, %v3526_v14 }
 0x4aa   : > { %v1676_v29 = vpop.xlane.xlu1 %1675  ;;  %1856 = vadd.xlane.f32.xlu1 %v1855_v43 }
 0x4ab   : > { %v3538_v28 = vsub.f32 %v3371_v27, %v1736_v60  ;;  %v1737_v30 = vmul.f32 0.03125, %v1676_v29  ;;  %v1870_v57 = vsel %vm379_vm0, %v1802_v21, 0.0  ;;  %v1803_v31 = vmul.f32 %v3532_v0, %v3532_v0 }
 0x4ac   : > { %1871 = vadd.xlane.f32.xlu0 %v1870_v57  ;;  %v1691_v53 = vpop.xlane.xlu0 %1690 }
 0x4ad   : > { %v3544_v50 = vsub.f32 %v3377_v33, %v1737_v30  ;;  %v1742_v20 = vmul.f32 0.03125, %v1691_v53  ;;  %v1873_v34 = vsel %vm379_vm0, %v1803_v31, 0.0  ;;  %v1800_v11 = vmul.f32 %v3538_v28, %v3538_v28 }
 0x4ae   : > { %v1694_v7 = vpop.xlane.xlu1 %1693  ;;  %1874 = vadd.xlane.f32.xlu1 %v1873_v34 }
 0x4af   : > { %v3550_v27 = vsub.f32 %v3385_v2, %v1742_v20  ;;  %v1743_v49 = vmul.f32 0.03125, %v1694_v7  ;;  %v1864_v61 = vsel %vm379_vm0, %v1800_v11, 0.0  ;;  %v1801_v58 = vmul.f32 %v3544_v50, %v3544_v50 }
 0x4b0   : > { %1865 = vadd.xlane.f32.xlu0 %v1864_v61  ;;  %v1685_v33 = vpop.xlane.xlu0 %1684 }
 0x4b1   : > { %v3556_v46 = vsub.f32 %v3391_v41, %v1743_v49  ;;  %v1740_v40 = vmul.f32 0.03125, %v1685_v33  ;;  %v1867_v17 = vsel %vm379_vm0, %v1801_v58, 0.0  ;;  %v1806_v3 = vmul.f32 %v3550_v27, %v3550_v27 }
 0x4b2   : > { %v1688_v15 = vpop.xlane.xlu1 %1687  ;;  %1868 = vadd.xlane.f32.xlu1 %v1867_v17 }
 0x4b3   : > { %v3562_v2 = vsub.f32 %v3387_v39, %v1740_v40  ;;  %v1741_v23 = vmul.f32 0.03125, %v1688_v15  ;;  %v1882_v8 = vsel %vm379_vm0, %v1806_v3, 0.0  ;;  %v1807_v54 = vmul.f32 %v3556_v46, %v3556_v46 }
 0x4b4   : > { %1883 = vadd.xlane.f32.xlu0 %v1882_v8  ;;  %v1703_v41 = vpop.xlane.xlu0 %1702 }
 0x4b5   : > { %v3568_v19 = vsub.f32 %v3393_v37, %v1741_v23  ;;  %v1746_v26 = vmul.f32 0.03125, %v1703_v41  ;;  %v1885_v5 = vsel %vm379_vm0, %v1807_v54, 0.0  ;;  %v1804_v16 = vmul.f32 %v3562_v2, %v3562_v2 }
 0x4b6   : > { %v1706_v44 = vpop.xlane.xlu1 %1705  ;;  %1886 = vadd.xlane.f32.xlu1 %v1885_v5 }
 0x4b7   : > { %v3574_v39 = vsub.f32 %v3401_v4, %v1746_v26  ;;  %v1747_v12 = vmul.f32 0.03125, %v1706_v44  ;;  %v1876_v32 = vsel %vm379_vm0, %v1804_v16, 0.0  ;;  %v1805_v60 = vmul.f32 %v3568_v19, %v3568_v19 }
 0x4b8   : > { %1877 = vadd.xlane.f32.xlu0 %v1876_v32  ;;  %v1697_v37 = vpop.xlane.xlu0 %1696 }
 0x4b9   : > { %v3580_v43 = vsub.f32 %v3407_v6, %v1747_v12  ;;  %v1744_v21 = vmul.f32 0.03125, %v1697_v37  ;;  %v1879_v29 = vsel %vm379_vm0, %v1805_v60, 0.0  ;;  %v1810_v30 = vmul.f32 %v3574_v39, %v3574_v39 }
 0x4ba   : > { %v1700_v57 = vpop.xlane.xlu1 %1699  ;;  %1880 = vadd.xlane.f32.xlu1 %v1879_v29 }
 0x4bb   : > { %v3586_v4 = vsub.f32 %v3403_v13, %v1744_v21  ;;  %v1745_v31 = vmul.f32 0.03125, %v1700_v57  ;;  %v1894_v53 = vsel %vm379_vm0, %v1810_v30, 0.0  ;;  %v1811_v20 = vmul.f32 %v3580_v43, %v3580_v43 }
 0x4bc   : > { %1895 = vadd.xlane.f32.xlu0 %v1894_v53 }
 0x4bd   : > { %v3592_v6 = vsub.f32 %v3409_v55, %v1745_v31  ;;  %v1709_v34 = vpop.xlane.xlu0 %1708  ;;  %v1897_v11 = vsel %vm379_vm0, %v1811_v20, 0.0  ;;  %v1808_v7 = vmul.f32 %v3586_v4, %v3586_v4 }
 0x4be   : > { %v1748_v49 = vmul.f32 0.03125, %v1709_v34  ;;  %1898 = vadd.xlane.f32.xlu1 %v1897_v11 }
 0x4bf   : > { %v1712_v13 = vpop.xlane.xlu1 %1711  ;;  %v1888_v61 = vsel %vm379_vm0, %v1808_v7, 0.0  ;;  %v1809_v58 = vmul.f32 %v3592_v6, %v3592_v6 }
 0x4c0   : > { %v3601_v33 = vsub.f32 %v3419_v56, %v1748_v49  ;;  %v1749_v40 = vmul.f32 0.03125, %v1712_v13  ;;  %1889 = vadd.xlane.f32.xlu0 %v1888_v61 }
 0x4c1   : > { %v1715_v55 = vpop.xlane.xlu0 %1714  ;;  %v1891_v17 = vsel %vm379_vm0, %v1809_v58, 0.0 }
 0x4c2   : > { %v3605_v3 = vsub.f32 %v3425_v22, %v1749_v40  ;;  %v1750_v15 = vmul.f32 0.03125, %v1715_v55  ;;  %1892 = vadd.xlane.f32.xlu1 %v1891_v17  ;;  %v1812_v23 = vmul.f32 %v3601_v33, %v3601_v33 }
 0x4c3   : > { %v1718_v8 = vpop.xlane.xlu1 %1717 }
 0x4c4   : > { %v3610_v54 = vsub.f32 %v3417_v18, %v1750_v15  ;;  %v1751_v41 = vmul.f32 0.03125, %v1718_v8  ;;  %v1900_v56 = vsel %vm379_vm0, %v1812_v23, 0.0  ;;  %v1813_v26 = vmul.f32 %v3605_v3, %v3605_v3  ;;  %v3628_v23 = vld [vmem:[%s3813_s8] ss:$0 sm:$0xff] }
 0x4c5   : > { %1901 = vadd.xlane.f32.xlu0 %v1900_v56 }
 0x4c6   : > { %v3616_v5 = vsub.f32 %v3421_v62, %v1751_v41  ;;  %v1903_v22 = vsel %vm379_vm0, %v1813_v26, 0.0  ;;  %v1814_v16 = vmul.f32 %v3610_v54, %v3610_v54 }
 0x4c7   : > { %1904 = vadd.xlane.f32.xlu1 %v1903_v22 }
 0x4c8   : > { %v1906_v44 = vsel %vm379_vm0, %v1814_v16, 0.0  ;;  %v1815_v18 = vmul.f32 %v3616_v5, %v3616_v5  ;;  %v3634_v16 = vld [vmem:[%s3814_s9] ss:$0 sm:$0xff] }
 0x4c9   : > { %1907 = vadd.xlane.f32.xlu0 %v1906_v44 }
 0x4ca   : > { %v1909_v12 = vsel %vm379_vm0, %v1815_v18, 0.0 }
 0x4cb   : > { %1910 = vadd.xlane.f32.xlu1 %v1909_v12 }
 0x519   : > { %v1824_v32 = vpop.xlane.xlu0 %1823 }
 0x51a   : > { %v1914_v60 = vmul.f32 0.03125, %v1824_v32 }
 0x51b   : > { %v1827_v37 = vpop.xlane.xlu1 %1826 }
 0x51c   : > { %v1946_v62 = vadd.f32 1e-05, %v1914_v60  ;;  %v1915_v21 = vmul.f32 0.03125, %v1827_v37 }
 0x51d   : > { %v1818_v29 = vpop.xlane.xlu0 %1817 }
 0x51e   : > { %2584 = vrsqrt.f32 %v1946_v62  ;;  %v1947_v30 = vadd.f32 1e-05, %v1915_v21  ;;  %v1912_v57 = vmul.f32 0.03125, %v1818_v29 }
 0x51f   : > { %v1821_v31 = vpop.xlane.xlu1 %1820 }
 0x520   : > { %2586 = vrsqrt.f32 %v1947_v30  ;;  %v1944_v53 = vadd.f32 1e-05, %v1912_v57  ;;  %v1913_v20 = vmul.f32 0.03125, %v1821_v31 }
 0x521   : > { %v1836_v34 = vpop.xlane.xlu0 %1835 }
 0x522   : > { %2588 = vrsqrt.f32 %v1944_v53  ;;  %v1945_v11 = vadd.f32 1e-05, %v1913_v20  ;;  %v1918_v7 = vmul.f32 0.03125, %v1836_v34 }
 0x523   : > { %v1839_v49 = vpop.xlane.xlu1 %1838 }
 0x524   : > { %2590 = vrsqrt.f32 %v1945_v11  ;;  %v1950_v13 = vadd.f32 1e-05, %v1918_v7  ;;  %v1919_v61 = vmul.f32 0.03125, %v1839_v49 }
 0x525   : > { %v1830_v58 = vpop.xlane.xlu0 %1829 }
 0x526   : > { %2592 = vrsqrt.f32 %v1950_v13  ;;  %v1951_v40 = vadd.f32 1e-05, %v1919_v61  ;;  %v1916_v55 = vmul.f32 0.03125, %v1830_v58 }
 0x527   : > { %v1833_v17 = vpop.xlane.xlu1 %1832 }
 0x528   : > { %v2585_v15 = vpop.eup %2584  ;;  %2594 = vrsqrt.f32 %v1951_v40  ;;  %v1948_v8 = vadd.f32 1e-05, %v1916_v55  ;;  %v1917_v41 = vmul.f32 0.03125, %v1833_v17 }
 0x529   : > { %v2010_v56 = vmul.f32 %v2585_v15, %v3434_v38  ;;  %v1848_v26 = vpop.xlane.xlu0 %1847 }
 0x52a   : > { %v2587_v22 = vpop.eup %2586  ;;  %2596 = vrsqrt.f32 %v1948_v8  ;;  %v1949_v44 = vadd.f32 1e-05, %v1917_v41  ;;  %v1922_v18 = vmul.f32 0.03125, %v1848_v26 }
 0x52b   : > { %v2048_v12 = vmul.f32 %v3628_v23, %v2010_v56  ;;  %v2011_v32 = vmul.f32 %v2587_v22, %v3437_v52  ;;  %v1851_v60 = vpop.xlane.xlu1 %1850 }
 0x52c   : > { %v2589_v37 = vpop.eup %2588  ;;  %2598 = vrsqrt.f32 %v1949_v44  ;;  %v1954_v38 = vadd.f32 1e-05, %v1922_v18  ;;  %v1923_v62 = vmul.f32 0.03125, %v1851_v60 }
 0x52d   : > { %v2086_v21 = vadd.f32 %v3634_v16, %v2048_v12  ;;  %v2049_v29 = vmul.f32 %v3628_v23, %v2011_v32  ;;  %v2008_v30 = vmul.f32 %v2589_v37, %v3442_v51  ;;  %v1842_v52 = vpop.xlane.xlu0 %1841 }
 0x52e   : > { %v2591_v57 = vpop.eup %2590  ;;  %2600 = vrsqrt.f32 %v1954_v38  ;;  %v1955_v31 = vadd.f32 1e-05, %v1923_v62  ;;  %v1920_v53 = vmul.f32 0.03125, %v1842_v52 }
 0x52f   : > { %2118 = vst.msk [vmem:[%s3643_s16 + $0x10] sm:$0xff] %vm379_vm0, %v2086_v21  ;;  %v2087_v20 = vadd.f32 %v3634_v16, %v2049_v29  ;;  %v2046_v34 = vmul.f32 %v3628_v23, %v2008_v30  ;;  %v2009_v11 = vmul.f32 %v2591_v57, %v3448_v35  ;;  %v1845_v7 = vpop.xlane.xlu1 %1844 }
 0x530   : > { %v2593_v49 = vpop.eup %2592  ;;  %2602 = vrsqrt.f32 %v1955_v31  ;;  %v1952_v13 = vadd.f32 1e-05, %v1920_v53  ;;  %v1921_v61 = vmul.f32 0.03125, %v1845_v7 }
 0x531   : > { %2119 = vst.msk [vmem:[%s3643_s16 + $0x18] sm:$0xff] %vm379_vm0, %v2087_v20  ;;  %v2084_v51 = vadd.f32 %v3634_v16, %v2046_v34  ;;  %v2047_v58 = vmul.f32 %v3628_v23, %v2009_v11  ;;  %v2014_v40 = vmul.f32 %v2593_v49, %v3454_v36  ;;  %v1860_v55 = vpop.xlane.xlu0 %1859 }
 0x532   : > { %v2595_v17 = vpop.eup %2594  ;;  %2604 = vrsqrt.f32 %v1952_v13  ;;  %v1953_v15 = vadd.f32 1e-05, %v1921_v61  ;;  %v1926_v8 = vmul.f32 0.03125, %v1860_v55 }
 0x533   : > { %2116 = vst.msk [vmem:[%s3643_s16] sm:$0xff] %vm379_vm0, %v2084_v51  ;;  %v2085_v35 = vadd.f32 %v3634_v16, %v2047_v58  ;;  %v2052_v41 = vmul.f32 %v3628_v23, %v2014_v40  ;;  %v2015_v56 = vmul.f32 %v2595_v17, %v3460_v9  ;;  %v1863_v26 = vpop.xlane.xlu1 %1862 }
 0x534   : > { %v2597_v22 = vpop.eup %2596  ;;  %2606 = vrsqrt.f32 %v1953_v15  ;;  %v1958_v44 = vadd.f32 1e-05, %v1926_v8  ;;  %v1927_v18 = vmul.f32 0.03125, %v1863_v26 }
 0x535   : > { %2117 = vst.msk [vmem:[%s3643_s16 + $0x8] sm:$0xff] %vm379_vm0, %v2085_v35  ;;  %v2090_v36 = vadd.f32 %v3634_v16, %v2052_v41  ;;  %v2053_v12 = vmul.f32 %v3628_v23, %v2015_v56  ;;  %v2012_v32 = vmul.f32 %v2597_v22, %v3466_v48  ;;  %v1854_v60 = vpop.xlane.xlu0 %1853 }
 0x536   : > { %v2599_v37 = vpop.eup %2598  ;;  %2608 = vrsqrt.f32 %v1958_v44  ;;  %v1959_v38 = vadd.f32 1e-05, %v1927_v18  ;;  %v1924_v62 = vmul.f32 0.03125, %v1854_v60 }
 0x537   : > { %2122 = vst.msk [vmem:[%s3643_s16 + $0x30] sm:$0xff] %vm379_vm0, %v2090_v36  ;;  %v2091_v9 = vadd.f32 %v3634_v16, %v2053_v12  ;;  %v2050_v21 = vmul.f32 %v3628_v23, %v2012_v32  ;;  %v2013_v29 = vmul.f32 %v2599_v37, %v3472_v59  ;;  %v1857_v30 = vpop.xlane.xlu1 %1856 }
 0x538   : > { %v2601_v52 = vpop.eup %2600  ;;  %2610 = vrsqrt.f32 %v1959_v38  ;;  %v1956_v57 = vadd.f32 1e-05, %v1924_v62  ;;  %v1925_v31 = vmul.f32 0.03125, %v1857_v30 }
 0x539   : > { %2123 = vst.msk [vmem:[%s3643_s16 + $0x38] sm:$0xff] %vm379_vm0, %v2091_v9  ;;  %v2088_v48 = vadd.f32 %v3634_v16, %v2050_v21  ;;  %v2051_v53 = vmul.f32 %v3628_v23, %v2013_v29  ;;  %v2018_v20 = vmul.f32 %v2601_v52, %v3478_v42  ;;  %v1872_v34 = vpop.xlane.xlu0 %1871 }
 0x53a   : > { %v2603_v11 = vpop.eup %2602  ;;  %2612 = vrsqrt.f32 %v1956_v57  ;;  %v1957_v7 = vadd.f32 1e-05, %v1925_v31  ;;  %v1930_v49 = vmul.f32 0.03125, %v1872_v34 }
 0x53b   : > { %2120 = vst.msk [vmem:[%s3643_s16 + $0x20] sm:$0xff] %vm379_vm0, %v2088_v48  ;;  %v2089_v59 = vadd.f32 %v3634_v16, %v2051_v53  ;;  %v2056_v13 = vmul.f32 %v3628_v23, %v2018_v20  ;;  %v2019_v61 = vmul.f32 %v2603_v11, %v3484_v10  ;;  %v1875_v51 = vpop.xlane.xlu1 %1874 }
 0x53c   : > { %v2605_v58 = vpop.eup %2604  ;;  %2614 = vrsqrt.f32 %v1957_v7  ;;  %v1962_v40 = vadd.f32 1e-05, %v1930_v49  ;;  %v1931_v55 = vmul.f32 0.03125, %v1875_v51 }
 0x53d   : > { %2121 = vst.msk [vmem:[%s3643_s16 + $0x28] sm:$0xff] %vm379_vm0, %v2089_v59  ;;  %v2094_v42 = vadd.f32 %v3634_v16, %v2056_v13  ;;  %v2057_v17 = vmul.f32 %v3628_v23, %v2019_v61  ;;  %v2016_v15 = vmul.f32 %v2605_v58, %v3490_v24  ;;  %v1866_v8 = vpop.xlane.xlu0 %1865 }
 0x53e   : > { %v2607_v35 = vpop.eup %2606  ;;  %2616 = vrsqrt.f32 %v1962_v40  ;;  %v1963_v41 = vadd.f32 1e-05, %v1931_v55  ;;  %v1928_v56 = vmul.f32 0.03125, %v1866_v8 }
 0x53f   : > { %2126 = vst.msk [vmem:[%s3643_s16 + $0x50] sm:$0xff] %vm379_vm0, %v2094_v42  ;;  %v2095_v10 = vadd.f32 %v3634_v16, %v2057_v17  ;;  %v2054_v26 = vmul.f32 %v3628_v23, %v2016_v15  ;;  %v2017_v22 = vmul.f32 %v2607_v35, %v3496_v25  ;;  %v1869_v44 = vpop.xlane.xlu1 %1868 }
 0x540   : > { %v2609_v18 = vpop.eup %2608  ;;  %2618 = vrsqrt.f32 %v1963_v41  ;;  %v1960_v36 = vadd.f32 1e-05, %v1928_v56  ;;  %v1929_v12 = vmul.f32 0.03125, %v1869_v44 }
 0x541   : > { %2127 = vst.msk [vmem:[%s3643_s16 + $0x58] sm:$0xff] %vm379_vm0, %v2095_v10  ;;  %v2092_v24 = vadd.f32 %v3634_v16, %v2054_v26  ;;  %v2055_v32 = vmul.f32 %v3628_v23, %v2017_v22  ;;  %v2022_v60 = vmul.f32 %v2609_v18, %v3502_v1  ;;  %v1884_v37 = vpop.xlane.xlu0 %1883 }
 0x542   : > { %v2611_v38 = vpop.eup %2610  ;;  %2620 = vrsqrt.f32 %v1960_v36  ;;  %v1961_v62 = vadd.f32 1e-05, %v1929_v12  ;;  %v1934_v9 = vmul.f32 0.03125, %v1884_v37 }
 0x543   : > { %2124 = vst.msk [vmem:[%s3643_s16 + $0x40] sm:$0xff] %vm379_vm0, %v2092_v24  ;;  %v2093_v25 = vadd.f32 %v3634_v16, %v2055_v32  ;;  %v2060_v21 = vmul.f32 %v3628_v23, %v2022_v60  ;;  %v2023_v29 = vmul.f32 %v2611_v38, %v3508_v63  ;;  %v1887_v30 = vpop.xlane.xlu1 %1886 }
 0x544   : > { %v2613_v52 = vpop.eup %2612  ;;  %2622 = vrsqrt.f32 %v1961_v62  ;;  %v1966_v57 = vadd.f32 1e-05, %v1934_v9  ;;  %v1935_v31 = vmul.f32 0.03125, %v1887_v30 }
 0x545   : > { %2125 = vst.msk [vmem:[%s3643_s16 + $0x48] sm:$0xff] %vm379_vm0, %v2093_v25  ;;  %v2098_v1 = vadd.f32 %v3634_v16, %v2060_v21  ;;  %v2061_v48 = vmul.f32 %v3628_v23, %v2023_v29  ;;  %v2020_v53 = vmul.f32 %v2613_v52, %v3514_v45  ;;  %v1878_v20 = vpop.xlane.xlu0 %1877 }
 0x546   : > { %v2615_v34 = vpop.eup %2614  ;;  %2624 = vrsqrt.f32 %v1966_v57  ;;  %v1967_v11 = vadd.f32 1e-05, %v1935_v31  ;;  %v1932_v7 = vmul.f32 0.03125, %v1878_v20 }
 0x547   : > { %2130 = vst.msk [vmem:[%s3643_s16 + $0x70] sm:$0xff] %vm379_vm0, %v2098_v1  ;;  %v2099_v63 = vadd.f32 %v3634_v16, %v2061_v48  ;;  %v2058_v49 = vmul.f32 %v3628_v23, %v2020_v53  ;;  %v2021_v59 = vmul.f32 %v2615_v34, %v3520_v47  ;;  %v1881_v13 = vpop.xlane.xlu1 %1880 }
 0x548   : > { %v2617_v61 = vpop.eup %2616  ;;  %2626 = vrsqrt.f32 %v1967_v11  ;;  %v1964_v51 = vadd.f32 1e-05, %v1932_v7  ;;  %v1933_v58 = vmul.f32 0.03125, %v1881_v13 }
 0x549   : > { %2131 = vst.msk [vmem:[%s3643_s16 + $0x78] sm:$0xff] %vm379_vm0, %v2099_v63  ;;  %v2096_v45 = vadd.f32 %v3634_v16, %v2058_v49  ;;  %v2059_v40 = vmul.f32 %v3628_v23, %v2021_v59  ;;  %v2026_v55 = vmul.f32 %v2617_v61, %v3526_v14  ;;  %v1896_v42 = vpop.xlane.xlu0 %1895 }
 0x54a   : > { %v2619_v17 = vpop.eup %2618  ;;  %2628 = vrsqrt.f32 %v1964_v51  ;;  %v1965_v15 = vadd.f32 1e-05, %v1933_v58  ;;  %v1938_v8 = vmul.f32 0.03125, %v1896_v42 }
 0x54b   : > { %2128 = vst.msk [vmem:[%s3643_s16 + $0x60] sm:$0xff] %vm379_vm0, %v2096_v45  ;;  %v2097_v47 = vadd.f32 %v3634_v16, %v2059_v40  ;;  %v2064_v35 = vmul.f32 %v3628_v23, %v2026_v55  ;;  %v2027_v41 = vmul.f32 %v2619_v17, %v3532_v0  ;;  %v1899_v56 = vpop.xlane.xlu1 %1898 }
 0x54c   : > { %v2621_v10 = vpop.eup %2620  ;;  %2630 = vrsqrt.f32 %v1965_v15  ;;  %v1970_v26 = vadd.f32 1e-05, %v1938_v8  ;;  %v1939_v22 = vmul.f32 0.03125, %v1899_v56 }
 0x54d   : > { %2129 = vst.msk [vmem:[%s3643_s16 + $0x68] sm:$0xff] %vm379_vm0, %v2097_v47  ;;  %v2102_v14 = vadd.f32 %v3634_v16, %v2064_v35  ;;  %v2065_v44 = vmul.f32 %v3628_v23, %v2027_v41  ;;  %v2024_v18 = vmul.f32 %v2621_v10, %v3538_v28  ;;  %v1890_v36 = vpop.xlane.xlu0 %1889 }
 0x54e   : > { %v2623_v12 = vpop.eup %2622  ;;  %2632 = vrsqrt.f32 %v1970_v26  ;;  %v1971_v24 = vadd.f32 1e-05, %v1939_v22  ;;  %v1936_v32 = vmul.f32 0.03125, %v1890_v36 }
 0x54f   : > { %2134 = vst.msk [vmem:[%s3643_s16 + $0x90] sm:$0xff] %vm379_vm0, %v2102_v14  ;;  %v2103_v0 = vadd.f32 %v3634_v16, %v2065_v44  ;;  %v2062_v60 = vmul.f32 %v3628_v23, %v2024_v18  ;;  %v2025_v37 = vmul.f32 %v2623_v12, %v3544_v50  ;;  %v1893_v38 = vpop.xlane.xlu1 %1892 }
 0x550   : > { %v2625_v62 = vpop.eup %2624  ;;  %2634 = vrsqrt.f32 %v1971_v24  ;;  %v1968_v9 = vadd.f32 1e-05, %v1936_v32  ;;  %v1937_v25 = vmul.f32 0.03125, %v1893_v38 }
 0x551   : > { %2135 = vst.msk [vmem:[%s3643_s16 + $0x98] sm:$0xff] %vm379_vm0, %v2103_v0  ;;  %v2100_v28 = vadd.f32 %v3634_v16, %v2062_v60  ;;  %v2063_v21 = vmul.f32 %v3628_v23, %v2025_v37  ;;  %v2030_v29 = vmul.f32 %v2625_v62, %v3550_v27 }
 0x552   : > { %v2627_v30 = vpop.eup %2626  ;;  %2636 = vrsqrt.f32 %v1968_v9  ;;  %v1969_v52 = vadd.f32 1e-05, %v1937_v25  ;;  %v1902_v57 = vpop.xlane.xlu0 %1901 }
 0x553   : > { %2132 = vst.msk [vmem:[%s3643_s16 + $0x80] sm:$0xff] %vm379_vm0, %v2100_v28  ;;  %v2101_v50 = vadd.f32 %v3634_v16, %v2063_v21  ;;  %v2068_v31 = vmul.f32 %v3628_v23, %v2030_v29  ;;  %v2031_v1 = vmul.f32 %v2627_v30, %v3556_v46  ;;  %v1940_v48 = vmul.f32 0.03125, %v1902_v57 }
 0x554   : > { %v2629_v53 = vpop.eup %2628  ;;  %2638 = vrsqrt.f32 %v1969_v52  ;;  %v1905_v20 = vpop.xlane.xlu1 %1904 }
 0x555   : > { %2133 = vst.msk [vmem:[%s3643_s16 + $0x88] sm:$0xff] %vm379_vm0, %v2101_v50  ;;  %v2106_v27 = vadd.f32 %v3634_v16, %v2068_v31  ;;  %v2069_v34 = vmul.f32 %v3628_v23, %v2031_v1  ;;  %v2028_v11 = vmul.f32 %v2629_v53, %v3562_v2  ;;  %v1972_v7 = vadd.f32 1e-05, %v1940_v48 }
 0x556   : > { %v2631_v63 = vpop.eup %2630  ;;  %v1941_v49 = vmul.f32 0.03125, %v1905_v20  ;;  %v1908_v59 = vpop.xlane.xlu0 %1907 }
 0x557   : > { %2138 = vst.msk [vmem:[%s3643_s16 + $0xb0] sm:$0xff] %vm379_vm0, %v2106_v27  ;;  %v2107_v46 = vadd.f32 %v3634_v16, %v2069_v34  ;;  %v2066_v13 = vmul.f32 %v3628_v23, %v2028_v11  ;;  %v2029_v61 = vmul.f32 %v2631_v63, %v3568_v19  ;;  %2640 = vrsqrt.f32 %v1972_v7 }
 0x558   : > { %v2633_v51 = vpop.eup %2632  ;;  %v1973_v58 = vadd.f32 1e-05, %v1941_v49  ;;  %v1942_v45 = vmul.f32 0.03125, %v1908_v59  ;;  %v1911_v40 = vpop.xlane.xlu1 %1910 }
 0x559   : > { %2139 = vst.msk [vmem:[%s3643_s16 + $0xb8] sm:$0xff] %vm379_vm0, %v2107_v46  ;;  %v2104_v2 = vadd.f32 %v3634_v16, %v2066_v13  ;;  %v2067_v55 = vmul.f32 %v3628_v23, %v2029_v61  ;;  %v2034_v42 = vmul.f32 %v2633_v51, %v3574_v39  ;;  %v1943_v17 = vmul.f32 0.03125, %v1911_v40 }
 0x55a   : > { %v2635_v15 = vpop.eup %2634  ;;  %2642 = vrsqrt.f32 %v1973_v58  ;;  %v1974_v8 = vadd.f32 1e-05, %v1942_v45 }
 0x55b   : > { %2136 = vst.msk [vmem:[%s3643_s16 + $0xa0] sm:$0xff] %vm379_vm0, %v2104_v2  ;;  %v2105_v19 = vadd.f32 %v3634_v16, %v2067_v55  ;;  %v2072_v47 = vmul.f32 %v3628_v23, %v2034_v42  ;;  %v2035_v35 = vmul.f32 %v2635_v15, %v3580_v43  ;;  %v1975_v41 = vadd.f32 1e-05, %v1943_v17 }
 0x55c   : > { %v2637_v56 = vpop.eup %2636  ;;  %2644 = vrsqrt.f32 %v1974_v8 }
 0x55d   : > { %2137 = vst.msk [vmem:[%s3643_s16 + $0xa8] sm:$0xff] %vm379_vm0, %v2105_v19  ;;  %v2110_v39 = vadd.f32 %v3634_v16, %v2072_v47  ;;  %v2073_v10 = vmul.f32 %v3628_v23, %v2035_v35  ;;  %v2032_v26 = vmul.f32 %v2637_v56, %v3586_v4  ;;  %2646 = vrsqrt.f32 %v1975_v41 }
 0x55e   : > { %v2639_v22 = vpop.eup %2638 }
 0x55f   : > { %2142 = vst.msk [vmem:[%s3643_s16 + $0xd0] sm:$0xff] %vm379_vm0, %v2110_v39  ;;  %v2111_v14 = vadd.f32 %v3634_v16, %v2073_v10  ;;  %v2070_v43 = vmul.f32 %v3628_v23, %v2032_v26  ;;  %v2033_v44 = vmul.f32 %v2639_v22, %v3592_v6 }
 0x561   : > { %v2641_v18 = vpop.eup %2640  ;;  %2143 = vst.msk [vmem:[%s3643_s16 + $0xd8] sm:$0xff] %vm379_vm0, %v2111_v14  ;;  %v2108_v36 = vadd.f32 %v3634_v16, %v2070_v43  ;;  %v2071_v12 = vmul.f32 %v3628_v23, %v2033_v44 }
 0x562   : > { %v2036_v4 = vmul.f32 %v2641_v18, %v3601_v33 }
 0x563   : > { %2140 = vst.msk [vmem:[%s3643_s16 + $0xc0] sm:$0xff] %vm379_vm0, %v2108_v36  ;;  %v2109_v24 = vadd.f32 %v3634_v16, %v2071_v12 }
 0x564   : > { %v2643_v32 = vpop.eup %2642  ;;  %v2074_v0 = vmul.f32 %v3628_v23, %v2036_v4 }
 0x565   : > { %2141 = vst.msk [vmem:[%s3643_s16 + $0xc8] sm:$0xff] %vm379_vm0, %v2109_v24  ;;  %v2037_v6 = vmul.f32 %v2643_v32, %v3605_v3 }
 0x566   : > { %v2645_v60 = vpop.eup %2644  ;;  %v2112_v37 = vadd.f32 %v3634_v16, %v2074_v0 }
 0x567   : > { %v2647_v38 = vpop.eup %2646  ;;  %v2075_v33 = vmul.f32 %v3628_v23, %v2037_v6  ;;  %v2038_v62 = vmul.f32 %v2645_v60, %v3610_v54 }
 0x568   : > { %2144 = vst.msk [vmem:[%s3643_s16 + $0xe0] sm:$0xff] %vm379_vm0, %v2112_v37  ;;  %v2039_v9 = vmul.f32 %v2647_v38, %v3616_v5 }
 0x569   : > { %v2113_v25 = vadd.f32 %v3634_v16, %v2075_v33  ;;  %v2076_v28 = vmul.f32 %v3628_v23, %v2038_v62 }
 0x56a   : > { %v2077_v21 = vmul.f32 %v3628_v23, %v2039_v9 }
 0x56b   : > { %2145 = vst.msk [vmem:[%s3643_s16 + $0xe8] sm:$0xff] %vm379_vm0, %v2113_v25  ;;  %v2114_v3 = vadd.f32 %v3634_v16, %v2076_v28 }
 0x56c   : > { %v2115_v29 = vadd.f32 %v3634_v16, %v2077_v21 }
 0x56d   : > { %2146 = vst.msk [vmem:[%s3643_s16 + $0xf0] sm:$0xff] %vm379_vm0, %v2114_v3 }
 0x56e   : > { %2147 = vst.msk [vmem:[%s3643_s16 + $0xf8] sm:$0xff] %vm379_vm0, %v2115_v29 }
 0x56f PF: > { %s20_s13 = sadd.s32 1, %s2654_s13  }
 0x570   : > { %p17_p4 = scmp.ge.s32.totalorder %s20_s13, 4  }
 0x572   :  { %19 = sbr.rel (!%p17_p4) target bundleno = 1 (0x1), region = 90 }

</bundles_post_ra>
